<compile_context>
chip_gen: v5e
topology: v5e:2x2
jax: 0.10.0
libtpu: 0.0.40
codegen_flags: <defaults>
</compile_context>

<pallas_src>
import functools

import jax
import jax.numpy as jnp
from jax.experimental import pallas as pl
from jax.experimental.pallas import tpu as pltpu

BN_EPS = 0.8
LEAK = 0.2


def _round_up(n, m):
  return (n + m - 1) // m * m


def _vector_segments(dims):
  """(offset, width) for b1, then (gamma_i, beta_i) for blocks 2..5, packed
  into one f32 row with every segment start lane-aligned (multiple of 128)."""
  widths = [dims[1]]                       # b1
  for d in dims[2:]:
    widths += [d, d]                       # gamma_i, beta_i
  segs, off = [], 0
  for w in widths:
    segs.append((off, w))
    off += _round_up(w, 128)
  return tuple(segs), _round_up(off, 128)


def _leaky_relu(x):
  return jnp.where(x > 0, x, LEAK * x)


def _bn_leaky_relu(y, gamma, beta):
  """Training-mode BatchNorm1d (biased batch stats, eps=0.8) + LeakyReLU(0.2).

  Single-pass statistics: var = E[y^2] - E[y]^2 (safe because eps=0.8
  dominates any cancellation error)."""
  mean = jnp.mean(y, axis=0, keepdims=True)
  var = jnp.mean(y * y, axis=0, keepdims=True) - mean * mean
  y_hat = (y - mean) * jax.lax.rsqrt(var + BN_EPS)
  return _leaky_relu(y_hat * gamma + beta)


def _fused_generator_kernel(segs,
                            x_ref, w1_ref, w2_ref, w3_ref,
                            w4_hbm_ref, w5_hbm_ref, vec_ref,
                            o_ref,
                            w4_vmem, w5_vmem, dma_sems):
  """Whole generator in one kernel; activations stay in VMEM/vregs.

  segs: static tuple of (offset, width) for the packed vector params, in
  order (b1, g2, bt2, g3, bt3, g4, bt4, g5, bt5).
  """
  # Kick off the two big weight DMAs immediately so blocks 1-3 compute
  # overlaps with them.  w4 first: it is needed first.
  cp4 = pltpu.make_async_copy(w4_hbm_ref, w4_vmem, dma_sems.at[0])
  cp4.start()
  cp5 = pltpu.make_async_copy(w5_hbm_ref, w5_vmem, dma_sems.at[1])
  cp5.start()

  (b1_s, g2_s, bt2_s, g3_s, bt3_s, g4_s, bt4_s, g5_s, bt5_s) = segs

  def vec(seg):
    off, width = seg
    return vec_ref[:, off:off + width]     # static slice: zero runtime cost

  # Block 1: Linear -> LeakyReLU (no BN, so the bias is kept).
  h = x_ref[...].astype(jnp.bfloat16)
  y = jnp.dot(h, w1_ref[...], preferred_element_type=jnp.float32)
  h = _leaky_relu(y + vec(b1_s))

  # Block 2: Linear -> BN(train, eps=0.8) -> LeakyReLU.  (The Linear bias is
  # a per-feature constant and cancels exactly in the BN mean subtraction.)
  y = jnp.dot(h.astype(jnp.bfloat16), w2_ref[...],
              preferred_element_type=jnp.float32)
  h = _bn_leaky_relu(y, vec(g2_s), vec(bt2_s))

  # Block 3.
  y = jnp.dot(h.astype(jnp.bfloat16), w3_ref[...],
              preferred_element_type=jnp.float32)
  h = _bn_leaky_relu(y, vec(g3_s), vec(bt3_s))

  # Block 4: wait for w4 only now -- blocks 1-3 ran under its DMA.
  cp4.wait()
  y = jnp.dot(h.astype(jnp.bfloat16), w4_vmem[...],
              preferred_element_type=jnp.float32)
  h = _bn_leaky_relu(y, vec(g4_s), vec(bt4_s))

  # Block 5: wait for w5 only now.
  cp5.wait()
  y = jnp.dot(h.astype(jnp.bfloat16), w5_vmem[...],
              preferred_element_type=jnp.float32)
  h = _bn_leaky_relu(y, vec(g5_s), vec(bt5_s))

  # Final Tanh.
  o_ref[...] = jnp.tanh(h)


def init_params(key, num_latent, num_channels, image_h, image_w):
  """Synthetic parameters matching the PyTorch module's shapes.

  Returns:
    weights : list of 5 (in, out) bf16 weight matrices.
    vec     : (1, total) f32 packed row holding b1 and gamma/beta of blocks
              2-5 (lane-aligned segments).
    ref     : f32 copies of every bias/gamma/beta for the pure-JAX check
              (incl. the block 2-5 biases the kernel legitimately drops).
  """
  dims = [num_latent, 128, 256, 512, 1024, num_channels * image_h * image_w]
  segs, total = _vector_segments(dims)

  weights, biases, gammas, betas = [], [], [], []
  vec = jnp.zeros((1, total), jnp.float32)
  seg_iter = iter(segs)
  for i in range(len(dims) - 1):
    key, kw, kb = jax.random.split(key, 3)
    fan_in, fan_out = dims[i], dims[i + 1]
    scale = 1.0 / jnp.sqrt(jnp.float32(fan_in))
    w = jax.random.uniform(kw, (fan_in, fan_out), jnp.float32, -scale, scale)
    b = jax.random.uniform(kb, (1, fan_out), jnp.float32, -scale, scale)
    weights.append(w.astype(jnp.bfloat16))
    biases.append(b)
    if i == 0:
      off, width = next(seg_iter)
      vec = vec.at[:, off:off + width].set(b)       # b1 is actually used
    else:
      g = jnp.ones((1, fan_out), jnp.float32)       # BN affine init
      bt = jnp.zeros((1, fan_out), jnp.float32)
      gammas.append(g)
      betas.append(bt)
      off, width = next(seg_iter)
      vec = vec.at[:, off:off + width].set(g)
      off, width = next(seg_iter)
      vec = vec.at[:, off:off + width].set(bt)
  return {"weights": weights, "vec": vec,
          "ref": {"b": biases, "gamma": gammas, "beta": betas}}


def baseline_generator_forward(x, weights, vec, num_channels, image_h, image_w):
  """Forward pass. x: latent, shape (B, num_latent, 1, 1) or (B, num_latent)."""
  batch = x.shape[0]
  h = x.reshape(batch, -1).astype(jnp.float32)      # torch .squeeze()

  w1, w2, w3, w4, w5 = weights
  out_features = w5.shape[1]
  dims = [w1.shape[0]] + [w.shape[1] for w in weights]
  segs, _ = _vector_segments(dims)

  kernel = functools.partial(_fused_generator_kernel, segs)

  vmem_spec = pl.BlockSpec(memory_space=pltpu.MemorySpace.VMEM)
  hbm_spec = pl.BlockSpec(memory_space=pl.ANY)      # manual DMA inside kernel

  out = pl.pallas_call(
      kernel,
      out_shape=jax.ShapeDtypeStruct((batch, out_features), jnp.float32),
      in_specs=[vmem_spec,            # x
                vmem_spec,            # w1  (8 KB)
                vmem_spec,            # w2  (64 KB)
                vmem_spec,            # w3  (256 KB)
                hbm_spec,             # w4  (1 MB) -> async copy in kernel
                hbm_spec,             # w5  (2 MB) -> async copy in kernel
                vmem_spec],           # packed vector params (1 DMA)
      out_specs=vmem_spec,
      scratch_shapes=[
          pltpu.VMEM(w4.shape, jnp.bfloat16),
          pltpu.VMEM(w5.shape, jnp.bfloat16),
          pltpu.SemaphoreType.DMA((2,)),
      ],
      compiler_params=pltpu.CompilerParams(
          # Real footprint < 4 MiB; 12 MiB gives headroom without starving
          # neighbouring fusions (esp. on v7x's 64 MiB physical VMEM).
          vmem_limit_bytes=12 * 1024 * 1024),
  )(h, w1, w2, w3, w4, w5, vec)

  return out.reshape(batch, num_channels, image_h, image_w)


def reference_forward(x, params, num_channels, image_h, image_w):
  """Pure-JAX reference of the PyTorch module (training-mode BN), using the
  same bf16 matmul casts as the kernel but keeping the block 2-5 Linear
  biases and the two-pass variance -- this also validates the kernel's
  bias-cancellation and single-pass-variance tricks numerically."""
  batch = x.shape[0]
  h = x.reshape(batch, -1).astype(jnp.float32)
  ws = params["weights"]
  bs = params["ref"]["b"]
  gs = params["ref"]["gamma"]
  bts = params["ref"]["beta"]

  y = jnp.dot(h.astype(jnp.bfloat16), ws[0],
              preferred_element_type=jnp.float32) + bs[0]
  h = jnp.where(y > 0, y, LEAK * y)
  for i in range(1, 5):
    y = jnp.dot(h.astype(jnp.bfloat16), ws[i],
                preferred_element_type=jnp.float32) + bs[i]
    mean = jnp.mean(y, axis=0, keepdims=True)
    var = jnp.var(y, axis=0, keepdims=True)          # biased, training-mode BN
    y = (y - mean) / jnp.sqrt(var + BN_EPS) * gs[i - 1] + bts[i - 1]
    h = jnp.where(y > 0, y, LEAK * y)
  h = jnp.tanh(h)
  return h.reshape(batch, num_channels, image_h, image_w)


if __name__ == "__main__":
  # Small config consistent with the module: NUM_LATENT=32, NUM_CHANNELS=4,
  # IMAGE_SIZE=(16, 16) -> final linear width = 4*16*16 = 1024.
  NUM_LATENT = 32
  NUM_CHANNELS = 4
  IMAGE_H, IMAGE_W = 16, 16
  BATCH = 2

  key = jax.random.PRNGKey(0)
  key, k_x = jax.random.split(key)
  x = jax.random.normal(k_x, (BATCH, NUM_LATENT, 1, 1), jnp.float32)

  params = init_params(key, NUM_LATENT, NUM_CHANNELS, IMAGE_H, IMAGE_W)

  fwd = jax.jit(functools.partial(
      baseline_generator_forward,
      num_channels=NUM_CHANNELS, image_h=IMAGE_H, image_w=IMAGE_W))

  out = fwd(x, params["weights"], params["vec"])
  out = jax.block_until_ready(out)

  ref = reference_forward(x, params, NUM_CHANNELS, IMAGE_H, IMAGE_W)

  assert out.shape == (BATCH, NUM_CHANNELS, IMAGE_H, IMAGE_W), out.shape
  assert bool(jnp.all(jnp.isfinite(out)))
  assert bool(jnp.all(jnp.abs(out) <= 1.0 + 1e-5))   # tanh output range
  max_err = float(jnp.max(jnp.abs(out - ref)))
  assert max_err < 2e-2, f"mismatch vs reference: {max_err}"
  print("KERNEL_OK")
</pallas_src>

<mosaic_0001>
module attributes {stable_mosaic.version = 11 : i64} {
  func.func @_fused_generator_kernel(%arg0: memref<2x32xf32, #tpu.memory_space<vmem>>, %arg1: memref<32x128xbf16, #tpu.memory_space<vmem>>, %arg2: memref<128x256xbf16, #tpu.memory_space<vmem>>, %arg3: memref<256x512xbf16, #tpu.memory_space<vmem>>, %arg4: memref<512x1024xbf16, #tpu.memory_space<any>>, %arg5: memref<1024x1024xbf16, #tpu.memory_space<any>>, %arg6: memref<1x5760xf32, #tpu.memory_space<vmem>>, %arg7: memref<2x1024xf32, #tpu.memory_space<vmem>>, %arg8: memref<512x1024xbf16, #tpu.memory_space<vmem>>, %arg9: memref<1024x1024xbf16, #tpu.memory_space<vmem>>, %arg10: memref<2x!tpu.dma_semaphore, #tpu.memory_space<semaphore_mem>>) attributes {dimension_semantics = [], scalar_prefetch = 0 : i64, scratch_operands = 3 : i64, tpu.core_type = #tpu.core_type<tc>} {
    %c0_i32 = arith.constant 0 : i32
    %0 = tpu.memref_slice %arg10[%c0_i32] : memref<2x!tpu.dma_semaphore, #tpu.memory_space<semaphore_mem>> -> memref<1x!tpu.dma_semaphore, #tpu.memory_space<semaphore_mem>>
    %1 = tpu.memref_squeeze %0 : memref<1x!tpu.dma_semaphore, #tpu.memory_space<semaphore_mem>> -> memref<!tpu.dma_semaphore, #tpu.memory_space<semaphore_mem>>
    tpu.enqueue_dma source(%arg4 : memref<512x1024xbf16, #tpu.memory_space<any>>) target(%arg8 : memref<512x1024xbf16, #tpu.memory_space<vmem>>) target_semaphore(%1 : memref<!tpu.dma_semaphore, #tpu.memory_space<semaphore_mem>>)
    %c1_i32 = arith.constant 1 : i32
    %2 = tpu.memref_slice %arg10[%c1_i32] : memref<2x!tpu.dma_semaphore, #tpu.memory_space<semaphore_mem>> -> memref<1x!tpu.dma_semaphore, #tpu.memory_space<semaphore_mem>>
    %3 = tpu.memref_squeeze %2 : memref<1x!tpu.dma_semaphore, #tpu.memory_space<semaphore_mem>> -> memref<!tpu.dma_semaphore, #tpu.memory_space<semaphore_mem>>
    tpu.enqueue_dma source(%arg5 : memref<1024x1024xbf16, #tpu.memory_space<any>>) target(%arg9 : memref<1024x1024xbf16, #tpu.memory_space<vmem>>) target_semaphore(%3 : memref<!tpu.dma_semaphore, #tpu.memory_space<semaphore_mem>>)
    %c0 = arith.constant 0 : index
    %c0_0 = arith.constant 0 : index
    %4 = vector.load %arg0[%c0, %c0_0] : memref<2x32xf32, #tpu.memory_space<vmem>>, vector<2x32xf32>
    %5 = arith.truncf %4 : vector<2x32xf32> to vector<2x32xbf16>
    %c0_1 = arith.constant 0 : index
    %c0_2 = arith.constant 0 : index
    %6 = vector.load %arg1[%c0_1, %c0_2] : memref<32x128xbf16, #tpu.memory_space<vmem>>, vector<32x128xbf16>
    %cst = arith.constant dense<0.000000e+00> : vector<2x128xf32>
    %7 = tpu.matmul %5, %6, %cst {dimension_numbers = #tpu.dot_dimension_numbers<[1], [0], [0], [1], [0, 0, 1, 1], [], []>} : vector<2x32xbf16>, vector<32x128xbf16>, vector<2x128xf32> -> vector<2x128xf32>
    %c0_3 = arith.constant 0 : index
    %c0_4 = arith.constant 0 : index
    %8 = vector.load %arg6[%c0_3, %c0_4] : memref<1x5760xf32, #tpu.memory_space<vmem>>, vector<1x128xf32>
    %9 = vector.broadcast %8 : vector<1x128xf32> to vector<2x128xf32>
    %10 = arith.addf %7, %9 : vector<2x128xf32>
    %cst_5 = arith.constant 0.000000e+00 : f32
    %11 = vector.broadcast %cst_5 : f32 to vector<2x128xf32>
    %12 = arith.cmpf ogt, %10, %11 : vector<2x128xf32>
    %cst_6 = arith.constant 2.000000e-01 : f32
    %13 = vector.broadcast %cst_6 : f32 to vector<2x128xf32>
    %14 = arith.mulf %13, %10 : vector<2x128xf32>
    %15 = arith.select %12, %10, %14 : vector<2x128xi1>, vector<2x128xf32>
    %16 = arith.truncf %15 : vector<2x128xf32> to vector<2x128xbf16>
    %c0_7 = arith.constant 0 : index
    %c0_8 = arith.constant 0 : index
    %17 = vector.load %arg2[%c0_7, %c0_8] : memref<128x256xbf16, #tpu.memory_space<vmem>>, vector<128x256xbf16>
    %cst_9 = arith.constant dense<0.000000e+00> : vector<2x256xf32>
    %18 = tpu.matmul %16, %17, %cst_9 {dimension_numbers = #tpu.dot_dimension_numbers<[1], [0], [0], [1], [0, 0, 1, 1], [], []>} : vector<2x128xbf16>, vector<128x256xbf16>, vector<2x256xf32> -> vector<2x256xf32>
    %c0_10 = arith.constant 0 : index
    %c128 = arith.constant 128 : index
    %19 = vector.load %arg6[%c0_10, %c128] : memref<1x5760xf32, #tpu.memory_space<vmem>>, vector<1x256xf32>
    %c0_11 = arith.constant 0 : index
    %c384 = arith.constant 384 : index
    %20 = vector.load %arg6[%c0_11, %c384] : memref<1x5760xf32, #tpu.memory_space<vmem>>, vector<1x256xf32>
    %cst_12 = arith.constant dense<0.000000e+00> : vector<256xf32>
    %21 = vector.multi_reduction <add>, %18, %cst_12 [0] : vector<2x256xf32> to vector<256xf32>
    %22 = vector.shape_cast %21 : vector<256xf32> to vector<1x256xf32>
    %cst_13 = arith.constant 2.000000e+00 : f32
    %23 = vector.broadcast %cst_13 : f32 to vector<1x256xf32>
    %24 = arith.divf %22, %23 : vector<1x256xf32>
    %25 = arith.mulf %18, %18 : vector<2x256xf32>
    %cst_14 = arith.constant dense<0.000000e+00> : vector<256xf32>
    %26 = vector.multi_reduction <add>, %25, %cst_14 [0] : vector<2x256xf32> to vector<256xf32>
    %27 = vector.shape_cast %26 : vector<256xf32> to vector<1x256xf32>
    %cst_15 = arith.constant 2.000000e+00 : f32
    %28 = vector.broadcast %cst_15 : f32 to vector<1x256xf32>
    %29 = arith.divf %27, %28 : vector<1x256xf32>
    %30 = arith.mulf %24, %24 : vector<1x256xf32>
    %31 = arith.subf %29, %30 : vector<1x256xf32>
    %32 = vector.broadcast %24 : vector<1x256xf32> to vector<2x256xf32>
    %33 = arith.subf %18, %32 : vector<2x256xf32>
    %cst_16 = arith.constant 8.000000e-01 : f32
    %34 = vector.broadcast %cst_16 : f32 to vector<1x256xf32>
    %35 = arith.addf %31, %34 : vector<1x256xf32>
    %36 = math.rsqrt %35 : vector<1x256xf32>
    %37 = vector.broadcast %36 : vector<1x256xf32> to vector<2x256xf32>
    %38 = arith.mulf %33, %37 : vector<2x256xf32>
    %39 = vector.broadcast %19 : vector<1x256xf32> to vector<2x256xf32>
    %40 = arith.mulf %38, %39 : vector<2x256xf32>
    %41 = vector.broadcast %20 : vector<1x256xf32> to vector<2x256xf32>
    %42 = arith.addf %40, %41 : vector<2x256xf32>
    %cst_17 = arith.constant 0.000000e+00 : f32
    %43 = vector.broadcast %cst_17 : f32 to vector<2x256xf32>
    %44 = arith.cmpf ogt, %42, %43 : vector<2x256xf32>
    %cst_18 = arith.constant 2.000000e-01 : f32
    %45 = vector.broadcast %cst_18 : f32 to vector<2x256xf32>
    %46 = arith.mulf %45, %42 : vector<2x256xf32>
    %47 = arith.select %44, %42, %46 : vector<2x256xi1>, vector<2x256xf32>
    %48 = arith.truncf %47 : vector<2x256xf32> to vector<2x256xbf16>
    %c0_19 = arith.constant 0 : index
    %c0_20 = arith.constant 0 : index
    %49 = vector.load %arg3[%c0_19, %c0_20] : memref<256x512xbf16, #tpu.memory_space<vmem>>, vector<256x512xbf16>
    %cst_21 = arith.constant dense<0.000000e+00> : vector<2x512xf32>
    %50 = tpu.matmul %48, %49, %cst_21 {dimension_numbers = #tpu.dot_dimension_numbers<[1], [0], [0], [1], [0, 0, 1, 1], [], []>} : vector<2x256xbf16>, vector<256x512xbf16>, vector<2x512xf32> -> vector<2x512xf32>
    %c0_22 = arith.constant 0 : index
    %c640 = arith.constant 640 : index
    %51 = vector.load %arg6[%c0_22, %c640] : memref<1x5760xf32, #tpu.memory_space<vmem>>, vector<1x512xf32>
    %c0_23 = arith.constant 0 : index
    %c1152 = arith.constant 1152 : index
    %52 = vector.load %arg6[%c0_23, %c1152] : memref<1x5760xf32, #tpu.memory_space<vmem>>, vector<1x512xf32>
    %cst_24 = arith.constant dense<0.000000e+00> : vector<512xf32>
    %53 = vector.multi_reduction <add>, %50, %cst_24 [0] : vector<2x512xf32> to vector<512xf32>
    %54 = vector.shape_cast %53 : vector<512xf32> to vector<1x512xf32>
    %cst_25 = arith.constant 2.000000e+00 : f32
    %55 = vector.broadcast %cst_25 : f32 to vector<1x512xf32>
    %56 = arith.divf %54, %55 : vector<1x512xf32>
    %57 = arith.mulf %50, %50 : vector<2x512xf32>
    %cst_26 = arith.constant dense<0.000000e+00> : vector<512xf32>
    %58 = vector.multi_reduction <add>, %57, %cst_26 [0] : vector<2x512xf32> to vector<512xf32>
    %59 = vector.shape_cast %58 : vector<512xf32> to vector<1x512xf32>
    %cst_27 = arith.constant 2.000000e+00 : f32
    %60 = vector.broadcast %cst_27 : f32 to vector<1x512xf32>
    %61 = arith.divf %59, %60 : vector<1x512xf32>
    %62 = arith.mulf %56, %56 : vector<1x512xf32>
    %63 = arith.subf %61, %62 : vector<1x512xf32>
    %64 = vector.broadcast %56 : vector<1x512xf32> to vector<2x512xf32>
    %65 = arith.subf %50, %64 : vector<2x512xf32>
    %cst_28 = arith.constant 8.000000e-01 : f32
    %66 = vector.broadcast %cst_28 : f32 to vector<1x512xf32>
    %67 = arith.addf %63, %66 : vector<1x512xf32>
    %68 = math.rsqrt %67 : vector<1x512xf32>
    %69 = vector.broadcast %68 : vector<1x512xf32> to vector<2x512xf32>
    %70 = arith.mulf %65, %69 : vector<2x512xf32>
    %71 = vector.broadcast %51 : vector<1x512xf32> to vector<2x512xf32>
    %72 = arith.mulf %70, %71 : vector<2x512xf32>
    %73 = vector.broadcast %52 : vector<1x512xf32> to vector<2x512xf32>
    %74 = arith.addf %72, %73 : vector<2x512xf32>
    %cst_29 = arith.constant 0.000000e+00 : f32
    %75 = vector.broadcast %cst_29 : f32 to vector<2x512xf32>
    %76 = arith.cmpf ogt, %74, %75 : vector<2x512xf32>
    %cst_30 = arith.constant 2.000000e-01 : f32
    %77 = vector.broadcast %cst_30 : f32 to vector<2x512xf32>
    %78 = arith.mulf %77, %74 : vector<2x512xf32>
    %79 = arith.select %76, %74, %78 : vector<2x512xi1>, vector<2x512xf32>
    %c0_i32_31 = arith.constant 0 : i32
    %80 = tpu.memref_slice %arg10[%c0_i32_31] : memref<2x!tpu.dma_semaphore, #tpu.memory_space<semaphore_mem>> -> memref<1x!tpu.dma_semaphore, #tpu.memory_space<semaphore_mem>>
    %81 = tpu.memref_squeeze %80 : memref<1x!tpu.dma_semaphore, #tpu.memory_space<semaphore_mem>> -> memref<!tpu.dma_semaphore, #tpu.memory_space<semaphore_mem>>
    tpu.wait_dma2 semaphore(%81 : memref<!tpu.dma_semaphore, #tpu.memory_space<semaphore_mem>>) src(%arg4 : memref<512x1024xbf16, #tpu.memory_space<any>>) dst(%arg8 : memref<512x1024xbf16, #tpu.memory_space<vmem>>)
    %82 = arith.truncf %79 : vector<2x512xf32> to vector<2x512xbf16>
    %c0_32 = arith.constant 0 : index
    %c0_33 = arith.constant 0 : index
    %83 = vector.load %arg8[%c0_32, %c0_33] : memref<512x1024xbf16, #tpu.memory_space<vmem>>, vector<512x1024xbf16>
    %cst_34 = arith.constant dense<0.000000e+00> : vector<2x1024xf32>
    %84 = tpu.matmul %82, %83, %cst_34 {dimension_numbers = #tpu.dot_dimension_numbers<[1], [0], [0], [1], [0, 0, 1, 1], [], []>} : vector<2x512xbf16>, vector<512x1024xbf16>, vector<2x1024xf32> -> vector<2x1024xf32>
    %c0_35 = arith.constant 0 : index
    %c1664 = arith.constant 1664 : index
    %85 = vector.load %arg6[%c0_35, %c1664] : memref<1x5760xf32, #tpu.memory_space<vmem>>, vector<1x1024xf32>
    %c0_36 = arith.constant 0 : index
    %c2688 = arith.constant 2688 : index
    %86 = vector.load %arg6[%c0_36, %c2688] : memref<1x5760xf32, #tpu.memory_space<vmem>>, vector<1x1024xf32>
    %cst_37 = arith.constant dense<0.000000e+00> : vector<1024xf32>
    %87 = vector.multi_reduction <add>, %84, %cst_37 [0] : vector<2x1024xf32> to vector<1024xf32>
    %88 = vector.shape_cast %87 : vector<1024xf32> to vector<1x1024xf32>
    %cst_38 = arith.constant 2.000000e+00 : f32
    %89 = vector.broadcast %cst_38 : f32 to vector<1x1024xf32>
    %90 = arith.divf %88, %89 : vector<1x1024xf32>
    %91 = arith.mulf %84, %84 : vector<2x1024xf32>
    %cst_39 = arith.constant dense<0.000000e+00> : vector<1024xf32>
    %92 = vector.multi_reduction <add>, %91, %cst_39 [0] : vector<2x1024xf32> to vector<1024xf32>
    %93 = vector.shape_cast %92 : vector<1024xf32> to vector<1x1024xf32>
    %cst_40 = arith.constant 2.000000e+00 : f32
    %94 = vector.broadcast %cst_40 : f32 to vector<1x1024xf32>
    %95 = arith.divf %93, %94 : vector<1x1024xf32>
    %96 = arith.mulf %90, %90 : vector<1x1024xf32>
    %97 = arith.subf %95, %96 : vector<1x1024xf32>
    %98 = vector.broadcast %90 : vector<1x1024xf32> to vector<2x1024xf32>
    %99 = arith.subf %84, %98 : vector<2x1024xf32>
    %cst_41 = arith.constant 8.000000e-01 : f32
    %100 = vector.broadcast %cst_41 : f32 to vector<1x1024xf32>
    %101 = arith.addf %97, %100 : vector<1x1024xf32>
    %102 = math.rsqrt %101 : vector<1x1024xf32>
    %103 = vector.broadcast %102 : vector<1x1024xf32> to vector<2x1024xf32>
    %104 = arith.mulf %99, %103 : vector<2x1024xf32>
    %105 = vector.broadcast %85 : vector<1x1024xf32> to vector<2x1024xf32>
    %106 = arith.mulf %104, %105 : vector<2x1024xf32>
    %107 = vector.broadcast %86 : vector<1x1024xf32> to vector<2x1024xf32>
    %108 = arith.addf %106, %107 : vector<2x1024xf32>
    %cst_42 = arith.constant 0.000000e+00 : f32
    %109 = vector.broadcast %cst_42 : f32 to vector<2x1024xf32>
    %110 = arith.cmpf ogt, %108, %109 : vector<2x1024xf32>
    %cst_43 = arith.constant 2.000000e-01 : f32
    %111 = vector.broadcast %cst_43 : f32 to vector<2x1024xf32>
    %112 = arith.mulf %111, %108 : vector<2x1024xf32>
    %113 = arith.select %110, %108, %112 : vector<2x1024xi1>, vector<2x1024xf32>
    %c1_i32_44 = arith.constant 1 : i32
    %114 = tpu.memref_slice %arg10[%c1_i32_44] : memref<2x!tpu.dma_semaphore, #tpu.memory_space<semaphore_mem>> -> memref<1x!tpu.dma_semaphore, #tpu.memory_space<semaphore_mem>>
    %115 = tpu.memref_squeeze %114 : memref<1x!tpu.dma_semaphore, #tpu.memory_space<semaphore_mem>> -> memref<!tpu.dma_semaphore, #tpu.memory_space<semaphore_mem>>
    tpu.wait_dma2 semaphore(%115 : memref<!tpu.dma_semaphore, #tpu.memory_space<semaphore_mem>>) src(%arg5 : memref<1024x1024xbf16, #tpu.memory_space<any>>) dst(%arg9 : memref<1024x1024xbf16, #tpu.memory_space<vmem>>)
    %116 = arith.truncf %113 : vector<2x1024xf32> to vector<2x1024xbf16>
    %c0_45 = arith.constant 0 : index
    %c0_46 = arith.constant 0 : index
    %117 = vector.load %arg9[%c0_45, %c0_46] : memref<1024x1024xbf16, #tpu.memory_space<vmem>>, vector<1024x1024xbf16>
    %cst_47 = arith.constant dense<0.000000e+00> : vector<2x1024xf32>
    %118 = tpu.matmul %116, %117, %cst_47 {dimension_numbers = #tpu.dot_dimension_numbers<[1], [0], [0], [1], [0, 0, 1, 1], [], []>} : vector<2x1024xbf16>, vector<1024x1024xbf16>, vector<2x1024xf32> -> vector<2x1024xf32>
    %c0_48 = arith.constant 0 : index
    %c3712 = arith.constant 3712 : index
    %119 = vector.load %arg6[%c0_48, %c3712] : memref<1x5760xf32, #tpu.memory_space<vmem>>, vector<1x1024xf32>
    %c0_49 = arith.constant 0 : index
    %c4736 = arith.constant 4736 : index
    %120 = vector.load %arg6[%c0_49, %c4736] : memref<1x5760xf32, #tpu.memory_space<vmem>>, vector<1x1024xf32>
    %cst_50 = arith.constant dense<0.000000e+00> : vector<1024xf32>
    %121 = vector.multi_reduction <add>, %118, %cst_50 [0] : vector<2x1024xf32> to vector<1024xf32>
    %122 = vector.shape_cast %121 : vector<1024xf32> to vector<1x1024xf32>
    %cst_51 = arith.constant 2.000000e+00 : f32
    %123 = vector.broadcast %cst_51 : f32 to vector<1x1024xf32>
    %124 = arith.divf %122, %123 : vector<1x1024xf32>
    %125 = arith.mulf %118, %118 : vector<2x1024xf32>
    %cst_52 = arith.constant dense<0.000000e+00> : vector<1024xf32>
    %126 = vector.multi_reduction <add>, %125, %cst_52 [0] : vector<2x1024xf32> to vector<1024xf32>
    %127 = vector.shape_cast %126 : vector<1024xf32> to vector<1x1024xf32>
    %cst_53 = arith.constant 2.000000e+00 : f32
    %128 = vector.broadcast %cst_53 : f32 to vector<1x1024xf32>
    %129 = arith.divf %127, %128 : vector<1x1024xf32>
    %130 = arith.mulf %124, %124 : vector<1x1024xf32>
    %131 = arith.subf %129, %130 : vector<1x1024xf32>
    %132 = vector.broadcast %124 : vector<1x1024xf32> to vector<2x1024xf32>
    %133 = arith.subf %118, %132 : vector<2x1024xf32>
    %cst_54 = arith.constant 8.000000e-01 : f32
    %134 = vector.broadcast %cst_54 : f32 to vector<1x1024xf32>
    %135 = arith.addf %131, %134 : vector<1x1024xf32>
    %136 = math.rsqrt %135 : vector<1x1024xf32>
    %137 = vector.broadcast %136 : vector<1x1024xf32> to vector<2x1024xf32>
    %138 = arith.mulf %133, %137 : vector<2x1024xf32>
    %139 = vector.broadcast %119 : vector<1x1024xf32> to vector<2x1024xf32>
    %140 = arith.mulf %138, %139 : vector<2x1024xf32>
    %141 = vector.broadcast %120 : vector<1x1024xf32> to vector<2x1024xf32>
    %142 = arith.addf %140, %141 : vector<2x1024xf32>
    %cst_55 = arith.constant 0.000000e+00 : f32
    %143 = vector.broadcast %cst_55 : f32 to vector<2x1024xf32>
    %144 = arith.cmpf ogt, %142, %143 : vector<2x1024xf32>
    %cst_56 = arith.constant 2.000000e-01 : f32
    %145 = vector.broadcast %cst_56 : f32 to vector<2x1024xf32>
    %146 = arith.mulf %145, %142 : vector<2x1024xf32>
    %147 = arith.select %144, %142, %146 : vector<2x1024xi1>, vector<2x1024xf32>
    %148 = math.tanh %147 : vector<2x1024xf32>
    %c0_57 = arith.constant 0 : index
    %c0_58 = arith.constant 0 : index
    %149 = vector.load %arg7[%c0_57, %c0_58] : memref<2x1024xf32, #tpu.memory_space<vmem>>, vector<2x1024xf32>
    tpu.vector_store %arg7[%c0_57, %c0_58], %148 {strides = array<i32>} : memref<2x1024xf32, #tpu.memory_space<vmem>>, vector<2x1024xf32>,
    return
  }
}

</mosaic_0001>

<bundles_post_ra>
// kernel: baseline_generator_forward.1
= control target key start
LH: loop header
LB: loop body
LE: loop exit
PB: predicated region body
PF: predicated region fallthrough
CT: control target
= control target key end

     0   :  { %12 = vsyncpa [#allocation6], 0  ;;  %s12906_s0 = inlined_call_operand.hbm [shape: f32[2,32], index: 0, kind: input, shape index: {}]   ;;  %s12907_s1 = inlined_call_operand.hbm [shape: bf16[32,128], index: 1, kind: input, shape index: {}]   ;;  %s12908_s2 = inlined_call_operand.hbm [shape: bf16[128,256], index: 2, kind: input, shape index: {}]   ;;  %s12909_s3 = inlined_call_operand.hbm [shape: bf16[256,512], index: 3, kind: input, shape index: {}]   ;;  %s12910_s4 = inlined_call_operand.hbm [shape: bf16[512,1024], index: 4, kind: input, shape index: {}]   ;;  %s12911_s5 = inlined_call_operand.hbm [shape: bf16[1024,1024], index: 5, kind: input, shape index: {}]   ;;  %s12912_s6 = inlined_call_operand.hbm [shape: f32[1,5760], index: 6, kind: input, shape index: {}]   ;;  %s12913_s7 = inlined_call_operand.vmem [shape: f32[2,1024], index: 7, kind: output, shape index: {}]  }
   0x1   :  { %13 = vsyncpa [#allocation8], 0  ;;  %s30_s26 = sshll.u32 %s12907_s1, 4  ;;  %s31_s26 = int_to_ptr.hbm [resolvable:$true] %s30_s26 }
   0x2   :  { %14 = vsyncpa [#allocation11], 0  ;;  %s12147_s27 = smov [#allocation7]   ;;  %s56_s8 = sshll.u32 %s12909_s3, 4  ;;  %s57_s8 = int_to_ptr.hbm [resolvable:$true] %s56_s8 }
   0x3   :  { %s32_s28 = sshll.u32 %s12147_s27, 4  ;;  %s12148_s9 = smov 64   ;;  %s33_s28 = int_to_ptr.vmem [resolvable:$true] %s32_s28 }
   0x4   :  { %s12149_s10 = smov 4   ;;  %s12150_s11 = smov [#allocation10]  }
   0x5   :  { %38 = dma.hbm_to_vmem [thread:$0]  %s31_s26, 256, %s33_s28, [#allocation8], %s12148_s9, %s12148_s9, %s12149_s10  }
   0x6   :  { %s58_s12 = sshll.u32 %s12150_s11, 4  ;;  %s12151_s13 = smov 256   ;;  %s59_s12 = int_to_ptr.vmem [resolvable:$true] %s58_s12 }
   0x7   :  { %s12152_s14 = smov 16   ;;  %s20_s16 = sshll.u32 %s12906_s0, 4  ;;  %s21_s16 = int_to_ptr.hbm [resolvable:$true] %s20_s16 }
   0x8   :  { %64 = dma.hbm_to_vmem [thread:$0]  %s57_s8, 8192, %s59_s12, [#allocation11], %s12151_s13, %s12151_s13, %s12152_s14  }
   0x9   :  { %s12153_s17 = smov [#allocation5]   ;;  %s43_s20 = sshll.u32 %s12908_s2, 4  ;;  %s44_s20 = int_to_ptr.hbm [resolvable:$true] %s43_s20 }
   0xa   :  { %s22_s18 = sshll.u32 %s12153_s17, 4  ;;  %s12154_s21 = smov [#allocation9]   ;;  %s23_s18 = int_to_ptr.vmem [resolvable:$true] %s22_s18 }
   0xb   :  { %25 = dma.hbm_to_vmem [thread:$0]  %s21_s16, 32, %s23_s18, [#allocation6]  }
   0xc   :  { %s45_s22 = sshll.u32 %s12154_s21, 4  ;;  %s12155_s23 = smov 128   ;;  %s46_s22 = int_to_ptr.vmem [resolvable:$true] %s45_s22 }
   0xd   :  { %s12156_s24 = smov 8   ;;  %s70_s0 = sshll.u32 %s12912_s6, 4  ;;  %s71_s0 = int_to_ptr.hbm [resolvable:$true] %s70_s0 }
   0xe   :  { %51 = dma.hbm_to_vmem [thread:$0]  %s44_s20, 2048, %s46_s22, [#allocation8], %s12155_s23, %s12155_s23, %s12156_s24  }
   0xf   :  { %s12157_s27 = smov [#allocation12]  }
  0x10   :  { %s72_s28 = sshll.u32 %s12157_s27, 4  ;;  %s73_s28 = int_to_ptr.vmem [resolvable:$true] %s72_s28 }
  0x11   :  { %75 = dma.hbm_to_vmem [thread:$0]  %s71_s0, 720, %s73_s28, [#allocation11]  }
  0x12   :  { %12137 = dma.done.wait [#allocation6], 32  }
  0x13   :  { %12138 = vsyncadd [#allocation6], 4294967264 }
  0x14   :  { %12139 = dma.done.wait [#allocation8], 2304  }
  0x15   :  { %12140 = vsyncadd [#allocation8], 4294964992 }
  0x16   :  { %12141 = dma.done.wait [#allocation11], 8912  }
  0x17   :  { %12142 = vsyncadd [#allocation11], 4294958384  ;;  %v11039_v0 = vld [vmem:[#allocation7 + $0x8] sm:$0xff]  ;;  %v11038_v1 = vld [vmem:[#allocation7] sm:$0xff]  ;;  %vm146_vm0 = vcmask 261120   ;;  %vm291_vm2 = vcmask 1041408  }
  0x18   :  { %v124_v2 = vld [vmem:[#allocation5] sm:$0x3]  ;;  %v7702_v3 = vld [vmem:[#allocation9 + $0x70] sm:$0xf]  ;;  %v11055_v4 = vld [vmem:[#allocation9 + $0x74] sm:$0xf0]  ;;  %156 = vmatpush.bf16.msra.mxu0 %v11039_v0 }
  0x19   :  { %v11054_v5 = vld [vmem:[#allocation9 + $0x74] sm:$0xf]  ;;  %v7703_v6 = vor.u32 %v11055_v4, %v7702_v3  ;;  %v7704_v7 = vld [vmem:[#allocation9 + $0x78] sm:$0xf0]  ;;  %v7694_v8 = vld [vmem:[#allocation9 + $0x60] sm:$0xf]  ;;  %v125_v14 = vpack.c.bf16 %v124_v2, %v124_v2 }
  0x1a   :  { %v11053_v9 = vld [vmem:[#allocation9 + $0x64] sm:$0xf0]  ;;  %v7707_v10 = vor.u32 %v11054_v5, %v7704_v7  ;;  %v11052_v11 = vld [vmem:[#allocation9 + $0x64] sm:$0xf]  ;;  %v7696_v12 = vld [vmem:[#allocation9 + $0x68] sm:$0xf0] }
  0x1b   :  { %263 = vmatpush.bf16.msra.mxu1 %v7703_v6  ;;  %v7695_v13 = vor.u32 %v11053_v9, %v7694_v8  ;;  %v7699_v15 = vor.u32 %v11052_v11, %v7696_v12  ;;  %v7686_v16 = vld [vmem:[#allocation9 + $0x50] sm:$0xf]  ;;  %v11051_v17 = vld [vmem:[#allocation9 + $0x54] sm:$0xf0]  ;;  %v11050_v18 = vld [vmem:[#allocation9 + $0x54] sm:$0xf] }
  0x1c   :  { %276 = vmatpush.bf16.msra.mxu2 %v7707_v10  ;;  %157 = vmatpush.bf16.msra.mxu0 %v11038_v1  ;;  %v7688_v19 = vld [vmem:[#allocation9 + $0x58] sm:$0xf0]  ;;  %v7687_v20 = vor.u32 %v11051_v17, %v7686_v16  ;;  %v7678_v22 = vld [vmem:[#allocation9 + $0x40] sm:$0xf]  ;;  %v11049_v23 = vld [vmem:[#allocation9 + $0x44] sm:$0xf0] }
  0x1d   :  { %v7691_v21 = vor.u32 %v11050_v18, %v7688_v19  ;;  %v11048_v24 = vld [vmem:[#allocation9 + $0x44] sm:$0xf]  ;;  %v7680_v25 = vld [vmem:[#allocation9 + $0x48] sm:$0xf0]  ;;  %v7679_v26 = vor.u32 %v11049_v23, %v7678_v22  ;;  %v7670_v28 = vld [vmem:[#allocation9 + $0x30] sm:$0xf] }
  0x1e   :  { %v7683_v27 = vor.u32 %v11048_v24, %v7680_v25  ;;  %v11047_v29 = vld [vmem:[#allocation9 + $0x34] sm:$0xf0]  ;;  %v11046_v30 = vld [vmem:[#allocation9 + $0x34] sm:$0xf]  ;;  %v7672_v31 = vld [vmem:[#allocation9 + $0x38] sm:$0xf0] }
  0x1f   :  { %264 = vmatpush.bf16.msra.mxu1 %v7695_v13  ;;  %7643 = vmatmul.msk.bf16.vlgmr.msra.gmra.mxu0 %vm146_vm0, %v125_v14  ;;  %v7671_v32 = vor.u32 %v11047_v29, %v7670_v28  ;;  %v7675_v33 = vor.u32 %v11046_v30, %v7672_v31  ;;  %v7662_v34 = vld [vmem:[#allocation9 + $0x20] sm:$0xf]  ;;  %v11045_v35 = vld [vmem:[#allocation9 + $0x24] sm:$0xf0]  ;;  %v11044_v36 = vld [vmem:[#allocation9 + $0x24] sm:$0xf] }
  0x20   :  { %277 = vmatpush.bf16.msra.mxu2 %v7699_v15  ;;  %v7664_v37 = vld [vmem:[#allocation9 + $0x28] sm:$0xf0]  ;;  %v7663_v38 = vor.u32 %v11045_v35, %v7662_v34  ;;  %v7654_v40 = vld [vmem:[#allocation9 + $0x10] sm:$0xf]  ;;  %v11043_v41 = vld [vmem:[#allocation9 + $0x14] sm:$0xf0] }
  0x21   :  { %v7667_v39 = vor.u32 %v11044_v36, %v7664_v37  ;;  %v11042_v42 = vld [vmem:[#allocation9 + $0x14] sm:$0xf]  ;;  %v7655_v43 = vor.u32 %v11043_v41, %v7654_v40  ;;  %v7656_v44 = vld [vmem:[#allocation9 + $0x18] sm:$0xf0]  ;;  %v7646_v46 = vld [vmem:[#allocation9] sm:$0xf] }
  0x22   :  { %v7659_v45 = vor.u32 %v11042_v42, %v7656_v44  ;;  %v11041_v47 = vld [vmem:[#allocation9 + $0x4] sm:$0xf0]  ;;  %v11040_v48 = vld [vmem:[#allocation9 + $0x4] sm:$0xf]  ;;  %v7648_v50 = vld [vmem:[#allocation9 + $0x8] sm:$0xf0] }
  0x23   :  { %265 = vmatpush.bf16.msra.mxu1 %v7687_v20  ;;  %v7647_v49 = vor.u32 %v11041_v47, %v7646_v46  ;;  %v7651_v51 = vor.u32 %v11040_v48, %v7648_v50  ;;  %v11902_v52 = vld [vmem:[#allocation12] ss:$0 sm:$0xff]  ;;  %v11086_v60 = vld [vmem:[#allocation10 + $0xec] sm:$0xf0]  ;;  %v11084_v62 = vld [vmem:[#allocation10 + $0xe4] sm:$0xf] }
  0x24   :  { %278 = vmatpush.bf16.msra.mxu2 %v7691_v21  ;;  %v7822_v59 = vld [vmem:[#allocation10 + $0xe0] sm:$0xf]  ;;  %v7824_v63 = vld [vmem:[#allocation10 + $0xf0] sm:$0xf0]  ;;  %v11082_v2 = vld [vmem:[#allocation10 + $0xcc] sm:$0xf0] }
  0x25   :  { %v7823_v61 = vor.u32 %v11086_v60, %v7822_v59  ;;  %v7827_v0 = vor.u32 %v11084_v62, %v7824_v63  ;;  %v7806_v1 = vld [vmem:[#allocation10 + $0xc0] sm:$0xf]  ;;  %v11080_v3 = vld [vmem:[#allocation10 + $0xc4] sm:$0xf]  ;;  %v7808_v5 = vld [vmem:[#allocation10 + $0xd0] sm:$0xf0] }
  0x26   :  { %v7807_v4 = vor.u32 %v11082_v2, %v7806_v1  ;;  %v7811_v6 = vor.u32 %v11080_v3, %v7808_v5  ;;  %v7950_v7 = vld [vmem:[#allocation10 + $0x1e0] sm:$0xf]  ;;  %v11118_v8 = vld [vmem:[#allocation10 + $0x1ec] sm:$0xf0]  ;;  %v11116_v9 = vld [vmem:[#allocation10 + $0x1e4] sm:$0xf] }
  0x27   :  { %266 = vmatpush.bf16.msra.mxu1 %v7679_v26  ;;  %769 = vmatpush.bf16.msra.mxu3 %v7823_v61  ;;  %v7951_v10 = vor.u32 %v11118_v8, %v7950_v7  ;;  %v7952_v11 = vld [vmem:[#allocation10 + $0x1f0] sm:$0xf0]  ;;  %v7790_v13 = vld [vmem:[#allocation10 + $0xa0] sm:$0xf]  ;;  %v11078_v14 = vld [vmem:[#allocation10 + $0xac] sm:$0xf0] }
  0x28   :  { %279 = vmatpush.bf16.msra.mxu2 %v7683_v27  ;;  %v7955_v12 = vor.u32 %v11116_v9, %v7952_v11  ;;  %v11076_v15 = vld [vmem:[#allocation10 + $0xa4] sm:$0xf]  ;;  %v7791_v16 = vor.u32 %v11078_v14, %v7790_v13  ;;  %v7792_v17 = vld [vmem:[#allocation10 + $0xb0] sm:$0xf0]  ;;  %v7934_v19 = vld [vmem:[#allocation10 + $0x1c0] sm:$0xf] }
  0x29   :  { %782 = vmatpush.bf16.msrb.mxu0 %v7951_v10  ;;  %v7795_v18 = vor.u32 %v11076_v15, %v7792_v17  ;;  %v11114_v20 = vld [vmem:[#allocation10 + $0x1cc] sm:$0xf0]  ;;  %v11112_v21 = vld [vmem:[#allocation10 + $0x1c4] sm:$0xf]  ;;  %v7936_v23 = vld [vmem:[#allocation10 + $0x1d0] sm:$0xf0] }
  0x2a   :  { %v7935_v22 = vor.u32 %v11114_v20, %v7934_v19  ;;  %v12158_v24 = vmov 2.0   ;;  %v7939_v25 = vor.u32 %v11112_v21, %v7936_v23  ;;  %v7774_v26 = vld [vmem:[#allocation10 + $0x80] sm:$0xf]  ;;  %v11074_v27 = vld [vmem:[#allocation10 + $0x8c] sm:$0xf0]  ;;  %s104_s29 = sshll.u32 %s12910_s4, 4  ;;  %s105_s29 = int_to_ptr.hbm [resolvable:$true] %s104_s29 }
  0x2b   :  { %267 = vmatpush.bf16.msra.mxu1 %v7671_v32  ;;  %770 = vmatpush.bf16.msra.mxu3 %v7807_v4  ;;  %11903 = vrcp.f32 %v12158_v24  ;;  %v11072_v28 = vld [vmem:[#allocation10 + $0x84] sm:$0xf]  ;;  %v7775_v29 = vor.u32 %v11074_v27, %v7774_v26  ;;  %v7776_v30 = vld [vmem:[#allocation10 + $0x90] sm:$0xf0]  ;;  %v7918_v32 = vld [vmem:[#allocation10 + $0x1a0] sm:$0xf] }
  0x2c   :  { %280 = vmatpush.bf16.msra.mxu2 %v7675_v33  ;;  %v7779_v31 = vor.u32 %v11072_v28, %v7776_v30  ;;  %v11110_v33 = vld [vmem:[#allocation10 + $0x1ac] sm:$0xf0]  ;;  %v11108_v34 = vld [vmem:[#allocation10 + $0x1a4] sm:$0xf]  ;;  %v7920_v36 = vld [vmem:[#allocation10 + $0x1b0] sm:$0xf0] }
  0x2d   :  { %783 = vmatpush.bf16.msrb.mxu0 %v7935_v22  ;;  %v7919_v35 = vor.u32 %v11110_v33, %v7918_v32  ;;  %v7923_v37 = vor.u32 %v11108_v34, %v7920_v36  ;;  %v11068_v40 = vld [vmem:[#allocation10 + $0x64] sm:$0xf]  ;;  %v7760_v42 = vld [vmem:[#allocation10 + $0x70] sm:$0xf0]  ;;  %v11106_v46 = vld [vmem:[#allocation10 + $0x18c] sm:$0xf0] }
  0x2e   :  { %v7763_v44 = vor.u32 %v11068_v40, %v7760_v42  ;;  %v11104_v47 = vld [vmem:[#allocation10 + $0x184] sm:$0xf]  ;;  %v11102_v59 = vld [vmem:[#allocation10 + $0x16c] sm:$0xf0]  ;;  %v7888_v62 = vld [vmem:[#allocation10 + $0x170] sm:$0xf0] }
  0x2f   :  { %268 = vmatpush.bf16.msra.mxu1 %v7663_v38  ;;  %771 = vmatpush.bf16.msra.mxu3 %v7791_v16  ;;  %v7758_v38 = vld [vmem:[#allocation10 + $0x60] sm:$0xf]  ;;  %v11100_v60 = vld [vmem:[#allocation10 + $0x164] sm:$0xf]  ;;  %v11062_v1 = vld [vmem:[#allocation10 + $0x2c] sm:$0xf0] }
  0x30   :  { %281 = vmatpush.bf16.msra.mxu2 %v7667_v39  ;;  %v11070_v39 = vld [vmem:[#allocation10 + $0x6c] sm:$0xf0]  ;;  %v7891_v63 = vor.u32 %v11100_v60, %v7888_v62  ;;  %v11060_v2 = vld [vmem:[#allocation10 + $0x24] sm:$0xf]  ;;  %v7728_v5 = vld [vmem:[#allocation10 + $0x30] sm:$0xf0] }
  0x31   :  { %784 = vmatpush.bf16.msrb.mxu0 %v7919_v35  ;;  %v7759_v41 = vor.u32 %v11070_v39, %v7758_v38  ;;  %v7870_v7 = vld [vmem:[#allocation10 + $0x140] sm:$0xf]  ;;  %v11098_v8 = vld [vmem:[#allocation10 + $0x14c] sm:$0xf0]  ;;  %v11096_v9 = vld [vmem:[#allocation10 + $0x144] sm:$0xf] }
  0x32   :  { %v7871_v11 = vor.u32 %v11098_v8, %v7870_v7  ;;  %v7710_v16 = vld [vmem:[#allocation10] sm:$0xf]  ;;  %v11058_v17 = vld [vmem:[#allocation10 + $0xc] sm:$0xf0]  ;;  %v11056_v20 = vld [vmem:[#allocation10 + $0x4] sm:$0xf] }
  0x33   :  { %269 = vmatpush.bf16.msra.mxu1 %v7655_v43  ;;  %772 = vmatpush.bf16.msra.mxu3 %v7775_v29  ;;  %v12216_v43 = vpop.eup %11903  ;;  %v7711_v19 = vor.u32 %v11058_v17, %v7710_v16  ;;  %v7712_v21 = vld [vmem:[#allocation10 + $0x10] sm:$0xf0]  ;;  %v11087_v26 = vld [vmem:[#allocation10 + $0xf4] sm:$0xf0]  ;;  %v11085_v30 = vld [vmem:[#allocation10 + $0xec] sm:$0xf] }
  0x34   :  { %282 = vmatpush.bf16.msra.mxu2 %v7659_v45  ;;  %v7902_v45 = vld [vmem:[#allocation10 + $0x180] sm:$0xf]  ;;  %v7715_v24 = vor.u32 %v11056_v20, %v7712_v21  ;;  %v11094_v34 = vld [vmem:[#allocation10 + $0x12c] sm:$0xf0]  ;;  %v11092_v35 = vld [vmem:[#allocation10 + $0x124] sm:$0xf]  ;;  %vm311_vm3 = vweird.f32 %v12216_v43 }
  0x35   :  { %v7903_v48 = vor.u32 %v11106_v46, %v7902_v45  ;;  %v7854_v33 = vld [vmem:[#allocation10 + $0x120] sm:$0xf]  ;;  %v7856_v40 = vld [vmem:[#allocation10 + $0x130] sm:$0xf0]  ;;  %v11088_v62 = vld [vmem:[#allocation10 + $0x104] sm:$0xf] }
  0x36   :  { %v7855_v39 = vor.u32 %v11094_v34, %v7854_v33  ;;  %v7859_v46 = vor.u32 %v11092_v35, %v7856_v40  ;;  %v11077_v16 = vld [vmem:[#allocation10 + $0xac] sm:$0xf]  ;;  %v7782_v33 = vld [vmem:[#allocation10 + $0x88] sm:$0xf]  ;;  %v11075_v34 = vld [vmem:[#allocation10 + $0x94] sm:$0xf0] }
  0x37   :  { %270 = vmatpush.bf16.msra.mxu1 %v7647_v49  ;;  %773 = vmatpush.bf16.msra.mxu3 %v7759_v41  ;;  %v7904_v49 = vld [vmem:[#allocation10 + $0x190] sm:$0xf0]  ;;  %v7814_v41 = vld [vmem:[#allocation10 + $0xc8] sm:$0xf]  ;;  %v7784_v40 = vld [vmem:[#allocation10 + $0x98] sm:$0xf0] }
  0x38   :  { %283 = vmatpush.bf16.msra.mxu2 %v7651_v51  ;;  %v7907_v50 = vor.u32 %v11104_v47, %v7904_v49  ;;  %v7742_v51 = vld [vmem:[#allocation10 + $0x40] sm:$0xf]  ;;  %785 = vmatpush.bf16.msrb.mxu0 %v7903_v48  ;;  %v11083_v47 = vld [vmem:[#allocation10 + $0xd4] sm:$0xf0]  ;;  %v11081_v48 = vld [vmem:[#allocation10 + $0xcc] sm:$0xf] }
  0x39   :  { %s12159_s30 = smov [#allocation2]   ;;  %s118_s11 = sshll.u32 %s12911_s5, 4  ;;  %s119_s11 = int_to_ptr.hbm [resolvable:$true] %s118_s11 }
  0x3a   :  { %s106_s8 = sshll.u32 %s12159_s30, 4  ;;  %s12160_s12 = smov [#allocation3]   ;;  %s107_s8 = int_to_ptr.vmem [resolvable:$true] %s106_s8 }
  0x3b   :  { %795 = vmatpush.bf16.msrb.mxu1 %v7827_v0  ;;  %v7726_v0 = vld [vmem:[#allocation10 + $0x20] sm:$0xf]  ;;  %109 = dma.hbm_to_vmem [thread:$0]  %s105_s29, 32768, %s107_s8, [#allocation4] }
  0x3c   :  { %808 = vmatpush.bf16.msrb.mxu2 %v7955_v12  ;;  %v7727_v4 = vor.u32 %v11062_v1, %v7726_v0  ;;  %v7872_v12 = vld [vmem:[#allocation10 + $0x150] sm:$0xf0]  ;;  %s120_s13 = sshll.u32 %s12160_s12, 4  ;;  %s121_s13 = int_to_ptr.vmem [resolvable:$true] %s120_s13 }
  0x3d   :  { %v7875_v15 = vor.u32 %v11096_v9, %v7872_v12  ;;  %v7960_v12 = vld [vmem:[#allocation10 + $0x1f8] sm:$0xf0]  ;;  %123 = dma.hbm_to_vmem [thread:$0]  %s119_s11, 65536, %s121_s13, [#allocation4 + $0x1] }
  0x3f   :  { %796 = vmatpush.bf16.msrb.mxu1 %v7811_v6  ;;  %v7731_v6 = vor.u32 %v11060_v2, %v7728_v5  ;;  %v11119_v5 = vld [vmem:[#allocation10 + $0x1f4] sm:$0xf0] }
  0x40   :  { %809 = vmatpush.bf16.msrb.mxu2 %v7939_v25  ;;  %v7830_v25 = vld [vmem:[#allocation10 + $0xe8] sm:$0xf] }
  0x41   :  { %v7831_v29 = vor.u32 %v11087_v26, %v7830_v25 }
  0x43   :  { %797 = vmatpush.bf16.msrb.mxu1 %v7795_v18 }
  0x44   :  { %810 = vmatpush.bf16.msrb.mxu2 %v7923_v37 }
  0x47   :  { %798 = vmatpush.bf16.msrb.mxu1 %v7779_v31  ;;  %v7832_v31 = vld [vmem:[#allocation10 + $0xf8] sm:$0xf0] }
  0x48   :  { %811 = vmatpush.bf16.msrb.mxu2 %v7907_v50  ;;  %v7835_v32 = vor.u32 %v11085_v30, %v7832_v31 }
  0x4b   :  { %799 = vmatpush.bf16.msrb.mxu1 %v7763_v44 }
  0x4c   :  { %812 = vmatpush.bf16.msrb.mxu2 %v7891_v63  ;;  %v7840_v63 = vld [vmem:[#allocation10 + $0x110] sm:$0xf0] }
  0x50   :  { %813 = vmatpush.bf16.msrb.mxu2 %v7875_v15  ;;  %v7798_v15 = vld [vmem:[#allocation10 + $0xa8] sm:$0xf] }
  0x54   :  { %814 = vmatpush.bf16.msrb.mxu2 %v7859_v46  ;;  %v11111_v46 = vld [vmem:[#allocation10 + $0x1b4] sm:$0xf0] }
  0x9c   :  { %v159_v53 = vpop.f32.mrf.mxu0 }
  0x9d   :  { %v160_v54 = vadd.f32 %v11902_v52, %v159_v53  ;;  %v11066_v52 = vld [vmem:[#allocation10 + $0x4c] sm:$0xf0]  ;;  %v11064_v53 = vld [vmem:[#allocation10 + $0x44] sm:$0xf] }
  0x9f   :  { %v164_v55 = vmul.f32 0.2, %v160_v54  ;;  %vm163_vm1 = vcmp.gt.f32.partialorder %v160_v54, 0.0 }
  0xa1   :  { %v165_v56 = vsel %vm163_vm1, %v160_v54, %v164_v55  ;;  %v307_v54 = vmul.f32 2.0, %v12216_v43  ;;  %v7743_v55 = vor.u32 %v11066_v52, %v7742_v51 }
  0xa2   :  { %v166_v57 = vpack.c.bf16 %v165_v56, %v165_v56  ;;  %v7744_v56 = vld [vmem:[#allocation10 + $0x50] sm:$0xf0] }
  0xa3   :  { %774 = vmatpush.bf16.msra.mxu3 %v7743_v55  ;;  %v308_v3 = vsub.f32 1.0, %v307_v54  ;;  %v7815_v55 = vor.u32 %v11083_v47, %v7814_v41  ;;  %v11109_v47 = vld [vmem:[#allocation10 + $0x1ac] sm:$0xf] }
  0xa4   :  { %v161_v58 = vpop.f32.mrf.mxu0  ;;  %271 = vmatmul.bf16.vlgmr.msra.gmra.mxu1 %v166_v57  ;;  %284 = vmatmul.bf16.vlgmr.msra.gmra.mxu2 %v166_v57  ;;  %v7747_v57 = vor.u32 %v11064_v53, %v7744_v56  ;;  %v7816_v53 = vld [vmem:[#allocation10 + $0xd8] sm:$0xf0] }
  0xa5   :  { %v7886_v58 = vld [vmem:[#allocation10 + $0x160] sm:$0xf]  ;;  %v309_v22 = vmul.f32 %v12216_v43, %v308_v3  ;;  %v7819_v56 = vor.u32 %v11081_v48, %v7816_v53  ;;  %v7843_v3 = vor.u32 %v11088_v62, %v7840_v63  ;;  %v11105_v63 = vld [vmem:[#allocation10 + $0x18c] sm:$0xf] }
  0xa6   :  { %v7887_v61 = vor.u32 %v11102_v59, %v7886_v58  ;;  %800 = vmatpush.bf16.msrb.mxu1 %v7747_v57  ;;  %v7838_v57 = vld [vmem:[#allocation10 + $0x100] sm:$0xf]  ;;  %v11090_v58 = vld [vmem:[#allocation10 + $0x10c] sm:$0xf0] }
  0xa7   :  { %775 = vmatpush.bf16.msra.mxu3 %v7727_v4  ;;  %v310_v42 = vadd.f32 %v12216_v43, %v309_v22  ;;  %v7839_v2 = vor.u32 %v11090_v58, %v7838_v57  ;;  %v7958_v4 = vld [vmem:[#allocation10 + $0x1e8] sm:$0xf]  ;;  %815 = vmatpush.bf16.msrb.mxu2 %v7843_v3  ;;  %v7800_v22 = vld [vmem:[#allocation10 + $0xb8] sm:$0xf0] }
  0xa8   :  { %786 = vmatpush.bf16.msrb.mxu0 %v7887_v61  ;;  %v7959_v9 = vor.u32 %v11119_v5, %v7958_v4  ;;  %v7803_v26 = vor.u32 %v11077_v16, %v7800_v22  ;;  %v7896_v16 = vld [vmem:[#allocation10 + $0x178] sm:$0xf0] }
  0xa9   :  { %v12239_v0 = vsel %vm311_vm3, %v12216_v43, %v310_v42  ;;  %v11079_v43 = vld [vmem:[#allocation10 + $0xb4] sm:$0xf0] }
  0xaa   :  { %801 = vmatpush.bf16.msrb.mxu1 %v7731_v6  ;;  %v7799_v21 = vor.u32 %v11079_v43, %v7798_v15 }
  0xab   :  { %776 = vmatpush.bf16.msra.mxu3 %v7711_v19 }
  0xac   :  { %787 = vmatpush.bf16.msrb.mxu0 %v7871_v11  ;;  %v11117_v11 = vld [vmem:[#allocation10 + $0x1ec] sm:$0xf] }
  0xae   :  { %802 = vmatpush.bf16.msrb.mxu1 %v7715_v24  ;;  %v11115_v24 = vld [vmem:[#allocation10 + $0x1d4] sm:$0xf0] }
  0xaf   :  { %821 = vmatpush.bf16.msrb.mxu3 %v7831_v29  ;;  %v7944_v29 = vld [vmem:[#allocation10 + $0x1d8] sm:$0xf0] }
  0xb0   :  { %788 = vmatpush.bf16.msrb.mxu0 %v7855_v39  ;;  %v11073_v39 = vld [vmem:[#allocation10 + $0x8c] sm:$0xf] }
  0xb2   :  { %847 = vmatpush.bf16.msra.mxu1 %v7835_v32 }
  0xb3   :  { %822 = vmatpush.bf16.msrb.mxu3 %v7815_v55  ;;  %v11071_v55 = vld [vmem:[#allocation10 + $0x74] sm:$0xf0] }
  0xb4   :  { %789 = vmatpush.bf16.msrb.mxu0 %v7839_v2  ;;  %v7750_v2 = vld [vmem:[#allocation10 + $0x48] sm:$0xf] }
  0xb6   :  { %848 = vmatpush.bf16.msra.mxu1 %v7819_v56  ;;  %v11069_v56 = vld [vmem:[#allocation10 + $0x6c] sm:$0xf] }
  0xb7   :  { %823 = vmatpush.bf16.msrb.mxu3 %v7799_v21  ;;  %v11061_v21 = vld [vmem:[#allocation10 + $0x2c] sm:$0xf] }
  0xb8   :  { %834 = vmatpush.bf16.msra.mxu0 %v7959_v9  ;;  %v7752_v9 = vld [vmem:[#allocation10 + $0x58] sm:$0xf0] }
  0xba   :  { %849 = vmatpush.bf16.msra.mxu1 %v7803_v26 }
 0x121   :  { %v12219_v10 = vpop.f32.mrf.mxu1 }
 0x122   :  { %v292_v13 = vsel %vm291_vm2, %v12219_v10, 0.0  ;;  %v315_v14 = vmul.f32 %v12219_v10, %v12219_v10 }
 0x123   :  { %v293_v18 = vrot.slane %v292_v13, 4 }
 0x124   :  { %v317_v23 = vsel %vm291_vm2, %v315_v14, 0.0  ;;  %v7963_v14 = vor.u32 %v11117_v11, %v7960_v12  ;;  %v7894_v12 = vld [vmem:[#allocation10 + $0x168] sm:$0xf] }
 0x125   :  { %v294_v27 = vadd.f32 %v293_v18, %v292_v13  ;;  %v318_v28 = vrot.slane %v317_v23, 4 }
 0x126   :  { %860 = vmatpush.bf16.msra.mxu2 %v7963_v14  ;;  %v11101_v14 = vld [vmem:[#allocation10 + $0x16c] sm:$0xf] }
 0x127   :  { %v295_v36 = vrot.slane %v294_v27, 2  ;;  %v319_v37 = vadd.f32 %v318_v28, %v317_v23  ;;  %v12227_v38 = vpop.f32.mrf.mxu2  ;;  %v7942_v23 = vld [vmem:[#allocation10 + $0x1c8] sm:$0xf]  ;;  %v11113_v28 = vld [vmem:[#allocation10 + $0x1cc] sm:$0xf] }
 0x128   :  { %v299_v44 = vsel %vm291_vm2, %v12227_v38, 0.0  ;;  %v316_v45 = vmul.f32 %v12227_v38, %v12227_v38 }
 0x129   :  { %v296_v49 = vadd.f32 %v295_v36, %v294_v27  ;;  %v320_v50 = vrot.slane %v319_v37, 2  ;;  %v300_v51 = vrot.slane %v299_v44, 4  ;;  %v274_v52 = vpop.f32.mrf.mxu1  ;;  %v7943_v27 = vor.u32 %v11115_v24, %v7942_v23  ;;  %v7736_v24 = vld [vmem:[#allocation10 + $0x38] sm:$0xf0] }
 0x12a   :  { %v324_v54 = vsel %vm291_vm2, %v316_v45, 0.0  ;;  %v7947_v36 = vor.u32 %v11113_v28, %v7944_v29  ;;  %v7926_v45 = vld [vmem:[#allocation10 + $0x1a8] sm:$0xf]  ;;  %v7899_v23 = vor.u32 %v11101_v14, %v7896_v16  ;;  %v11099_v28 = vld [vmem:[#allocation10 + $0x154] sm:$0xf0] }
 0x12b   :  { %v297_v59 = vrot.slane %v296_v49, 1  ;;  %v321_v60 = vadd.f32 %v320_v50, %v319_v37  ;;  %v301_v61 = vadd.f32 %v300_v51, %v299_v44  ;;  %v325_v1 = vrot.slane %v324_v54, 4  ;;  %835 = vmatpush.bf16.msra.mxu0 %v7943_v27  ;;  %v7928_v50 = vld [vmem:[#allocation10 + $0x1b8] sm:$0xf0]  ;;  %v7766_v51 = vld [vmem:[#allocation10 + $0x68] sm:$0xf] }
 0x12c   :  { %v7783_v37 = vor.u32 %v11075_v34, %v7782_v33  ;;  %v7787_v44 = vor.u32 %v11073_v39, %v7784_v40  ;;  %861 = vmatpush.bf16.msra.mxu2 %v7947_v36  ;;  %v7767_v58 = vor.u32 %v11071_v55, %v7766_v51  ;;  %v11097_v29 = vld [vmem:[#allocation10 + $0x14c] sm:$0xf]  ;;  %v7718_v33 = vld [vmem:[#allocation10 + $0x8] sm:$0xf]  ;;  %v11059_v34 = vld [vmem:[#allocation10 + $0x14] sm:$0xf0] }
 0x12d   :  { %v298_v6 = vadd.f32 %v297_v59, %v296_v49  ;;  %v322_v7 = vrot.slane %v321_v60, 1  ;;  %v302_v8 = vrot.slane %v301_v61, 2  ;;  %v326_v13 = vadd.f32 %v325_v1, %v324_v54  ;;  %v7768_v59 = vld [vmem:[#allocation10 + $0x78] sm:$0xf0]  ;;  %v11057_v36 = vld [vmem:[#allocation10 + $0xc] sm:$0xf] }
 0x12e   :  { %v7927_v49 = vor.u32 %v11111_v46, %v7926_v45  ;;  %824 = vmatpush.bf16.msrb.mxu3 %v7783_v37  ;;  %v7931_v54 = vor.u32 %v11109_v47, %v7928_v50  ;;  %850 = vmatpush.bf16.msra.mxu1 %v7787_v44  ;;  %v7912_v1 = vld [vmem:[#allocation10 + $0x198] sm:$0xf0]  ;;  %v7771_v4 = vor.u32 %v11069_v56, %v7768_v59  ;;  %v11093_v45 = vld [vmem:[#allocation10 + $0x12c] sm:$0xf]  ;;  %v7846_v56 = vld [vmem:[#allocation10 + $0x108] sm:$0xf] }
 0x12f   :  { %v12242_v17 = vmul.f32 %v12239_v0, %v298_v6  ;;  %v323_v18 = vadd.f32 %v322_v7, %v321_v60  ;;  %v303_v19 = vadd.f32 %v302_v8, %v301_v61  ;;  %v287_v20 = vpop.f32.mrf.mxu2  ;;  %v327_v25 = vrot.slane %v326_v13, 2  ;;  %v7910_v60 = vld [vmem:[#allocation10 + $0x188] sm:$0xf]  ;;  %v11107_v61 = vld [vmem:[#allocation10 + $0x194] sm:$0xf0] }
 0x130   :  { %836 = vmatpush.bf16.msra.mxu0 %v7927_v49  ;;  %862 = vmatpush.bf16.msra.mxu2 %v7931_v54  ;;  %v7911_v5 = vor.u32 %v11107_v61, %v7910_v60  ;;  %v7915_v6 = vor.u32 %v11105_v63, %v7912_v1  ;;  %v11067_v7 = vld [vmem:[#allocation10 + $0x54] sm:$0xf0]  ;;  %v11065_v8 = vld [vmem:[#allocation10 + $0x4c] sm:$0xf]  ;;  %v7720_v37 = vld [vmem:[#allocation10 + $0x18] sm:$0xf0]  ;;  %v7719_v44 = vor.u32 %v11059_v34, %v7718_v33 }
 0x131   :  { %v331_v30 = vmul.f32 %v323_v18, %v12239_v0  ;;  %v333_v31 = vmul.f32 %v12242_v17, %v12242_v17  ;;  %v304_v32 = vrot.slane %v303_v19, 1  ;;  %v328_v35 = vadd.f32 %v327_v25, %v326_v13  ;;  %v11103_v13 = vld [vmem:[#allocation10 + $0x174] sm:$0xf0]  ;;  %v7878_v25 = vld [vmem:[#allocation10 + $0x148] sm:$0xf] }
 0x132   :  { %825 = vmatpush.bf16.msrb.mxu3 %v7767_v58  ;;  %v7751_v11 = vor.u32 %v11067_v7, %v7750_v2  ;;  %851 = vmatpush.bf16.msra.mxu1 %v7771_v4  ;;  %v7755_v43 = vor.u32 %v11065_v8, %v7752_v9  ;;  %v7895_v18 = vor.u32 %v11103_v13, %v7894_v12  ;;  %v11063_v20 = vld [vmem:[#allocation10 + $0x34] sm:$0xf0]  ;;  %v7864_v46 = vld [vmem:[#allocation10 + $0x138] sm:$0xf0]  ;;  %v289_v49 = vld [vmem:[#allocation12 + $0x1] sm:$0x3] }
 0x133   :  { %v335_v41 = vsub.f32 %v331_v30, %v333_v31  ;;  %v305_v42 = vadd.f32 %v304_v32, %v303_v19  ;;  %v329_v48 = vrot.slane %v328_v35, 1  ;;  %v7734_v19 = vld [vmem:[#allocation10 + $0x28] sm:$0xf]  ;;  %v7880_v30 = vld [vmem:[#allocation10 + $0x158] sm:$0xf0]  ;;  %v7739_v32 = vor.u32 %v11061_v21, %v7736_v24 }
 0x134   :  { %837 = vmatpush.bf16.msra.mxu0 %v7911_v5  ;;  %863 = vmatpush.bf16.msra.mxu2 %v7915_v6  ;;  %v7735_v27 = vor.u32 %v11063_v20, %v7734_v19  ;;  %v7883_v40 = vor.u32 %v11097_v29, %v7880_v30  ;;  %v7867_v55 = vor.u32 %v11093_v45, %v7864_v46  ;;  %v11089_v59 = vld [vmem:[#allocation10 + $0x10c] sm:$0xf]  ;;  %v7848_v60 = vld [vmem:[#allocation10 + $0x118] sm:$0xf0]  ;;  %v290_v61 = vld [vmem:[#allocation12 + $0x3] sm:$0x3] }
 0x135   :  { %v12247_v52 = vadd.f32 0.8, %v335_v41  ;;  %v12250_v53 = vmul.f32 %v12239_v0, %v305_v42  ;;  %v330_v57 = vadd.f32 %v329_v48, %v328_v35  ;;  %v7879_v35 = vor.u32 %v11099_v28, %v7878_v25  ;;  %v7862_v41 = vld [vmem:[#allocation10 + $0x128] sm:$0xf]  ;;  %v11095_v42 = vld [vmem:[#allocation10 + $0x134] sm:$0xf0] }
 0x136   :  { %826 = vmatpush.bf16.msrb.mxu3 %v7751_v11  ;;  %852 = vmatpush.bf16.msra.mxu1 %v7755_v43  ;;  %v7723_v48 = vor.u32 %v11057_v36, %v7720_v37  ;;  %v7863_v50 = vor.u32 %v11095_v42, %v7862_v41  ;;  %v337_v63 = vsub.f32 %v12219_v10, %v12242_v17  ;;  %v364_v1 = vperm.slane %v289_v49, 0 }
 0x137   :  { %11905 = vrsqrt.f32 %v12247_v52  ;;  %v334_v62 = vmul.f32 %v12250_v53, %v12250_v53  ;;  %v332_v3 = vmul.f32 %v330_v57, %v12239_v0  ;;  %v11091_v57 = vld [vmem:[#allocation10 + $0x114] sm:$0xf0]  ;;  %vm347_vm5 = vweird.f32 %v12247_v52 }
 0x138   :  { %838 = vmatpush.bf16.msra.mxu0 %v7895_v18  ;;  %864 = vmatpush.bf16.msra.mxu2 %v7899_v23  ;;  %v7851_v5 = vor.u32 %v11089_v59, %v7848_v60  ;;  %v371_v7 = vperm.slane %v290_v61, 0  ;;  %v338_v10 = vsub.f32 %v12227_v38, %v12250_v53  ;;  %v365_v17 = vperm.slane %v289_v49, 1 }
 0x139   :  { %v336_v15 = vsub.f32 %v332_v3, %v334_v62  ;;  %v7847_v3 = vor.u32 %v11091_v57, %v7846_v56  ;;  %v372_v43 = vperm.slane %v290_v61, 1 }
 0x13a   :  { %827 = vmatpush.bf16.msrb.mxu3 %v7735_v27  ;;  %853 = vmatpush.bf16.msra.mxu1 %v7739_v32 }
 0x13b   :  { %v12256_v22 = vadd.f32 0.8, %v336_v15 }
 0x13c   :  { %839 = vmatpush.bf16.msra.mxu0 %v7879_v35  ;;  %865 = vmatpush.bf16.msra.mxu2 %v7883_v40 }
 0x13d   :  { %v11906_v26 = vpop.eup %11905  ;;  %11907 = vrsqrt.f32 %v12256_v22  ;;  %vm357_vm8 = vweird.f32 %v12256_v22 }
 0x13e   :  { %v342_v31 = vmul.f32 %v11906_v26, %v12247_v52  ;;  %vm348_vm4 = vweird.f32 %v11906_v26  ;;  %828 = vmatpush.bf16.msrb.mxu3 %v7719_v44  ;;  %854 = vmatpush.bf16.msra.mxu1 %v7723_v48 }
 0x13f   :  { %vm349_vm6 = vmor %vm347_vm5, %vm348_vm4 }
 0x140   :  { %v343_v39 = vmul.f32 %v11906_v26, %v342_v31  ;;  %840 = vmatpush.bf16.msra.mxu0 %v7863_v50  ;;  %866 = vmatpush.bf16.msra.mxu2 %v7867_v55 }
 0x142   :  { %v344_v47 = vmul.f32 0.5, %v343_v39 }
 0x143   :  { %v11908_v51 = vpop.eup %11907 }
 0x144   :  { %v345_v54 = vsub.f32 1.5, %v344_v47  ;;  %v352_v58 = vmul.f32 %v11908_v51, %v12256_v22  ;;  %vm358_vm7 = vweird.f32 %v11908_v51  ;;  %841 = vmatpush.bf16.msra.mxu0 %v7847_v3  ;;  %867 = vmatpush.bf16.msra.mxu2 %v7851_v5 }
 0x145   :  { %vm359_vm9 = vmor %vm357_vm8, %vm358_vm7 }
 0x146   :  { %v346_v62 = vmul.f32 %v11906_v26, %v345_v54  ;;  %v353_v2 = vmul.f32 %v11908_v51, %v352_v58 }
 0x148   :  { %v350_v4 = vsel %vm349_vm6, %v11906_v26, %v346_v62  ;;  %v354_v8 = vmul.f32 0.5, %v353_v2 }
 0x149   :  { %v361_v6 = vmul.f32 %v350_v4, %v337_v63 }
 0x14a   :  { %v355_v11 = vsub.f32 1.5, %v354_v8 }
 0x14b   :  { %v368_v9 = vmul.f32 %v364_v1, %v361_v6 }
 0x14c   :  { %v356_v12 = vmul.f32 %v11908_v51, %v355_v11 }
 0x14d   :  { %v375_v52 = vadd.f32 %v371_v7, %v368_v9 }
 0x14e   :  { %v360_v13 = vsel %vm359_vm9, %v11908_v51, %v356_v12 }
 0x14f   :  { %vm377_vm10 = vcmp.gt.f32.partialorder %v375_v52, 0.0  ;;  %v379_v14 = vmul.f32 0.2, %v375_v52  ;;  %v362_v15 = vmul.f32 %v360_v13, %v338_v10 }
 0x151   :  { %v381_v16 = vsel %vm377_vm10, %v375_v52, %v379_v14  ;;  %v369_v18 = vmul.f32 %v365_v17, %v362_v15 }
 0x152   :  { %v383_v19 = vpack.c.bf16 %v381_v16, %v381_v16 }
 0x153   :  { %v376_v20 = vadd.f32 %v372_v43, %v369_v18 }
 0x154   :  { %777 = vmatmul.bf16.vlgmr.msra.gmra.mxu3 %v383_v19  ;;  %803 = vmatmul.bf16.vlgmr.msrb.gmra.mxu1 %v383_v19 }
 0x155   :  { %vm378_vm11 = vcmp.gt.f32.partialorder %v376_v20, 0.0  ;;  %v380_v21 = vmul.f32 0.2, %v376_v20 }
 0x157   :  { %v382_v23 = vsel %vm378_vm11, %v376_v20, %v380_v21 }
 0x158   :  { %v384_v22 = vpack.c.bf16 %v382_v23, %v382_v23 }
 0x15a   :  { %790 = vmatmul.bf16.vlgmr.msrb.gmra.mxu0 %v384_v22  ;;  %816 = vmatmul.bf16.vlgmr.msrb.gmra.mxu2 %v384_v22 }
 0x164   :  { %829 = vmatmul.bf16.vlgmr.msrb.gmra.mxu3 %v383_v19  ;;  %855 = vmatmul.bf16.vlgmr.msra.gmra.mxu1 %v383_v19 }
 0x16a   :  { %842 = vmatmul.bf16.vlgmr.msra.gmra.mxu0 %v384_v22  ;;  %868 = vmatmul.bf16.vlgmr.msra.gmra.mxu2 %v384_v22 }
 0x1d1   :  { %v804_v38 = vpop.f32.mrf.mxu1 }
 0x1d7   :  { %v778_v53 = vpop.f32.mrf.mxu3  ;;  %v791_v24 = vpop.f32.mrf.mxu0 }
 0x1d8   :  { %v12273_v25 = vadd.f32 %v791_v24, %v778_v53 }
 0x1d9   :  { %v806_v26 = vpop.f32.mrf.mxu1 }
 0x1da   :  { %v875_v27 = vsel %vm291_vm2, %v12273_v25, 0.0  ;;  %v907_v28 = vmul.f32 %v12273_v25, %v12273_v25 }
 0x1db   :  { %v876_v29 = vrot.slane %v875_v27, 4 }
 0x1dc   :  { %v911_v30 = vsel %vm291_vm2, %v907_v28, 0.0 }
 0x1dd   :  { %v877_v31 = vadd.f32 %v876_v29, %v875_v27  ;;  %v912_v32 = vrot.slane %v911_v30, 4  ;;  %v817_v33 = vpop.f32.mrf.mxu2 }
 0x1de   :  { %v12280_v34 = vadd.f32 %v817_v33, %v804_v38 }
 0x1df   :  { %v780_v35 = vpop.f32.mrf.mxu3  ;;  %v878_v36 = vrot.slane %v877_v31, 2  ;;  %v913_v37 = vadd.f32 %v912_v32, %v911_v30  ;;  %v793_v39 = vpop.f32.mrf.mxu0 }
 0x1e0   :  { %v882_v40 = vsel %vm291_vm2, %v12280_v34, 0.0  ;;  %v908_v41 = vmul.f32 %v12280_v34, %v12280_v34 }
 0x1e1   :  { %v856_v42 = vpop.f32.mrf.mxu1  ;;  %v879_v44 = vadd.f32 %v878_v36, %v877_v31  ;;  %v914_v45 = vrot.slane %v913_v37, 2  ;;  %v883_v46 = vrot.slane %v882_v40, 4 }
 0x1e2   :  { %v918_v47 = vsel %vm291_vm2, %v908_v41, 0.0 }
 0x1e3   :  { %v880_v48 = vrot.slane %v879_v44, 1  ;;  %v915_v49 = vadd.f32 %v914_v45, %v913_v37  ;;  %v884_v50 = vadd.f32 %v883_v46, %v882_v40  ;;  %v919_v51 = vrot.slane %v918_v47, 4 }
 0x1e5   :  { %v881_v54 = vadd.f32 %v880_v48, %v879_v44  ;;  %v916_v55 = vrot.slane %v915_v49, 1  ;;  %v885_v56 = vrot.slane %v884_v50, 2  ;;  %v819_v57 = vpop.f32.mrf.mxu2  ;;  %v920_v58 = vadd.f32 %v919_v51, %v918_v47 }
 0x1e7   :  { %v830_v59 = vpop.f32.mrf.mxu3  ;;  %v12288_v60 = vmul.f32 %v881_v54, %v12239_v0  ;;  %v917_v61 = vadd.f32 %v916_v55, %v915_v49  ;;  %v886_v62 = vadd.f32 %v885_v56, %v884_v50  ;;  %v843_v63 = vpop.f32.mrf.mxu0  ;;  %v921_v1 = vrot.slane %v920_v58, 2 }
 0x1e8   :  { %v12290_v2 = vadd.f32 %v843_v63, %v830_v59 }
 0x1e9   :  { %v858_v3 = vpop.f32.mrf.mxu1  ;;  %v939_v4 = vmul.f32 %v917_v61, %v12239_v0  ;;  %v943_v5 = vmul.f32 %v12288_v60, %v12288_v60  ;;  %v887_v6 = vrot.slane %v886_v62, 1  ;;  %v922_v7 = vadd.f32 %v921_v1, %v920_v58  ;;  %v12319_v61 = vld [vmem:[#allocation12 + $0x5] sm:$0xf] }
 0x1ea   :  { %v889_v8 = vsel %vm291_vm2, %v12290_v2, 0.0  ;;  %v909_v9 = vmul.f32 %v12290_v2, %v12290_v2 }
 0x1eb   :  { %v947_v11 = vsub.f32 %v939_v4, %v943_v5  ;;  %v888_v52 = vadd.f32 %v887_v6, %v886_v62  ;;  %v890_v12 = vrot.slane %v889_v8, 4  ;;  %v923_v10 = vrot.slane %v922_v7, 1  ;;  %v12324_v5 = vld [vmem:[#allocation12 + $0x9] sm:$0xf] }
 0x1ec   :  { %v925_v17 = vsel %vm291_vm2, %v909_v9, 0.0  ;;  %v1004_v9 = vperm.slane %v12319_v61, 0 }
 0x1ed   :  { %v955_v13 = vadd.f32 0.8, %v947_v11  ;;  %v12301_v14 = vmul.f32 %v888_v52, %v12239_v0  ;;  %v891_v15 = vadd.f32 %v890_v12, %v889_v8  ;;  %v926_v43 = vrot.slane %v925_v17, 4  ;;  %v869_v16 = vpop.f32.mrf.mxu2 }
 0x1ee   :  { %v924_v18 = vadd.f32 %v923_v10, %v922_v7  ;;  %v12303_v19 = vadd.f32 %v869_v16, %v856_v42  ;;  %v951_v8 = vsub.f32 %v12273_v25, %v12288_v60 }
 0x1ef   :  { %v832_v20 = vpop.f32.mrf.mxu3  ;;  %11909 = vrsqrt.f32 %v955_v13  ;;  %v944_v21 = vmul.f32 %v12301_v14, %v12301_v14  ;;  %v845_v23 = vpop.f32.mrf.mxu0  ;;  %v892_v38 = vrot.slane %v891_v15, 2  ;;  %v927_v53 = vadd.f32 %v926_v43, %v925_v17 }
 0x1f0   :  { %v940_v22 = vmul.f32 %v924_v18, %v12239_v0  ;;  %v896_v24 = vsel %vm291_vm2, %v12303_v19, 0.0  ;;  %v910_v27 = vmul.f32 %v12303_v19, %v12303_v19  ;;  %vm965_vm13 = vweird.f32 %v955_v13 }
 0x1f1   :  { %v897_v26 = vrot.slane %v896_v24, 4  ;;  %v893_v29 = vadd.f32 %v892_v38, %v891_v15  ;;  %v928_v30 = vrot.slane %v927_v53, 2  ;;  %v1017_v43 = vperm.slane %v12324_v5, 0 }
 0x1f2   :  { %v948_v28 = vsub.f32 %v940_v22, %v944_v21  ;;  %v932_v32 = vsel %vm291_vm2, %v910_v27, 0.0  ;;  %v952_v23 = vsub.f32 %v12280_v34, %v12301_v14  ;;  %v1005_v22 = vperm.slane %v12319_v61, 1 }
 0x1f3   :  { %v898_v31 = vadd.f32 %v897_v26, %v896_v24  ;;  %v894_v35 = vrot.slane %v893_v29, 1  ;;  %v929_v36 = vadd.f32 %v928_v30, %v927_v53  ;;  %v933_v37 = vrot.slane %v932_v32, 4 }
 0x1f4   :  { %v956_v33 = vadd.f32 0.8, %v948_v28  ;;  %v1018_v28 = vperm.slane %v12324_v5, 1 }
 0x1f5   :  { %v11910_v39 = vpop.eup %11909  ;;  %v899_v40 = vrot.slane %v898_v31, 2  ;;  %v871_v41 = vpop.f32.mrf.mxu2  ;;  %v895_v44 = vadd.f32 %v894_v35, %v893_v29  ;;  %v930_v45 = vrot.slane %v929_v36, 1  ;;  %v934_v47 = vadd.f32 %v933_v37, %v932_v32 }
 0x1f6   :  { %v960_v42 = vmul.f32 %v11910_v39, %v955_v13  ;;  %11911 = vrsqrt.f32 %v956_v33  ;;  %vm966_vm12 = vweird.f32 %v11910_v39  ;;  %vm975_vm0 = vweird.f32 %v956_v33 }
 0x1f7   :  { %v900_v46 = vadd.f32 %v899_v40, %v898_v31  ;;  %v12314_v49 = vmul.f32 %v895_v44, %v12239_v0  ;;  %v931_v50 = vadd.f32 %v930_v45, %v929_v36  ;;  %v935_v54 = vrot.slane %v934_v47, 2  ;;  %vm967_vm14 = vmor %vm965_vm13, %vm966_vm12 }
 0x1f8   :  { %v961_v48 = vmul.f32 %v11910_v39, %v960_v42  ;;  %v1006_v42 = vperm.slane %v12319_v61, 2 }
 0x1f9   :  { %v901_v51 = vrot.slane %v900_v46, 1  ;;  %v941_v56 = vmul.f32 %v931_v50, %v12239_v0  ;;  %v945_v57 = vmul.f32 %v12314_v49, %v12314_v49  ;;  %v936_v63 = vadd.f32 %v935_v54, %v934_v47 }
 0x1fa   :  { %v962_v55 = vmul.f32 0.5, %v961_v48  ;;  %v953_v41 = vsub.f32 %v12290_v2, %v12314_v49  ;;  %v1019_v47 = vperm.slane %v12324_v5, 2  ;;  %v1007_v2 = vperm.slane %v12319_v61, 3 }
 0x1fb   :  { %v902_v58 = vadd.f32 %v901_v51, %v900_v46  ;;  %v949_v3 = vsub.f32 %v941_v56, %v945_v57  ;;  %v937_v7 = vrot.slane %v936_v63, 1 }
 0x1fc   :  { %v11912_v59 = vpop.eup %11911  ;;  %v963_v62 = vsub.f32 1.5, %v962_v55 }
 0x1fd   :  { %v970_v1 = vmul.f32 %v11912_v59, %v956_v33  ;;  %v12322_v4 = vmul.f32 %v902_v58, %v12239_v0  ;;  %v957_v52 = vadd.f32 0.8, %v949_v3  ;;  %v938_v10 = vadd.f32 %v937_v7, %v936_v63 }
 0x1fe   :  { %v964_v6 = vmul.f32 %v11910_v39, %v963_v62  ;;  %vm976_vm15 = vweird.f32 %v11912_v59 }
 0x1ff   :  { %v971_v11 = vmul.f32 %v11912_v59, %v970_v1  ;;  %v946_v17 = vmul.f32 %v12322_v4, %v12322_v4  ;;  %11913 = vrsqrt.f32 %v957_v52  ;;  %v942_v13 = vmul.f32 %v938_v10, %v12239_v0  ;;  %vm977_vm1 = vmor %vm975_vm0, %vm976_vm15 }
 0x200   :  { %v968_v12 = vsel %vm967_vm14, %v11910_v39, %v964_v6  ;;  %vm985_vm6 = vweird.f32 %v957_v52  ;;  %v954_v56 = vsub.f32 %v12303_v19, %v12322_v4 }
 0x201   :  { %v999_v15 = vmul.f32 %v968_v12, %v951_v8  ;;  %v972_v16 = vmul.f32 0.5, %v971_v11  ;;  %v950_v25 = vsub.f32 %v942_v13, %v946_v17 }
 0x203   :  { %v1012_v18 = vmul.f32 %v1004_v9, %v999_v15  ;;  %v973_v20 = vsub.f32 1.5, %v972_v16  ;;  %v958_v38 = vadd.f32 0.8, %v950_v25 }
 0x205   :  { %v1025_v60 = vadd.f32 %v1017_v43, %v1012_v18  ;;  %v974_v21 = vmul.f32 %v11912_v59, %v973_v20  ;;  %v11914_v53 = vpop.eup %11913  ;;  %11915 = vrsqrt.f32 %v958_v38  ;;  %vm995_vm9 = vweird.f32 %v958_v38 }
 0x206   :  { %v980_v29 = vmul.f32 %v11914_v53, %v957_v52  ;;  %vm986_vm5 = vweird.f32 %v11914_v53 }
 0x207   :  { %vm1029_vm3 = vcmp.gt.f32.partialorder %v1025_v60, 0.0  ;;  %v1033_v24 = vmul.f32 0.2, %v1025_v60  ;;  %v978_v26 = vsel %vm977_vm1, %v11912_v59, %v974_v21  ;;  %vm987_vm7 = vmor %vm985_vm6, %vm986_vm5  ;;  %v1020_v59 = vperm.slane %v12324_v5, 3 }
 0x208   :  { %v1000_v27 = vmul.f32 %v978_v26, %v952_v23  ;;  %v981_v32 = vmul.f32 %v11914_v53, %v980_v29 }
 0x209   :  { %v12337_v30 = vsel %vm1029_vm3, %v1025_v60, %v1033_v24 }
 0x20a   :  { %v1013_v31 = vmul.f32 %v1005_v22, %v1000_v27  ;;  %v982_v35 = vmul.f32 0.5, %v981_v32 }
 0x20b   :  { %v11916_v34 = vpop.eup %11915 }
 0x20c   :  { %v1026_v33 = vadd.f32 %v1018_v28, %v1013_v31  ;;  %v983_v36 = vsub.f32 1.5, %v982_v35  ;;  %v990_v37 = vmul.f32 %v11916_v34, %v958_v38  ;;  %vm996_vm8 = vweird.f32 %v11916_v34 }
 0x20d   :  { %vm997_vm10 = vmor %vm995_vm9, %vm996_vm8 }
 0x20e   :  { %vm1030_vm4 = vcmp.gt.f32.partialorder %v1026_v33, 0.0  ;;  %v1034_v14 = vmul.f32 0.2, %v1026_v33  ;;  %v984_v40 = vmul.f32 %v11914_v53, %v983_v36  ;;  %v991_v44 = vmul.f32 %v11916_v34, %v990_v37 }
 0x210   :  { %v12339_v39 = vsel %vm1030_vm4, %v1026_v33, %v1034_v14  ;;  %v988_v45 = vsel %vm987_vm7, %v11914_v53, %v984_v40  ;;  %v992_v48 = vmul.f32 0.5, %v991_v44 }
 0x211   :  { %v1001_v46 = vmul.f32 %v988_v45, %v953_v41 }
 0x212   :  { %v993_v51 = vsub.f32 1.5, %v992_v48 }
 0x213   :  { %v1014_v50 = vmul.f32 %v1006_v42, %v1001_v46 }
 0x214   :  { %v994_v55 = vmul.f32 %v11916_v34, %v993_v51 }
 0x215   :  { %v1027_v54 = vadd.f32 %v1019_v47, %v1014_v50 }
 0x216   :  { %v998_v57 = vsel %vm997_vm10, %v11916_v34, %v994_v55 }
 0x217   :  { %vm1031_vm11 = vcmp.gt.f32.partialorder %v1027_v54, 0.0  ;;  %v1035_v49 = vmul.f32 0.2, %v1027_v54  ;;  %v1002_v58 = vmul.f32 %v998_v57, %v954_v56 }
 0x219   :  { %v12349_v62 = vsel %vm1031_vm11, %v1027_v54, %v1035_v49  ;;  %v1015_v63 = vmul.f32 %v1007_v2, %v1002_v58 }
 0x21b   :  { %v1028_v1 = vadd.f32 %v1020_v59, %v1015_v63 }
 0x21d   :  { %vm1032_vm12 = vcmp.gt.f32.partialorder %v1028_v1, 0.0  ;;  %v1036_v3 = vmul.f32 0.2, %v1028_v1 }
 0x21f   :  { %v12351_v6 = vsel %vm1032_vm12, %v1028_v1, %v1036_v3 }
 0x220   :  { %12143 = dma.done.wait [#allocation4], 32768 }
 0x221   :  { %12144 = vsyncadd [#allocation4], 4294934528  ;;  %v8190_v19 = vld [vmem:[#allocation2 + $0x1c0] sm:$0xf] }
 0x222   :  { %v11180_v4 = vld [vmem:[#allocation2 + $0x1dc] sm:$0xf0] }
 0x223   :  { %v8446_v7 = vld [vmem:[#allocation2 + $0x3c0] sm:$0xf]  ;;  %v8191_v61 = vor.u32 %v11180_v4, %v8190_v19 }
 0x224   :  { %v11244_v8 = vld [vmem:[#allocation2 + $0x3dc] sm:$0xf0] }
 0x225   :  { %v8702_v9 = vld [vmem:[#allocation2 + $0x5c0] sm:$0xf]  ;;  %v8447_v52 = vor.u32 %v11244_v8, %v8446_v7  ;;  %2585 = vmatpush.bf16.msra.mxu3 %v8191_v61 }
 0x226   :  { %v11308_v11 = vld [vmem:[#allocation2 + $0x5dc] sm:$0xf0] }
 0x227   :  { %v8703_v12 = vor.u32 %v11308_v11, %v8702_v9  ;;  %v8958_v5 = vld [vmem:[#allocation2 + $0x7c0] sm:$0xf]  ;;  %2598 = vmatpush.bf16.msrb.mxu0 %v8447_v52 }
 0x228   :  { %v11372_v10 = vld [vmem:[#allocation2 + $0x7dc] sm:$0xf0] }
 0x229   :  { %v8158_v17 = vld [vmem:[#allocation2 + $0x180] sm:$0xf]  ;;  %v8959_v15 = vor.u32 %v11372_v10, %v8958_v5  ;;  %2611 = vmatpush.bf16.msrb.mxu1 %v8703_v12 }
 0x22a   :  { %v11172_v43 = vld [vmem:[#allocation2 + $0x19c] sm:$0xf0] }
 0x22b   :  { %v8414_v16 = vld [vmem:[#allocation2 + $0x380] sm:$0xf]  ;;  %v8159_v18 = vor.u32 %v11172_v43, %v8158_v17  ;;  %2624 = vmatpush.bf16.msrb.mxu2 %v8959_v15 }
 0x22c   :  { %v11236_v13 = vld [vmem:[#allocation2 + $0x39c] sm:$0xf0] }
 0x22d   :  { %v8415_v20 = vor.u32 %v11236_v13, %v8414_v16  ;;  %v8670_v25 = vld [vmem:[#allocation2 + $0x580] sm:$0xf]  ;;  %2586 = vmatpush.bf16.msra.mxu3 %v8159_v18 }
 0x22e   :  { %v11300_v60 = vld [vmem:[#allocation2 + $0x59c] sm:$0xf0] }
 0x22f   :  { %v8926_v21 = vld [vmem:[#allocation2 + $0x780] sm:$0xf]  ;;  %v8671_v23 = vor.u32 %v11300_v60, %v8670_v25  ;;  %2599 = vmatpush.bf16.msrb.mxu0 %v8415_v20 }
 0x230   :  { %v11364_v22 = vld [vmem:[#allocation2 + $0x79c] sm:$0xf0] }
 0x231   :  { %v8126_v38 = vld [vmem:[#allocation2 + $0x140] sm:$0xf]  ;;  %v8927_v24 = vor.u32 %v11364_v22, %v8926_v21  ;;  %2612 = vmatpush.bf16.msrb.mxu1 %v8671_v23 }
 0x232   :  { %v11164_v53 = vld [vmem:[#allocation2 + $0x15c] sm:$0xf0] }
 0x233   :  { %v8382_v26 = vld [vmem:[#allocation2 + $0x340] sm:$0xf]  ;;  %v8127_v29 = vor.u32 %v11164_v53, %v8126_v38  ;;  %2625 = vmatpush.bf16.msrb.mxu2 %v8927_v24 }
 0x234   :  { %v11228_v27 = vld [vmem:[#allocation2 + $0x35c] sm:$0xf0] }
 0x235   :  { %v8638_v28 = vld [vmem:[#allocation2 + $0x540] sm:$0xf]  ;;  %v8383_v35 = vor.u32 %v11228_v27, %v8382_v26  ;;  %2587 = vmatpush.bf16.msra.mxu3 %v8127_v29 }
 0x236   :  { %v11292_v31 = vld [vmem:[#allocation2 + $0x55c] sm:$0xf0] }
 0x237   :  { %v8894_v32 = vld [vmem:[#allocation2 + $0x740] sm:$0xf]  ;;  %v8639_v34 = vor.u32 %v11292_v31, %v8638_v28  ;;  %2600 = vmatpush.bf16.msrb.mxu0 %v8383_v35  ;;  %v11176_v35 = vld [vmem:[#allocation2 + $0x1c4] sm:$0xf] }
 0x238   :  { %v11356_v33 = vld [vmem:[#allocation2 + $0x75c] sm:$0xf0] }
 0x239   :  { %v8094_v14 = vld [vmem:[#allocation2 + $0x100] sm:$0xf]  ;;  %v8895_v40 = vor.u32 %v11356_v33, %v8894_v32  ;;  %2613 = vmatpush.bf16.msrb.mxu1 %v8639_v34  ;;  %v8192_v34 = vld [vmem:[#allocation2 + $0x1e0] sm:$0xf0] }
 0x23a   :  { %v11156_v36 = vld [vmem:[#allocation2 + $0x11c] sm:$0xf0] }
 0x23b   :  { %v8350_v37 = vld [vmem:[#allocation2 + $0x300] sm:$0xf]  ;;  %v8095_v47 = vor.u32 %v11156_v36, %v8094_v14  ;;  %2626 = vmatpush.bf16.msrb.mxu2 %v8895_v40  ;;  %v11240_v14 = vld [vmem:[#allocation2 + $0x3c4] sm:$0xf] }
 0x23c   :  { %v11220_v41 = vld [vmem:[#allocation2 + $0x31c] sm:$0xf0]  ;;  %v11304_v40 = vld [vmem:[#allocation2 + $0x5c4] sm:$0xf] }
 0x23d   :  { %v8606_v42 = vld [vmem:[#allocation2 + $0x500] sm:$0xf]  ;;  %v8351_v48 = vor.u32 %v11220_v41, %v8350_v37  ;;  %2588 = vmatpush.bf16.msra.mxu3 %v8095_v47  ;;  %v8448_v37 = vld [vmem:[#allocation2 + $0x3e0] sm:$0xf0] }
 0x23e   :  { %v11284_v44 = vld [vmem:[#allocation2 + $0x51c] sm:$0xf0]  ;;  %v8704_v41 = vld [vmem:[#allocation2 + $0x5e0] sm:$0xf0] }
 0x23f   :  { %v8862_v45 = vld [vmem:[#allocation2 + $0x700] sm:$0xf]  ;;  %v8607_v50 = vor.u32 %v11284_v44, %v8606_v42  ;;  %2601 = vmatpush.bf16.msrb.mxu0 %v8351_v48  ;;  %v8195_v48 = vor.u32 %v11176_v35, %v8192_v34  ;;  %v8832_v35 = vld [vmem:[#allocation2 + $0x6e0] sm:$0xf0] }
 0x240   :  { %v11348_v46 = vld [vmem:[#allocation2 + $0x71c] sm:$0xf0] }
 0x241   :  { %v8062_v51 = vld [vmem:[#allocation2 + $0xc0] sm:$0xf]  ;;  %v8863_v56 = vor.u32 %v11348_v46, %v8862_v45  ;;  %2614 = vmatpush.bf16.msrb.mxu1 %v8607_v50  ;;  %v11368_v45 = vld [vmem:[#allocation2 + $0x7c4] sm:$0xf]  ;;  %v8451_v50 = vor.u32 %v11240_v14, %v8448_v37 }
 0x242   :  { %v11148_v54 = vld [vmem:[#allocation2 + $0xdc] sm:$0xf0]  ;;  %v8960_v46 = vld [vmem:[#allocation2 + $0x7e0] sm:$0xf0] }
 0x243   :  { %v8318_v55 = vld [vmem:[#allocation2 + $0x2c0] sm:$0xf]  ;;  %v8063_v63 = vor.u32 %v11148_v54, %v8062_v51  ;;  %2627 = vmatpush.bf16.msrb.mxu2 %v8863_v56  ;;  %v8707_v51 = vor.u32 %v11304_v40, %v8704_v41  ;;  %v11168_v54 = vld [vmem:[#allocation2 + $0x184] sm:$0xf] }
 0x244   :  { %v11212_v2 = vld [vmem:[#allocation2 + $0x2dc] sm:$0xf0]  ;;  %v11232_v56 = vld [vmem:[#allocation2 + $0x384] sm:$0xf] }
 0x245   :  { %v8574_v49 = vld [vmem:[#allocation2 + $0x4c0] sm:$0xf]  ;;  %v8319_v1 = vor.u32 %v11212_v2, %v8318_v55  ;;  %2589 = vmatpush.bf16.msra.mxu3 %v8063_v63  ;;  %v8160_v55 = vld [vmem:[#allocation2 + $0x1a0] sm:$0xf0]  ;;  %v8963_v2 = vor.u32 %v11368_v45, %v8960_v46 }
 0x246   :  { %v11276_v57 = vld [vmem:[#allocation2 + $0x4dc] sm:$0xf0]  ;;  %v11360_v63 = vld [vmem:[#allocation2 + $0x784] sm:$0xf] }
 0x247   :  { %v8830_v58 = vld [vmem:[#allocation2 + $0x6c0] sm:$0xf]  ;;  %v8575_v3 = vor.u32 %v11276_v57, %v8574_v49  ;;  %2602 = vmatpush.bf16.msrb.mxu0 %v8319_v1  ;;  %v12355_v49 = vpack.c.bf16 %v12337_v30, %v12337_v30  ;;  %v8416_v57 = vld [vmem:[#allocation2 + $0x3a0] sm:$0xf0]  ;;  %v12367_v30 = vpack.c.bf16 %v12349_v62, %v12349_v62 }
 0x248   :  { %v11340_v59 = vld [vmem:[#allocation2 + $0x6dc] sm:$0xf0]  ;;  %v8928_v1 = vld [vmem:[#allocation2 + $0x7a0] sm:$0xf0] }
 0x249   :  { %v8030_v19 = vld [vmem:[#allocation2 + $0x80] sm:$0xf]  ;;  %v8831_v61 = vor.u32 %v11340_v59, %v8830_v58  ;;  %2615 = vmatpush.bf16.msrb.mxu1 %v8575_v3  ;;  %v11296_v58 = vld [vmem:[#allocation2 + $0x584] sm:$0xf]  ;;  %v12359_v3 = vpack.c.bf16 %v12351_v6, %v12351_v6  ;;  %v8931_v6 = vor.u32 %v11360_v63, %v8928_v1 }
 0x24a   :  { %v11140_v4 = vld [vmem:[#allocation2 + $0x9c] sm:$0xf0]  ;;  %v8672_v59 = vld [vmem:[#allocation2 + $0x5a0] sm:$0xf0] }
 0x24b   :  { %v8286_v7 = vld [vmem:[#allocation2 + $0x280] sm:$0xf]  ;;  %v8031_v5 = vor.u32 %v11140_v4, %v8030_v19  ;;  %2628 = vmatpush.bf16.msrb.mxu2 %v8831_v61  ;;  %v12363_v19 = vpack.c.bf16 %v12339_v39, %v12339_v39  ;;  %v8163_v4 = vor.u32 %v11168_v54, %v8160_v55  ;;  %v8675_v61 = vor.u32 %v11296_v58, %v8672_v59  ;;  %v8384_v39 = vld [vmem:[#allocation2 + $0x360] sm:$0xf0] }
 0x24c   :  { %v11204_v8 = vld [vmem:[#allocation2 + $0x29c] sm:$0xf0]  ;;  %v11352_v62 = vld [vmem:[#allocation2 + $0x744] sm:$0xf] }
 0x24d   :  { %v8542_v9 = vld [vmem:[#allocation2 + $0x480] sm:$0xf]  ;;  %v8287_v10 = vor.u32 %v11204_v8, %v8286_v7  ;;  %2590 = vmatpush.bf16.msra.mxu3 %v8031_v5  ;;  %v8419_v7 = vor.u32 %v11232_v56, %v8416_v57  ;;  %v11160_v8 = vld [vmem:[#allocation2 + $0x144] sm:$0xf] }
 0x24e   :  { %v11268_v11 = vld [vmem:[#allocation2 + $0x49c] sm:$0xf0]  ;;  %v8896_v5 = vld [vmem:[#allocation2 + $0x760] sm:$0xf0] }
 0x24f   :  { %v8798_v52 = vld [vmem:[#allocation2 + $0x680] sm:$0xf]  ;;  %v8543_v17 = vor.u32 %v11268_v11, %v8542_v9  ;;  %2603 = vmatpush.bf16.msrb.mxu0 %v8287_v10  ;;  %v8128_v9 = vld [vmem:[#allocation2 + $0x160] sm:$0xf0] }
 0x250   :  { %v11332_v12 = vld [vmem:[#allocation2 + $0x69c] sm:$0xf0]  ;;  %v11224_v11 = vld [vmem:[#allocation2 + $0x344] sm:$0xf]  ;;  %v8131_v10 = vor.u32 %v11160_v8, %v8128_v9 }
 0x251   :  { %v7998_v15 = vld [vmem:[#allocation2 + $0x40] sm:$0xf]  ;;  %v8799_v13 = vor.u32 %v11332_v12, %v8798_v52  ;;  %2616 = vmatpush.bf16.msrb.mxu1 %v8543_v17  ;;  %v11288_v52 = vld [vmem:[#allocation2 + $0x544] sm:$0xf]  ;;  %v8387_v17 = vor.u32 %v11224_v11, %v8384_v39 }
 0x252   :  { %v11132_v43 = vld [vmem:[#allocation2 + $0x5c] sm:$0xf0]  ;;  %v8640_v12 = vld [vmem:[#allocation2 + $0x560] sm:$0xf0] }
 0x253   :  { %v8254_v16 = vld [vmem:[#allocation2 + $0x240] sm:$0xf]  ;;  %v7999_v23 = vor.u32 %v11132_v43, %v7998_v15  ;;  %2629 = vmatpush.bf16.msrb.mxu2 %v8799_v13  ;;  %v8643_v15 = vor.u32 %v11288_v52, %v8640_v12  ;;  %v11152_v43 = vld [vmem:[#allocation2 + $0x104] sm:$0xf] }
 0x254   :  { %v11196_v18 = vld [vmem:[#allocation2 + $0x25c] sm:$0xf0]  ;;  %v11216_v13 = vld [vmem:[#allocation2 + $0x304] sm:$0xf] }
 0x255   :  { %v8510_v20 = vld [vmem:[#allocation2 + $0x440] sm:$0xf]  ;;  %v8255_v53 = vor.u32 %v11196_v18, %v8254_v16  ;;  %2591 = vmatpush.bf16.msra.mxu3 %v7999_v23  ;;  %v8096_v16 = vld [vmem:[#allocation2 + $0x120] sm:$0xf0]  ;;  %v8899_v18 = vor.u32 %v11352_v62, %v8896_v5 }
 0x256   :  { %v11260_v25 = vld [vmem:[#allocation2 + $0x45c] sm:$0xf0]  ;;  %v8864_v23 = vld [vmem:[#allocation2 + $0x720] sm:$0xf0] }
 0x257   :  { %v8766_v60 = vld [vmem:[#allocation2 + $0x640] sm:$0xf]  ;;  %v8511_v24 = vor.u32 %v11260_v25, %v8510_v20  ;;  %2604 = vmatpush.bf16.msrb.mxu0 %v8255_v53  ;;  %v8352_v20 = vld [vmem:[#allocation2 + $0x320] sm:$0xf0] }
 0x258   :  { %v11324_v21 = vld [vmem:[#allocation2 + $0x65c] sm:$0xf0]  ;;  %v11280_v25 = vld [vmem:[#allocation2 + $0x504] sm:$0xf] }
 0x259   :  { %v7966_v22 = vld [vmem:[#allocation2] sm:$0xf]  ;;  %v8767_v29 = vor.u32 %v11324_v21, %v8766_v60  ;;  %2617 = vmatpush.bf16.msrb.mxu1 %v8511_v24  ;;  %v8608_v60 = vld [vmem:[#allocation2 + $0x520] sm:$0xf0] }
 0x25a   :  { %v11124_v38 = vld [vmem:[#allocation2 + $0x1c] sm:$0xf0]  ;;  %v11344_v21 = vld [vmem:[#allocation2 + $0x704] sm:$0xf]  ;;  %v8611_v53 = vor.u32 %v11280_v25, %v8608_v60 }
 0x25b   :  { %v8222_v26 = vld [vmem:[#allocation2 + $0x200] sm:$0xf]  ;;  %v7967_v36 = vor.u32 %v11124_v38, %v7966_v22  ;;  %2630 = vmatpush.bf16.msrb.mxu2 %v8767_v29  ;;  %v8099_v22 = vor.u32 %v11152_v43, %v8096_v16  ;;  %v8355_v38 = vor.u32 %v11216_v13, %v8352_v20  ;;  %v11144_v24 = vld [vmem:[#allocation2 + $0xc4] sm:$0xf]  ;;  %v8454_v43 = vld [vmem:[#allocation2 + $0x3c8] sm:$0xf] }
 0x25c   :  { %v11188_v27 = vld [vmem:[#allocation2 + $0x21c] sm:$0xf0]  ;;  %v8320_v29 = vld [vmem:[#allocation2 + $0x2e0] sm:$0xf0]  ;;  %v11245_v13 = vld [vmem:[#allocation2 + $0x3e4] sm:$0xf0] }
 0x25d   :  { %v8478_v28 = vld [vmem:[#allocation2 + $0x400] sm:$0xf]  ;;  %v8223_v42 = vor.u32 %v11188_v27, %v8222_v26  ;;  %2592 = vmatpush.bf16.msra.mxu3 %v7967_v36  ;;  %v8064_v26 = vld [vmem:[#allocation2 + $0xe0] sm:$0xf0]  ;;  %v11309_v20 = vld [vmem:[#allocation2 + $0x5e4] sm:$0xf0] }
 0x25e   :  { %v11252_v31 = vld [vmem:[#allocation2 + $0x41c] sm:$0xf0]  ;;  %v11208_v27 = vld [vmem:[#allocation2 + $0x2c4] sm:$0xf]  ;;  %v8067_v34 = vor.u32 %v11144_v24, %v8064_v26  ;;  %v8166_v26 = vld [vmem:[#allocation2 + $0x188] sm:$0xf] }
 0x25f   :  { %v8734_v32 = vld [vmem:[#allocation2 + $0x600] sm:$0xf]  ;;  %v8479_v44 = vor.u32 %v11252_v31, %v8478_v28  ;;  %2605 = vmatpush.bf16.msrb.mxu0 %v8223_v42  ;;  %v8867_v28 = vor.u32 %v11344_v21, %v8864_v23  ;;  %v11272_v31 = vld [vmem:[#allocation2 + $0x4c4] sm:$0xf]  ;;  %v8323_v14 = vor.u32 %v11208_v27, %v8320_v29  ;;  %v8966_v21 = vld [vmem:[#allocation2 + $0x7c8] sm:$0xf] }
 0x260   :  { %v11316_v33 = vld [vmem:[#allocation2 + $0x61c] sm:$0xf0]  ;;  %2593 = vmatmul.bf16.vlgmr.msra.gmra.mxu3 %v12355_v49  ;;  %v11136_v37 = vld [vmem:[#allocation2 + $0x84] sm:$0xf]  ;;  %v11373_v23 = vld [vmem:[#allocation2 + $0x7e4] sm:$0xf0] }
 0x261   :  { %v8735_v47 = vor.u32 %v11316_v33, %v8734_v32  ;;  %2618 = vmatpush.bf16.msrb.mxu1 %v8479_v44  ;;  %2637 = vmatpush.bf16.msrb.mxu3 %v8195_v48  ;;  %v8576_v32 = vld [vmem:[#allocation2 + $0x4e0] sm:$0xf0]  ;;  %v11173_v27 = vld [vmem:[#allocation2 + $0x1a4] sm:$0xf0]  ;;  %v8967_v29 = vor.u32 %v11373_v23, %v8966_v21 }
 0x262   :  { %2606 = vmatmul.bf16.vlgmr.msrb.gmra.mxu0 %v12363_v19  ;;  %v11336_v33 = vld [vmem:[#allocation2 + $0x6c4] sm:$0xf]  ;;  %v8579_v36 = vor.u32 %v11272_v31, %v8576_v32  ;;  %v11237_v31 = vld [vmem:[#allocation2 + $0x3a4] sm:$0xf0] }
 0x263   :  { %2631 = vmatpush.bf16.msrb.mxu2 %v8735_v47  ;;  %2650 = vmatpush.bf16.msra.mxu0 %v8451_v50  ;;  %v8032_v40 = vld [vmem:[#allocation2 + $0xa0] sm:$0xf0]  ;;  %v8835_v42 = vor.u32 %v11336_v33, %v8832_v35  ;;  %v8678_v32 = vld [vmem:[#allocation2 + $0x588] sm:$0xf] }
 0x264   :  { %2619 = vmatmul.bf16.vlgmr.msrb.gmra.mxu1 %v12367_v30  ;;  %v11200_v41 = vld [vmem:[#allocation2 + $0x284] sm:$0xf]  ;;  %v8035_v50 = vor.u32 %v11136_v37, %v8032_v40  ;;  %v11301_v33 = vld [vmem:[#allocation2 + $0x5a4] sm:$0xf0] }
 0x265   :  { %2663 = vmatpush.bf16.msra.mxu1 %v8707_v51  ;;  %2638 = vmatpush.bf16.msrb.mxu3 %v8163_v4  ;;  %v8288_v44 = vld [vmem:[#allocation2 + $0x2a0] sm:$0xf0]  ;;  %v8934_v35 = vld [vmem:[#allocation2 + $0x788] sm:$0xf]  ;;  %v8679_v37 = vor.u32 %v11301_v33, %v8678_v32 }
 0x266   :  { %2632 = vmatmul.bf16.vlgmr.msrb.gmra.mxu2 %v12359_v3  ;;  %v11264_v45 = vld [vmem:[#allocation2 + $0x484] sm:$0xf]  ;;  %v8291_v51 = vor.u32 %v11200_v41, %v8288_v44  ;;  %v8134_v40 = vld [vmem:[#allocation2 + $0x148] sm:$0xf] }
 0x267   :  { %2676 = vmatpush.bf16.msra.mxu2 %v8963_v2  ;;  %2651 = vmatpush.bf16.msra.mxu0 %v8419_v7  ;;  %v8544_v46 = vld [vmem:[#allocation2 + $0x4a0] sm:$0xf0]  ;;  %v11165_v41 = vld [vmem:[#allocation2 + $0x164] sm:$0xf0] }
 0x268   :  { %v11328_v47 = vld [vmem:[#allocation2 + $0x684] sm:$0xf]  ;;  %v8547_v54 = vor.u32 %v11264_v45, %v8544_v46  ;;  %v11229_v45 = vld [vmem:[#allocation2 + $0x364] sm:$0xf0] }
 0x269   :  { %2664 = vmatpush.bf16.msra.mxu1 %v8675_v61  ;;  %2639 = vmatpush.bf16.msrb.mxu3 %v8131_v10  ;;  %v8800_v48 = vld [vmem:[#allocation2 + $0x6a0] sm:$0xf0]  ;;  %v8646_v46 = vld [vmem:[#allocation2 + $0x548] sm:$0xf] }
 0x26a   :  { %v11128_v55 = vld [vmem:[#allocation2 + $0x44] sm:$0xf]  ;;  %v8803_v57 = vor.u32 %v11328_v47, %v8800_v48  ;;  %v11293_v47 = vld [vmem:[#allocation2 + $0x564] sm:$0xf0] }
 0x26b   :  { %2677 = vmatpush.bf16.msra.mxu2 %v8931_v6  ;;  %2652 = vmatpush.bf16.msra.mxu0 %v8387_v17  ;;  %v8000_v56 = vld [vmem:[#allocation2 + $0x60] sm:$0xf0]  ;;  %v8198_v17 = vld [vmem:[#allocation2 + $0x1c8] sm:$0xf] }
 0x26c   :  { %v11192_v2 = vld [vmem:[#allocation2 + $0x244] sm:$0xf]  ;;  %v8003_v7 = vor.u32 %v11128_v55, %v8000_v56  ;;  %v8902_v48 = vld [vmem:[#allocation2 + $0x748] sm:$0xf]  ;;  %v8647_v55 = vor.u32 %v11293_v47, %v8646_v46 }
 0x26d   :  { %2665 = vmatpush.bf16.msra.mxu1 %v8643_v15  ;;  %2640 = vmatpush.bf16.msrb.mxu3 %v8099_v22  ;;  %v8256_v58 = vld [vmem:[#allocation2 + $0x260] sm:$0xf0]  ;;  %v11181_v15 = vld [vmem:[#allocation2 + $0x1e4] sm:$0xf0] }
 0x26e   :  { %v11256_v59 = vld [vmem:[#allocation2 + $0x444] sm:$0xf]  ;;  %v8259_v9 = vor.u32 %v11192_v2, %v8256_v58  ;;  %v8102_v56 = vld [vmem:[#allocation2 + $0x108] sm:$0xf] }
 0x26f   :  { %2678 = vmatpush.bf16.msra.mxu2 %v8899_v18  ;;  %2653 = vmatpush.bf16.msra.mxu0 %v8355_v38  ;;  %v8512_v63 = vld [vmem:[#allocation2 + $0x460] sm:$0xf0]  ;;  %v8710_v18 = vld [vmem:[#allocation2 + $0x5c8] sm:$0xf]  ;;  %v8199_v38 = vor.u32 %v11181_v15, %v8198_v17 }
 0x270   :  { %v11320_v1 = vld [vmem:[#allocation2 + $0x644] sm:$0xf]  ;;  %v8515_v11 = vor.u32 %v11256_v59, %v8512_v63  ;;  %v8711_v24 = vor.u32 %v11309_v20, %v8710_v18  ;;  %v11157_v2 = vld [vmem:[#allocation2 + $0x124] sm:$0xf0] }
 0x271   :  { %2666 = vmatpush.bf16.msra.mxu1 %v8611_v53  ;;  %2641 = vmatpush.bf16.msrb.mxu3 %v8067_v34  ;;  %v8768_v4 = vld [vmem:[#allocation2 + $0x660] sm:$0xf0]  ;;  %v8455_v53 = vor.u32 %v11245_v13, %v8454_v43  ;;  %v11365_v34 = vld [vmem:[#allocation2 + $0x7a4] sm:$0xf0] }
 0x272   :  { %v11120_v61 = vld [vmem:[#allocation2 + $0x4] sm:$0xf]  ;;  %v8771_v12 = vor.u32 %v11320_v1, %v8768_v4  ;;  %v8935_v44 = vor.u32 %v11365_v34, %v8934_v35  ;;  %v11221_v59 = vld [vmem:[#allocation2 + $0x324] sm:$0xf0] }
 0x273   :  { %2679 = vmatpush.bf16.msra.mxu2 %v8867_v28  ;;  %2654 = vmatpush.bf16.msra.mxu0 %v8323_v14  ;;  %v7968_v8 = vld [vmem:[#allocation2 + $0x20] sm:$0xf0]  ;;  %v8422_v28 = vld [vmem:[#allocation2 + $0x388] sm:$0xf]  ;;  %v8167_v14 = vor.u32 %v11173_v27, %v8166_v26 }
 0x274   :  { %v11184_v6 = vld [vmem:[#allocation2 + $0x204] sm:$0xf]  ;;  %v7971_v16 = vor.u32 %v11120_v61, %v7968_v8  ;;  %v8614_v63 = vld [vmem:[#allocation2 + $0x508] sm:$0xf]  ;;  %v8103_v61 = vor.u32 %v11157_v2, %v8102_v56  ;;  %v11241_v56 = vld [vmem:[#allocation2 + $0x3cc] sm:$0xf] }
 0x275   :  { %2667 = vmatpush.bf16.msra.mxu1 %v8579_v36  ;;  %2642 = vmatpush.bf16.msrb.mxu3 %v8035_v50  ;;  %v8224_v39 = vld [vmem:[#allocation2 + $0x220] sm:$0xf0]  ;;  %v8423_v36 = vor.u32 %v11237_v31, %v8422_v28  ;;  %v11357_v50 = vld [vmem:[#allocation2 + $0x764] sm:$0xf0] }
 0x276   :  { %v11248_v52 = vld [vmem:[#allocation2 + $0x404] sm:$0xf]  ;;  %v8227_v25 = vor.u32 %v11184_v6, %v8224_v39  ;;  %v8903_v58 = vor.u32 %v11357_v50, %v8902_v48  ;;  %v11285_v1 = vld [vmem:[#allocation2 + $0x524] sm:$0xf0] }
 0x277   :  { %2680 = vmatpush.bf16.msra.mxu2 %v8835_v42  ;;  %2655 = vmatpush.bf16.msra.mxu0 %v8291_v51  ;;  %v8480_v62 = vld [vmem:[#allocation2 + $0x420] sm:$0xf0]  ;;  %v8390_v42 = vld [vmem:[#allocation2 + $0x348] sm:$0xf]  ;;  %v8135_v51 = vor.u32 %v11165_v41, %v8134_v40 }
 0x278   :  { %v11312_v5 = vld [vmem:[#allocation2 + $0x604] sm:$0xf]  ;;  %v8483_v60 = vor.u32 %v11248_v52, %v8480_v62  ;;  %v8870_v4 = vld [vmem:[#allocation2 + $0x708] sm:$0xf] }
 0x279   :  { %2668 = vmatpush.bf16.msra.mxu1 %v8547_v54  ;;  %v8736_v10 = vld [vmem:[#allocation2 + $0x620] sm:$0xf0]  ;;  %2643 = vmatpush.bf16.msrb.mxu3 %v8003_v7  ;;  %v8391_v54 = vor.u32 %v11229_v45, %v8390_v42  ;;  %v11349_v7 = vld [vmem:[#allocation2 + $0x724] sm:$0xf0] }
 0x27a   :  { %v8739_v22 = vor.u32 %v11312_v5, %v8736_v10  ;;  %v11149_v6 = vld [vmem:[#allocation2 + $0xe4] sm:$0xf0]  ;;  %v8871_v52 = vor.u32 %v11349_v7, %v8870_v4  ;;  %v11369_v4 = vld [vmem:[#allocation2 + $0x7cc] sm:$0xf] }
 0x27b   :  { %2681 = vmatpush.bf16.msra.mxu2 %v8803_v57  ;;  %2656 = vmatpush.bf16.msra.mxu0 %v8259_v9  ;;  %v8358_v57 = vld [vmem:[#allocation2 + $0x308] sm:$0xf]  ;;  %v8615_v9 = vor.u32 %v11285_v1, %v8614_v63  ;;  %v8968_v7 = vld [vmem:[#allocation2 + $0x7e8] sm:$0xf0] }
 0x27c   :  { %v8359_v8 = vor.u32 %v11221_v59, %v8358_v57  ;;  %v8326_v39 = vld [vmem:[#allocation2 + $0x2c8] sm:$0xf]  ;;  %v8456_v57 = vld [vmem:[#allocation2 + $0x3e8] sm:$0xf0] }
 0x27d   :  { %2669 = vmatpush.bf16.msra.mxu1 %v8515_v11  ;;  %2644 = vmatpush.bf16.msrb.mxu3 %v7971_v16  ;;  %v8070_v11 = vld [vmem:[#allocation2 + $0xc8] sm:$0xf]  ;;  %v8712_v59 = vld [vmem:[#allocation2 + $0x5e8] sm:$0xf0] }
 0x27e   :  { %v8582_v62 = vld [vmem:[#allocation2 + $0x4c8] sm:$0xf]  ;;  %v8071_v15 = vor.u32 %v11149_v6, %v8070_v11  ;;  %v11169_v6 = vld [vmem:[#allocation2 + $0x18c] sm:$0xf] }
 0x27f   :  { %2682 = vmatpush.bf16.msra.mxu2 %v8771_v12  ;;  %2657 = vmatpush.bf16.msra.mxu0 %v8227_v25  ;;  %v11213_v12 = vld [vmem:[#allocation2 + $0x2e4] sm:$0xf0] }
 0x280   :  { %2645 = vmatmul.bf16.vlgmr.msrb.gmra.mxu3 %v12355_v49  ;;  %v11277_v5 = vld [vmem:[#allocation2 + $0x4e4] sm:$0xf0]  ;;  %v8327_v43 = vor.u32 %v11213_v12, %v8326_v39  ;;  %v8168_v39 = vld [vmem:[#allocation2 + $0x1a8] sm:$0xf0]  ;;  %v8971_v12 = vor.u32 %v11369_v4, %v8968_v7 }
 0x281   :  { %2670 = vmatpush.bf16.msra.mxu1 %v8483_v60  ;;  %2689 = vmatpush.bf16.msra.mxu3 %v8199_v38  ;;  %v8838_v10 = vld [vmem:[#allocation2 + $0x6c8] sm:$0xf]  ;;  %v8583_v16 = vor.u32 %v11277_v5, %v8582_v62  ;;  %v8424_v62 = vld [vmem:[#allocation2 + $0x3a8] sm:$0xf0] }
 0x282   :  { %2658 = vmatmul.bf16.vlgmr.msra.gmra.mxu0 %v12363_v19  ;;  %v11341_v17 = vld [vmem:[#allocation2 + $0x6e4] sm:$0xf0]  ;;  %v11297_v5 = vld [vmem:[#allocation2 + $0x58c] sm:$0xf] }
 0x283   :  { %2683 = vmatpush.bf16.msra.mxu2 %v8739_v22  ;;  %2702 = vmatpush.bf16.msrb.mxu0 %v8455_v53  ;;  %v8038_v13 = vld [vmem:[#allocation2 + $0x88] sm:$0xf]  ;;  %v8839_v25 = vor.u32 %v11341_v17, %v8838_v10  ;;  %v8680_v10 = vld [vmem:[#allocation2 + $0x5a8] sm:$0xf0] }
 0x284   :  { %2671 = vmatmul.bf16.vlgmr.msra.gmra.mxu1 %v12367_v30  ;;  %v11141_v18 = vld [vmem:[#allocation2 + $0xa4] sm:$0xf0]  ;;  %v11361_v17 = vld [vmem:[#allocation2 + $0x78c] sm:$0xf] }
 0x285   :  { %2715 = vmatpush.bf16.msrb.mxu1 %v8711_v24  ;;  %2690 = vmatpush.bf16.msra.mxu3 %v8167_v14  ;;  %v8294_v20 = vld [vmem:[#allocation2 + $0x288] sm:$0xf]  ;;  %v8039_v53 = vor.u32 %v11141_v18, %v8038_v13  ;;  %v8683_v13 = vor.u32 %v11297_v5, %v8680_v10  ;;  %v11161_v18 = vld [vmem:[#allocation2 + $0x14c] sm:$0xf] }
 0x286   :  { %2684 = vmatmul.bf16.vlgmr.msra.gmra.mxu2 %v12359_v3  ;;  %v11205_v60 = vld [vmem:[#allocation2 + $0x2a4] sm:$0xf0]  ;;  %v11265_v4 = vld [vmem:[#allocation2 + $0x48c] sm:$0xf] }
 0x287   :  { %2728 = vmatpush.bf16.msrb.mxu2 %v8967_v29  ;;  %2703 = vmatpush.bf16.msrb.mxu0 %v8423_v36  ;;  %v8550_v21 = vld [vmem:[#allocation2 + $0x488] sm:$0xf]  ;;  %v8295_v24 = vor.u32 %v11205_v60, %v8294_v20  ;;  %v8136_v20 = vld [vmem:[#allocation2 + $0x168] sm:$0xf0] }
 0x288   :  { %v11269_v23 = vld [vmem:[#allocation2 + $0x4a4] sm:$0xf0]  ;;  %v8552_v7 = vld [vmem:[#allocation2 + $0x4a8] sm:$0xf0] }
 0x289   :  { %2716 = vmatpush.bf16.msrb.mxu1 %v8679_v37  ;;  %2691 = vmatpush.bf16.msra.mxu3 %v8135_v51  ;;  %v8806_v22 = vld [vmem:[#allocation2 + $0x688] sm:$0xf]  ;;  %v8551_v26 = vor.u32 %v11269_v23, %v8550_v21  ;;  %v8392_v21 = vld [vmem:[#allocation2 + $0x368] sm:$0xf0] }
 0x28a   :  { %v11333_v38 = vld [vmem:[#allocation2 + $0x6a4] sm:$0xf0]  ;;  %v11289_v23 = vld [vmem:[#allocation2 + $0x54c] sm:$0xf] }
 0x28b   :  { %2729 = vmatpush.bf16.msrb.mxu2 %v8935_v44  ;;  %2704 = vmatpush.bf16.msrb.mxu0 %v8391_v54  ;;  %v8006_v27 = vld [vmem:[#allocation2 + $0x48] sm:$0xf]  ;;  %v8807_v31 = vor.u32 %v11333_v38, %v8806_v22  ;;  %v11177_v54 = vld [vmem:[#allocation2 + $0x1cc] sm:$0xf] }
 0x28c   :  { %v11133_v28 = vld [vmem:[#allocation2 + $0x64] sm:$0xf0]  ;;  %v8648_v22 = vld [vmem:[#allocation2 + $0x568] sm:$0xf0] }
 0x28d   :  { %2717 = vmatpush.bf16.msrb.mxu1 %v8647_v55  ;;  %2692 = vmatpush.bf16.msra.mxu3 %v8103_v61  ;;  %v8262_v29 = vld [vmem:[#allocation2 + $0x248] sm:$0xf]  ;;  %v8007_v36 = vor.u32 %v11133_v28, %v8006_v27  ;;  %v8200_v55 = vld [vmem:[#allocation2 + $0x1e8] sm:$0xf0]  ;;  %v8651_v27 = vor.u32 %v11289_v23, %v8648_v22 }
 0x28e   :  { %v11197_v32 = vld [vmem:[#allocation2 + $0x264] sm:$0xf0]  ;;  %v11353_v38 = vld [vmem:[#allocation2 + $0x74c] sm:$0xf] }
 0x28f   :  { %2730 = vmatpush.bf16.msrb.mxu2 %v8903_v58  ;;  %2705 = vmatpush.bf16.msrb.mxu0 %v8359_v8  ;;  %v8518_v33 = vld [vmem:[#allocation2 + $0x448] sm:$0xf]  ;;  %v8263_v41 = vor.u32 %v11197_v32, %v8262_v29  ;;  %v11305_v58 = vld [vmem:[#allocation2 + $0x5cc] sm:$0xf]  ;;  %v8203_v8 = vor.u32 %v11177_v54, %v8200_v55 }
 0x290   :  { %v11261_v35 = vld [vmem:[#allocation2 + $0x464] sm:$0xf0]  ;;  %v8715_v11 = vor.u32 %v11305_v58, %v8712_v59  ;;  %v11153_v28 = vld [vmem:[#allocation2 + $0x10c] sm:$0xf] }
 0x291   :  { %2718 = vmatpush.bf16.msrb.mxu1 %v8615_v9  ;;  %2693 = vmatpush.bf16.msra.mxu3 %v8071_v15  ;;  %v8774_v34 = vld [vmem:[#allocation2 + $0x648] sm:$0xf]  ;;  %v8519_v42 = vor.u32 %v11261_v35, %v8518_v33  ;;  %v8459_v9 = vor.u32 %v11241_v56, %v8456_v57  ;;  %v8936_v15 = vld [vmem:[#allocation2 + $0x7a8] sm:$0xf0] }
 0x292   :  { %v11325_v14 = vld [vmem:[#allocation2 + $0x664] sm:$0xf0]  ;;  %v8939_v60 = vor.u32 %v11361_v17, %v8936_v15  ;;  %v8104_v29 = vld [vmem:[#allocation2 + $0x128] sm:$0xf0] }
 0x293   :  { %2731 = vmatpush.bf16.msrb.mxu2 %v8871_v52  ;;  %2706 = vmatpush.bf16.msrb.mxu0 %v8327_v43  ;;  %v7974_v37 = vld [vmem:[#allocation2 + $0x8] sm:$0xf]  ;;  %v8775_v47 = vor.u32 %v11325_v14, %v8774_v34  ;;  %v11233_v52 = vld [vmem:[#allocation2 + $0x38c] sm:$0xf]  ;;  %v8171_v43 = vor.u32 %v11169_v6, %v8168_v39  ;;  %v8555_v6 = vor.u32 %v11265_v4, %v8552_v7  ;;  %v11230_v4 = vld [vmem:[#allocation2 + $0x36c] sm:$0xf0] }
 0x294   :  { %v11125_v40 = vld [vmem:[#allocation2 + $0x24] sm:$0xf0]  ;;  %v8360_v33 = vld [vmem:[#allocation2 + $0x328] sm:$0xf0]  ;;  %v8654_v7 = vld [vmem:[#allocation2 + $0x550] sm:$0xf] }
 0x295   :  { %2719 = vmatpush.bf16.msrb.mxu1 %v8583_v16  ;;  %2694 = vmatpush.bf16.msra.mxu3 %v8039_v53  ;;  %v8230_v44 = vld [vmem:[#allocation2 + $0x208] sm:$0xf]  ;;  %v7975_v2 = vor.u32 %v11125_v40, %v7974_v37  ;;  %v8427_v16 = vor.u32 %v11233_v52, %v8424_v62  ;;  %v8904_v53 = vld [vmem:[#allocation2 + $0x768] sm:$0xf0]  ;;  %v8107_v37 = vor.u32 %v11153_v28, %v8104_v29  ;;  %v8462_v28 = vld [vmem:[#allocation2 + $0x3d0] sm:$0xf] }
 0x296   :  { %v11189_v45 = vld [vmem:[#allocation2 + $0x224] sm:$0xf0]  ;;  %v8907_v32 = vor.u32 %v11353_v38, %v8904_v53  ;;  %v11281_v35 = vld [vmem:[#allocation2 + $0x50c] sm:$0xf] }
 0x297   :  { %2732 = vmatpush.bf16.msrb.mxu2 %v8839_v25  ;;  %2707 = vmatpush.bf16.msrb.mxu0 %v8295_v24  ;;  %v8486_v46 = vld [vmem:[#allocation2 + $0x408] sm:$0xf]  ;;  %v8231_v63 = vor.u32 %v11189_v45, %v8230_v44  ;;  %v11225_v25 = vld [vmem:[#allocation2 + $0x34c] sm:$0xf]  ;;  %v8139_v24 = vor.u32 %v11161_v18, %v8136_v20 }
 0x298   :  { %v11253_v48 = vld [vmem:[#allocation2 + $0x424] sm:$0xf0]  ;;  %v8616_v34 = vld [vmem:[#allocation2 + $0x528] sm:$0xf0] }
 0x299   :  { %2720 = vmatpush.bf16.msrb.mxu1 %v8551_v26  ;;  %v8742_v50 = vld [vmem:[#allocation2 + $0x608] sm:$0xf]  ;;  %2695 = vmatpush.bf16.msra.mxu3 %v8007_v36  ;;  %v8487_v1 = vor.u32 %v11253_v48, %v8486_v46  ;;  %v8395_v26 = vor.u32 %v11225_v25, %v8392_v21  ;;  %v11345_v14 = vld [vmem:[#allocation2 + $0x70c] sm:$0xf] }
 0x29a   :  { %v11317_v51 = vld [vmem:[#allocation2 + $0x624] sm:$0xf0]  ;;  %v8872_v36 = vld [vmem:[#allocation2 + $0x728] sm:$0xf0] }
 0x29b   :  { %2733 = vmatpush.bf16.msrb.mxu2 %v8807_v31  ;;  %2708 = vmatpush.bf16.msrb.mxu0 %v8263_v41  ;;  %v8743_v61 = vor.u32 %v11317_v51, %v8742_v50  ;;  %v11217_v31 = vld [vmem:[#allocation2 + $0x30c] sm:$0xf]  ;;  %v8619_v41 = vor.u32 %v11281_v35, %v8616_v34  ;;  %v8875_v46 = vor.u32 %v11345_v14, %v8872_v36  ;;  %v8974_v14 = vld [vmem:[#allocation2 + $0x7d0] sm:$0xf] }
 0x29c   :  { %v8363_v40 = vor.u32 %v11217_v31, %v8360_v33  ;;  %v8072_v44 = vld [vmem:[#allocation2 + $0xe8] sm:$0xf0]  ;;  %v11246_v31 = vld [vmem:[#allocation2 + $0x3ec] sm:$0xf0] }
 0x29d   :  { %2721 = vmatpush.bf16.msrb.mxu1 %v8519_v42  ;;  %2696 = vmatpush.bf16.msra.mxu3 %v7975_v2  ;;  %v11145_v42 = vld [vmem:[#allocation2 + $0xcc] sm:$0xf]  ;;  %v11310_v33 = vld [vmem:[#allocation2 + $0x5ec] sm:$0xf0] }
 0x29e   :  { %v11209_v45 = vld [vmem:[#allocation2 + $0x2cc] sm:$0xf]  ;;  %v8075_v55 = vor.u32 %v11145_v42, %v8072_v44  ;;  %v11374_v36 = vld [vmem:[#allocation2 + $0x7ec] sm:$0xf0] }
 0x29f   :  { %2734 = vmatpush.bf16.msrb.mxu2 %v8775_v47  ;;  %2709 = vmatpush.bf16.msrb.mxu0 %v8231_v63  ;;  %v8328_v47 = vld [vmem:[#allocation2 + $0x2e8] sm:$0xf0]  ;;  %v8174_v44 = vld [vmem:[#allocation2 + $0x190] sm:$0xf] }
 0x2a0   :  { %2697 = vmatmul.bf16.vlgmr.msra.gmra.mxu3 %v12355_v49  ;;  %v11273_v48 = vld [vmem:[#allocation2 + $0x4cc] sm:$0xf]  ;;  %v8331_v56 = vor.u32 %v11209_v45, %v8328_v47  ;;  %v11174_v45 = vld [vmem:[#allocation2 + $0x1ac] sm:$0xf0]  ;;  %v8975_v47 = vor.u32 %v11374_v36, %v8974_v14 }
 0x2a1   :  { %2722 = vmatpush.bf16.msrb.mxu1 %v8487_v1  ;;  %2741 = vmatpush.bf16.msrb.mxu3 %v8203_v8  ;;  %v8584_v50 = vld [vmem:[#allocation2 + $0x4e8] sm:$0xf0]  ;;  %v8558_v14 = vld [vmem:[#allocation2 + $0x490] sm:$0xf] }
 0x2a2   :  { %2710 = vmatmul.bf16.vlgmr.msrb.gmra.mxu0 %v12363_v19  ;;  %v11337_v51 = vld [vmem:[#allocation2 + $0x6cc] sm:$0xf]  ;;  %v8587_v2 = vor.u32 %v11273_v48, %v8584_v50  ;;  %v11238_v48 = vld [vmem:[#allocation2 + $0x3ac] sm:$0xf0] }
 0x2a3   :  { %2735 = vmatpush.bf16.msrb.mxu2 %v8743_v61  ;;  %2754 = vmatpush.bf16.msra.mxu0 %v8459_v9  ;;  %v8840_v54 = vld [vmem:[#allocation2 + $0x6e8] sm:$0xf0]  ;;  %v8686_v50 = vld [vmem:[#allocation2 + $0x590] sm:$0xf] }
 0x2a4   :  { %2723 = vmatmul.bf16.vlgmr.msrb.gmra.mxu1 %v12367_v30  ;;  %v11137_v57 = vld [vmem:[#allocation2 + $0x8c] sm:$0xf]  ;;  %v8843_v63 = vor.u32 %v11337_v51, %v8840_v54  ;;  %v11302_v51 = vld [vmem:[#allocation2 + $0x5ac] sm:$0xf0] }
 0x2a5   :  { %2767 = vmatpush.bf16.msra.mxu1 %v8715_v11  ;;  %2742 = vmatpush.bf16.msrb.mxu3 %v8171_v43  ;;  %v8040_v58 = vld [vmem:[#allocation2 + $0xa8] sm:$0xf0]  ;;  %v8942_v54 = vld [vmem:[#allocation2 + $0x790] sm:$0xf] }
 0x2a6   :  { %2736 = vmatmul.bf16.vlgmr.msrb.gmra.mxu2 %v12359_v3  ;;  %v11201_v59 = vld [vmem:[#allocation2 + $0x28c] sm:$0xf]  ;;  %v8043_v9 = vor.u32 %v11137_v57, %v8040_v58  ;;  %v8687_v57 = vor.u32 %v11302_v51, %v8686_v50  ;;  %v8142_v58 = vld [vmem:[#allocation2 + $0x150] sm:$0xf] }
 0x2a7   :  { %2780 = vmatpush.bf16.msra.mxu2 %v8971_v12  ;;  %2755 = vmatpush.bf16.msra.mxu0 %v8427_v16  ;;  %v8296_v1 = vld [vmem:[#allocation2 + $0x2a8] sm:$0xf0]  ;;  %v11270_v36 = vld [vmem:[#allocation2 + $0x4ac] sm:$0xf0] }
 0x2a8   :  { %v11329_v61 = vld [vmem:[#allocation2 + $0x68c] sm:$0xf]  ;;  %v8299_v11 = vor.u32 %v11201_v59, %v8296_v1  ;;  %v11166_v59 = vld [vmem:[#allocation2 + $0x16c] sm:$0xf0] }
 0x2a9   :  { %2768 = vmatpush.bf16.msra.mxu1 %v8683_v13  ;;  %2743 = vmatpush.bf16.msrb.mxu3 %v8139_v24  ;;  %v8808_v8 = vld [vmem:[#allocation2 + $0x6a8] sm:$0xf0]  ;;  %v11198_v50 = vld [vmem:[#allocation2 + $0x26c] sm:$0xf0] }
 0x2aa   :  { %v11129_v39 = vld [vmem:[#allocation2 + $0x4c] sm:$0xf]  ;;  %v8811_v62 = vor.u32 %v11329_v61, %v8808_v8  ;;  %v11294_v61 = vld [vmem:[#allocation2 + $0x56c] sm:$0xf0] }
 0x2ab   :  { %2781 = vmatpush.bf16.msra.mxu2 %v8939_v60  ;;  %2756 = vmatpush.bf16.msra.mxu0 %v8395_v26  ;;  %v8008_v52 = vld [vmem:[#allocation2 + $0x68] sm:$0xf0]  ;;  %v8206_v26 = vld [vmem:[#allocation2 + $0x1d0] sm:$0xf] }
 0x2ac   :  { %v11193_v12 = vld [vmem:[#allocation2 + $0x24c] sm:$0xf]  ;;  %v8011_v16 = vor.u32 %v11129_v39, %v8008_v52  ;;  %v8910_v8 = vld [vmem:[#allocation2 + $0x750] sm:$0xf]  ;;  %v8655_v39 = vor.u32 %v11294_v61, %v8654_v7 }
 0x2ad   :  { %2769 = vmatpush.bf16.msra.mxu1 %v8651_v27  ;;  %2744 = vmatpush.bf16.msrb.mxu3 %v8107_v37  ;;  %v8264_v5 = vld [vmem:[#allocation2 + $0x268] sm:$0xf0]  ;;  %v11182_v27 = vld [vmem:[#allocation2 + $0x1ec] sm:$0xf0] }
 0x2ae   :  { %v11257_v10 = vld [vmem:[#allocation2 + $0x44c] sm:$0xf]  ;;  %v8267_v20 = vor.u32 %v11193_v12, %v8264_v5  ;;  %v8110_v52 = vld [vmem:[#allocation2 + $0x110] sm:$0xf] }
 0x2af   :  { %2782 = vmatpush.bf16.msra.mxu2 %v8907_v32  ;;  %2757 = vmatpush.bf16.msra.mxu0 %v8363_v40  ;;  %v8520_v17 = vld [vmem:[#allocation2 + $0x468] sm:$0xf0]  ;;  %v8718_v32 = vld [vmem:[#allocation2 + $0x5d0] sm:$0xf]  ;;  %v8207_v40 = vor.u32 %v11182_v27, %v8206_v26 }
 0x2b0   :  { %v11321_v15 = vld [vmem:[#allocation2 + $0x64c] sm:$0xf]  ;;  %v8523_v25 = vor.u32 %v11257_v10, %v8520_v17  ;;  %v8719_v42 = vor.u32 %v11310_v33, %v8718_v32  ;;  %v11158_v12 = vld [vmem:[#allocation2 + $0x12c] sm:$0xf0] }
 0x2b1   :  { %2770 = vmatpush.bf16.msra.mxu1 %v8619_v41  ;;  %2745 = vmatpush.bf16.msrb.mxu3 %v8075_v55  ;;  %v8776_v43 = vld [vmem:[#allocation2 + $0x668] sm:$0xf0]  ;;  %v8463_v41 = vor.u32 %v11246_v31, %v8462_v28  ;;  %v11366_v55 = vld [vmem:[#allocation2 + $0x7ac] sm:$0xf0] }
 0x2b2   :  { %v11121_v13 = vld [vmem:[#allocation2 + $0xc] sm:$0xf]  ;;  %v8779_v22 = vor.u32 %v11321_v15, %v8776_v43  ;;  %v8943_v1 = vor.u32 %v11366_v55, %v8942_v54  ;;  %v11222_v10 = vld [vmem:[#allocation2 + $0x32c] sm:$0xf0] }
 0x2b3   :  { %2783 = vmatpush.bf16.msra.mxu2 %v8875_v46  ;;  %2758 = vmatpush.bf16.msra.mxu0 %v8331_v56  ;;  %v7976_v18 = vld [vmem:[#allocation2 + $0x28] sm:$0xf0]  ;;  %v8430_v46 = vld [vmem:[#allocation2 + $0x390] sm:$0xf]  ;;  %v8175_v56 = vor.u32 %v11174_v45, %v8174_v44  ;;  %v8559_v44 = vor.u32 %v11270_v36, %v8558_v14  ;;  %v8400_v14 = vld [vmem:[#allocation2 + $0x370] sm:$0xf0] }
 0x2b4   :  { %v11185_v60 = vld [vmem:[#allocation2 + $0x20c] sm:$0xf]  ;;  %v7979_v29 = vor.u32 %v11121_v13, %v7976_v18  ;;  %v8622_v17 = vld [vmem:[#allocation2 + $0x510] sm:$0xf]  ;;  %v8111_v13 = vor.u32 %v11158_v12, %v8110_v52  ;;  %v11242_v52 = vld [vmem:[#allocation2 + $0x3d4] sm:$0xf] }
 0x2b5   :  { %2771 = vmatpush.bf16.msra.mxu1 %v8587_v2  ;;  %2746 = vmatpush.bf16.msrb.mxu3 %v8043_v9  ;;  %v8232_v21 = vld [vmem:[#allocation2 + $0x228] sm:$0xf0]  ;;  %v8431_v2 = vor.u32 %v11238_v48, %v8430_v46  ;;  %v11358_v9 = vld [vmem:[#allocation2 + $0x76c] sm:$0xf0]  ;;  %v11290_v36 = vld [vmem:[#allocation2 + $0x554] sm:$0xf] }
 0x2b6   :  { %v11249_v23 = vld [vmem:[#allocation2 + $0x40c] sm:$0xf]  ;;  %v8235_v35 = vor.u32 %v11185_v60, %v8232_v21  ;;  %v8911_v5 = vor.u32 %v11358_v9, %v8910_v8  ;;  %v11286_v15 = vld [vmem:[#allocation2 + $0x52c] sm:$0xf0] }
 0x2b7   :  { %2784 = vmatpush.bf16.msra.mxu2 %v8843_v63  ;;  %2759 = vmatpush.bf16.msra.mxu0 %v8299_v11  ;;  %v8488_v38 = vld [vmem:[#allocation2 + $0x428] sm:$0xf0]  ;;  %v8398_v63 = vld [vmem:[#allocation2 + $0x350] sm:$0xf]  ;;  %v8143_v11 = vor.u32 %v11166_v59, %v8142_v58 }
 0x2b8   :  { %v11313_v53 = vld [vmem:[#allocation2 + $0x60c] sm:$0xf]  ;;  %v8491_v34 = vor.u32 %v11249_v23, %v8488_v38  ;;  %v8878_v43 = vld [vmem:[#allocation2 + $0x710] sm:$0xf] }
 0x2b9   :  { %2772 = vmatpush.bf16.msra.mxu1 %v8555_v6  ;;  %v8744_v24 = vld [vmem:[#allocation2 + $0x628] sm:$0xf0]  ;;  %2747 = vmatpush.bf16.msrb.mxu3 %v8011_v16  ;;  %v8399_v6 = vor.u32 %v11230_v4, %v8398_v63  ;;  %v11350_v16 = vld [vmem:[#allocation2 + $0x72c] sm:$0xf0] }
 0x2ba   :  { %v8747_v37 = vor.u32 %v11313_v53, %v8744_v24  ;;  %v11150_v60 = vld [vmem:[#allocation2 + $0xec] sm:$0xf0]  ;;  %v8879_v23 = vor.u32 %v11350_v16, %v8878_v43  ;;  %v11370_v43 = vld [vmem:[#allocation2 + $0x7d4] sm:$0xf] }
 0x2bb   :  { %2785 = vmatpush.bf16.msra.mxu2 %v8811_v62  ;;  %2760 = vmatpush.bf16.msra.mxu0 %v8267_v20  ;;  %v8366_v62 = vld [vmem:[#allocation2 + $0x310] sm:$0xf]  ;;  %v8623_v20 = vor.u32 %v11286_v15, %v8622_v17  ;;  %v8976_v16 = vld [vmem:[#allocation2 + $0x7f0] sm:$0xf0] }
 0x2bc   :  { %v8367_v18 = vor.u32 %v11222_v10, %v8366_v62  ;;  %v8334_v21 = vld [vmem:[#allocation2 + $0x2d0] sm:$0xf]  ;;  %v8464_v62 = vld [vmem:[#allocation2 + $0x3f0] sm:$0xf0] }
 0x2bd   :  { %2773 = vmatpush.bf16.msra.mxu1 %v8523_v25  ;;  %2748 = vmatpush.bf16.msrb.mxu3 %v7979_v29  ;;  %v8078_v25 = vld [vmem:[#allocation2 + $0xd0] sm:$0xf]  ;;  %v8720_v10 = vld [vmem:[#allocation2 + $0x5f0] sm:$0xf0] }
 0x2be   :  { %v8590_v38 = vld [vmem:[#allocation2 + $0x4d0] sm:$0xf]  ;;  %v8079_v27 = vor.u32 %v11150_v60, %v8078_v25  ;;  %v11170_v60 = vld [vmem:[#allocation2 + $0x194] sm:$0xf] }
 0x2bf   :  { %2786 = vmatpush.bf16.msra.mxu2 %v8779_v22  ;;  %2761 = vmatpush.bf16.msra.mxu0 %v8235_v35  ;;  %v11214_v22 = vld [vmem:[#allocation2 + $0x2ec] sm:$0xf0] }
 0x2c0   :  { %2749 = vmatmul.bf16.vlgmr.msrb.gmra.mxu3 %v12355_v49  ;;  %v11278_v53 = vld [vmem:[#allocation2 + $0x4ec] sm:$0xf0]  ;;  %v8335_v28 = vor.u32 %v11214_v22, %v8334_v21  ;;  %v8176_v21 = vld [vmem:[#allocation2 + $0x1b0] sm:$0xf0]  ;;  %v8979_v22 = vor.u32 %v11370_v43, %v8976_v16 }
 0x2c1   :  { %2774 = vmatpush.bf16.msra.mxu1 %v8491_v34  ;;  %2793 = vmatpush.bf16.msra.mxu3 %v8207_v40  ;;  %v8846_v24 = vld [vmem:[#allocation2 + $0x6d0] sm:$0xf]  ;;  %v8591_v29 = vor.u32 %v11278_v53, %v8590_v38  ;;  %v8432_v38 = vld [vmem:[#allocation2 + $0x3b0] sm:$0xf0] }
 0x2c2   :  { %2762 = vmatmul.bf16.vlgmr.msra.gmra.mxu0 %v12363_v19  ;;  %v11342_v26 = vld [vmem:[#allocation2 + $0x6ec] sm:$0xf0]  ;;  %v11298_v53 = vld [vmem:[#allocation2 + $0x594] sm:$0xf] }
 0x2c3   :  { %2787 = vmatpush.bf16.msra.mxu2 %v8747_v37  ;;  %2806 = vmatpush.bf16.msrb.mxu0 %v8463_v41  ;;  %v8046_v31 = vld [vmem:[#allocation2 + $0x90] sm:$0xf]  ;;  %v8847_v35 = vor.u32 %v11342_v26, %v8846_v24  ;;  %v8688_v24 = vld [vmem:[#allocation2 + $0x5b0] sm:$0xf0] }
 0x2c4   :  { %2775 = vmatmul.bf16.vlgmr.msra.gmra.mxu1 %v12367_v30  ;;  %v11142_v32 = vld [vmem:[#allocation2 + $0xac] sm:$0xf0]  ;;  %v11362_v26 = vld [vmem:[#allocation2 + $0x794] sm:$0xf] }
 0x2c5   :  { %2819 = vmatpush.bf16.msrb.mxu1 %v8719_v42  ;;  %2794 = vmatpush.bf16.msra.mxu3 %v8175_v56  ;;  %v8302_v33 = vld [vmem:[#allocation2 + $0x290] sm:$0xf]  ;;  %v8047_v41 = vor.u32 %v11142_v32, %v8046_v31  ;;  %v8691_v31 = vor.u32 %v11298_v53, %v8688_v24  ;;  %v11162_v32 = vld [vmem:[#allocation2 + $0x154] sm:$0xf] }
 0x2c6   :  { %2788 = vmatmul.bf16.vlgmr.msra.gmra.mxu2 %v12359_v3  ;;  %v11206_v34 = vld [vmem:[#allocation2 + $0x2ac] sm:$0xf0]  ;;  %v11202_v43 = vld [vmem:[#allocation2 + $0x294] sm:$0xf] }
 0x2c7   :  { %2832 = vmatpush.bf16.msrb.mxu2 %v8975_v47  ;;  %2807 = vmatpush.bf16.msrb.mxu0 %v8431_v2  ;;  %v8814_v37 = vld [vmem:[#allocation2 + $0x690] sm:$0xf]  ;;  %v8303_v42 = vor.u32 %v11206_v34, %v8302_v33  ;;  %v8144_v33 = vld [vmem:[#allocation2 + $0x170] sm:$0xf0] }
 0x2c8   :  { %v11334_v40 = vld [vmem:[#allocation2 + $0x6ac] sm:$0xf0]  ;;  %v11130_v53 = vld [vmem:[#allocation2 + $0x54] sm:$0xf] }
 0x2c9   :  { %2820 = vmatpush.bf16.msrb.mxu1 %v8687_v57  ;;  %2795 = vmatpush.bf16.msra.mxu3 %v8143_v11  ;;  %v8014_v45 = vld [vmem:[#allocation2 + $0x50] sm:$0xf]  ;;  %v8815_v48 = vor.u32 %v11334_v40, %v8814_v37  ;;  %v8656_v37 = vld [vmem:[#allocation2 + $0x570] sm:$0xf0] }
 0x2ca   :  { %v11134_v46 = vld [vmem:[#allocation2 + $0x6c] sm:$0xf0]  ;;  %v11354_v40 = vld [vmem:[#allocation2 + $0x754] sm:$0xf] }
 0x2cb   :  { %2833 = vmatpush.bf16.msrb.mxu2 %v8943_v1  ;;  %2808 = vmatpush.bf16.msrb.mxu0 %v8399_v6  ;;  %v8270_v47 = vld [vmem:[#allocation2 + $0x250] sm:$0xf]  ;;  %v8015_v2 = vor.u32 %v11134_v46, %v8014_v45  ;;  %v11178_v6 = vld [vmem:[#allocation2 + $0x1d4] sm:$0xf]  ;;  %v8659_v45 = vor.u32 %v11290_v36, %v8656_v37 }
 0x2cc   :  { %v8526_v51 = vld [vmem:[#allocation2 + $0x450] sm:$0xf]  ;;  %v8271_v59 = vor.u32 %v11198_v50, %v8270_v47  ;;  %v11154_v46 = vld [vmem:[#allocation2 + $0x114] sm:$0xf] }
 0x2cd   :  { %2821 = vmatpush.bf16.msrb.mxu1 %v8655_v39  ;;  %2796 = vmatpush.bf16.msra.mxu3 %v8111_v13  ;;  %v11262_v54 = vld [vmem:[#allocation2 + $0x46c] sm:$0xf0]  ;;  %v8208_v39 = vld [vmem:[#allocation2 + $0x1f0] sm:$0xf0] }
 0x2ce   :  { %v8782_v55 = vld [vmem:[#allocation2 + $0x650] sm:$0xf]  ;;  %v8527_v63 = vor.u32 %v11262_v54, %v8526_v51  ;;  %v8112_v47 = vld [vmem:[#allocation2 + $0x130] sm:$0xf0] }
 0x2cf   :  { %2834 = vmatpush.bf16.msrb.mxu2 %v8911_v5  ;;  %2809 = vmatpush.bf16.msrb.mxu0 %v8367_v18  ;;  %v11326_v56 = vld [vmem:[#allocation2 + $0x66c] sm:$0xf0]  ;;  %v11306_v5 = vld [vmem:[#allocation2 + $0x5d4] sm:$0xf]  ;;  %v8211_v18 = vor.u32 %v11178_v6, %v8208_v39 }
 0x2d0   :  { %v7982_v57 = vld [vmem:[#allocation2 + $0x10] sm:$0xf]  ;;  %v8783_v61 = vor.u32 %v11326_v56, %v8782_v55  ;;  %v8723_v25 = vor.u32 %v11306_v5, %v8720_v10  ;;  %v8368_v51 = vld [vmem:[#allocation2 + $0x330] sm:$0xf0] }
 0x2d1   :  { %2822 = vmatpush.bf16.msrb.mxu1 %v8623_v20  ;;  %2797 = vmatpush.bf16.msra.mxu3 %v8079_v27  ;;  %v11126_v58 = vld [vmem:[#allocation2 + $0x2c] sm:$0xf0]  ;;  %v8467_v20 = vor.u32 %v11242_v52, %v8464_v62  ;;  %v8944_v27 = vld [vmem:[#allocation2 + $0x7b0] sm:$0xf0] }
 0x2d2   :  { %v8238_v1 = vld [vmem:[#allocation2 + $0x210] sm:$0xf]  ;;  %v7983_v12 = vor.u32 %v11126_v58, %v7982_v57  ;;  %v8947_v34 = vor.u32 %v11362_v26, %v8944_v27  ;;  %v11282_v54 = vld [vmem:[#allocation2 + $0x514] sm:$0xf]  ;;  %v8115_v57 = vor.u32 %v11154_v46, %v8112_v47 }
 0x2d3   :  { %2835 = vmatpush.bf16.msrb.mxu2 %v8879_v23  ;;  %2810 = vmatpush.bf16.msrb.mxu0 %v8335_v28  ;;  %v11190_v4 = vld [vmem:[#allocation2 + $0x22c] sm:$0xf0]  ;;  %v11234_v23 = vld [vmem:[#allocation2 + $0x394] sm:$0xf]  ;;  %v8179_v28 = vor.u32 %v11170_v60, %v8176_v21 }
 0x2d4   :  { %v8494_v7 = vld [vmem:[#allocation2 + $0x410] sm:$0xf]  ;;  %v8239_v17 = vor.u32 %v11190_v4, %v8238_v1  ;;  %v8624_v55 = vld [vmem:[#allocation2 + $0x530] sm:$0xf0] }
 0x2d5   :  { %2823 = vmatpush.bf16.msrb.mxu1 %v8591_v29  ;;  %2798 = vmatpush.bf16.msra.mxu3 %v8047_v41  ;;  %v11254_v8 = vld [vmem:[#allocation2 + $0x42c] sm:$0xf0]  ;;  %v8435_v29 = vor.u32 %v11234_v23, %v8432_v38  ;;  %v8912_v41 = vld [vmem:[#allocation2 + $0x770] sm:$0xf0] }
 0x2d6   :  { %v8750_v9 = vld [vmem:[#allocation2 + $0x610] sm:$0xf]  ;;  %v8495_v15 = vor.u32 %v11254_v8, %v8494_v7  ;;  %v8915_v50 = vor.u32 %v11354_v40, %v8912_v41  ;;  %v11346_v56 = vld [vmem:[#allocation2 + $0x714] sm:$0xf] }
 0x2d7   :  { %2836 = vmatpush.bf16.msrb.mxu2 %v8847_v35  ;;  %2811 = vmatpush.bf16.msrb.mxu0 %v8303_v42  ;;  %v11318_v11 = vld [vmem:[#allocation2 + $0x62c] sm:$0xf0]  ;;  %v11226_v35 = vld [vmem:[#allocation2 + $0x354] sm:$0xf]  ;;  %v8147_v42 = vor.u32 %v11162_v32, %v8144_v33 }
 0x2d8   :  { %v8751_v13 = vor.u32 %v11318_v11, %v8750_v9  ;;  %v11146_v1 = vld [vmem:[#allocation2 + $0xd4] sm:$0xf] }
 0x2d9   :  { %2824 = vmatpush.bf16.msrb.mxu1 %v8559_v44  ;;  %2799 = vmatpush.bf16.msra.mxu3 %v8015_v2  ;;  %v8403_v44 = vor.u32 %v11226_v35, %v8400_v14  ;;  %v8880_v2 = vld [vmem:[#allocation2 + $0x730] sm:$0xf0] }
 0x2da   :  { %v8080_v4 = vld [vmem:[#allocation2 + $0xf0] sm:$0xf0]  ;;  %v8883_v8 = vor.u32 %v11346_v56, %v8880_v2 }
 0x2db   :  { %2837 = vmatpush.bf16.msrb.mxu2 %v8815_v48  ;;  %2812 = vmatpush.bf16.msrb.mxu0 %v8271_v59  ;;  %v11218_v48 = vld [vmem:[#allocation2 + $0x314] sm:$0xf] }
 0x2dc   :  { %v8371_v59 = vor.u32 %v11218_v48, %v8368_v51  ;;  %v11210_v7 = vld [vmem:[#allocation2 + $0x2d4] sm:$0xf] }
 0x2dd   :  { %2825 = vmatpush.bf16.msrb.mxu1 %v8527_v63  ;;  %2800 = vmatpush.bf16.msra.mxu3 %v7983_v12  ;;  %v8627_v63 = vor.u32 %v11282_v54, %v8624_v55  ;;  %v8336_v9 = vld [vmem:[#allocation2 + $0x2f0] sm:$0xf0]  ;;  %v8083_v12 = vor.u32 %v11146_v1, %v8080_v4 }
 0x2de   :  { %v11274_v11 = vld [vmem:[#allocation2 + $0x4d4] sm:$0xf]  ;;  %v8339_v62 = vor.u32 %v11210_v7, %v8336_v9 }
 0x2df   :  { %2838 = vmatpush.bf16.msrb.mxu2 %v8783_v61  ;;  %2813 = vmatpush.bf16.msrb.mxu0 %v8239_v17  ;;  %v2607_v58 = vpop.f32.mrf.mxu0  ;;  %v8592_v6 = vld [vmem:[#allocation2 + $0x4f0] sm:$0xf0] }
 0x2e0   :  { %2801 = vmatmul.bf16.vlgmr.msra.gmra.mxu3 %v12355_v49  ;;  %v11338_v39 = vld [vmem:[#allocation2 + $0x6d4] sm:$0xf]  ;;  %v8595_v5 = vor.u32 %v11274_v11, %v8592_v6  ;;  %v11247_v11 = vld [vmem:[#allocation2 + $0x3f4] sm:$0xf0] }
 0x2e1   :  { %2826 = vmatpush.bf16.msrb.mxu1 %v8495_v15  ;;  %2845 = vmatpush.bf16.msrb.mxu3 %v8211_v18  ;;  %v2620_v61 = vpop.f32.mrf.mxu1  ;;  %v8848_v52 = vld [vmem:[#allocation2 + $0x6f0] sm:$0xf0]  ;;  %v8726_v6 = vld [vmem:[#allocation2 + $0x5d8] sm:$0xf] }
 0x2e2   :  { %2814 = vmatmul.bf16.vlgmr.msrb.gmra.mxu0 %v12363_v19  ;;  %v11138_v17 = vld [vmem:[#allocation2 + $0x94] sm:$0xf]  ;;  %v8851_v16 = vor.u32 %v11338_v39, %v8848_v52  ;;  %v11311_v39 = vld [vmem:[#allocation2 + $0x5f4] sm:$0xf0] }
 0x2e3   :  { %2839 = vmatpush.bf16.msrb.mxu2 %v8751_v13  ;;  %2858 = vmatpush.bf16.msra.mxu0 %v8467_v20  ;;  %v2594_v10 = vpop.f32.mrf.mxu3  ;;  %v8048_v15 = vld [vmem:[#allocation2 + $0xb0] sm:$0xf0] }
 0x2e4   :  { %2827 = vmatmul.bf16.vlgmr.msrb.gmra.mxu1 %v12367_v30  ;;  %v2608_v13 = vadd.f32 %v2607_v58, %v2594_v10  ;;  %v8304_v18 = vld [vmem:[#allocation2 + $0x2b0] sm:$0xf0]  ;;  %v8051_v38 = vor.u32 %v11138_v17, %v8048_v15  ;;  %v8982_v10 = vld [vmem:[#allocation2 + $0x7d8] sm:$0xf] }
 0x2e5   :  { %2871 = vmatpush.bf16.msra.mxu1 %v8723_v25  ;;  %2846 = vmatpush.bf16.msrb.mxu3 %v8179_v28  ;;  %v11266_v20 = vld [vmem:[#allocation2 + $0x494] sm:$0xf]  ;;  %v8307_v26 = vor.u32 %v11202_v43, %v8304_v18  ;;  %v11375_v17 = vld [vmem:[#allocation2 + $0x7f4] sm:$0xf0] }
 0x2e6   :  { %2840 = vmatmul.bf16.vlgmr.msrb.gmra.mxu2 %v12359_v3  ;;  %v8560_v25 = vld [vmem:[#allocation2 + $0x4b0] sm:$0xf0] }
 0x2e7   :  { %2884 = vmatpush.bf16.msra.mxu2 %v8979_v22  ;;  %2859 = vmatpush.bf16.msra.mxu0 %v8435_v29  ;;  %v11330_v21 = vld [vmem:[#allocation2 + $0x694] sm:$0xf]  ;;  %v2621_v22 = vadd.f32 %v2620_v61, %v2608_v13  ;;  %v2609_v24 = vpop.f32.mrf.mxu0  ;;  %v8563_v27 = vor.u32 %v11266_v20, %v8560_v25  ;;  %v11183_v61 = vld [vmem:[#allocation2 + $0x1f4] sm:$0xf0]  ;;  %v8727_v25 = vor.u32 %v11311_v39, %v8726_v6 }
 0x2e8   :  { %v8816_v23 = vld [vmem:[#allocation2 + $0x6b0] sm:$0xf0] }
 0x2e9   :  { %2872 = vmatpush.bf16.msra.mxu1 %v8691_v31  ;;  %2847 = vmatpush.bf16.msrb.mxu3 %v8147_v42  ;;  %v2633_v60 = vpop.f32.mrf.mxu2  ;;  %v8016_v28 = vld [vmem:[#allocation2 + $0x70] sm:$0xf0]  ;;  %v2622_v32 = vpop.f32.mrf.mxu1  ;;  %v8819_v33 = vor.u32 %v11330_v21, %v8816_v23  ;;  %v8438_v21 = vld [vmem:[#allocation2 + $0x398] sm:$0xf]  ;;  %v8983_v23 = vor.u32 %v11375_v17, %v8982_v10 }
 0x2ea   :  { %v11194_v29 = vld [vmem:[#allocation2 + $0x254] sm:$0xf]  ;;  %v12389_v35 = vadd.f32 %v2633_v60, %v2621_v22  ;;  %v11175_v60 = vld [vmem:[#allocation2 + $0x1b4] sm:$0xf0] }
 0x2eb   :  { %2885 = vmatpush.bf16.msra.mxu2 %v8947_v34  ;;  %2860 = vmatpush.bf16.msra.mxu0 %v8403_v44  ;;  %v8272_v31 = vld [vmem:[#allocation2 + $0x270] sm:$0xf0]  ;;  %v2596_v2 = vpop.f32.mrf.mxu3  ;;  %v11239_v22 = vld [vmem:[#allocation2 + $0x3b4] sm:$0xf0] }
 0x2ec   :  { %v11258_v34 = vld [vmem:[#allocation2 + $0x454] sm:$0xf]  ;;  %v3003_v42 = vsel %vm291_vm2, %v12389_v35, 0.0  ;;  %v3067_v44 = vmul.f32 %v12389_v35, %v12389_v35  ;;  %v8275_v51 = vor.u32 %v11194_v29, %v8272_v31  ;;  %v8150_v31 = vld [vmem:[#allocation2 + $0x158] sm:$0xf] }
 0x2ed   :  { %2873 = vmatpush.bf16.msra.mxu1 %v8659_v45  ;;  %2848 = vmatpush.bf16.msrb.mxu3 %v8115_v57  ;;  %v8528_v14 = vld [vmem:[#allocation2 + $0x470] sm:$0xf0]  ;;  %v8019_v45 = vor.u32 %v11130_v53, %v8016_v28  ;;  %v11303_v53 = vld [vmem:[#allocation2 + $0x5b4] sm:$0xf0] }
 0x2ee   :  { %v11322_v36 = vld [vmem:[#allocation2 + $0x654] sm:$0xf]  ;;  %v8531_v54 = vor.u32 %v11258_v34, %v8528_v14  ;;  %v3075_v57 = vsel %vm291_vm2, %v3067_v44, 0.0  ;;  %v11367_v28 = vld [vmem:[#allocation2 + $0x7b4] sm:$0xf0]  ;;  %v8439_v14 = vor.u32 %v11239_v22, %v8438_v21 }
 0x2ef   :  { %2886 = vmatpush.bf16.msra.mxu2 %v8915_v50  ;;  %2861 = vmatpush.bf16.msra.mxu0 %v8371_v59  ;;  %v8784_v37 = vld [vmem:[#allocation2 + $0x670] sm:$0xf0]  ;;  %v3004_v50 = vrot.slane %v3003_v42, 4  ;;  %v3076_v7 = vrot.slane %v3075_v57, 4  ;;  %v11167_v32 = vld [vmem:[#allocation2 + $0x174] sm:$0xf0] }
 0x2f0   :  { %v11122_v40 = vld [vmem:[#allocation2 + $0x14] sm:$0xf]  ;;  %v8787_v58 = vor.u32 %v11322_v36, %v8784_v37  ;;  %v8406_v37 = vld [vmem:[#allocation2 + $0x358] sm:$0xf] }
 0x2f1   :  { %2874 = vmatpush.bf16.msra.mxu1 %v8627_v63  ;;  %2849 = vmatpush.bf16.msrb.mxu3 %v8083_v12  ;;  %v7984_v41 = vld [vmem:[#allocation2 + $0x30] sm:$0xf0]  ;;  %v8214_v63 = vld [vmem:[#allocation2 + $0x1d8] sm:$0xf]  ;;  %v2635_v1 = vpop.f32.mrf.mxu2  ;;  %v3005_v4 = vadd.f32 %v3004_v50, %v3003_v42  ;;  %v3077_v12 = vadd.f32 %v3076_v7, %v3075_v57  ;;  %v8151_v50 = vor.u32 %v11167_v32, %v8150_v31 }
 0x2f2   :  { %v11186_v46 = vld [vmem:[#allocation2 + $0x214] sm:$0xf]  ;;  %v7987_v9 = vor.u32 %v11122_v40, %v7984_v41  ;;  %v8215_v43 = vor.u32 %v11183_v61, %v8214_v63  ;;  %v11231_v40 = vld [vmem:[#allocation2 + $0x374] sm:$0xf0] }
 0x2f3   :  { %2887 = vmatpush.bf16.msra.mxu2 %v8883_v8  ;;  %2862 = vmatpush.bf16.msra.mxu0 %v8339_v62  ;;  %v8240_v47 = vld [vmem:[#allocation2 + $0x230] sm:$0xf0]  ;;  %v8470_v8 = vld [vmem:[#allocation2 + $0x3d8] sm:$0xf]  ;;  %v3006_v52 = vrot.slane %v3005_v4, 2  ;;  %v3078_v18 = vrot.slane %v3077_v12, 2 }
 0x2f4   :  { %v11250_v48 = vld [vmem:[#allocation2 + $0x414] sm:$0xf]  ;;  %v8243_v62 = vor.u32 %v11186_v46, %v8240_v47  ;;  %v8471_v20 = vor.u32 %v11247_v11, %v8470_v8  ;;  %v8662_v42 = vld [vmem:[#allocation2 + $0x558] sm:$0xf] }
 0x2f5   :  { %2875 = vmatpush.bf16.msra.mxu1 %v8595_v5  ;;  %2850 = vmatpush.bf16.msrb.mxu3 %v8051_v38  ;;  %v8496_v55 = vld [vmem:[#allocation2 + $0x430] sm:$0xf0]  ;;  %v3007_v13 = vadd.f32 %v3006_v52, %v3005_v4  ;;  %v8694_v38 = vld [vmem:[#allocation2 + $0x598] sm:$0xf] }
 0x2f6   :  { %v11314_v56 = vld [vmem:[#allocation2 + $0x614] sm:$0xf]  ;;  %v8499_v5 = vor.u32 %v11250_v48, %v8496_v55  ;;  %v8695_v36 = vor.u32 %v11303_v53, %v8694_v38  ;;  %v11295_v44 = vld [vmem:[#allocation2 + $0x574] sm:$0xf0] }
 0x2f7   :  { %2888 = vmatpush.bf16.msra.mxu2 %v8851_v16  ;;  %2863 = vmatpush.bf16.msra.mxu0 %v8307_v26  ;;  %v8752_v59 = vld [vmem:[#allocation2 + $0x630] sm:$0xf0]  ;;  %v8182_v16 = vld [vmem:[#allocation2 + $0x198] sm:$0xf]  ;;  %v3008_v24 = vrot.slane %v3007_v13, 1  ;;  %v3079_v26 = vadd.f32 %v3078_v18, %v3077_v12 }
 0x2f8   :  { %v8755_v15 = vor.u32 %v11314_v56, %v8752_v59  ;;  %v8183_v29 = vor.u32 %v11175_v60, %v8182_v16  ;;  %v8918_v47 = vld [vmem:[#allocation2 + $0x758] sm:$0xf]  ;;  %v8663_v56 = vor.u32 %v11295_v44, %v8662_v42 }
 0x2f9   :  { %2876 = vmatpush.bf16.msra.mxu1 %v8563_v27  ;;  %2851 = vmatpush.bf16.msrb.mxu3 %v8019_v45  ;;  %v8950_v27 = vld [vmem:[#allocation2 + $0x798] sm:$0xf]  ;;  %v3080_v34 = vrot.slane %v3079_v26, 1 }
 0x2fa   :  { %v8951_v41 = vor.u32 %v11367_v28, %v8950_v27  ;;  %v11359_v48 = vld [vmem:[#allocation2 + $0x774] sm:$0xf0] }
 0x2fb   :  { %2889 = vmatpush.bf16.msra.mxu2 %v8819_v33  ;;  %2864 = vmatpush.bf16.msra.mxu0 %v8275_v51  ;;  %v3009_v33 = vadd.f32 %v3008_v24, %v3007_v13  ;;  %v3081_v46 = vadd.f32 %v3080_v34, %v3079_v26  ;;  %v8407_v51 = vor.u32 %v11231_v40, %v8406_v37  ;;  %v8118_v2 = vld [vmem:[#allocation2 + $0x118] sm:$0xf] }
 0x2fc   :  { %v11159_v57 = vld [vmem:[#allocation2 + $0x134] sm:$0xf0]  ;;  %v8919_v59 = vor.u32 %v11359_v48, %v8918_v47 }
 0x2fd   :  { %2877 = vmatpush.bf16.msra.mxu1 %v8531_v54  ;;  %2852 = vmatpush.bf16.msrb.mxu3 %v7987_v9  ;;  %v12398_v45 = vmul.f32 %v3009_v33, %v12239_v0  ;;  %v3131_v54 = vmul.f32 %v3081_v46, %v12239_v0  ;;  %v11223_v63 = vld [vmem:[#allocation2 + $0x334] sm:$0xf0]  ;;  %v8119_v9 = vor.u32 %v11159_v57, %v8118_v2 }
 0x2fe   :  { %v8630_v1 = vld [vmem:[#allocation2 + $0x518] sm:$0xf] }
 0x2ff   :  { %2890 = vmatpush.bf16.msra.mxu2 %v8787_v58  ;;  %2865 = vmatpush.bf16.msra.mxu0 %v8243_v62  ;;  %v3139_v55 = vmul.f32 %v12398_v45, %v12398_v45  ;;  %v8374_v58 = vld [vmem:[#allocation2 + $0x318] sm:$0xf]  ;;  %v2659_v6 = vpop.f32.mrf.mxu0 }
 0x300   :  { %2853 = vmatmul.bf16.vlgmr.msrb.gmra.mxu3 %v12355_v49  ;;  %v11287_v4 = vld [vmem:[#allocation2 + $0x534] sm:$0xf0]  ;;  %v8375_v52 = vor.u32 %v11223_v63, %v8374_v58 }
 0x301   :  { %2878 = vmatpush.bf16.msra.mxu1 %v8499_v5  ;;  %2897 = vmatpush.bf16.msra.mxu3 %v8215_v43  ;;  %v3147_v7 = vsub.f32 %v3131_v54, %v3139_v55  ;;  %v8886_v61 = vld [vmem:[#allocation2 + $0x718] sm:$0xf]  ;;  %v8631_v12 = vor.u32 %v11287_v4, %v8630_v1  ;;  %v2672_v10 = vpop.f32.mrf.mxu1 }
 0x302   :  { %2866 = vmatmul.bf16.vlgmr.msra.gmra.mxu0 %v12363_v19  ;;  %v11351_v8 = vld [vmem:[#allocation2 + $0x734] sm:$0xf0] }
 0x303   :  { %2891 = vmatpush.bf16.msra.mxu2 %v8755_v15  ;;  %2910 = vmatpush.bf16.msrb.mxu0 %v8471_v20  ;;  %v8086_v11 = vld [vmem:[#allocation2 + $0xd8] sm:$0xf]  ;;  %v12406_v39 = vadd.f32 0.8, %v3147_v7  ;;  %v8887_v17 = vor.u32 %v11351_v8, %v8886_v61  ;;  %v2646_v21 = vpop.f32.mrf.mxu3 }
 0x304   :  { %2879 = vmatmul.bf16.vlgmr.msra.gmra.mxu1 %v12367_v30  ;;  %v11151_v62 = vld [vmem:[#allocation2 + $0xf4] sm:$0xf0]  ;;  %v2660_v24 = vadd.f32 %v2659_v6, %v2646_v21  ;;  %v8472_v21 = vld [vmem:[#allocation2 + $0x3f8] sm:$0xf0] }
 0x305   :  { %2923 = vmatpush.bf16.msrb.mxu1 %v8727_v25  ;;  %2898 = vmatpush.bf16.msra.mxu3 %v8183_v29  ;;  %v8342_v5 = vld [vmem:[#allocation2 + $0x2d8] sm:$0xf]  ;;  %11917 = vrsqrt.f32 %v12406_v39  ;;  %v8087_v20 = vor.u32 %v11151_v62, %v8086_v11  ;;  %v12432_v11 = vld [vmem:[#allocation12 + $0xd] sm:$0xff]  ;;  %vm3177_vm13 = vweird.f32 %v12406_v39 }
 0x306   :  { %2892 = vmatmul.bf16.vlgmr.msra.gmra.mxu2 %v12359_v3  ;;  %v11215_v15 = vld [vmem:[#allocation2 + $0x2f4] sm:$0xf0]  ;;  %v2673_v33 = vadd.f32 %v2672_v10, %v2660_v24  ;;  %v8728_v24 = vld [vmem:[#allocation2 + $0x5f8] sm:$0xf0] }
 0x307   :  { %2936 = vmatpush.bf16.msrb.mxu2 %v8983_v23  ;;  %2911 = vmatpush.bf16.msrb.mxu0 %v8439_v14  ;;  %v8598_v43 = vld [vmem:[#allocation2 + $0x4d8] sm:$0xf]  ;;  %v8343_v25 = vor.u32 %v11215_v15, %v8342_v5  ;;  %v2661_v37 = vpop.f32.mrf.mxu0 }
 0x308   :  { %v11279_v16 = vld [vmem:[#allocation2 + $0x4f4] sm:$0xf0] }
 0x309   :  { %2924 = vmatpush.bf16.msrb.mxu1 %v8695_v36  ;;  %2899 = vmatpush.bf16.msra.mxu3 %v8151_v50  ;;  %v8854_v13 = vld [vmem:[#allocation2 + $0x6d8] sm:$0xf]  ;;  %v8599_v60 = vor.u32 %v11279_v16, %v8598_v43  ;;  %v2685_v29 = vpop.f32.mrf.mxu2  ;;  %v2674_v48 = vpop.f32.mrf.mxu1  ;;  %v11179_v16 = vld [vmem:[#allocation2 + $0x1dc] sm:$0xf] }
 0x30a   :  { %v11343_v18 = vld [vmem:[#allocation2 + $0x6f4] sm:$0xf0]  ;;  %v12413_v54 = vadd.f32 %v2685_v29, %v2673_v33  ;;  %v8984_v33 = vld [vmem:[#allocation2 + $0x7f8] sm:$0xf0] }
 0x30b   :  { %2937 = vmatpush.bf16.msrb.mxu2 %v8951_v41  ;;  %2912 = vmatpush.bf16.msrb.mxu0 %v8407_v51  ;;  %v8054_v23 = vld [vmem:[#allocation2 + $0x98] sm:$0xf]  ;;  %v8855_v53 = vor.u32 %v11343_v18, %v8854_v13  ;;  %v12409_v40 = vpop.eup %11917  ;;  %v8216_v13 = vld [vmem:[#allocation2 + $0x1f8] sm:$0xf0] }
 0x30c   :  { %v11143_v22 = vld [vmem:[#allocation2 + $0xb4] sm:$0xf0]  ;;  %v3172_v50 = vmul.f32 %v12409_v40, %v12406_v39  ;;  %v3010_v63 = vsel %vm291_vm2, %v12413_v54, 0.0  ;;  %v3068_v1 = vmul.f32 %v12413_v54, %v12413_v54  ;;  %vm3178_vm14 = vweird.f32 %v12409_v40 }
 0x30d   :  { %2925 = vmatpush.bf16.msrb.mxu1 %v8663_v56  ;;  %2900 = vmatpush.bf16.msra.mxu3 %v8119_v9  ;;  %v8310_v38 = vld [vmem:[#allocation2 + $0x298] sm:$0xf]  ;;  %v8055_v34 = vor.u32 %v11143_v22, %v8054_v23  ;;  %v3011_v6 = vrot.slane %v3010_v63, 4  ;;  %v3260_v22 = vperm.slane %v12432_v11, 0  ;;  %vm12444_vm15 = vmor %vm3177_vm13, %vm3178_vm14 }
 0x30e   :  { %v11207_v26 = vld [vmem:[#allocation2 + $0x2b4] sm:$0xf0]  ;;  %v3082_v43 = vsel %vm291_vm2, %v3068_v1, 0.0 }
 0x30f   :  { %2938 = vmatpush.bf16.msrb.mxu2 %v8919_v59  ;;  %2913 = vmatpush.bf16.msrb.mxu0 %v8375_v52  ;;  %v8566_v27 = vld [vmem:[#allocation2 + $0x498] sm:$0xf]  ;;  %v8311_v41 = vor.u32 %v11207_v26, %v8310_v38  ;;  %v3173_v59 = vmul.f32 %v12409_v40, %v3172_v50  ;;  %v11235_v50 = vld [vmem:[#allocation2 + $0x39c] sm:$0xf] }
 0x310   :  { %v11271_v28 = vld [vmem:[#allocation2 + $0x4b4] sm:$0xf0] }
 0x311   :  { %2926 = vmatpush.bf16.msrb.mxu1 %v8631_v12  ;;  %v8822_v31 = vld [vmem:[#allocation2 + $0x698] sm:$0xf]  ;;  %2901 = vmatpush.bf16.msra.mxu3 %v8087_v20  ;;  %v8567_v42 = vor.u32 %v11271_v28, %v8566_v27  ;;  %v3174_v15 = vmul.f32 0.5, %v3173_v59  ;;  %v2687_v18 = vpop.f32.mrf.mxu2  ;;  %v3012_v20 = vadd.f32 %v3011_v6, %v3010_v63 }
 0x312   :  { %v11335_v32 = vld [vmem:[#allocation2 + $0x6b4] sm:$0xf0]  ;;  %v8920_v18 = vld [vmem:[#allocation2 + $0x778] sm:$0xf0] }
 0x313   :  { %2939 = vmatpush.bf16.msrb.mxu2 %v8887_v17  ;;  %v8022_v14 = vld [vmem:[#allocation2 + $0x58] sm:$0xf]  ;;  %2914 = vmatpush.bf16.msrb.mxu0 %v8343_v25  ;;  %v8823_v51 = vor.u32 %v11335_v32, %v8822_v31  ;;  %v2648_v17 = vpop.f32.mrf.mxu3  ;;  %v3083_v25 = vrot.slane %v3082_v43, 4  ;;  %v3175_v23 = vsub.f32 1.5, %v3174_v15  ;;  %v3013_v27 = vrot.slane %v3012_v20, 2 }
 0x314   :  { %v11135_v36 = vld [vmem:[#allocation2 + $0x74] sm:$0xf0]  ;;  %v11371_v32 = vld [vmem:[#allocation2 + $0x7dc] sm:$0xf] }
 0x315   :  { %2927 = vmatpush.bf16.msrb.mxu1 %v8599_v60  ;;  %v8278_v44 = vld [vmem:[#allocation2 + $0x258] sm:$0xf]  ;;  %2902 = vmatpush.bf16.msra.mxu3 %v8055_v34  ;;  %v8023_v4 = vor.u32 %v11135_v36, %v8022_v14  ;;  %v11243_v60 = vld [vmem:[#allocation2 + $0x3dc] sm:$0xf]  ;;  %v3084_v28 = vadd.f32 %v3083_v25, %v3082_v43  ;;  %v12452_v34 = vld [vmem:[#allocation12 + $0x15] sm:$0xff]  ;;  %v3176_v39 = vmul.f32 %v12409_v40, %v3175_v23 }
 0x316   :  { %v11199_v46 = vld [vmem:[#allocation2 + $0x274] sm:$0xf0]  ;;  %v8219_v36 = vor.u32 %v11179_v16, %v8216_v13  ;;  %v8475_v37 = vor.u32 %v11243_v60, %v8472_v21  ;;  %v3285_v63 = vperm.slane %v12452_v34, 0  ;;  %v11355_v13 = vld [vmem:[#allocation2 + $0x75c] sm:$0xf] }
 0x317   :  { %v8534_v47 = vld [vmem:[#allocation2 + $0x458] sm:$0xf]  ;;  %2940 = vmatpush.bf16.msrb.mxu2 %v8855_v53  ;;  %2915 = vmatpush.bf16.msrb.mxu0 %v8311_v41  ;;  %v8279_v52 = vor.u32 %v11199_v46, %v8278_v44  ;;  %v11307_v53 = vld [vmem:[#allocation2 + $0x5dc] sm:$0xf]  ;;  %v3155_v44 = vsub.f32 %v12389_v35, %v12398_v45  ;;  %v3014_v46 = vadd.f32 %v3013_v27, %v3012_v20 }
 0x318   :  { %v11263_v55 = vld [vmem:[#allocation2 + $0x474] sm:$0xf0]  ;;  %v11171_v41 = vld [vmem:[#allocation2 + $0x19c] sm:$0xf]  ;;  %v8731_v48 = vor.u32 %v11307_v53, %v8728_v24  ;;  %v8923_v26 = vor.u32 %v11355_v13, %v8920_v18 }
 0x319   :  { %v8790_v56 = vld [vmem:[#allocation2 + $0x658] sm:$0xf]  ;;  %2928 = vmatpush.bf16.msrb.mxu1 %v8567_v42  ;;  %v8535_v12 = vor.u32 %v11263_v55, %v8534_v47  ;;  %2903 = vmatpush.bf16.msra.mxu3 %v8023_v4  ;;  %v8184_v42 = vld [vmem:[#allocation2 + $0x1b8] sm:$0xf0]  ;;  %v3085_v47 = vrot.slane %v3084_v28, 2  ;;  %v3180_v55 = vsel %vm12444_vm15, %v12409_v40, %v3176_v39  ;;  %v3015_v1 = vrot.slane %v3014_v46, 1 }
 0x31a   :  { %v11327_v2 = vld [vmem:[#allocation2 + $0x674] sm:$0xf0]  ;;  %v3251_v59 = vmul.f32 %v3180_v55, %v3155_v44  ;;  %v8952_v35 = vld [vmem:[#allocation2 + $0x7b8] sm:$0xf0] }
 0x31b   :  { %v12415_v57 = vld [vmem:[#allocation2 + $0x18] sm:$0xf]  ;;  %v8791_v62 = vor.u32 %v11327_v2, %v8790_v56  ;;  %2941 = vmatpush.bf16.msrb.mxu2 %v8823_v51  ;;  %2916 = vmatpush.bf16.msrb.mxu0 %v8279_v52  ;;  %v8440_v51 = vld [vmem:[#allocation2 + $0x3b8] sm:$0xf0]  ;;  %v8987_v56 = vor.u32 %v11371_v32, %v8984_v33  ;;  %v3086_v4 = vadd.f32 %v3085_v47, %v3084_v28 }
 0x31c   :  { %v12417_v58 = vld [vmem:[#allocation2 + $0x34] sm:$0xf0]  ;;  %v11299_v2 = vld [vmem:[#allocation2 + $0x59c] sm:$0xf]  ;;  %v3276_v6 = vmul.f32 %v3260_v22, %v3251_v59  ;;  %v3016_v52 = vadd.f32 %v3015_v1, %v3014_v46 }
 0x31d   :  { %v12424_v7 = vld [vmem:[#allocation2 + $0x218] sm:$0xf]  ;;  %v7991_v38 = vor.u32 %v12417_v58, %v12415_v57  ;;  %2929 = vmatpush.bf16.msrb.mxu1 %v8535_v12  ;;  %v8696_v57 = vld [vmem:[#allocation2 + $0x5b8] sm:$0xf0]  ;;  %v3087_v12 = vrot.slane %v3086_v4, 1 }
 0x31e   :  { %v12426_v61 = vld [vmem:[#allocation2 + $0x234] sm:$0xf0]  ;;  %v11363_v58 = vld [vmem:[#allocation2 + $0x79c] sm:$0xf]  ;;  %v3301_v15 = vadd.f32 %v3285_v63, %v3276_v6  ;;  %v12463_v43 = vmul.f32 %v3016_v52, %v12239_v0 }
 0x31f   :  { %v12428_v8 = vld [vmem:[#allocation2 + $0x418] sm:$0xf]  ;;  %v8247_v29 = vor.u32 %v12426_v61, %v12424_v7  ;;  %2942 = vmatpush.bf16.msrb.mxu2 %v8791_v62  ;;  %2904 = vmatpush.bf16.msra.mxu3 %v7991_v38  ;;  %v11163_v45 = vld [vmem:[#allocation2 + $0x15c] sm:$0xf]  ;;  %v8187_v7 = vor.u32 %v11171_v41, %v8184_v42  ;;  %v8443_v61 = vor.u32 %v11235_v50, %v8440_v51 }
 0x320   :  { %v12430_v9 = vld [vmem:[#allocation2 + $0x434] sm:$0xf0]  ;;  %v11227_v40 = vld [vmem:[#allocation2 + $0x35c] sm:$0xf]  ;;  %v8699_v62 = vor.u32 %v11299_v2, %v8696_v57  ;;  %v8955_v17 = vor.u32 %v11363_v58, %v8952_v35  ;;  %v3088_v16 = vadd.f32 %v3087_v12, %v3086_v4  ;;  %vm3309_vm0 = vcmp.gt.f32.partialorder %v3301_v15, 0.0 }
 0x321   :  { %v8758_v5 = vld [vmem:[#allocation2 + $0x618] sm:$0xf]  ;;  %v8503_v31 = vor.u32 %v12430_v9, %v12428_v8  ;;  %2917 = vmatpush.bf16.msrb.mxu0 %v8247_v29  ;;  %v8152_v8 = vld [vmem:[#allocation2 + $0x178] sm:$0xf0]  ;;  %v3317_v22 = vmul.f32 0.2, %v3301_v15  ;;  %v3140_v53 = vmul.f32 %v12463_v43, %v12463_v43 }
 0x322   :  { %v11319_v10 = vld [vmem:[#allocation2 + $0x634] sm:$0xf0]  ;;  %v8408_v9 = vld [vmem:[#allocation2 + $0x378] sm:$0xf0]  ;;  %2905 = vmatmul.bf16.vlgmr.msra.gmra.mxu3 %v12355_v49  ;;  %v8155_v20 = vor.u32 %v11163_v45, %v8152_v8  ;;  %v3132_v38 = vmul.f32 %v3088_v16, %v12239_v0 }
 0x323   :  { %v8759_v14 = vor.u32 %v11319_v10, %v8758_v5  ;;  %2930 = vmatpush.bf16.msrb.mxu1 %v8503_v31  ;;  %2949 = vmatpush.bf16.msrb.mxu3 %v8219_v36  ;;  %v11291_v5 = vld [vmem:[#allocation2 + $0x55c] sm:$0xf]  ;;  %v8411_v25 = vor.u32 %v11227_v40, %v8408_v9  ;;  %v12471_v31 = vsel %vm3309_vm0, %v3301_v15, %v3317_v22  ;;  %v2698_v1 = vpop.f32.mrf.mxu3 }
 0x324   :  { %v8664_v10 = vld [vmem:[#allocation2 + $0x578] sm:$0xf0]  ;;  %2918 = vmatmul.bf16.vlgmr.msrb.gmra.mxu0 %v12363_v19  ;;  %v3148_v32 = vsub.f32 %v3132_v38, %v3140_v53 }
 0x325   :  { %2943 = vmatpush.bf16.msrb.mxu2 %v8759_v14  ;;  %2962 = vmatpush.bf16.msra.mxu0 %v8475_v37  ;;  %v8667_v60 = vor.u32 %v11291_v5, %v8664_v10  ;;  %v11155_v21 = vld [vmem:[#allocation2 + $0x11c] sm:$0xf]  ;;  %v2711_v37 = vpop.f32.mrf.mxu0 }
 0x326   :  { %2931 = vmatmul.bf16.vlgmr.msrb.gmra.mxu1 %v12367_v30  ;;  %v8120_v23 = vld [vmem:[#allocation2 + $0x138] sm:$0xf0]  ;;  %v12473_v41 = vadd.f32 0.8, %v3148_v32 }
 0x327   :  { %2975 = vmatpush.bf16.msra.mxu1 %v8731_v48  ;;  %2950 = vmatpush.bf16.msrb.mxu3 %v8187_v7  ;;  %v11219_v24 = vld [vmem:[#allocation2 + $0x31c] sm:$0xf]  ;;  %v8123_v14 = vor.u32 %v11155_v21, %v8120_v23  ;;  %v2724_v48 = vpop.f32.mrf.mxu1 }
 0x328   :  { %2944 = vmatmul.bf16.vlgmr.msrb.gmra.mxu2 %v12359_v3  ;;  %v8376_v27 = vld [vmem:[#allocation2 + $0x338] sm:$0xf0]  ;;  %11919 = vrsqrt.f32 %v12473_v41  ;;  %vm3187_vm1 = vweird.f32 %v12473_v41 }
 0x329   :  { %2988 = vmatpush.bf16.msra.mxu2 %v8987_v56  ;;  %2963 = vmatpush.bf16.msra.mxu0 %v8443_v61  ;;  %v11283_v28 = vld [vmem:[#allocation2 + $0x51c] sm:$0xf]  ;;  %v8379_v42 = vor.u32 %v11219_v24, %v8376_v27  ;;  %v2712_v61 = vadd.f32 %v2711_v37, %v2698_v1  ;;  %v2737_v6 = vpop.f32.mrf.mxu2 }
 0x32a   :  { %v8632_v29 = vld [vmem:[#allocation2 + $0x538] sm:$0xf0] }
 0x32b   :  { %2976 = vmatpush.bf16.msra.mxu1 %v8699_v62  ;;  %v11347_v33 = vld [vmem:[#allocation2 + $0x71c] sm:$0xf]  ;;  %2951 = vmatpush.bf16.msrb.mxu3 %v8155_v20  ;;  %v8635_v44 = vor.u32 %v11283_v28, %v8632_v29  ;;  %v2725_v62 = vadd.f32 %v2724_v48, %v2712_v61 }
 0x32c   :  { %v8888_v39 = vld [vmem:[#allocation2 + $0x738] sm:$0xf0] }
 0x32d   :  { %2989 = vmatpush.bf16.msra.mxu2 %v8955_v17  ;;  %v11147_v36 = vld [vmem:[#allocation2 + $0xdc] sm:$0xf]  ;;  %2964 = vmatpush.bf16.msra.mxu0 %v8411_v25  ;;  %v8891_v50 = vor.u32 %v11347_v33, %v8888_v39  ;;  %v2713_v15 = vpop.f32.mrf.mxu0  ;;  %v12480_v38 = vadd.f32 %v2737_v6, %v2725_v62 }
 0x32e   :  { %v8088_v46 = vld [vmem:[#allocation2 + $0xf8] sm:$0xf0]  ;;  %v12476_v16 = vpop.eup %11919 }
 0x32f   :  { %2977 = vmatpush.bf16.msra.mxu1 %v8667_v60  ;;  %v11211_v47 = vld [vmem:[#allocation2 + $0x2dc] sm:$0xf]  ;;  %2952 = vmatpush.bf16.msrb.mxu3 %v8123_v14  ;;  %v8091_v58 = vor.u32 %v11147_v36, %v8088_v46  ;;  %v2726_v21 = vpop.f32.mrf.mxu1  ;;  %v3182_v23 = vmul.f32 %v12476_v16, %v12473_v41  ;;  %v3017_v28 = vsel %vm291_vm2, %v12480_v38, 0.0  ;;  %v3069_v29 = vmul.f32 %v12480_v38, %v12480_v38 }
 0x330   :  { %v8344_v51 = vld [vmem:[#allocation2 + $0x2f8] sm:$0xf0]  ;;  %v3018_v14 = vrot.slane %v3017_v28, 4  ;;  %vm3188_vm3 = vweird.f32 %v12476_v16 }
 0x331   :  { %2990 = vmatpush.bf16.msra.mxu2 %v8923_v26  ;;  %v11275_v55 = vld [vmem:[#allocation2 + $0x4dc] sm:$0xf]  ;;  %2965 = vmatpush.bf16.msra.mxu0 %v8379_v42  ;;  %v8347_v59 = vor.u32 %v11211_v47, %v8344_v51  ;;  %v3183_v27 = vmul.f32 %v12476_v16, %v3182_v23  ;;  %v2700_v47 = vpop.f32.mrf.mxu3  ;;  %vm12490_vm4 = vmor %vm3187_vm1, %vm3188_vm3 }
 0x332   :  { %v8600_v56 = vld [vmem:[#allocation2 + $0x4f8] sm:$0xf0] }
 0x333   :  { %v11339_v2 = vld [vmem:[#allocation2 + $0x6dc] sm:$0xf]  ;;  %2978 = vmatpush.bf16.msra.mxu1 %v8635_v44  ;;  %v8603_v63 = vor.u32 %v11275_v55, %v8600_v56  ;;  %2953 = vmatpush.bf16.msrb.mxu3 %v8091_v58  ;;  %v3184_v48 = vmul.f32 0.5, %v3183_v27  ;;  %v2739_v56 = vpop.f32.mrf.mxu2 }
 0x334   :  { %v8856_v57 = vld [vmem:[#allocation2 + $0x6f8] sm:$0xf0] }
 0x335   :  { %v11139_v4 = vld [vmem:[#allocation2 + $0x9c] sm:$0xf]  ;;  %2991 = vmatpush.bf16.msra.mxu2 %v8891_v50  ;;  %v8859_v7 = vor.u32 %v11339_v2, %v8856_v57  ;;  %2966 = vmatpush.bf16.msra.mxu0 %v8347_v59  ;;  %v3089_v50 = vsel %vm291_vm2, %v3069_v29, 0.0  ;;  %v3019_v2 = vadd.f32 %v3018_v14, %v3017_v28 }
 0x336   :  { %v8056_v35 = vld [vmem:[#allocation2 + $0xb8] sm:$0xf0]  ;;  %v3090_v57 = vrot.slane %v3089_v50, 4 }
 0x337   :  { %v11203_v45 = vld [vmem:[#allocation2 + $0x29c] sm:$0xf]  ;;  %v8059_v5 = vor.u32 %v11139_v4, %v8056_v35  ;;  %2979 = vmatpush.bf16.msra.mxu1 %v8603_v63  ;;  %v3185_v63 = vsub.f32 1.5, %v3184_v48  ;;  %v3020_v41 = vrot.slane %v3019_v2, 2  ;;  %v3287_v4 = vperm.slane %v12452_v34, 2 }
 0x338   :  { %v8312_v8 = vld [vmem:[#allocation2 + $0x2b8] sm:$0xf0]  ;;  %v3091_v35 = vadd.f32 %v3090_v57, %v3089_v50  ;;  %v3262_v57 = vperm.slane %v12432_v11, 2 }
 0x339   :  { %v11267_v40 = vld [vmem:[#allocation2 + $0x49c] sm:$0xf]  ;;  %v8315_v13 = vor.u32 %v11203_v45, %v8312_v8  ;;  %2992 = vmatpush.bf16.msra.mxu2 %v8859_v7  ;;  %2954 = vmatpush.bf16.msrb.mxu3 %v8059_v5  ;;  %v3186_v61 = vmul.f32 %v12476_v16, %v3185_v63  ;;  %v3021_v6 = vadd.f32 %v3020_v41, %v3019_v2  ;;  %v3286_v5 = vperm.slane %v12452_v34, 1 }
 0x33a   :  { %v8568_v9 = vld [vmem:[#allocation2 + $0x4b8] sm:$0xf0] }
 0x33b   :  { %v11331_v52 = vld [vmem:[#allocation2 + $0x69c] sm:$0xf]  ;;  %v8571_v18 = vor.u32 %v11267_v40, %v8568_v9  ;;  %2967 = vmatpush.bf16.msra.mxu0 %v8315_v13  ;;  %v3156_v40 = vsub.f32 %v12413_v54, %v12463_v43  ;;  %v3261_v9 = vperm.slane %v12432_v11, 1 }
 0x33c   :  { %v8824_v12 = vld [vmem:[#allocation2 + $0x6b8] sm:$0xf0] }
 0x33d   :  { %v11131_v10 = vld [vmem:[#allocation2 + $0x5c] sm:$0xf]  ;;  %v8827_v22 = vor.u32 %v11331_v52, %v8824_v12  ;;  %2980 = vmatpush.bf16.msra.mxu1 %v8571_v18  ;;  %v3092_v52 = vrot.slane %v3091_v35, 2  ;;  %v3190_v12 = vsel %vm12490_vm4, %v12476_v16, %v3186_v61 }
 0x33e   :  { %v8024_v17 = vld [vmem:[#allocation2 + $0x78] sm:$0xf0]  ;;  %v3252_v62 = vmul.f32 %v3190_v12, %v3156_v40 }
 0x33f   :  { %v11195_v20 = vld [vmem:[#allocation2 + $0x25c] sm:$0xf]  ;;  %v8027_v32 = vor.u32 %v11131_v10, %v8024_v17  ;;  %2993 = vmatpush.bf16.msra.mxu2 %v8827_v22  ;;  %v3022_v10 = vrot.slane %v3021_v6, 1  ;;  %v3093_v17 = vadd.f32 %v3092_v52, %v3091_v35  ;;  %v2763_v22 = vpop.f32.mrf.mxu0 }
 0x340   :  { %v8280_v25 = vld [vmem:[#allocation2 + $0x278] sm:$0xf0]  ;;  %v3277_v15 = vmul.f32 %v3261_v9, %v3252_v62 }
 0x341   :  { %v11259_v60 = vld [vmem:[#allocation2 + $0x45c] sm:$0xf]  ;;  %v8283_v36 = vor.u32 %v11195_v20, %v8280_v25  ;;  %2955 = vmatpush.bf16.msrb.mxu3 %v8027_v32  ;;  %v3023_v13 = vadd.f32 %v3022_v10, %v3021_v6  ;;  %v3094_v54 = vrot.slane %v3093_v17, 1 }
 0x342   :  { %v8536_v53 = vld [vmem:[#allocation2 + $0x478] sm:$0xf0]  ;;  %v3302_v43 = vadd.f32 %v3286_v5, %v3277_v15 }
 0x343   :  { %v11323_v24 = vld [vmem:[#allocation2 + $0x65c] sm:$0xf]  ;;  %v8539_v37 = vor.u32 %v11259_v60, %v8536_v53  ;;  %2968 = vmatpush.bf16.msra.mxu0 %v8283_v36  ;;  %v3061_v16 = vmul.f32 %v3023_v13, %v12239_v0  ;;  %v3095_v18 = vadd.f32 %v3094_v54, %v3093_v17  ;;  %v2776_v53 = vpop.f32.mrf.mxu1 }
 0x344   :  { %v8792_v26 = vld [vmem:[#allocation2 + $0x678] sm:$0xf0]  ;;  %vm3310_vm5 = vcmp.gt.f32.partialorder %v3302_v43, 0.0  ;;  %v3318_v20 = vmul.f32 0.2, %v3302_v43 }
 0x345   :  { %v11123_v33 = vld [vmem:[#allocation2 + $0x1c] sm:$0xf]  ;;  %v8795_v42 = vor.u32 %v11323_v24, %v8792_v26  ;;  %2981 = vmatpush.bf16.msra.mxu1 %v8539_v37  ;;  %v3133_v25 = vmul.f32 %v3095_v18, %v12239_v0  ;;  %v3141_v60 = vmul.f32 %v3061_v16, %v3061_v16  ;;  %v3157_v2 = vsub.f32 %v12480_v38, %v3061_v16 }
 0x346   :  { %v7992_v39 = vld [vmem:[#allocation2 + $0x38] sm:$0xf0]  ;;  %v12508_v21 = vsel %vm3310_vm5, %v3302_v43, %v3318_v20 }
 0x347   :  { %v11187_v44 = vld [vmem:[#allocation2 + $0x21c] sm:$0xf]  ;;  %v7995_v1 = vor.u32 %v11123_v33, %v7992_v39  ;;  %2994 = vmatpush.bf16.msra.mxu2 %v8795_v42  ;;  %v3149_v23 = vsub.f32 %v3133_v25, %v3141_v60  ;;  %v2765_v27 = vpop.f32.mrf.mxu0 }
 0x348   :  { %v8248_v46 = vld [vmem:[#allocation2 + $0x238] sm:$0xf0] }
 0x349   :  { %v11251_v51 = vld [vmem:[#allocation2 + $0x41c] sm:$0xf]  ;;  %v8251_v45 = vor.u32 %v11187_v44, %v8248_v46  ;;  %2956 = vmatpush.bf16.msrb.mxu3 %v7995_v1  ;;  %v2789_v24 = vpop.f32.mrf.mxu2 }
 0x34a   :  { %v8504_v55 = vld [vmem:[#allocation2 + $0x438] sm:$0xf0] }
 0x34b   :  { %v11315_v58 = vld [vmem:[#allocation2 + $0x61c] sm:$0xf]  ;;  %v8507_v7 = vor.u32 %v11251_v51, %v8504_v55  ;;  %2969 = vmatpush.bf16.msra.mxu0 %v8251_v45  ;;  %v2778_v29 = vpop.f32.mrf.mxu1 }
 0x34c   :  { %v8760_v59 = vld [vmem:[#allocation2 + $0x638] sm:$0xf0]  ;;  %2957 = vmatmul.bf16.vlgmr.msrb.gmra.mxu3 %v12355_v49  ;;  %v3165_v49 = vadd.f32 0.8, %v3149_v23 }
 0x34d   :  { %v8763_v8 = vor.u32 %v11315_v58, %v8760_v59  ;;  %2982 = vmatpush.bf16.msra.mxu1 %v8507_v7 }
 0x34e   :  { %2970 = vmatmul.bf16.vlgmr.msra.gmra.mxu0 %v12363_v19  ;;  %11921 = vrsqrt.f32 %v3165_v49  ;;  %v2750_v19 = vpop.f32.mrf.mxu3  ;;  %vm3197_vm6 = vweird.f32 %v3165_v49 }
 0x34f   :  { %2995 = vmatpush.bf16.msra.mxu2 %v8763_v8 }
 0x350   :  { %2983 = vmatmul.bf16.vlgmr.msra.gmra.mxu1 %v12367_v30  ;;  %v2764_v30 = vadd.f32 %v2763_v22, %v2750_v19 }
 0x351   :  { %v2791_v46 = vpop.f32.mrf.mxu2 }
 0x352   :  { %2996 = vmatmul.bf16.vlgmr.msra.gmra.mxu2 %v12359_v3  ;;  %v2777_v26 = vadd.f32 %v2776_v53, %v2764_v30 }
 0x354   :  { %v11922_v28 = vpop.eup %11921  ;;  %v12510_v32 = vadd.f32 %v2789_v24, %v2777_v26 }
 0x355   :  { %v3192_v3 = vmul.f32 %v11922_v28, %v3165_v49  ;;  %vm3198_vm7 = vweird.f32 %v11922_v28 }
 0x356   :  { %v3024_v39 = vsel %vm291_vm2, %v12510_v32, 0.0  ;;  %v3070_v14 = vmul.f32 %v12510_v32, %v12510_v32  ;;  %v2752_v37 = vpop.f32.mrf.mxu3  ;;  %vm3199_vm8 = vmor %vm3197_vm6, %vm3198_vm7 }
 0x357   :  { %v3193_v33 = vmul.f32 %v11922_v28, %v3192_v3  ;;  %v3025_v36 = vrot.slane %v3024_v39, 4 }
 0x358   :  { %v3096_v44 = vsel %vm291_vm2, %v3070_v14, 0.0 }
 0x359   :  { %v3194_v42 = vmul.f32 0.5, %v3193_v33  ;;  %v3026_v47 = vadd.f32 %v3025_v36, %v3024_v39  ;;  %v3097_v48 = vrot.slane %v3096_v44, 4  ;;  %v3263_v36 = vperm.slane %v12432_v11, 3 }
 0x35b   :  { %v3195_v50 = vsub.f32 1.5, %v3194_v42  ;;  %v3027_v51 = vrot.slane %v3026_v47, 2  ;;  %v3098_v55 = vadd.f32 %v3097_v48, %v3096_v44 }
 0x35d   :  { %v3196_v56 = vmul.f32 %v11922_v28, %v3195_v50  ;;  %v3028_v58 = vadd.f32 %v3027_v51, %v3026_v47  ;;  %v3099_v59 = vrot.slane %v3098_v55, 2  ;;  %v3288_v47 = vperm.slane %v12452_v34, 3 }
 0x35f   :  { %v3200_v63 = vsel %vm3199_vm8, %v11922_v28, %v3196_v56  ;;  %v3029_v41 = vrot.slane %v3028_v58, 1  ;;  %v3100_v35 = vadd.f32 %v3099_v59, %v3098_v55  ;;  %v2815_v5 = vpop.f32.mrf.mxu0 }
 0x360   :  { %v3253_v1 = vmul.f32 %v3200_v63, %v3157_v2 }
 0x361   :  { %v3030_v7 = vadd.f32 %v3029_v41, %v3028_v58  ;;  %v3101_v61 = vrot.slane %v3100_v35, 1  ;;  %v2828_v17 = vpop.f32.mrf.mxu1 }
 0x362   :  { %v3278_v45 = vmul.f32 %v3262_v57, %v3253_v1 }
 0x363   :  { %v3062_v40 = vmul.f32 %v3030_v7, %v12239_v0  ;;  %v3102_v9 = vadd.f32 %v3101_v61, %v3100_v35  ;;  %v2802_v15 = vpop.f32.mrf.mxu3 }
 0x364   :  { %v3303_v8 = vadd.f32 %v3287_v4, %v3278_v45  ;;  %v2816_v13 = vadd.f32 %v2815_v5, %v2802_v15 }
 0x365   :  { %v3134_v38 = vmul.f32 %v3102_v9, %v12239_v0  ;;  %v3142_v52 = vmul.f32 %v3062_v40, %v3062_v40  ;;  %v3158_v14 = vsub.f32 %v12510_v32, %v3062_v40 }
 0x366   :  { %vm3311_vm9 = vcmp.gt.f32.partialorder %v3303_v8, 0.0  ;;  %v3319_v6 = vmul.f32 0.2, %v3303_v8  ;;  %v2829_v43 = vadd.f32 %v2828_v17, %v2816_v13 }
 0x367   :  { %v3150_v62 = vsub.f32 %v3134_v38, %v3142_v52  ;;  %v2817_v16 = vpop.f32.mrf.mxu0 }
 0x368   :  { %v12522_v12 = vsel %vm3311_vm9, %v3303_v8, %v3319_v6 }
 0x369   :  { %v3166_v10 = vadd.f32 0.8, %v3150_v62  ;;  %v2841_v54 = vpop.f32.mrf.mxu2  ;;  %v2830_v20 = vpop.f32.mrf.mxu1 }
 0x36a   :  { %v12524_v60 = vadd.f32 %v2841_v54, %v2829_v43 }
 0x36b   :  { %11923 = vrsqrt.f32 %v3166_v10  ;;  %v2804_v19 = vpop.f32.mrf.mxu3  ;;  %vm3207_vm10 = vweird.f32 %v3166_v10 }
 0x36c   :  { %v3031_v22 = vsel %vm291_vm2, %v12524_v60, 0.0  ;;  %v3071_v49 = vmul.f32 %v12524_v60, %v12524_v60  ;;  %v3264_v19 = vperm.slane %v12432_v11, 4 }
 0x36d   :  { %v3032_v53 = vrot.slane %v3031_v22, 4 }
 0x36e   :  { %v3103_v24 = vsel %vm291_vm2, %v3071_v49, 0.0 }
 0x36f   :  { %v3033_v27 = vadd.f32 %v3032_v53, %v3031_v22  ;;  %v3104_v28 = vrot.slane %v3103_v24, 4 }
 0x371   :  { %v11924_v18 = vpop.eup %11923  ;;  %v2843_v26 = vpop.f32.mrf.mxu2  ;;  %v3034_v3 = vrot.slane %v3033_v27, 2  ;;  %v3105_v33 = vadd.f32 %v3104_v28, %v3103_v24  ;;  %v3289_v28 = vperm.slane %v12452_v34, 4 }
 0x372   :  { %v3202_v25 = vmul.f32 %v11924_v18, %v3166_v10  ;;  %vm3208_vm11 = vweird.f32 %v11924_v18 }
 0x373   :  { %vm3209_vm12 = vmor %vm3207_vm10, %vm3208_vm11  ;;  %v3035_v37 = vadd.f32 %v3034_v3, %v3033_v27  ;;  %v3106_v42 = vrot.slane %v3105_v33, 2 }
 0x374   :  { %v3203_v23 = vmul.f32 %v11924_v18, %v3202_v25 }
 0x375   :  { %v3036_v48 = vrot.slane %v3035_v37, 1  ;;  %v3107_v50 = vadd.f32 %v3106_v42, %v3105_v33 }
 0x376   :  { %v3204_v30 = vmul.f32 0.5, %v3203_v23 }
 0x377   :  { %v3037_v55 = vadd.f32 %v3036_v48, %v3035_v37  ;;  %v3108_v56 = vrot.slane %v3107_v50, 1 }
 0x378   :  { %v3205_v29 = vsub.f32 1.5, %v3204_v30 }
 0x379   :  { %v3063_v57 = vmul.f32 %v3037_v55, %v12239_v0  ;;  %v3109_v58 = vadd.f32 %v3108_v56, %v3107_v50 }
 0x37a   :  { %v3206_v39 = vmul.f32 %v11924_v18, %v3205_v29 }
 0x37b   :  { %v3135_v32 = vmul.f32 %v3109_v58, %v12239_v0  ;;  %v3143_v63 = vmul.f32 %v3063_v57, %v3063_v57  ;;  %v3159_v53 = vsub.f32 %v12524_v60, %v3063_v57 }
 0x37c   :  { %v3210_v44 = vsel %vm3209_vm12, %v11924_v18, %v3206_v39 }
 0x37d   :  { %v3254_v46 = vmul.f32 %v3210_v44, %v3158_v14  ;;  %v3151_v4 = vsub.f32 %v3135_v32, %v3143_v63 }
 0x37f   :  { %v3279_v51 = vmul.f32 %v3263_v36, %v3254_v46  ;;  %v2867_v41 = vpop.f32.mrf.mxu0  ;;  %v3167_v35 = vadd.f32 0.8, %v3151_v4 }
 0x381   :  { %v3304_v2 = vadd.f32 %v3288_v47, %v3279_v51  ;;  %v2880_v45 = vpop.f32.mrf.mxu1  ;;  %11925 = vrsqrt.f32 %v3167_v35  ;;  %vm3217_vm14 = vweird.f32 %v3167_v35 }
 0x383   :  { %vm3312_vm13 = vcmp.gt.f32.partialorder %v3304_v2, 0.0  ;;  %v3320_v59 = vmul.f32 0.2, %v3304_v2  ;;  %v2854_v7 = vpop.f32.mrf.mxu3 }
 0x384   :  { %v2868_v61 = vadd.f32 %v2867_v41, %v2854_v7 }
 0x385   :  { %v12536_v1 = vsel %vm3312_vm13, %v3304_v2, %v3320_v59 }
 0x386   :  { %v2881_v40 = vadd.f32 %v2880_v45, %v2868_v61 }
 0x387   :  { %v2869_v9 = vpop.f32.mrf.mxu0  ;;  %v11926_v6 = vpop.eup %11925 }
 0x388   :  { %v3212_v52 = vmul.f32 %v11926_v6, %v3167_v35  ;;  %vm3218_vm15 = vweird.f32 %v11926_v6 }
 0x389   :  { %v2893_v8 = vpop.f32.mrf.mxu2  ;;  %v2882_v38 = vpop.f32.mrf.mxu1  ;;  %vm3219_vm0 = vmor %vm3217_vm14, %vm3218_vm15 }
 0x38a   :  { %v12538_v62 = vadd.f32 %v2893_v8, %v2881_v40  ;;  %v3213_v5 = vmul.f32 %v11926_v6, %v3212_v52 }
 0x38b   :  { %v2856_v13 = vpop.f32.mrf.mxu3 }
 0x38c   :  { %v3038_v10 = vsel %vm291_vm2, %v12538_v62, 0.0  ;;  %v3072_v17 = vmul.f32 %v12538_v62, %v12538_v62  ;;  %v3214_v54 = vmul.f32 0.5, %v3213_v5 }
 0x38d   :  { %v3039_v15 = vrot.slane %v3038_v10, 4 }
 0x38e   :  { %v3110_v43 = vsel %vm291_vm2, %v3072_v17, 0.0  ;;  %v3215_v25 = vsub.f32 1.5, %v3214_v54  ;;  %v3265_v54 = vperm.slane %v12432_v11, 5 }
 0x38f   :  { %v3040_v18 = vadd.f32 %v3039_v15, %v3038_v10  ;;  %v3111_v20 = vrot.slane %v3110_v43, 4 }
 0x390   :  { %v3216_v49 = vmul.f32 %v11926_v6, %v3215_v25  ;;  %v3290_v25 = vperm.slane %v12452_v34, 5 }
 0x391   :  { %v2895_v16 = vpop.f32.mrf.mxu2  ;;  %v3041_v23 = vrot.slane %v3040_v18, 2  ;;  %v3112_v22 = vadd.f32 %v3111_v20, %v3110_v43 }
 0x392   :  { %v3220_v26 = vsel %vm3219_vm0, %v11926_v6, %v3216_v49 }
 0x393   :  { %v3042_v30 = vadd.f32 %v3041_v23, %v3040_v18  ;;  %v3113_v24 = vrot.slane %v3112_v22, 2  ;;  %v3255_v27 = vmul.f32 %v3220_v26, %v3159_v53 }
 0x395   :  { %v3043_v29 = vrot.slane %v3042_v30, 1  ;;  %v3114_v3 = vadd.f32 %v3113_v24, %v3112_v22  ;;  %v3280_v33 = vmul.f32 %v3264_v19, %v3255_v27 }
 0x397   :  { %v3044_v39 = vadd.f32 %v3043_v29, %v3042_v30  ;;  %v3115_v14 = vrot.slane %v3114_v3, 1  ;;  %v3305_v36 = vadd.f32 %v3289_v28, %v3280_v33 }
 0x399   :  { %v3064_v37 = vmul.f32 %v3044_v39, %v12239_v0  ;;  %v3116_v42 = vadd.f32 %v3115_v14, %v3114_v3  ;;  %vm3313_vm1 = vcmp.gt.f32.partialorder %v3305_v36, 0.0  ;;  %v3321_v44 = vmul.f32 0.2, %v3305_v36 }
 0x39b   :  { %v3136_v60 = vmul.f32 %v3116_v42, %v12239_v0  ;;  %v3144_v46 = vmul.f32 %v3064_v37, %v3064_v37  ;;  %v12550_v47 = vsel %vm3313_vm1, %v3305_v36, %v3321_v44  ;;  %v3160_v13 = vsub.f32 %v12538_v62, %v3064_v37 }
 0x39d   :  { %v3152_v48 = vsub.f32 %v3136_v60, %v3144_v46 }
 0x39f   :  { %v3168_v51 = vadd.f32 0.8, %v3152_v48 }
 0x3a1   :  { %v2919_v50 = vpop.f32.mrf.mxu0  ;;  %11927 = vrsqrt.f32 %v3168_v51  ;;  %vm3227_vm3 = vweird.f32 %v3168_v51 }
 0x3a3   :  { %v2932_v55 = vpop.f32.mrf.mxu1 }
 0x3a5   :  { %v2906_v56 = vpop.f32.mrf.mxu3 }
 0x3a6   :  { %v2920_v2 = vadd.f32 %v2919_v50, %v2906_v56 }
 0x3a7   :  { %v11928_v32 = vpop.eup %11927 }
 0x3a8   :  { %v2933_v58 = vadd.f32 %v2932_v55, %v2920_v2  ;;  %v3222_v4 = vmul.f32 %v11928_v32, %v3168_v51  ;;  %vm3228_vm4 = vweird.f32 %v11928_v32 }
 0x3a9   :  { %v2921_v59 = vpop.f32.mrf.mxu0  ;;  %vm3229_vm5 = vmor %vm3227_vm3, %vm3228_vm4 }
 0x3aa   :  { %v3223_v35 = vmul.f32 %v11928_v32, %v3222_v4 }
 0x3ab   :  { %v2945_v57 = vpop.f32.mrf.mxu2  ;;  %v2934_v63 = vpop.f32.mrf.mxu1 }
 0x3ac   :  { %v12552_v41 = vadd.f32 %v2945_v57, %v2933_v58  ;;  %v3224_v40 = vmul.f32 0.5, %v3223_v35 }
 0x3ad   :  { %v2908_v8 = vpop.f32.mrf.mxu3 }
 0x3ae   :  { %v3045_v45 = vsel %vm291_vm2, %v12552_v41, 0.0  ;;  %v3073_v7 = vmul.f32 %v12552_v41, %v12552_v41  ;;  %v3225_v5 = vsub.f32 1.5, %v3224_v40 }
 0x3af   :  { %v3046_v61 = vrot.slane %v3045_v45, 4 }
 0x3b0   :  { %v3117_v9 = vsel %vm291_vm2, %v3073_v7, 0.0  ;;  %v3226_v15 = vmul.f32 %v11928_v32, %v3225_v5 }
 0x3b1   :  { %v3047_v38 = vadd.f32 %v3046_v61, %v3045_v45  ;;  %v3118_v52 = vrot.slane %v3117_v9, 4 }
 0x3b2   :  { %v3230_v18 = vsel %vm3229_vm5, %v11928_v32, %v3226_v15  ;;  %v3291_v15 = vperm.slane %v12452_v34, 6 }
 0x3b3   :  { %v2947_v6 = vpop.f32.mrf.mxu2  ;;  %v3048_v10 = vrot.slane %v3047_v38, 2  ;;  %v3119_v17 = vadd.f32 %v3118_v52, %v3117_v9  ;;  %v3256_v20 = vmul.f32 %v3230_v18, %v3160_v13 }
 0x3b5   :  { %v3049_v43 = vadd.f32 %v3048_v10, %v3047_v38  ;;  %v3120_v16 = vrot.slane %v3119_v17, 2  ;;  %v3281_v49 = vmul.f32 %v3265_v54, %v3256_v20  ;;  %v3266_v38 = vperm.slane %v12432_v11, 6 }
 0x3b7   :  { %v3050_v23 = vrot.slane %v3049_v43, 1  ;;  %v3121_v22 = vadd.f32 %v3120_v16, %v3119_v17  ;;  %v3306_v30 = vadd.f32 %v3290_v25, %v3281_v49 }
 0x3b9   :  { %v3051_v53 = vadd.f32 %v3050_v23, %v3049_v43  ;;  %v3122_v19 = vrot.slane %v3121_v22, 1  ;;  %vm3314_vm6 = vcmp.gt.f32.partialorder %v3306_v30, 0.0  ;;  %v3322_v27 = vmul.f32 0.2, %v3306_v30 }
 0x3bb   :  { %v3065_v24 = vmul.f32 %v3051_v53, %v12239_v0  ;;  %v3123_v26 = vadd.f32 %v3122_v19, %v3121_v22  ;;  %v12564_v29 = vsel %vm3314_vm6, %v3306_v30, %v3322_v27 }
 0x3bd   :  { %v3137_v62 = vmul.f32 %v3123_v26, %v12239_v0  ;;  %v3145_v28 = vmul.f32 %v3065_v24, %v3065_v24  ;;  %v3161_v6 = vsub.f32 %v12552_v41, %v3065_v24 }
 0x3bf   :  { %v3153_v3 = vsub.f32 %v3137_v62, %v3145_v28 }
 0x3c1   :  { %v3169_v14 = vadd.f32 0.8, %v3153_v3  ;;  %v3267_v3 = vperm.slane %v12432_v11, 7 }
 0x3c3   :  { %11929 = vrsqrt.f32 %v3169_v14  ;;  %vm3237_vm7 = vweird.f32 %v3169_v14 }
 0x3c9   :  { %v11930_v48 = vpop.eup %11929 }
 0x3ca   :  { %v3232_v51 = vmul.f32 %v11930_v48, %v3169_v14  ;;  %vm3238_vm8 = vweird.f32 %v11930_v48  ;;  %v3292_v14 = vperm.slane %v12452_v34, 7 }
 0x3cb   :  { %v2971_v33 = vpop.f32.mrf.mxu0  ;;  %vm3239_vm9 = vmor %vm3237_vm7, %vm3238_vm8 }
 0x3cc   :  { %v3233_v2 = vmul.f32 %v11930_v48, %v3232_v51 }
 0x3cd   :  { %v2984_v39 = vpop.f32.mrf.mxu1 }
 0x3ce   :  { %v3234_v32 = vmul.f32 0.5, %v3233_v2 }
 0x3cf   :  { %v2958_v36 = vpop.f32.mrf.mxu3 }
 0x3d0   :  { %v2972_v37 = vadd.f32 %v2971_v33, %v2958_v36  ;;  %v3235_v45 = vsub.f32 1.5, %v3234_v32 }
 0x3d2   :  { %v2985_v44 = vadd.f32 %v2984_v39, %v2972_v37  ;;  %v3236_v8 = vmul.f32 %v11930_v48, %v3235_v45 }
 0x3d3   :  { %v2973_v60 = vpop.f32.mrf.mxu0 }
 0x3d4   :  { %v3240_v52 = vsel %vm3239_vm9, %v11930_v48, %v3236_v8 }
 0x3d5   :  { %v2997_v42 = vpop.f32.mrf.mxu2  ;;  %v2986_v46 = vpop.f32.mrf.mxu1  ;;  %v3257_v17 = vmul.f32 %v3240_v52, %v3161_v6 }
 0x3d6   :  { %v2998_v50 = vadd.f32 %v2997_v42, %v2985_v44 }
 0x3d7   :  { %v2960_v58 = vpop.f32.mrf.mxu3  ;;  %v3282_v43 = vmul.f32 %v3266_v38, %v3257_v17 }
 0x3d8   :  { %v3052_v55 = vsel %vm291_vm2, %v2998_v50, 0.0  ;;  %v3074_v56 = vmul.f32 %v2998_v50, %v2998_v50 }
 0x3d9   :  { %v3053_v57 = vrot.slane %v3052_v55, 4  ;;  %v3307_v20 = vadd.f32 %v3291_v15, %v3282_v43 }
 0x3da   :  { %v3124_v59 = vsel %vm291_vm2, %v3074_v56, 0.0 }
 0x3db   :  { %v3054_v63 = vadd.f32 %v3053_v57, %v3052_v55  ;;  %v3125_v4 = vrot.slane %v3124_v59, 4  ;;  %vm3315_vm10 = vcmp.gt.f32.partialorder %v3307_v20, 0.0  ;;  %v3323_v41 = vmul.f32 0.2, %v3307_v20 }
 0x3dd   :  { %v2999_v35 = vpop.f32.mrf.mxu2  ;;  %v3055_v7 = vrot.slane %v3054_v63, 2  ;;  %v3126_v61 = vadd.f32 %v3125_v4, %v3124_v59  ;;  %v12573_v49 = vsel %vm3315_vm10, %v3307_v20, %v3323_v41 }
 0x3df   :  { %v3056_v40 = vadd.f32 %v3055_v7, %v3054_v63  ;;  %v3127_v9 = vrot.slane %v3126_v61, 2 }
 0x3e1   :  { %v3057_v5 = vrot.slane %v3056_v40, 1  ;;  %v3128_v10 = vadd.f32 %v3127_v9, %v3126_v61 }
 0x3e3   :  { %v3058_v13 = vadd.f32 %v3057_v5, %v3056_v40  ;;  %v3129_v54 = vrot.slane %v3128_v10, 1 }
 0x3e5   :  { %v3066_v16 = vmul.f32 %v3058_v13, %v12239_v0  ;;  %v3130_v18 = vadd.f32 %v3129_v54, %v3128_v10 }
 0x3e7   :  { %v3138_v25 = vmul.f32 %v3130_v18, %v12239_v0  ;;  %v3146_v23 = vmul.f32 %v3066_v16, %v3066_v16  ;;  %v3162_v28 = vsub.f32 %v2998_v50, %v3066_v16 }
 0x3e9   :  { %v3154_v22 = vsub.f32 %v3138_v25, %v3146_v23 }
 0x3eb   :  { %v3170_v53 = vadd.f32 0.8, %v3154_v22 }
 0x3ed   :  { %11931 = vrsqrt.f32 %v3170_v53  ;;  %vm3247_vm12 = vweird.f32 %v3170_v53 }
 0x3f3   :  { %v11932_v19 = vpop.eup %11931 }
 0x3f4   :  { %v3242_v30 = vmul.f32 %v11932_v19, %v3170_v53  ;;  %vm3248_vm11 = vweird.f32 %v11932_v19 }
 0x3f5   :  { %vm3249_vm13 = vmor %vm3247_vm12, %vm3248_vm11 }
 0x3f6   :  { %v3243_v24 = vmul.f32 %v11932_v19, %v3242_v30 }
 0x3f8   :  { %v3244_v26 = vmul.f32 0.5, %v3243_v24 }
 0x3fa   :  { %v3245_v27 = vsub.f32 1.5, %v3244_v26 }
 0x3fc   :  { %v3246_v62 = vmul.f32 %v11932_v19, %v3245_v27 }
 0x3fe   :  { %v3250_v33 = vsel %vm3249_vm13, %v11932_v19, %v3246_v62 }
 0x3ff   :  { %v3258_v39 = vmul.f32 %v3250_v33, %v3162_v28 }
 0x401   :  { %v3283_v36 = vmul.f32 %v3267_v3, %v3258_v39 }
 0x403   :  { %v3308_v37 = vadd.f32 %v3292_v14, %v3283_v36 }
 0x405   :  { %vm3316_vm14 = vcmp.gt.f32.partialorder %v3308_v37, 0.0  ;;  %v3324_v42 = vmul.f32 0.2, %v3308_v37 }
 0x407   :  { %v12577_v44 = vsel %vm3316_vm14, %v3308_v37, %v3324_v42 }
 0x408   :  { %12145 = dma.done.wait [#allocation4 + $0x1], 65536 }
 0x409   :  { %12146 = vsyncadd [#allocation4 + $0x1], 4294901760  ;;  %v9214_v60 = vld [vmem:[#allocation3 + $0x1c0] sm:$0xf] }
 0x40a   :  { %v11436_v46 = vld [vmem:[#allocation3 + $0x1dc] sm:$0xf0] }
 0x40b   :  { %v9470_v48 = vld [vmem:[#allocation3 + $0x3c0] sm:$0xf]  ;;  %v9215_v51 = vor.u32 %v11436_v46, %v9214_v60 }
 0x40c   :  { %v11500_v50 = vld [vmem:[#allocation3 + $0x3dc] sm:$0xf0] }
 0x40d   :  { %v9982_v55 = vld [vmem:[#allocation3 + $0x7c0] sm:$0xf]  ;;  %v9471_v11 = vor.u32 %v11500_v50, %v9470_v48  ;;  %6417 = vmatpush.bf16.msra.mxu3 %v9215_v51 }
 0x40e   :  { %v11628_v56 = vld [vmem:[#allocation3 + $0x7dc] sm:$0xf0] }
 0x40f   :  { %v9983_v2 = vor.u32 %v11628_v56, %v9982_v55  ;;  %v9726_v57 = vld [vmem:[#allocation3 + $0x5c0] sm:$0xf]  ;;  %6430 = vmatpush.bf16.msrb.mxu0 %v9471_v11 }
 0x410   :  { %v11564_v58 = vld [vmem:[#allocation3 + $0x5dc] sm:$0xf0] }
 0x411   :  { %v9182_v34 = vld [vmem:[#allocation3 + $0x180] sm:$0xf]  ;;  %v9727_v59 = vor.u32 %v11564_v58, %v9726_v57  ;;  %6456 = vmatpush.bf16.msrb.mxu2 %v9983_v2 }
 0x412   :  { %v11428_v32 = vld [vmem:[#allocation3 + $0x19c] sm:$0xf0] }
 0x413   :  { %v9438_v63 = vld [vmem:[#allocation3 + $0x380] sm:$0xf]  ;;  %v9183_v35 = vor.u32 %v11428_v32, %v9182_v34  ;;  %6443 = vmatpush.bf16.msrb.mxu1 %v9727_v59 }
 0x414   :  { %v11492_v4 = vld [vmem:[#allocation3 + $0x39c] sm:$0xf0] }
 0x415   :  { %v9439_v45 = vor.u32 %v11492_v4, %v9438_v63  ;;  %v9950_v7 = vld [vmem:[#allocation3 + $0x780] sm:$0xf]  ;;  %6418 = vmatpush.bf16.msra.mxu3 %v9183_v35 }
 0x416   :  { %v11620_v61 = vld [vmem:[#allocation3 + $0x79c] sm:$0xf0] }
 0x417   :  { %v9694_v8 = vld [vmem:[#allocation3 + $0x580] sm:$0xf]  ;;  %v9951_v40 = vor.u32 %v11620_v61, %v9950_v7  ;;  %6431 = vmatpush.bf16.msrb.mxu0 %v9439_v45 }
 0x418   :  { %v11556_v9 = vld [vmem:[#allocation3 + $0x59c] sm:$0xf0] }
 0x419   :  { %v9150_v6 = vld [vmem:[#allocation3 + $0x140] sm:$0xf]  ;;  %v9695_v52 = vor.u32 %v11556_v9, %v9694_v8  ;;  %6457 = vmatpush.bf16.msrb.mxu2 %v9951_v40 }
 0x41a   :  { %v11420_v38 = vld [vmem:[#allocation3 + $0x15c] sm:$0xf0] }
 0x41b   :  { %v9406_v5 = vld [vmem:[#allocation3 + $0x340] sm:$0xf]  ;;  %v9151_v15 = vor.u32 %v11420_v38, %v9150_v6  ;;  %6444 = vmatpush.bf16.msrb.mxu1 %v9695_v52 }
 0x41c   :  { %v11484_v10 = vld [vmem:[#allocation3 + $0x35c] sm:$0xf0] }
 0x41d   :  { %v9918_v17 = vld [vmem:[#allocation3 + $0x740] sm:$0xf]  ;;  %v9407_v16 = vor.u32 %v11484_v10, %v9406_v5  ;;  %6419 = vmatpush.bf16.msra.mxu3 %v9151_v15 }
 0x41e   :  { %v11612_v13 = vld [vmem:[#allocation3 + $0x75c] sm:$0xf0] }
 0x41f   :  { %v9662_v54 = vld [vmem:[#allocation3 + $0x540] sm:$0xf]  ;;  %v9919_v18 = vor.u32 %v11612_v13, %v9918_v17  ;;  %6432 = vmatpush.bf16.msrb.mxu0 %v9407_v16 }
 0x420   :  { %v11548_v43 = vld [vmem:[#allocation3 + $0x55c] sm:$0xf0] }
 0x421   :  { %v9118_v20 = vld [vmem:[#allocation3 + $0x100] sm:$0xf]  ;;  %v9663_v41 = vor.u32 %v11548_v43, %v9662_v54  ;;  %6458 = vmatpush.bf16.msrb.mxu2 %v9919_v18 }
 0x422   :  { %v11412_v25 = vld [vmem:[#allocation3 + $0x11c] sm:$0xf0] }
 0x423   :  { %v9374_v23 = vld [vmem:[#allocation3 + $0x300] sm:$0xf]  ;;  %v9119_v26 = vor.u32 %v11412_v25, %v9118_v20  ;;  %6445 = vmatpush.bf16.msrb.mxu1 %v9663_v41 }
 0x424   :  { %v11476_v22 = vld [vmem:[#allocation3 + $0x31c] sm:$0xf0] }
 0x425   :  { %v9886_v53 = vld [vmem:[#allocation3 + $0x700] sm:$0xf]  ;;  %v9375_v27 = vor.u32 %v11476_v22, %v9374_v23  ;;  %6420 = vmatpush.bf16.msra.mxu3 %v9119_v26 }
 0x426   :  { %v11604_v19 = vld [vmem:[#allocation3 + $0x71c] sm:$0xf0] }
 0x427   :  { %v9630_v30 = vld [vmem:[#allocation3 + $0x500] sm:$0xf]  ;;  %v9887_v62 = vor.u32 %v11604_v19, %v9886_v53  ;;  %6433 = vmatpush.bf16.msrb.mxu0 %v9375_v27 }
 0x428   :  { %v11540_v24 = vld [vmem:[#allocation3 + $0x51c] sm:$0xf0] }
 0x429   :  { %v9086_v28 = vld [vmem:[#allocation3 + $0xc0] sm:$0xf]  ;;  %v9631_v39 = vor.u32 %v11540_v24, %v9630_v30  ;;  %6459 = vmatpush.bf16.msrb.mxu2 %v9887_v62 }
 0x42a   :  { %v11404_v3 = vld [vmem:[#allocation3 + $0xdc] sm:$0xf0] }
 0x42b   :  { %v9342_v33 = vld [vmem:[#allocation3 + $0x2c0] sm:$0xf]  ;;  %v9087_v46 = vor.u32 %v11404_v3, %v9086_v28  ;;  %6446 = vmatpush.bf16.msrb.mxu1 %v9631_v39 }
 0x42c   :  { %v11468_v14 = vld [vmem:[#allocation3 + $0x2dc] sm:$0xf0] }
 0x42d   :  { %v9854_v36 = vld [vmem:[#allocation3 + $0x6c0] sm:$0xf]  ;;  %v9343_v48 = vor.u32 %v11468_v14, %v9342_v33  ;;  %6421 = vmatpush.bf16.msra.mxu3 %v9087_v46 }
 0x42e   :  { %v11596_v37 = vld [vmem:[#allocation3 + $0x6dc] sm:$0xf0] }
 0x42f   :  { %v9598_v42 = vld [vmem:[#allocation3 + $0x4c0] sm:$0xf]  ;;  %v9855_v51 = vor.u32 %v11596_v37, %v9854_v36  ;;  %6434 = vmatpush.bf16.msrb.mxu0 %v9343_v48 }
 0x430   :  { %v11532_v60 = vld [vmem:[#allocation3 + $0x4dc] sm:$0xf0] }
 0x431   :  { %v9054_v50 = vld [vmem:[#allocation3 + $0x80] sm:$0xf]  ;;  %v9599_v11 = vor.u32 %v11532_v60, %v9598_v42  ;;  %6460 = vmatpush.bf16.msrb.mxu2 %v9855_v51 }
 0x432   :  { %v11396_v55 = vld [vmem:[#allocation3 + $0x9c] sm:$0xf0] }
 0x433   :  { %v9310_v56 = vld [vmem:[#allocation3 + $0x280] sm:$0xf]  ;;  %v9055_v32 = vor.u32 %v11396_v55, %v9054_v50  ;;  %6447 = vmatpush.bf16.msrb.mxu1 %v9599_v11  ;;  %v12581_v50 = vpack.c.bf16 %v12471_v31, %v12471_v31  ;;  %v12585_v11 = vpack.c.bf16 %v12536_v1, %v12536_v1 }
 0x434   :  { %v11460_v2 = vld [vmem:[#allocation3 + $0x29c] sm:$0xf0] }
 0x435   :  { %v9822_v57 = vld [vmem:[#allocation3 + $0x680] sm:$0xf]  ;;  %v9311_v63 = vor.u32 %v11460_v2, %v9310_v56  ;;  %6422 = vmatpush.bf16.msra.mxu3 %v9055_v32  ;;  %v12589_v2 = vpack.c.bf16 %v12508_v21, %v12508_v21 }
 0x436   :  { %v11588_v58 = vld [vmem:[#allocation3 + $0x69c] sm:$0xf0] }
 0x437   :  { %v9566_v34 = vld [vmem:[#allocation3 + $0x480] sm:$0xf]  ;;  %v9823_v4 = vor.u32 %v11588_v58, %v9822_v57  ;;  %6435 = vmatpush.bf16.msrb.mxu0 %v9311_v63 }
 0x438   :  { %v11524_v59 = vld [vmem:[#allocation3 + $0x49c] sm:$0xf0] }
 0x439   :  { %v9022_v35 = vld [vmem:[#allocation3 + $0x40] sm:$0xf]  ;;  %v9567_v61 = vor.u32 %v11524_v59, %v9566_v34  ;;  %6461 = vmatpush.bf16.msrb.mxu2 %v9823_v4  ;;  %v12593_v4 = vpack.c.bf16 %v12522_v12, %v12522_v12 }
 0x43a   :  { %v11388_v45 = vld [vmem:[#allocation3 + $0x5c] sm:$0xf0] }
 0x43b   :  { %v9278_v7 = vld [vmem:[#allocation3 + $0x240] sm:$0xf]  ;;  %v9023_v52 = vor.u32 %v11388_v45, %v9022_v35  ;;  %6448 = vmatpush.bf16.msrb.mxu1 %v9567_v61 }
 0x43c   :  { %v11452_v8 = vld [vmem:[#allocation3 + $0x25c] sm:$0xf0] }
 0x43d   :  { %v9790_v40 = vld [vmem:[#allocation3 + $0x640] sm:$0xf]  ;;  %v9279_v17 = vor.u32 %v11452_v8, %v9278_v7  ;;  %6423 = vmatpush.bf16.msra.mxu3 %v9023_v52 }
 0x43e   :  { %v11580_v9 = vld [vmem:[#allocation3 + $0x65c] sm:$0xf0] }
 0x43f   :  { %v9534_v6 = vld [vmem:[#allocation3 + $0x440] sm:$0xf]  ;;  %v9791_v15 = vor.u32 %v11580_v9, %v9790_v40  ;;  %6436 = vmatpush.bf16.msrb.mxu0 %v9279_v17 }
 0x440   :  { %v11516_v38 = vld [vmem:[#allocation3 + $0x45c] sm:$0xf0] }
 0x441   :  { %v8990_v5 = vld [vmem:[#allocation3] sm:$0xf]  ;;  %v9535_v16 = vor.u32 %v11516_v38, %v9534_v6  ;;  %6462 = vmatpush.bf16.msrb.mxu2 %v9791_v15 }
 0x442   :  { %v11380_v10 = vld [vmem:[#allocation3 + $0x1c] sm:$0xf0] }
 0x443   :  { %v9246_v13 = vld [vmem:[#allocation3 + $0x200] sm:$0xf]  ;;  %v8991_v53 = vor.u32 %v11380_v10, %v8990_v5  ;;  %6449 = vmatpush.bf16.msrb.mxu1 %v9535_v16 }
 0x444   :  { %v11444_v54 = vld [vmem:[#allocation3 + $0x21c] sm:$0xf0] }
 0x445   :  { %v9758_v43 = vld [vmem:[#allocation3 + $0x600] sm:$0xf]  ;;  %v9247_v26 = vor.u32 %v11444_v54, %v9246_v13  ;;  %6424 = vmatpush.bf16.msra.mxu3 %v8991_v53 }
 0x446   :  { %v11572_v18 = vld [vmem:[#allocation3 + $0x61c] sm:$0xf0] }
 0x447   :  { %v10238_v20 = vld [vmem:[#allocation3 + $0x9c0] sm:$0xf]  ;;  %v9759_v27 = vor.u32 %v11572_v18, %v9758_v43  ;;  %6437 = vmatpush.bf16.msrb.mxu0 %v9247_v26 }
 0x448   :  { %v11692_v25 = vld [vmem:[#allocation3 + $0x9dc] sm:$0xf0]  ;;  %6425 = vmatmul.bf16.vlgmr.msra.gmra.mxu3 %v12581_v50 }
 0x449   :  { %v10494_v23 = vld [vmem:[#allocation3 + $0xbc0] sm:$0xf]  ;;  %v10239_v3 = vor.u32 %v11692_v25, %v10238_v20  ;;  %6463 = vmatpush.bf16.msrb.mxu2 %v9759_v27 }
 0x44a   :  { %v11756_v41 = vld [vmem:[#allocation3 + $0xbdc] sm:$0xf0]  ;;  %6438 = vmatmul.bf16.vlgmr.msrb.gmra.mxu0 %v12589_v2 }
 0x44b   :  { %v11006_v22 = vld [vmem:[#allocation3 + $0xfc0] sm:$0xf]  ;;  %v10495_v33 = vor.u32 %v11756_v41, %v10494_v23  ;;  %6469 = vmatpush.bf16.msrb.mxu3 %v10239_v3 }
 0x44c   :  { %v11884_v19 = vld [vmem:[#allocation3 + $0xfdc] sm:$0xf0]  ;;  %6464 = vmatmul.bf16.vlgmr.msrb.gmra.mxu2 %v12585_v11 }
 0x44d   :  { %v9502_v30 = vld [vmem:[#allocation3 + $0x400] sm:$0xf]  ;;  %v11007_v14 = vor.u32 %v11884_v19, %v11006_v22  ;;  %6482 = vmatpush.bf16.msra.mxu0 %v10495_v33 }
 0x44e   :  { %v11508_v24 = vld [vmem:[#allocation3 + $0x41c] sm:$0xf0] }
 0x44f   :  { %v10750_v62 = vld [vmem:[#allocation3 + $0xdc0] sm:$0xf]  ;;  %v9503_v36 = vor.u32 %v11508_v24, %v9502_v30  ;;  %6508 = vmatpush.bf16.msra.mxu2 %v11007_v14 }
 0x450   :  { %v11820_v28 = vld [vmem:[#allocation3 + $0xddc] sm:$0xf0] }
 0x451   :  { %v10206_v39 = vld [vmem:[#allocation3 + $0x980] sm:$0xf]  ;;  %v10751_v46 = vor.u32 %v11820_v28, %v10750_v62  ;;  %6450 = vmatpush.bf16.msrb.mxu1 %v9503_v36 }
 0x452   :  { %v11684_v37 = vld [vmem:[#allocation3 + $0x99c] sm:$0xf0] }
 0x453   :  { %v10462_v42 = vld [vmem:[#allocation3 + $0xb80] sm:$0xf]  ;;  %v10207_v57 = vor.u32 %v11684_v37, %v10206_v39 }
 0x454   :  { %v11748_v60 = vld [vmem:[#allocation3 + $0xb9c] sm:$0xf0]  ;;  %6451 = vmatmul.bf16.vlgmr.msrb.gmra.mxu1 %v12593_v4 }
 0x455   :  { %v10974_v48 = vld [vmem:[#allocation3 + $0xf80] sm:$0xf]  ;;  %v10463_v58 = vor.u32 %v11748_v60, %v10462_v42  ;;  %6495 = vmatpush.bf16.msra.mxu1 %v10751_v46  ;;  %6470 = vmatpush.bf16.msrb.mxu3 %v10207_v57 }
 0x456   :  { %v11876_v51 = vld [vmem:[#allocation3 + $0xf9c] sm:$0xf0] }
 0x457   :  { %v10718_v55 = vld [vmem:[#allocation3 + $0xd80] sm:$0xf]  ;;  %v10975_v31 = vor.u32 %v11876_v51, %v10974_v48  ;;  %6483 = vmatpush.bf16.msra.mxu0 %v10463_v58 }
 0x458   :  { %v11812_v56 = vld [vmem:[#allocation3 + $0xd9c] sm:$0xf0] }
 0x459   :  { %v10174_v34 = vld [vmem:[#allocation3 + $0x940] sm:$0xf]  ;;  %v10719_v1 = vor.u32 %v11812_v56, %v10718_v55  ;;  %6509 = vmatpush.bf16.msra.mxu2 %v10975_v31 }
 0x45a   :  { %v11676_v59 = vld [vmem:[#allocation3 + $0x95c] sm:$0xf0] }
 0x45b   :  { %v10430_v32 = vld [vmem:[#allocation3 + $0xb40] sm:$0xf]  ;;  %v10175_v61 = vor.u32 %v11676_v59, %v10174_v34  ;;  %6496 = vmatpush.bf16.msra.mxu1 %v10719_v1 }
 0x45c   :  { %v11740_v63 = vld [vmem:[#allocation3 + $0xb5c] sm:$0xf0] }
 0x45d   :  { %v10942_v35 = vld [vmem:[#allocation3 + $0xf40] sm:$0xf]  ;;  %v10431_v8 = vor.u32 %v11740_v63, %v10430_v32  ;;  %6471 = vmatpush.bf16.msrb.mxu3 %v10175_v61 }
 0x45e   :  { %v11868_v21 = vld [vmem:[#allocation3 + $0xf5c] sm:$0xf0] }
 0x45f   :  { %v10686_v45 = vld [vmem:[#allocation3 + $0xd40] sm:$0xf]  ;;  %v10943_v12 = vor.u32 %v11868_v21, %v10942_v35  ;;  %6484 = vmatpush.bf16.msra.mxu0 %v10431_v8 }
 0x460   :  { %v11804_v7 = vld [vmem:[#allocation3 + $0xd5c] sm:$0xf0] }
 0x461   :  { %v10142_v40 = vld [vmem:[#allocation3 + $0x900] sm:$0xf]  ;;  %v10687_v52 = vor.u32 %v11804_v7, %v10686_v45  ;;  %6510 = vmatpush.bf16.msra.mxu2 %v10943_v12  ;;  %v11432_v12 = vld [vmem:[#allocation3 + $0x1c4] sm:$0xf] }
 0x462   :  { %v11668_v9 = vld [vmem:[#allocation3 + $0x91c] sm:$0xf0] }
 0x463   :  { %v10398_v6 = vld [vmem:[#allocation3 + $0xb00] sm:$0xf]  ;;  %v10143_v13 = vor.u32 %v11668_v9, %v10142_v40  ;;  %6497 = vmatpush.bf16.msra.mxu1 %v10687_v52  ;;  %v9216_v9 = vld [vmem:[#allocation3 + $0x1e0] sm:$0xf0] }
 0x464   :  { %v11732_v38 = vld [vmem:[#allocation3 + $0xb1c] sm:$0xf0]  ;;  %v11624_v52 = vld [vmem:[#allocation3 + $0x7c4] sm:$0xf] }
 0x465   :  { %v10910_v5 = vld [vmem:[#allocation3 + $0xf00] sm:$0xf]  ;;  %v10399_v54 = vor.u32 %v11732_v38, %v10398_v6  ;;  %6472 = vmatpush.bf16.msrb.mxu3 %v10143_v13  ;;  %v11496_v6 = vld [vmem:[#allocation3 + $0x3c4] sm:$0xf] }
 0x466   :  { %v11860_v10 = vld [vmem:[#allocation3 + $0xf1c] sm:$0xf0]  ;;  %v9472_v38 = vld [vmem:[#allocation3 + $0x3e0] sm:$0xf0] }
 0x467   :  { %v10654_v17 = vld [vmem:[#allocation3 + $0xd00] sm:$0xf]  ;;  %v10911_v16 = vor.u32 %v11860_v10, %v10910_v5  ;;  %6485 = vmatpush.bf16.msra.mxu0 %v10399_v54  ;;  %v9984_v5 = vld [vmem:[#allocation3 + $0x7e0] sm:$0xf0] }
 0x468   :  { %v11796_v15 = vld [vmem:[#allocation3 + $0xd1c] sm:$0xf0] }
 0x469   :  { %v10110_v43 = vld [vmem:[#allocation3 + $0x8c0] sm:$0xf]  ;;  %v10655_v23 = vor.u32 %v11796_v15, %v10654_v17  ;;  %6511 = vmatpush.bf16.msra.mxu2 %v10911_v16  ;;  %v11560_v16 = vld [vmem:[#allocation3 + $0x5c4] sm:$0xf] }
 0x46a   :  { %v11660_v18 = vld [vmem:[#allocation3 + $0x8dc] sm:$0xf0] }
 0x46b   :  { %v10366_v20 = vld [vmem:[#allocation3 + $0xac0] sm:$0xf]  ;;  %v10111_v30 = vor.u32 %v11660_v18, %v10110_v43  ;;  %6498 = vmatpush.bf16.msra.mxu1 %v10655_v23  ;;  %v9219_v43 = vor.u32 %v11432_v12, %v9216_v9  ;;  %v9728_v18 = vld [vmem:[#allocation3 + $0x5e0] sm:$0xf0] }
 0x46c   :  { %v11724_v25 = vld [vmem:[#allocation3 + $0xadc] sm:$0xf0]  ;;  %v11424_v23 = vld [vmem:[#allocation3 + $0x184] sm:$0xf] }
 0x46d   :  { %v10878_v41 = vld [vmem:[#allocation3 + $0xec0] sm:$0xf]  ;;  %v10367_v24 = vor.u32 %v11724_v25, %v10366_v20  ;;  %6473 = vmatpush.bf16.msrb.mxu3 %v10111_v30  ;;  %v9475_v20 = vor.u32 %v11496_v6, %v9472_v38  ;;  %v9987_v25 = vor.u32 %v11624_v52, %v9984_v5  ;;  %v9440_v30 = vld [vmem:[#allocation3 + $0x3a0] sm:$0xf0] }
 0x46e   :  { %v11852_v22 = vld [vmem:[#allocation3 + $0xedc] sm:$0xf0]  ;;  %v11464_v12 = vld [vmem:[#allocation3 + $0x2c4] sm:$0xf] }
 0x46f   :  { %v10622_v53 = vld [vmem:[#allocation3 + $0xcc0] sm:$0xf]  ;;  %v10879_v27 = vor.u32 %v11852_v22, %v10878_v41  ;;  %6486 = vmatpush.bf16.msra.mxu0 %v10367_v24  ;;  %v9184_v41 = vld [vmem:[#allocation3 + $0x1a0] sm:$0xf0] }
 0x470   :  { %v11788_v19 = vld [vmem:[#allocation3 + $0xcdc] sm:$0xf0]  ;;  %v11488_v22 = vld [vmem:[#allocation3 + $0x384] sm:$0xf] }
 0x471   :  { %v10078_v26 = vld [vmem:[#allocation3 + $0x880] sm:$0xf]  ;;  %v10623_v33 = vor.u32 %v11788_v19, %v10622_v53  ;;  %6512 = vmatpush.bf16.msra.mxu2 %v10879_v27  ;;  %v12601_v19 = vpack.c.bf16 %v12550_v47, %v12550_v47  ;;  %v11616_v24 = vld [vmem:[#allocation3 + $0x784] sm:$0xf]  ;;  %v9731_v27 = vor.u32 %v11560_v16, %v9728_v18  ;;  %v9443_v47 = vor.u32 %v11488_v22, %v9440_v30 }
 0x472   :  { %v11652_v62 = vld [vmem:[#allocation3 + $0x89c] sm:$0xf0]  ;;  %v9344_v9 = vld [vmem:[#allocation3 + $0x2e0] sm:$0xf0] }
 0x473   :  { %v10334_v28 = vld [vmem:[#allocation3 + $0xa80] sm:$0xf]  ;;  %v10079_v42 = vor.u32 %v11652_v62, %v10078_v26  ;;  %6499 = vmatpush.bf16.msra.mxu1 %v10623_v33  ;;  %v9952_v26 = vld [vmem:[#allocation3 + $0x7a0] sm:$0xf0]  ;;  %v12605_v62 = vpack.c.bf16 %v12577_v44, %v12577_v44 }
 0x474   :  { %v11716_v3 = vld [vmem:[#allocation3 + $0xa9c] sm:$0xf0]  ;;  %v9696_v33 = vld [vmem:[#allocation3 + $0x5a0] sm:$0xf0] }
 0x475   :  { %v10846_v39 = vld [vmem:[#allocation3 + $0xe80] sm:$0xf]  ;;  %v10335_v60 = vor.u32 %v11716_v3, %v10334_v28  ;;  %6474 = vmatpush.bf16.msrb.mxu3 %v10079_v42  ;;  %v9187_v28 = vor.u32 %v11424_v23, %v9184_v41  ;;  %v11552_v3 = vld [vmem:[#allocation3 + $0x584] sm:$0xf] }
 0x476   :  { %v11844_v14 = vld [vmem:[#allocation3 + $0xe9c] sm:$0xf0]  ;;  %v11480_v42 = vld [vmem:[#allocation3 + $0x344] sm:$0xf] }
 0x477   :  { %v10590_v36 = vld [vmem:[#allocation3 + $0xc80] sm:$0xf]  ;;  %v10847_v48 = vor.u32 %v11844_v14, %v10846_v39  ;;  %6487 = vmatpush.bf16.msra.mxu0 %v10335_v60  ;;  %v12609_v39 = vpack.c.bf16 %v12564_v29, %v12564_v29  ;;  %v9955_v14 = vor.u32 %v11616_v24, %v9952_v26  ;;  %v9408_v44 = vld [vmem:[#allocation3 + $0x360] sm:$0xf0]  ;;  %v9699_v29 = vor.u32 %v11552_v3, %v9696_v33 }
 0x478   :  { %v11780_v37 = vld [vmem:[#allocation3 + $0xc9c] sm:$0xf0]  ;;  %v11608_v60 = vld [vmem:[#allocation3 + $0x744] sm:$0xf] }
 0x479   :  { %v10046_v46 = vld [vmem:[#allocation3 + $0x840] sm:$0xf]  ;;  %v10591_v57 = vor.u32 %v11780_v37, %v10590_v36  ;;  %6513 = vmatpush.bf16.msra.mxu2 %v10847_v48  ;;  %v11416_v36 = vld [vmem:[#allocation3 + $0x144] sm:$0xf]  ;;  %v12614_v48 = vpack.c.bf16 %v12573_v49, %v12573_v49 }
 0x47a   :  { %v11644_v51 = vld [vmem:[#allocation3 + $0x85c] sm:$0xf0]  ;;  %v9152_v37 = vld [vmem:[#allocation3 + $0x160] sm:$0xf0] }
 0x47b   :  { %v10302_v55 = vld [vmem:[#allocation3 + $0xa40] sm:$0xf]  ;;  %v10047_v32 = vor.u32 %v11644_v51, %v10046_v46  ;;  %6500 = vmatpush.bf16.msra.mxu1 %v10591_v57  ;;  %v9920_v46 = vld [vmem:[#allocation3 + $0x760] sm:$0xf0]  ;;  %v9155_v51 = vor.u32 %v11416_v36, %v9152_v37  ;;  %v9411_v57 = vor.u32 %v11480_v42, %v9408_v44 }
 0x47c   :  { %v11708_v56 = vld [vmem:[#allocation3 + $0xa5c] sm:$0xf0]  ;;  %v9376_v49 = vld [vmem:[#allocation3 + $0x320] sm:$0xf0] }
 0x47d   :  { %v10814_v58 = vld [vmem:[#allocation3 + $0xe40] sm:$0xf]  ;;  %v10303_v63 = vor.u32 %v11708_v56, %v10302_v55  ;;  %6475 = vmatpush.bf16.msrb.mxu3 %v10047_v32  ;;  %v11544_v55 = vld [vmem:[#allocation3 + $0x544] sm:$0xf] }
 0x47e   :  { %v11836_v34 = vld [vmem:[#allocation3 + $0xe5c] sm:$0xf0]  ;;  %v9664_v56 = vld [vmem:[#allocation3 + $0x560] sm:$0xf0] }
 0x47f   :  { %v10558_v31 = vld [vmem:[#allocation3 + $0xc40] sm:$0xf]  ;;  %v10815_v45 = vor.u32 %v11836_v34, %v10814_v58  ;;  %6488 = vmatpush.bf16.msra.mxu0 %v10303_v63  ;;  %v9923_v58 = vor.u32 %v11608_v60, %v9920_v46  ;;  %v11408_v34 = vld [vmem:[#allocation3 + $0x104] sm:$0xf] }
 0x480   :  { %v11772_v59 = vld [vmem:[#allocation3 + $0xc5c] sm:$0xf0]  ;;  %v11600_v32 = vld [vmem:[#allocation3 + $0x704] sm:$0xf] }
 0x481   :  { %v10014_v1 = vld [vmem:[#allocation3 + $0x800] sm:$0xf]  ;;  %v10559_v40 = vor.u32 %v11772_v59, %v10558_v31  ;;  %6514 = vmatpush.bf16.msra.mxu2 %v10815_v45  ;;  %v9120_v31 = vld [vmem:[#allocation3 + $0x120] sm:$0xf0] }
 0x482   :  { %v11636_v35 = vld [vmem:[#allocation3 + $0x81c] sm:$0xf0]  ;;  %v11472_v59 = vld [vmem:[#allocation3 + $0x304] sm:$0xf] }
 0x483   :  { %v10270_v21 = vld [vmem:[#allocation3 + $0xa00] sm:$0xf]  ;;  %v10015_v10 = vor.u32 %v11636_v35, %v10014_v1  ;;  %6501 = vmatpush.bf16.msra.mxu1 %v10559_v40  ;;  %v9888_v63 = vld [vmem:[#allocation3 + $0x720] sm:$0xf0]  ;;  %v9667_v1 = vor.u32 %v11544_v55, %v9664_v56  ;;  %v9123_v35 = vor.u32 %v11408_v34, %v9120_v31 }
 0x484   :  { %v11700_v7 = vld [vmem:[#allocation3 + $0xa1c] sm:$0xf0]  ;;  %v9632_v45 = vld [vmem:[#allocation3 + $0x520] sm:$0xf0] }
 0x485   :  { %v10782_v61 = vld [vmem:[#allocation3 + $0xe00] sm:$0xf]  ;;  %v10271_v17 = vor.u32 %v11700_v7, %v10270_v21  ;;  %6476 = vmatpush.bf16.msrb.mxu3 %v10015_v10  ;;  %v11536_v21 = vld [vmem:[#allocation3 + $0x504] sm:$0xf]  ;;  %v9379_v7 = vor.u32 %v11472_v59, %v9376_v49 }
 0x486   :  { %v11828_v8 = vld [vmem:[#allocation3 + $0xe1c] sm:$0xf0]  ;;  %v9088_v40 = vld [vmem:[#allocation3 + $0xe0] sm:$0xf0]  ;;  %v9635_v52 = vor.u32 %v11536_v21, %v9632_v45 }
 0x487   :  { %v10526_v15 = vld [vmem:[#allocation3 + $0xc00] sm:$0xf]  ;;  %v10783_v54 = vor.u32 %v11828_v8, %v10782_v61  ;;  %6489 = vmatpush.bf16.msra.mxu0 %v10271_v17  ;;  %v9891_v61 = vor.u32 %v11600_v32, %v9888_v63  ;;  %v11400_v8 = vld [vmem:[#allocation3 + $0xc4] sm:$0xf] }
 0x488   :  { %v11764_v13 = vld [vmem:[#allocation3 + $0xc1c] sm:$0xf0]  ;;  %6477 = vmatmul.bf16.vlgmr.msrb.gmra.mxu3 %v12601_v19  ;;  %v11592_v6 = vld [vmem:[#allocation3 + $0x6c4] sm:$0xf]  ;;  %v9091_v5 = vor.u32 %v11400_v8, %v9088_v40 }
 0x489   :  { %v10527_v53 = vor.u32 %v11764_v13, %v10526_v15  ;;  %6515 = vmatpush.bf16.msra.mxu2 %v10783_v54  ;;  %6521 = vmatpush.bf16.msra.mxu3 %v9219_v43  ;;  %v9856_v38 = vld [vmem:[#allocation3 + $0x6e0] sm:$0xf0]  ;;  %v9347_v15 = vor.u32 %v11464_v12, %v9344_v9 }
 0x48a   :  { %6490 = vmatmul.bf16.vlgmr.msra.gmra.mxu0 %v12609_v39  ;;  %v11528_v10 = vld [vmem:[#allocation3 + $0x4c4] sm:$0xf]  ;;  %v9859_v13 = vor.u32 %v11592_v6, %v9856_v38 }
 0x48b   :  { %6534 = vmatpush.bf16.msrb.mxu0 %v9475_v20  ;;  %6502 = vmatpush.bf16.msra.mxu1 %v10527_v53  ;;  %v9600_v17 = vld [vmem:[#allocation3 + $0x4e0] sm:$0xf0] }
 0x48c   :  { %6516 = vmatmul.bf16.vlgmr.msra.gmra.mxu2 %v12605_v62  ;;  %v11392_v54 = vld [vmem:[#allocation3 + $0x84] sm:$0xf]  ;;  %v9603_v23 = vor.u32 %v11528_v10, %v9600_v17 }
 0x48d   :  { %6560 = vmatpush.bf16.msrb.mxu2 %v9987_v25  ;;  %6522 = vmatpush.bf16.msra.mxu3 %v9187_v28  ;;  %v9056_v43 = vld [vmem:[#allocation3 + $0xa0] sm:$0xf0] }
 0x48e   :  { %6503 = vmatmul.bf16.vlgmr.msra.gmra.mxu1 %v12614_v48  ;;  %v11456_v16 = vld [vmem:[#allocation3 + $0x284] sm:$0xf]  ;;  %v9059_v41 = vor.u32 %v11392_v54, %v9056_v43 }
 0x48f   :  { %6547 = vmatpush.bf16.msrb.mxu1 %v9731_v27  ;;  %6535 = vmatpush.bf16.msrb.mxu0 %v9443_v47  ;;  %v9312_v18 = vld [vmem:[#allocation3 + $0x2a0] sm:$0xf0] }
 0x490   :  { %v11584_v20 = vld [vmem:[#allocation3 + $0x684] sm:$0xf]  ;;  %v9315_v30 = vor.u32 %v11456_v16, %v9312_v18 }
 0x491   :  { %6561 = vmatpush.bf16.msrb.mxu2 %v9955_v14  ;;  %6523 = vmatpush.bf16.msra.mxu3 %v9155_v51  ;;  %v9824_v25 = vld [vmem:[#allocation3 + $0x6a0] sm:$0xf0] }
 0x492   :  { %v11520_v22 = vld [vmem:[#allocation3 + $0x484] sm:$0xf]  ;;  %v9827_v24 = vor.u32 %v11584_v20, %v9824_v25 }
 0x493   :  { %6548 = vmatpush.bf16.msrb.mxu1 %v9699_v29  ;;  %6536 = vmatpush.bf16.msrb.mxu0 %v9411_v57  ;;  %v9568_v53 = vld [vmem:[#allocation3 + $0x4a0] sm:$0xf0] }
 0x494   :  { %v11384_v26 = vld [vmem:[#allocation3 + $0x44] sm:$0xf]  ;;  %v9571_v14 = vor.u32 %v11520_v22, %v9568_v53 }
 0x495   :  { %6562 = vmatpush.bf16.msrb.mxu2 %v9923_v58  ;;  %6524 = vmatpush.bf16.msra.mxu3 %v9123_v35  ;;  %v9024_v27 = vld [vmem:[#allocation3 + $0x60] sm:$0xf0] }
 0x496   :  { %v11448_v28 = vld [vmem:[#allocation3 + $0x244] sm:$0xf]  ;;  %v9027_v37 = vor.u32 %v11384_v26, %v9024_v27 }
 0x497   :  { %6549 = vmatpush.bf16.msrb.mxu1 %v9667_v1  ;;  %6537 = vmatpush.bf16.msrb.mxu0 %v9379_v7  ;;  %v9280_v3 = vld [vmem:[#allocation3 + $0x260] sm:$0xf0] }
 0x498   :  { %v11576_v33 = vld [vmem:[#allocation3 + $0x644] sm:$0xf]  ;;  %v9283_v46 = vor.u32 %v11448_v28, %v9280_v3 }
 0x499   :  { %6563 = vmatpush.bf16.msrb.mxu2 %v9891_v61  ;;  %6525 = vmatpush.bf16.msra.mxu3 %v9091_v5  ;;  %v9792_v47 = vld [vmem:[#allocation3 + $0x660] sm:$0xf0] }
 0x49a   :  { %v11512_v36 = vld [vmem:[#allocation3 + $0x444] sm:$0xf]  ;;  %v9795_v29 = vor.u32 %v11576_v33, %v9792_v47 }
 0x49b   :  { %6550 = vmatpush.bf16.msrb.mxu1 %v9635_v52  ;;  %6538 = vmatpush.bf16.msrb.mxu0 %v9347_v15  ;;  %v9536_v42 = vld [vmem:[#allocation3 + $0x460] sm:$0xf0] }
 0x49c   :  { %v11376_v44 = vld [vmem:[#allocation3 + $0x4] sm:$0xf]  ;;  %v9539_v31 = vor.u32 %v11512_v36, %v9536_v42 }
 0x49d   :  { %6564 = vmatpush.bf16.msrb.mxu2 %v9859_v13  ;;  %6526 = vmatpush.bf16.msra.mxu3 %v9059_v41  ;;  %v8992_v60 = vld [vmem:[#allocation3 + $0x20] sm:$0xf0] }
 0x49e   :  { %v11440_v51 = vld [vmem:[#allocation3 + $0x204] sm:$0xf]  ;;  %v8995_v63 = vor.u32 %v11376_v44, %v8992_v60 }
 0x49f   :  { %6551 = vmatpush.bf16.msrb.mxu1 %v9603_v23  ;;  %6539 = vmatpush.bf16.msrb.mxu0 %v9315_v30  ;;  %v9248_v55 = vld [vmem:[#allocation3 + $0x220] sm:$0xf0] }
 0x4a0   :  { %v11568_v56 = vld [vmem:[#allocation3 + $0x604] sm:$0xf]  ;;  %v9251_v45 = vor.u32 %v11440_v51, %v9248_v55 }
 0x4a1   :  { %6565 = vmatpush.bf16.msrb.mxu2 %v9827_v24  ;;  %v9760_v57 = vld [vmem:[#allocation3 + $0x620] sm:$0xf0]  ;;  %6527 = vmatpush.bf16.msra.mxu3 %v9027_v37 }
 0x4a2   :  { %v11688_v58 = vld [vmem:[#allocation3 + $0x9c4] sm:$0xf]  ;;  %v9763_v7 = vor.u32 %v11568_v56, %v9760_v57 }
 0x4a3   :  { %v10240_v34 = vld [vmem:[#allocation3 + $0x9e0] sm:$0xf0]  ;;  %6552 = vmatpush.bf16.msrb.mxu1 %v9571_v14  ;;  %6540 = vmatpush.bf16.msrb.mxu0 %v9283_v46 }
 0x4a4   :  { %v11752_v59 = vld [vmem:[#allocation3 + $0xbc4] sm:$0xf]  ;;  %v10243_v40 = vor.u32 %v11688_v58, %v10240_v34 }
 0x4a5   :  { %v10496_v49 = vld [vmem:[#allocation3 + $0xbe0] sm:$0xf0]  ;;  %6566 = vmatpush.bf16.msrb.mxu2 %v9795_v29  ;;  %6528 = vmatpush.bf16.msra.mxu3 %v8995_v63 }
 0x4a6   :  { %v11880_v32 = vld [vmem:[#allocation3 + $0xfc4] sm:$0xf]  ;;  %v10499_v12 = vor.u32 %v11752_v59, %v10496_v49 }
 0x4a7   :  { %v11008_v1 = vld [vmem:[#allocation3 + $0xfe0] sm:$0xf0]  ;;  %6553 = vmatpush.bf16.msrb.mxu1 %v9539_v31  ;;  %6541 = vmatpush.bf16.msrb.mxu0 %v9251_v45 }
 0x4a8   :  { %v11504_v35 = vld [vmem:[#allocation3 + $0x404] sm:$0xf]  ;;  %v11011_v6 = vor.u32 %v11880_v32, %v11008_v1  ;;  %6529 = vmatmul.bf16.vlgmr.msra.gmra.mxu3 %v12581_v50 }
 0x4a9   :  { %v9504_v21 = vld [vmem:[#allocation3 + $0x420] sm:$0xf0]  ;;  %6567 = vmatpush.bf16.msrb.mxu2 %v9763_v7  ;;  %6573 = vmatpush.bf16.msrb.mxu3 %v10243_v40 }
 0x4aa   :  { %v11816_v61 = vld [vmem:[#allocation3 + $0xdc4] sm:$0xf]  ;;  %v9507_v38 = vor.u32 %v11504_v35, %v9504_v21  ;;  %6542 = vmatmul.bf16.vlgmr.msrb.gmra.mxu0 %v12589_v2 }
 0x4ab   :  { %v10752_v8 = vld [vmem:[#allocation3 + $0xde0] sm:$0xf0]  ;;  %6586 = vmatpush.bf16.msra.mxu0 %v10499_v12 }
 0x4ac   :  { %v11680_v9 = vld [vmem:[#allocation3 + $0x984] sm:$0xf]  ;;  %v10755_v17 = vor.u32 %v11816_v61, %v10752_v8  ;;  %6554 = vmatpush.bf16.msrb.mxu1 %v9507_v38  ;;  %6568 = vmatmul.bf16.vlgmr.msrb.gmra.mxu2 %v12585_v11 }
 0x4ad   :  { %v10208_v52 = vld [vmem:[#allocation3 + $0x9a0] sm:$0xf0]  ;;  %6612 = vmatpush.bf16.msra.mxu2 %v11011_v6 }
 0x4ae   :  { %v11744_v5 = vld [vmem:[#allocation3 + $0xb84] sm:$0xf]  ;;  %v10211_v16 = vor.u32 %v11680_v9, %v10208_v52 }
 0x4af   :  { %v10464_v10 = vld [vmem:[#allocation3 + $0xba0] sm:$0xf0]  ;;  %6555 = vmatmul.bf16.vlgmr.msrb.gmra.mxu1 %v12593_v4 }
 0x4b0   :  { %v11872_v15 = vld [vmem:[#allocation3 + $0xf84] sm:$0xf]  ;;  %v10467_v18 = vor.u32 %v11744_v5, %v10464_v10  ;;  %6599 = vmatpush.bf16.msra.mxu1 %v10755_v17  ;;  %6574 = vmatpush.bf16.msrb.mxu3 %v10211_v16 }
 0x4b1   :  { %v10976_v13 = vld [vmem:[#allocation3 + $0xfa0] sm:$0xf0] }
 0x4b2   :  { %v11808_v54 = vld [vmem:[#allocation3 + $0xd84] sm:$0xf]  ;;  %v10979_v25 = vor.u32 %v11872_v15, %v10976_v13  ;;  %6587 = vmatpush.bf16.msra.mxu0 %v10467_v18 }
 0x4b3   :  { %v10720_v43 = vld [vmem:[#allocation3 + $0xda0] sm:$0xf0] }
 0x4b4   :  { %v11672_v20 = vld [vmem:[#allocation3 + $0x944] sm:$0xf]  ;;  %v10723_v53 = vor.u32 %v11808_v54, %v10720_v43  ;;  %6613 = vmatpush.bf16.msra.mxu2 %v10979_v25 }
 0x4b5   :  { %v10176_v23 = vld [vmem:[#allocation3 + $0x960] sm:$0xf0] }
 0x4b6   :  { %v11736_v41 = vld [vmem:[#allocation3 + $0xb44] sm:$0xf]  ;;  %v10179_v28 = vor.u32 %v11672_v20, %v10176_v23  ;;  %6600 = vmatpush.bf16.msra.mxu1 %v10723_v53 }
 0x4b7   :  { %v10432_v22 = vld [vmem:[#allocation3 + $0xb60] sm:$0xf0] }
 0x4b8   :  { %v11864_v30 = vld [vmem:[#allocation3 + $0xf44] sm:$0xf]  ;;  %v10435_v3 = vor.u32 %v11736_v41, %v10432_v22  ;;  %6575 = vmatpush.bf16.msrb.mxu3 %v10179_v28 }
 0x4b9   :  { %v10944_v24 = vld [vmem:[#allocation3 + $0xf60] sm:$0xf0] }
 0x4ba   :  { %v11800_v26 = vld [vmem:[#allocation3 + $0xd44] sm:$0xf]  ;;  %v10947_v47 = vor.u32 %v11864_v30, %v10944_v24  ;;  %6588 = vmatpush.bf16.msra.mxu0 %v10435_v3 }
 0x4bb   :  { %v10688_v27 = vld [vmem:[#allocation3 + $0xd60] sm:$0xf0] }
 0x4bc   :  { %v11664_v33 = vld [vmem:[#allocation3 + $0x904] sm:$0xf]  ;;  %v10691_v42 = vor.u32 %v11800_v26, %v10688_v27  ;;  %6614 = vmatpush.bf16.msra.mxu2 %v10947_v47  ;;  %v9222_v47 = vld [vmem:[#allocation3 + $0x1c8] sm:$0xf] }
 0x4bd   :  { %v10144_v14 = vld [vmem:[#allocation3 + $0x920] sm:$0xf0] }
 0x4be   :  { %v11728_v36 = vld [vmem:[#allocation3 + $0xb04] sm:$0xf]  ;;  %v10147_v51 = vor.u32 %v11664_v33, %v10144_v14  ;;  %6601 = vmatpush.bf16.msra.mxu1 %v10691_v42  ;;  %v11437_v14 = vld [vmem:[#allocation3 + $0x1e4] sm:$0xf0] }
 0x4bf   :  { %v10400_v37 = vld [vmem:[#allocation3 + $0xb20] sm:$0xf0]  ;;  %v9990_v42 = vld [vmem:[#allocation3 + $0x7c8] sm:$0xf] }
 0x4c0   :  { %v11856_v44 = vld [vmem:[#allocation3 + $0xf04] sm:$0xf]  ;;  %v10403_v55 = vor.u32 %v11728_v36, %v10400_v37  ;;  %6576 = vmatpush.bf16.msrb.mxu3 %v10147_v51  ;;  %v9478_v36 = vld [vmem:[#allocation3 + $0x3c8] sm:$0xf] }
 0x4c1   :  { %v10912_v60 = vld [vmem:[#allocation3 + $0xf20] sm:$0xf0]  ;;  %v11501_v37 = vld [vmem:[#allocation3 + $0x3e4] sm:$0xf0] }
 0x4c2   :  { %v11792_v46 = vld [vmem:[#allocation3 + $0xd04] sm:$0xf]  ;;  %v10915_v57 = vor.u32 %v11856_v44, %v10912_v60  ;;  %6589 = vmatpush.bf16.msra.mxu0 %v10403_v55  ;;  %v11629_v44 = vld [vmem:[#allocation3 + $0x7e4] sm:$0xf0] }
 0x4c3   :  { %v10656_v29 = vld [vmem:[#allocation3 + $0xd20] sm:$0xf0] }
 0x4c4   :  { %v11656_v56 = vld [vmem:[#allocation3 + $0x8c4] sm:$0xf]  ;;  %v10659_v59 = vor.u32 %v11792_v46, %v10656_v29  ;;  %6615 = vmatpush.bf16.msra.mxu2 %v10915_v57  ;;  %v9734_v57 = vld [vmem:[#allocation3 + $0x5c8] sm:$0xf] }
 0x4c5   :  { %v10112_v58 = vld [vmem:[#allocation3 + $0x8e0] sm:$0xf0] }
 0x4c6   :  { %v11720_v34 = vld [vmem:[#allocation3 + $0xac4] sm:$0xf]  ;;  %v10115_v35 = vor.u32 %v11656_v56, %v10112_v58  ;;  %6602 = vmatpush.bf16.msra.mxu1 %v10659_v59  ;;  %v9223_v56 = vor.u32 %v11437_v14, %v9222_v47  ;;  %v11565_v58 = vld [vmem:[#allocation3 + $0x5e4] sm:$0xf0] }
 0x4c7   :  { %v10368_v31 = vld [vmem:[#allocation3 + $0xae0] sm:$0xf0]  ;;  %v9190_v59 = vld [vmem:[#allocation3 + $0x188] sm:$0xf] }
 0x4c8   :  { %v11848_v49 = vld [vmem:[#allocation3 + $0xec4] sm:$0xf]  ;;  %v10371_v21 = vor.u32 %v11720_v34, %v10368_v31  ;;  %6577 = vmatpush.bf16.msrb.mxu3 %v10115_v35  ;;  %v9479_v34 = vor.u32 %v11501_v37, %v9478_v36  ;;  %v9991_v31 = vor.u32 %v11629_v44, %v9990_v42  ;;  %v9958_v35 = vld [vmem:[#allocation3 + $0x788] sm:$0xf] }
 0x4c9   :  { %v10880_v32 = vld [vmem:[#allocation3 + $0xee0] sm:$0xf0]  ;;  %v9350_v47 = vld [vmem:[#allocation3 + $0x2c8] sm:$0xf] }
 0x4ca   :  { %v11784_v63 = vld [vmem:[#allocation3 + $0xcc4] sm:$0xf]  ;;  %v10883_v7 = vor.u32 %v11848_v49, %v10880_v32  ;;  %6590 = vmatpush.bf16.msra.mxu0 %v10371_v21  ;;  %v11429_v49 = vld [vmem:[#allocation3 + $0x1a4] sm:$0xf0] }
 0x4cb   :  { %v10624_v1 = vld [vmem:[#allocation3 + $0xce0] sm:$0xf0]  ;;  %v9446_v32 = vld [vmem:[#allocation3 + $0x388] sm:$0xf] }
 0x4cc   :  { %v11648_v45 = vld [vmem:[#allocation3 + $0x884] sm:$0xf]  ;;  %v10627_v12 = vor.u32 %v11784_v63, %v10624_v1  ;;  %6616 = vmatpush.bf16.msra.mxu2 %v10883_v7  ;;  %v11493_v1 = vld [vmem:[#allocation3 + $0x3a4] sm:$0xf0]  ;;  %v9191_v7 = vor.u32 %v11429_v49, %v9190_v59 }
 0x4cd   :  { %v10080_v61 = vld [vmem:[#allocation3 + $0x8a0] sm:$0xf0]  ;;  %v11621_v21 = vld [vmem:[#allocation3 + $0x7a4] sm:$0xf0] }
 0x4ce   :  { %v11712_v8 = vld [vmem:[#allocation3 + $0xa84] sm:$0xf]  ;;  %v10083_v5 = vor.u32 %v11648_v45, %v10080_v61  ;;  %6603 = vmatpush.bf16.msra.mxu1 %v10627_v12  ;;  %v9735_v45 = vor.u32 %v11565_v58, %v9734_v57  ;;  %v9702_v61 = vld [vmem:[#allocation3 + $0x588] sm:$0xf]  ;;  %v9959_v12 = vor.u32 %v11621_v21, %v9958_v35 }
 0x4cf   :  { %v10336_v40 = vld [vmem:[#allocation3 + $0xaa0] sm:$0xf0]  ;;  %v11469_v14 = vld [vmem:[#allocation3 + $0x2e4] sm:$0xf0] }
 0x4d0   :  { %v11840_v9 = vld [vmem:[#allocation3 + $0xe84] sm:$0xf]  ;;  %v10339_v10 = vor.u32 %v11712_v8, %v10336_v40  ;;  %6578 = vmatpush.bf16.msrb.mxu3 %v10083_v5  ;;  %v11557_v8 = vld [vmem:[#allocation3 + $0x5a4] sm:$0xf0]  ;;  %v9447_v40 = vor.u32 %v11493_v1, %v9446_v32 }
 0x4d1   :  { %v10848_v6 = vld [vmem:[#allocation3 + $0xea0] sm:$0xf0]  ;;  %v9926_v5 = vld [vmem:[#allocation3 + $0x748] sm:$0xf] }
 0x4d2   :  { %v11776_v38 = vld [vmem:[#allocation3 + $0xc84] sm:$0xf]  ;;  %v10851_v15 = vor.u32 %v11840_v9, %v10848_v6  ;;  %6591 = vmatpush.bf16.msra.mxu0 %v10339_v10  ;;  %v9158_v9 = vld [vmem:[#allocation3 + $0x148] sm:$0xf] }
 0x4d3   :  { %v10592_v52 = vld [vmem:[#allocation3 + $0xca0] sm:$0xf0]  ;;  %v11421_v6 = vld [vmem:[#allocation3 + $0x164] sm:$0xf0] }
 0x4d4   :  { %v11640_v17 = vld [vmem:[#allocation3 + $0x844] sm:$0xf]  ;;  %v10595_v16 = vor.u32 %v11776_v38, %v10592_v52  ;;  %6617 = vmatpush.bf16.msra.mxu2 %v10851_v15  ;;  %v9414_v38 = vld [vmem:[#allocation3 + $0x348] sm:$0xf]  ;;  %v9159_v15 = vor.u32 %v11421_v6, %v9158_v9 }
 0x4d5   :  { %v10048_v13 = vld [vmem:[#allocation3 + $0x860] sm:$0xf0]  ;;  %v11485_v52 = vld [vmem:[#allocation3 + $0x364] sm:$0xf0] }
 0x4d6   :  { %v11704_v54 = vld [vmem:[#allocation3 + $0xa44] sm:$0xf]  ;;  %v10051_v41 = vor.u32 %v11640_v17, %v10048_v13  ;;  %6604 = vmatpush.bf16.msra.mxu1 %v10595_v16  ;;  %v11613_v10 = vld [vmem:[#allocation3 + $0x764] sm:$0xf0]  ;;  %v9703_v17 = vor.u32 %v11557_v8, %v9702_v61 }
 0x4d7   :  { %v10304_v43 = vld [vmem:[#allocation3 + $0xa60] sm:$0xf0]  ;;  %v9670_v13 = vld [vmem:[#allocation3 + $0x548] sm:$0xf]  ;;  %v9927_v16 = vor.u32 %v11613_v10, %v9926_v5 }
 0x4d8   :  { %v11832_v18 = vld [vmem:[#allocation3 + $0xe44] sm:$0xf]  ;;  %v10307_v22 = vor.u32 %v11704_v54, %v10304_v43  ;;  %6579 = vmatpush.bf16.msrb.mxu3 %v10051_v41  ;;  %v11549_v54 = vld [vmem:[#allocation3 + $0x564] sm:$0xf0]  ;;  %v9415_v43 = vor.u32 %v11485_v52, %v9414_v38 }
 0x4d9   :  { %v10816_v20 = vld [vmem:[#allocation3 + $0xe60] sm:$0xf0]  ;;  %v9894_v41 = vld [vmem:[#allocation3 + $0x708] sm:$0xf] }
 0x4da   :  { %v11768_v25 = vld [vmem:[#allocation3 + $0xc44] sm:$0xf]  ;;  %v10819_v26 = vor.u32 %v11832_v18, %v10816_v20  ;;  %6592 = vmatpush.bf16.msra.mxu0 %v10307_v22  ;;  %v9126_v18 = vld [vmem:[#allocation3 + $0x108] sm:$0xf] }
 0x4db   :  { %v10560_v23 = vld [vmem:[#allocation3 + $0xc60] sm:$0xf0]  ;;  %v11413_v20 = vld [vmem:[#allocation3 + $0x124] sm:$0xf0] }
 0x4dc   :  { %v11632_v53 = vld [vmem:[#allocation3 + $0x804] sm:$0xf]  ;;  %v10563_v33 = vor.u32 %v11768_v25, %v10560_v23  ;;  %6618 = vmatpush.bf16.msra.mxu2 %v10819_v26  ;;  %v9382_v25 = vld [vmem:[#allocation3 + $0x308] sm:$0xf] }
 0x4dd   :  { %v10016_v30 = vld [vmem:[#allocation3 + $0x820] sm:$0xf0]  ;;  %v11477_v23 = vld [vmem:[#allocation3 + $0x324] sm:$0xf0] }
 0x4de   :  { %v11696_v24 = vld [vmem:[#allocation3 + $0xa04] sm:$0xf]  ;;  %v10019_v60 = vor.u32 %v11632_v53, %v10016_v30  ;;  %6605 = vmatpush.bf16.msra.mxu1 %v10563_v33  ;;  %v11605_v22 = vld [vmem:[#allocation3 + $0x724] sm:$0xf0]  ;;  %v9671_v53 = vor.u32 %v11549_v54, %v9670_v13  ;;  %v9127_v30 = vor.u32 %v11413_v20, %v9126_v18 }
 0x4df   :  { %v10272_v27 = vld [vmem:[#allocation3 + $0xa20] sm:$0xf0]  ;;  %v11541_v26 = vld [vmem:[#allocation3 + $0x524] sm:$0xf0] }
 0x4e0   :  { %v11824_v28 = vld [vmem:[#allocation3 + $0xe04] sm:$0xf]  ;;  %v10275_v46 = vor.u32 %v11696_v24, %v10272_v27  ;;  %6580 = vmatpush.bf16.msrb.mxu3 %v10019_v60  ;;  %v9638_v24 = vld [vmem:[#allocation3 + $0x508] sm:$0xf]  ;;  %v9383_v27 = vor.u32 %v11477_v23, %v9382_v25 }
 0x4e1   :  { %v10784_v3 = vld [vmem:[#allocation3 + $0xe20] sm:$0xf0]  ;;  %v11405_v33 = vld [vmem:[#allocation3 + $0xe4] sm:$0xf0]  ;;  %v9639_v42 = vor.u32 %v11541_v26, %v9638_v24 }
 0x4e2   :  { %v11760_v29 = vld [vmem:[#allocation3 + $0xc04] sm:$0xf]  ;;  %v10787_v55 = vor.u32 %v11824_v28, %v10784_v3  ;;  %6593 = vmatpush.bf16.msra.mxu0 %v10275_v46  ;;  %v9895_v28 = vor.u32 %v11605_v22, %v9894_v41  ;;  %v9094_v3 = vld [vmem:[#allocation3 + $0xc8] sm:$0xf] }
 0x4e3   :  { %v10528_v51 = vld [vmem:[#allocation3 + $0xc20] sm:$0xf0]  ;;  %6581 = vmatmul.bf16.vlgmr.msrb.gmra.mxu3 %v12601_v19  ;;  %v9862_v36 = vld [vmem:[#allocation3 + $0x6c8] sm:$0xf]  ;;  %v9095_v44 = vor.u32 %v11405_v33, %v9094_v3 }
 0x4e4   :  { %v10531_v63 = vor.u32 %v11760_v29, %v10528_v51  ;;  %6619 = vmatpush.bf16.msra.mxu2 %v10787_v55  ;;  %6625 = vmatpush.bf16.msra.mxu3 %v9223_v56  ;;  %v11597_v37 = vld [vmem:[#allocation3 + $0x6e4] sm:$0xf0]  ;;  %v9351_v29 = vor.u32 %v11469_v14, %v9350_v47 }
 0x4e5   :  { %6594 = vmatmul.bf16.vlgmr.msra.gmra.mxu0 %v12609_v39  ;;  %v9606_v60 = vld [vmem:[#allocation3 + $0x4c8] sm:$0xf]  ;;  %v9863_v51 = vor.u32 %v11597_v37, %v9862_v36 }
 0x4e6   :  { %6638 = vmatpush.bf16.msrb.mxu0 %v9479_v34  ;;  %6606 = vmatpush.bf16.msra.mxu1 %v10531_v63  ;;  %v11533_v46 = vld [vmem:[#allocation3 + $0x4e4] sm:$0xf0] }
 0x4e7   :  { %6620 = vmatmul.bf16.vlgmr.msra.gmra.mxu2 %v12605_v62  ;;  %v9062_v55 = vld [vmem:[#allocation3 + $0x88] sm:$0xf]  ;;  %v9607_v59 = vor.u32 %v11533_v46, %v9606_v60 }
 0x4e8   :  { %6664 = vmatpush.bf16.msrb.mxu2 %v9991_v31  ;;  %6626 = vmatpush.bf16.msra.mxu3 %v9191_v7  ;;  %v11397_v56 = vld [vmem:[#allocation3 + $0xa4] sm:$0xf0] }
 0x4e9   :  { %6607 = vmatmul.bf16.vlgmr.msra.gmra.mxu1 %v12614_v48  ;;  %v9318_v57 = vld [vmem:[#allocation3 + $0x288] sm:$0xf]  ;;  %v9063_v49 = vor.u32 %v11397_v56, %v9062_v55 }
 0x4ea   :  { %6651 = vmatpush.bf16.msrb.mxu1 %v9735_v45  ;;  %6639 = vmatpush.bf16.msrb.mxu0 %v9447_v40  ;;  %v11461_v58 = vld [vmem:[#allocation3 + $0x2a4] sm:$0xf0] }
 0x4eb   :  { %v9830_v34 = vld [vmem:[#allocation3 + $0x688] sm:$0xf]  ;;  %v9319_v1 = vor.u32 %v11461_v58, %v9318_v57 }
 0x4ec   :  { %6665 = vmatpush.bf16.msrb.mxu2 %v9959_v12  ;;  %6627 = vmatpush.bf16.msra.mxu3 %v9159_v15  ;;  %v11589_v31 = vld [vmem:[#allocation3 + $0x6a4] sm:$0xf0] }
 0x4ed   :  { %v9574_v32 = vld [vmem:[#allocation3 + $0x488] sm:$0xf]  ;;  %v9831_v35 = vor.u32 %v11589_v31, %v9830_v34 }
 0x4ee   :  { %6652 = vmatpush.bf16.msrb.mxu1 %v9703_v17  ;;  %6640 = vmatpush.bf16.msrb.mxu0 %v9415_v43  ;;  %v11525_v63 = vld [vmem:[#allocation3 + $0x4a4] sm:$0xf0] }
 0x4ef   :  { %v9030_v21 = vld [vmem:[#allocation3 + $0x48] sm:$0xf]  ;;  %v9575_v12 = vor.u32 %v11525_v63, %v9574_v32 }
 0x4f0   :  { %6666 = vmatpush.bf16.msrb.mxu2 %v9927_v16  ;;  %6628 = vmatpush.bf16.msra.mxu3 %v9127_v30  ;;  %v11389_v45 = vld [vmem:[#allocation3 + $0x64] sm:$0xf0] }
 0x4f1   :  { %v9286_v7 = vld [vmem:[#allocation3 + $0x248] sm:$0xf]  ;;  %v9031_v6 = vor.u32 %v11389_v45, %v9030_v21 }
 0x4f2   :  { %6653 = vmatpush.bf16.msrb.mxu1 %v9671_v53  ;;  %6641 = vmatpush.bf16.msrb.mxu0 %v9383_v27  ;;  %v11453_v61 = vld [vmem:[#allocation3 + $0x264] sm:$0xf0] }
 0x4f3   :  { %v9798_v8 = vld [vmem:[#allocation3 + $0x648] sm:$0xf]  ;;  %v9287_v10 = vor.u32 %v11453_v61, %v9286_v7 }
 0x4f4   :  { %6667 = vmatpush.bf16.msrb.mxu2 %v9895_v28  ;;  %6629 = vmatpush.bf16.msra.mxu3 %v9095_v44  ;;  %v11581_v40 = vld [vmem:[#allocation3 + $0x664] sm:$0xf0] }
 0x4f5   :  { %v9542_v9 = vld [vmem:[#allocation3 + $0x448] sm:$0xf]  ;;  %v9799_v17 = vor.u32 %v11581_v40, %v9798_v8 }
 0x4f6   :  { %6654 = vmatpush.bf16.msrb.mxu1 %v9639_v42  ;;  %6642 = vmatpush.bf16.msrb.mxu0 %v9351_v29  ;;  %v11517_v38 = vld [vmem:[#allocation3 + $0x464] sm:$0xf0] }
 0x4f7   :  { %v8998_v52 = vld [vmem:[#allocation3 + $0x8] sm:$0xf]  ;;  %v9543_v20 = vor.u32 %v11517_v38, %v9542_v9 }
 0x4f8   :  { %6668 = vmatpush.bf16.msrb.mxu2 %v9863_v51  ;;  %6630 = vmatpush.bf16.msra.mxu3 %v9063_v49  ;;  %v11381_v5 = vld [vmem:[#allocation3 + $0x24] sm:$0xf0] }
 0x4f9   :  { %v9254_v15 = vld [vmem:[#allocation3 + $0x208] sm:$0xf]  ;;  %v8999_v22 = vor.u32 %v11381_v5, %v8998_v52 }
 0x4fa   :  { %6655 = vmatpush.bf16.msrb.mxu1 %v9607_v59  ;;  %6643 = vmatpush.bf16.msrb.mxu0 %v9319_v1  ;;  %v11445_v13 = vld [vmem:[#allocation3 + $0x224] sm:$0xf0] }
 0x4fb   :  { %v9766_v54 = vld [vmem:[#allocation3 + $0x608] sm:$0xf]  ;;  %v9255_v26 = vor.u32 %v11445_v13, %v9254_v15 }
 0x4fc   :  { %6669 = vmatpush.bf16.msrb.mxu2 %v9831_v35  ;;  %v11573_v43 = vld [vmem:[#allocation3 + $0x624] sm:$0xf0]  ;;  %6631 = vmatpush.bf16.msra.mxu3 %v9031_v6 }
 0x4fd   :  { %v10246_v16 = vld [vmem:[#allocation3 + $0x9c8] sm:$0xf]  ;;  %v9767_v27 = vor.u32 %v11573_v43, %v9766_v54 }
 0x4fe   :  { %v11693_v18 = vld [vmem:[#allocation3 + $0x9e4] sm:$0xf0]  ;;  %6656 = vmatpush.bf16.msrb.mxu1 %v9575_v12  ;;  %6644 = vmatpush.bf16.msrb.mxu0 %v9287_v10 }
 0x4ff   :  { %v10502_v25 = vld [vmem:[#allocation3 + $0xbc8] sm:$0xf]  ;;  %v10247_v33 = vor.u32 %v11693_v18, %v10246_v16 }
 0x500   :  { %v11757_v23 = vld [vmem:[#allocation3 + $0xbe4] sm:$0xf0]  ;;  %6670 = vmatpush.bf16.msrb.mxu2 %v9799_v17  ;;  %6632 = vmatpush.bf16.msra.mxu3 %v8999_v22  ;;  %v6439_v22 = vpop.f32.mrf.mxu0 }
 0x501   :  { %v11014_v41 = vld [vmem:[#allocation3 + $0xfc8] sm:$0xf]  ;;  %v10503_v47 = vor.u32 %v11757_v23, %v10502_v25 }
 0x502   :  { %v11885_v53 = vld [vmem:[#allocation3 + $0xfe4] sm:$0xf0]  ;;  %6657 = vmatpush.bf16.msrb.mxu1 %v9543_v20  ;;  %6645 = vmatpush.bf16.msrb.mxu0 %v9255_v26 }
 0x503   :  { %v9510_v30 = vld [vmem:[#allocation3 + $0x408] sm:$0xf]  ;;  %v11015_v36 = vor.u32 %v11885_v53, %v11014_v41  ;;  %6633 = vmatmul.bf16.vlgmr.msra.gmra.mxu3 %v12581_v50 }
 0x504   :  { %v11509_v24 = vld [vmem:[#allocation3 + $0x424] sm:$0xf0]  ;;  %6671 = vmatpush.bf16.msrb.mxu2 %v9767_v27  ;;  %6677 = vmatpush.bf16.msrb.mxu3 %v10247_v33 }
 0x505   :  { %v10758_v28 = vld [vmem:[#allocation3 + $0xdc8] sm:$0xf]  ;;  %v9511_v37 = vor.u32 %v11509_v24, %v9510_v30  ;;  %6646 = vmatmul.bf16.vlgmr.msrb.gmra.mxu0 %v12589_v2 }
 0x506   :  { %v11821_v3 = vld [vmem:[#allocation3 + $0xde4] sm:$0xf0]  ;;  %6690 = vmatpush.bf16.msra.mxu0 %v10503_v47 }
 0x507   :  { %v10214_v14 = vld [vmem:[#allocation3 + $0x988] sm:$0xf]  ;;  %v10759_v46 = vor.u32 %v11821_v3, %v10758_v28  ;;  %6658 = vmatpush.bf16.msrb.mxu1 %v9511_v37  ;;  %6672 = vmatmul.bf16.vlgmr.msrb.gmra.mxu2 %v12585_v11  ;;  %v6452_v28 = vpop.f32.mrf.mxu1 }
 0x508   :  { %v11685_v42 = vld [vmem:[#allocation3 + $0x9a4] sm:$0xf0]  ;;  %6716 = vmatpush.bf16.msra.mxu2 %v11015_v36 }
 0x509   :  { %v10470_v44 = vld [vmem:[#allocation3 + $0xb88] sm:$0xf]  ;;  %v10215_v57 = vor.u32 %v11685_v42, %v10214_v14 }
 0x50a   :  { %v11749_v60 = vld [vmem:[#allocation3 + $0xba4] sm:$0xf0]  ;;  %6659 = vmatmul.bf16.vlgmr.msrb.gmra.mxu1 %v12593_v4 }
 0x50b   :  { %v10982_v29 = vld [vmem:[#allocation3 + $0xf88] sm:$0xf]  ;;  %v10471_v58 = vor.u32 %v11749_v60, %v10470_v44  ;;  %6703 = vmatpush.bf16.msra.mxu1 %v10759_v46  ;;  %6678 = vmatpush.bf16.msrb.mxu3 %v10215_v57  ;;  %v6426_v46 = vpop.f32.mrf.mxu3  ;;  %v6465_v57 = vpop.f32.mrf.mxu2 }
 0x50c   :  { %v11877_v51 = vld [vmem:[#allocation3 + $0xfa4] sm:$0xf0] }
 0x50d   :  { %v10726_v55 = vld [vmem:[#allocation3 + $0xd88] sm:$0xf]  ;;  %v10983_v31 = vor.u32 %v11877_v51, %v10982_v29  ;;  %6691 = vmatpush.bf16.msra.mxu0 %v10471_v58 }
 0x50e   :  { %v11813_v56 = vld [vmem:[#allocation3 + $0xda4] sm:$0xf0] }
 0x50f   :  { %v10182_v34 = vld [vmem:[#allocation3 + $0x948] sm:$0xf]  ;;  %v10727_v63 = vor.u32 %v11813_v56, %v10726_v55  ;;  %6717 = vmatpush.bf16.msra.mxu2 %v10983_v31  ;;  %v6440_v56 = vadd.f32 %v6439_v22, %v6426_v46 }
 0x510   :  { %v11677_v59 = vld [vmem:[#allocation3 + $0x964] sm:$0xf0] }
 0x511   :  { %v10438_v49 = vld [vmem:[#allocation3 + $0xb48] sm:$0xf]  ;;  %v10183_v7 = vor.u32 %v11677_v59, %v10182_v34  ;;  %6704 = vmatpush.bf16.msra.mxu1 %v10727_v63 }
 0x512   :  { %v11741_v32 = vld [vmem:[#allocation3 + $0xb64] sm:$0xf0] }
 0x513   :  { %v10950_v1 = vld [vmem:[#allocation3 + $0xf48] sm:$0xf]  ;;  %v10439_v61 = vor.u32 %v11741_v32, %v10438_v49  ;;  %6679 = vmatpush.bf16.msrb.mxu3 %v10183_v7 }
 0x514   :  { %v11869_v35 = vld [vmem:[#allocation3 + $0xf64] sm:$0xf0] }
 0x515   :  { %v10694_v21 = vld [vmem:[#allocation3 + $0xd48] sm:$0xf]  ;;  %v10951_v40 = vor.u32 %v11869_v35, %v10950_v1  ;;  %6692 = vmatpush.bf16.msra.mxu0 %v10439_v61  ;;  %v6453_v1 = vadd.f32 %v6452_v28, %v6440_v56  ;;  %v6441_v35 = vpop.f32.mrf.mxu0 }
 0x516   :  { %v11805_v45 = vld [vmem:[#allocation3 + $0xd64] sm:$0xf0]  ;;  %v9672_v35 = vld [vmem:[#allocation3 + $0x568] sm:$0xf0] }
 0x517   :  { %v10150_v8 = vld [vmem:[#allocation3 + $0x908] sm:$0xf]  ;;  %v10695_v38 = vor.u32 %v11805_v45, %v10694_v21  ;;  %6718 = vmatpush.bf16.msra.mxu2 %v10951_v40 }
 0x518   :  { %v11669_v12 = vld [vmem:[#allocation3 + $0x924] sm:$0xf0] }
 0x519   :  { %v10406_v9 = vld [vmem:[#allocation3 + $0xb08] sm:$0xf]  ;;  %v10151_v15 = vor.u32 %v11669_v12, %v10150_v8  ;;  %6705 = vmatpush.bf16.msra.mxu1 %v10695_v38 }
 0x51a   :  { %v11733_v6 = vld [vmem:[#allocation3 + $0xb24] sm:$0xf0] }
 0x51b   :  { %v10918_v52 = vld [vmem:[#allocation3 + $0xf08] sm:$0xf]  ;;  %v10407_v13 = vor.u32 %v11733_v6, %v10406_v9  ;;  %6680 = vmatpush.bf16.msrb.mxu3 %v10151_v15  ;;  %v12631_v9 = vadd.f32 %v6465_v57, %v6453_v1  ;;  %v6454_v6 = vpop.f32.mrf.mxu1  ;;  %v11433_v15 = vld [vmem:[#allocation3 + $0x1cc] sm:$0xf] }
 0x51c   :  { %v11861_v5 = vld [vmem:[#allocation3 + $0xf24] sm:$0xf0]  ;;  %v11417_v57 = vld [vmem:[#allocation3 + $0x14c] sm:$0xf] }
 0x51d   :  { %v10662_v10 = vld [vmem:[#allocation3 + $0xd08] sm:$0xf]  ;;  %v10919_v43 = vor.u32 %v11861_v5, %v10918_v52  ;;  %6693 = vmatpush.bf16.msra.mxu0 %v10407_v13  ;;  %v9224_v13 = vld [vmem:[#allocation3 + $0x1e8] sm:$0xf0] }
 0x51e   :  { %v11797_v17 = vld [vmem:[#allocation3 + $0xd24] sm:$0xf0]  ;;  %v11545_v1 = vld [vmem:[#allocation3 + $0x54c] sm:$0xf] }
 0x51f   :  { %v10118_v54 = vld [vmem:[#allocation3 + $0x8c8] sm:$0xf]  ;;  %v10663_v25 = vor.u32 %v11797_v17, %v10662_v10  ;;  %6719 = vmatpush.bf16.msra.mxu2 %v10919_v43  ;;  %v9480_v43 = vld [vmem:[#allocation3 + $0x3e8] sm:$0xf0] }
 0x520   :  { %v11661_v16 = vld [vmem:[#allocation3 + $0x8e4] sm:$0xf0]  ;;  %v9896_v6 = vld [vmem:[#allocation3 + $0x728] sm:$0xf0] }
 0x521   :  { %v10374_v18 = vld [vmem:[#allocation3 + $0xac8] sm:$0xf]  ;;  %v10119_v24 = vor.u32 %v11661_v16, %v10118_v54  ;;  %6706 = vmatpush.bf16.msra.mxu1 %v10663_v25  ;;  %v11497_v54 = vld [vmem:[#allocation3 + $0x3cc] sm:$0xf] }
 0x522   :  { %v11725_v20 = vld [vmem:[#allocation3 + $0xae4] sm:$0xf0]  ;;  %v11625_v16 = vld [vmem:[#allocation3 + $0x7cc] sm:$0xf]  ;;  %v9483_v28 = vor.u32 %v11497_v54, %v9480_v43 }
 0x523   :  { %v10886_v23 = vld [vmem:[#allocation3 + $0xec8] sm:$0xf]  ;;  %v10375_v26 = vor.u32 %v11725_v20, %v10374_v18  ;;  %6681 = vmatpush.bf16.msrb.mxu3 %v10119_v24  ;;  %v9992_v18 = vld [vmem:[#allocation3 + $0x7e8] sm:$0xf0]  ;;  %v6428_v20 = vpop.f32.mrf.mxu3  ;;  %v9227_v24 = vor.u32 %v11433_v15, %v9224_v13 }
 0x524   :  { %v11853_v41 = vld [vmem:[#allocation3 + $0xee4] sm:$0xf0]  ;;  %v11401_v13 = vld [vmem:[#allocation3 + $0xcc] sm:$0xf] }
 0x525   :  { %v10630_v53 = vld [vmem:[#allocation3 + $0xcc8] sm:$0xf]  ;;  %v10887_v3 = vor.u32 %v11853_v41, %v10886_v23  ;;  %6694 = vmatpush.bf16.msra.mxu0 %v10375_v26  ;;  %v11561_v26 = vld [vmem:[#allocation3 + $0x5cc] sm:$0xf] }
 0x526   :  { %v11789_v30 = vld [vmem:[#allocation3 + $0xce4] sm:$0xf0]  ;;  %v9096_v54 = vld [vmem:[#allocation3 + $0xe8] sm:$0xf0] }
 0x527   :  { %v10086_v27 = vld [vmem:[#allocation3 + $0x888] sm:$0xf]  ;;  %v10631_v36 = vor.u32 %v11789_v30, %v10630_v53  ;;  %6720 = vmatpush.bf16.msra.mxu2 %v10887_v3  ;;  %v6467_v53 = vpop.f32.mrf.mxu2  ;;  %v9995_v3 = vor.u32 %v11625_v16, %v9992_v18  ;;  %v11465_v43 = vld [vmem:[#allocation3 + $0x2cc] sm:$0xf] }
 0x528   :  { %v11653_v33 = vld [vmem:[#allocation3 + $0x8a4] sm:$0xf0]  ;;  %v9352_v16 = vld [vmem:[#allocation3 + $0x2e8] sm:$0xf0] }
 0x529   :  { %v10342_v47 = vld [vmem:[#allocation3 + $0xa88] sm:$0xf]  ;;  %v10087_v29 = vor.u32 %v11653_v33, %v10086_v27  ;;  %6707 = vmatpush.bf16.msra.mxu1 %v10631_v36  ;;  %v9736_v27 = vld [vmem:[#allocation3 + $0x5e8] sm:$0xf0] }
 0x52a   :  { %v11717_v14 = vld [vmem:[#allocation3 + $0xaa4] sm:$0xf0]  ;;  %v11425_v33 = vld [vmem:[#allocation3 + $0x18c] sm:$0xf] }
 0x52b   :  { %v10854_v37 = vld [vmem:[#allocation3 + $0xe88] sm:$0xf]  ;;  %v10343_v51 = vor.u32 %v11717_v14, %v10342_v47  ;;  %6682 = vmatpush.bf16.msrb.mxu3 %v10087_v29  ;;  %v9192_v47 = vld [vmem:[#allocation3 + $0x1a8] sm:$0xf0] }
 0x52c   :  { %v11845_v42 = vld [vmem:[#allocation3 + $0xea4] sm:$0xf0]  ;;  %v11489_v14 = vld [vmem:[#allocation3 + $0x38c] sm:$0xf]  ;;  %v9195_v46 = vor.u32 %v11425_v33, %v9192_v47 }
 0x52d   :  { %v10598_v44 = vld [vmem:[#allocation3 + $0xc88] sm:$0xf]  ;;  %v10855_v58 = vor.u32 %v11845_v42, %v10854_v37  ;;  %6695 = vmatpush.bf16.msra.mxu0 %v10343_v51  ;;  %v9448_v37 = vld [vmem:[#allocation3 + $0x3a8] sm:$0xf0] }
 0x52e   :  { %v11781_v60 = vld [vmem:[#allocation3 + $0xca4] sm:$0xf0]  ;;  %v11617_v42 = vld [vmem:[#allocation3 + $0x78c] sm:$0xf] }
 0x52f   :  { %v10054_v55 = vld [vmem:[#allocation3 + $0x848] sm:$0xf]  ;;  %v10599_v49 = vor.u32 %v11781_v60, %v10598_v44  ;;  %6721 = vmatpush.bf16.msra.mxu2 %v10855_v58  ;;  %v9960_v44 = vld [vmem:[#allocation3 + $0x7a8] sm:$0xf0]  ;;  %v9739_v60 = vor.u32 %v11561_v26, %v9736_v27 }
 0x530   :  { %v11645_v34 = vld [vmem:[#allocation3 + $0x864] sm:$0xf0]  ;;  %v11553_v29 = vld [vmem:[#allocation3 + $0x58c] sm:$0xf]  ;;  %v9963_v56 = vor.u32 %v11617_v42, %v9960_v44 }
 0x531   :  { %v10310_v31 = vld [vmem:[#allocation3 + $0xa48] sm:$0xf]  ;;  %v10055_v7 = vor.u32 %v11645_v34, %v10054_v55  ;;  %6708 = vmatpush.bf16.msra.mxu1 %v10599_v49  ;;  %v9704_v51 = vld [vmem:[#allocation3 + $0x5a8] sm:$0xf0]  ;;  %v9451_v55 = vor.u32 %v11489_v14, %v9448_v37 }
 0x532   :  { %v11709_v59 = vld [vmem:[#allocation3 + $0xa64] sm:$0xf0]  ;;  %v9160_v58 = vld [vmem:[#allocation3 + $0x168] sm:$0xf0] }
 0x533   :  { %v10822_v32 = vld [vmem:[#allocation3 + $0xe48] sm:$0xf]  ;;  %v10311_v61 = vor.u32 %v11709_v59, %v10310_v31  ;;  %6683 = vmatpush.bf16.msrb.mxu3 %v10055_v7  ;;  %v11481_v34 = vld [vmem:[#allocation3 + $0x34c] sm:$0xf] }
 0x534   :  { %v11837_v63 = vld [vmem:[#allocation3 + $0xe64] sm:$0xf0]  ;;  %v9416_v31 = vld [vmem:[#allocation3 + $0x368] sm:$0xf0] }
 0x535   :  { %v10566_v21 = vld [vmem:[#allocation3 + $0xc48] sm:$0xf]  ;;  %v10823_v38 = vor.u32 %v11837_v63, %v10822_v32  ;;  %6696 = vmatpush.bf16.msra.mxu0 %v10311_v61  ;;  %v11609_v59 = vld [vmem:[#allocation3 + $0x74c] sm:$0xf]  ;;  %v9707_v32 = vor.u32 %v11553_v29, %v9704_v51  ;;  %v9163_v63 = vor.u32 %v11417_v57, %v9160_v58  ;;  %v6517_v29 = vpop.f32.mrf.mxu2 }
 0x536   :  { %v11773_v45 = vld [vmem:[#allocation3 + $0xc64] sm:$0xf0]  ;;  %v9928_v49 = vld [vmem:[#allocation3 + $0x768] sm:$0xf0] }
 0x537   :  { %v10022_v8 = vld [vmem:[#allocation3 + $0x808] sm:$0xf]  ;;  %v10567_v17 = vor.u32 %v11773_v45, %v10566_v21  ;;  %6722 = vmatpush.bf16.msra.mxu2 %v10823_v38  ;;  %v9419_v21 = vor.u32 %v11481_v34, %v9416_v31  ;;  %v9931_v45 = vor.u32 %v11609_v59, %v9928_v49  ;;  %v11409_v7 = vld [vmem:[#allocation3 + $0x10c] sm:$0xf]  ;;  %v9675_v38 = vor.u32 %v11545_v1, %v9672_v35 }
 0x538   :  { %v11637_v40 = vld [vmem:[#allocation3 + $0x824] sm:$0xf0]  ;;  %v9128_v61 = vld [vmem:[#allocation3 + $0x128] sm:$0xf0] }
 0x539   :  { %v10278_v12 = vld [vmem:[#allocation3 + $0xa08] sm:$0xf]  ;;  %v10023_v25 = vor.u32 %v11637_v40, %v10022_v8  ;;  %6709 = vmatpush.bf16.msra.mxu1 %v10567_v17  ;;  %v11473_v8 = vld [vmem:[#allocation3 + $0x30c] sm:$0xf] }
 0x53a   :  { %v11701_v52 = vld [vmem:[#allocation3 + $0xa24] sm:$0xf0]  ;;  %v9384_v40 = vld [vmem:[#allocation3 + $0x328] sm:$0xf0] }
 0x53b   :  { %v10790_v5 = vld [vmem:[#allocation3 + $0xe08] sm:$0xf]  ;;  %v10279_v23 = vor.u32 %v11701_v52, %v10278_v12  ;;  %6684 = vmatpush.bf16.msrb.mxu3 %v10023_v25  ;;  %v11601_v12 = vld [vmem:[#allocation3 + $0x70c] sm:$0xf]  ;;  %v9131_v52 = vor.u32 %v11409_v7, %v9128_v61  ;;  %v9387_v17 = vor.u32 %v11473_v8, %v9384_v40 }
 0x53c   :  { %v11829_v10 = vld [vmem:[#allocation3 + $0xe24] sm:$0xf0]  ;;  %v9899_v15 = vor.u32 %v11601_v12, %v9896_v6  ;;  %v11593_v18 = vld [vmem:[#allocation3 + $0x6cc] sm:$0xf] }
 0x53d   :  { %v10534_v41 = vld [vmem:[#allocation3 + $0xc08] sm:$0xf]  ;;  %v10791_v30 = vor.u32 %v11829_v10, %v10790_v5  ;;  %6697 = vmatpush.bf16.msra.mxu0 %v10279_v23  ;;  %v11537_v5 = vld [vmem:[#allocation3 + $0x50c] sm:$0xf]  ;;  %v6491_v23 = vpop.f32.mrf.mxu0 }
 0x53e   :  { %v11765_v22 = vld [vmem:[#allocation3 + $0xc24] sm:$0xf0]  ;;  %6685 = vmatmul.bf16.vlgmr.msrb.gmra.mxu3 %v12601_v19  ;;  %v9640_v10 = vld [vmem:[#allocation3 + $0x528] sm:$0xf0] }
 0x53f   :  { %v10535_v36 = vor.u32 %v11765_v22, %v10534_v41  ;;  %6723 = vmatpush.bf16.msra.mxu2 %v10791_v30  ;;  %6729 = vmatpush.bf16.msra.mxu3 %v9227_v24  ;;  %v9864_v20 = vld [vmem:[#allocation3 + $0x6e8] sm:$0xf0]  ;;  %v9643_v25 = vor.u32 %v11537_v5, %v9640_v10  ;;  %v9099_v41 = vor.u32 %v11401_v13, %v9096_v54 }
 0x540   :  { %6698 = vmatmul.bf16.vlgmr.msra.gmra.mxu0 %v12609_v39  ;;  %v11529_v22 = vld [vmem:[#allocation3 + $0x4cc] sm:$0xf]  ;;  %v9355_v30 = vor.u32 %v11465_v43, %v9352_v16  ;;  %v9867_v24 = vor.u32 %v11593_v18, %v9864_v20 }
 0x541   :  { %6742 = vmatpush.bf16.msrb.mxu0 %v9483_v28  ;;  %6710 = vmatpush.bf16.msra.mxu1 %v10535_v36  ;;  %v9608_v53 = vld [vmem:[#allocation3 + $0x4e8] sm:$0xf0]  ;;  %v6478_v36 = vpop.f32.mrf.mxu3 }
 0x542   :  { %6724 = vmatmul.bf16.vlgmr.msra.gmra.mxu2 %v12605_v62  ;;  %v11393_v26 = vld [vmem:[#allocation3 + $0x8c] sm:$0xf]  ;;  %v9611_v37 = vor.u32 %v11529_v22, %v9608_v53  ;;  %v6479_v42 = vadd.f32 %v6478_v36, %v12631_v9 }
 0x543   :  { %6768 = vmatpush.bf16.msrb.mxu2 %v9995_v3  ;;  %6730 = vmatpush.bf16.msra.mxu3 %v9195_v46  ;;  %v9064_v27 = vld [vmem:[#allocation3 + $0xa8] sm:$0xf0]  ;;  %v6504_v3 = vpop.f32.mrf.mxu1 }
 0x544   :  { %6711 = vmatmul.bf16.vlgmr.msra.gmra.mxu1 %v12614_v48  ;;  %v11457_v28 = vld [vmem:[#allocation3 + $0x28c] sm:$0xf]  ;;  %v9067_v44 = vor.u32 %v11393_v26, %v9064_v27  ;;  %v6492_v34 = vadd.f32 %v6491_v23, %v6479_v42 }
 0x545   :  { %6755 = vmatpush.bf16.msrb.mxu1 %v9739_v60  ;;  %6743 = vmatpush.bf16.msrb.mxu0 %v9451_v55  ;;  %v9320_v33 = vld [vmem:[#allocation3 + $0x2a8] sm:$0xf0]  ;;  %v6493_v1 = vpop.f32.mrf.mxu0 }
 0x546   :  { %v11585_v47 = vld [vmem:[#allocation3 + $0x68c] sm:$0xf]  ;;  %v9323_v51 = vor.u32 %v11457_v28, %v9320_v33  ;;  %v6505_v9 = vadd.f32 %v6504_v3, %v6492_v34 }
 0x547   :  { %6769 = vmatpush.bf16.msrb.mxu2 %v9963_v56  ;;  %6731 = vmatpush.bf16.msra.mxu3 %v9163_v63  ;;  %v9832_v14 = vld [vmem:[#allocation3 + $0x6a8] sm:$0xf0] }
 0x548   :  { %v11521_v60 = vld [vmem:[#allocation3 + $0x48c] sm:$0xf]  ;;  %v9835_v55 = vor.u32 %v11585_v47, %v9832_v14 }
 0x549   :  { %6756 = vmatpush.bf16.msrb.mxu1 %v9707_v32  ;;  %6744 = vmatpush.bf16.msrb.mxu0 %v9419_v21  ;;  %v9576_v46 = vld [vmem:[#allocation3 + $0x4a8] sm:$0xf0]  ;;  %v6480_v16 = vpop.f32.mrf.mxu3 }
 0x54a   :  { %v11385_v56 = vld [vmem:[#allocation3 + $0x4c] sm:$0xf]  ;;  %v9579_v32 = vor.u32 %v11521_v60, %v9576_v46 }
 0x54b   :  { %6770 = vmatpush.bf16.msrb.mxu2 %v9931_v45  ;;  %6732 = vmatpush.bf16.msra.mxu3 %v9131_v52  ;;  %v9032_v57 = vld [vmem:[#allocation3 + $0x68] sm:$0xf0]  ;;  %v12638_v52 = vadd.f32 %v6517_v29, %v6505_v9 }
 0x54c   :  { %v11449_v58 = vld [vmem:[#allocation3 + $0x24c] sm:$0xf]  ;;  %v9035_v35 = vor.u32 %v11385_v56, %v9032_v57 }
 0x54d   :  { %6757 = vmatpush.bf16.msrb.mxu1 %v9675_v38  ;;  %6745 = vmatpush.bf16.msrb.mxu0 %v9387_v17  ;;  %v9288_v31 = vld [vmem:[#allocation3 + $0x268] sm:$0xf0]  ;;  %v6506_v38 = vpop.f32.mrf.mxu1 }
 0x54e   :  { %v11577_v59 = vld [vmem:[#allocation3 + $0x64c] sm:$0xf]  ;;  %v9291_v61 = vor.u32 %v11449_v58, %v9288_v31 }
 0x54f   :  { %6771 = vmatpush.bf16.msrb.mxu2 %v9899_v15  ;;  %6733 = vmatpush.bf16.msra.mxu3 %v9099_v41  ;;  %v9800_v49 = vld [vmem:[#allocation3 + $0x668] sm:$0xf0]  ;;  %v6519_v41 = vpop.f32.mrf.mxu2 }
 0x550   :  { %v11513_v63 = vld [vmem:[#allocation3 + $0x44c] sm:$0xf]  ;;  %v9803_v8 = vor.u32 %v11577_v59, %v9800_v49 }
 0x551   :  { %6758 = vmatpush.bf16.msrb.mxu1 %v9643_v25  ;;  %6746 = vmatpush.bf16.msrb.mxu0 %v9355_v30  ;;  %v9544_v21 = vld [vmem:[#allocation3 + $0x468] sm:$0xf0] }
 0x552   :  { %v11377_v45 = vld [vmem:[#allocation3 + $0xc] sm:$0xf]  ;;  %v9547_v15 = vor.u32 %v11513_v63, %v9544_v21 }
 0x553   :  { %6772 = vmatpush.bf16.msrb.mxu2 %v9867_v24  ;;  %6734 = vmatpush.bf16.msra.mxu3 %v9067_v44  ;;  %v9000_v7 = vld [vmem:[#allocation3 + $0x28] sm:$0xf0] }
 0x554   :  { %v11441_v40 = vld [vmem:[#allocation3 + $0x20c] sm:$0xf]  ;;  %v9003_v18 = vor.u32 %v11377_v45, %v9000_v7 }
 0x555   :  { %6759 = vmatpush.bf16.msrb.mxu1 %v9611_v37  ;;  %6747 = vmatpush.bf16.msrb.mxu0 %v9323_v51  ;;  %v9256_v12 = vld [vmem:[#allocation3 + $0x228] sm:$0xf0] }
 0x556   :  { %v11569_v6 = vld [vmem:[#allocation3 + $0x60c] sm:$0xf]  ;;  %v9259_v22 = vor.u32 %v11441_v40, %v9256_v12  ;;  %v7315_v40 = vmul.f32 %v12638_v52, %v12638_v52 }
 0x557   :  { %6773 = vmatpush.bf16.msrb.mxu2 %v9835_v55  ;;  %v9768_v5 = vld [vmem:[#allocation3 + $0x628] sm:$0xf0]  ;;  %6735 = vmatpush.bf16.msra.mxu3 %v9035_v35 }
 0x558   :  { %v11689_v10 = vld [vmem:[#allocation3 + $0x9cc] sm:$0xf]  ;;  %v9771_v53 = vor.u32 %v11569_v6, %v9768_v5 }
 0x559   :  { %v10248_v17 = vld [vmem:[#allocation3 + $0x9e8] sm:$0xf0]  ;;  %6760 = vmatpush.bf16.msrb.mxu1 %v9579_v32  ;;  %6748 = vmatpush.bf16.msrb.mxu0 %v9291_v61 }
 0x55a   :  { %v11753_v13 = vld [vmem:[#allocation3 + $0xbcc] sm:$0xf]  ;;  %v10251_v26 = vor.u32 %v11689_v10, %v10248_v17 }
 0x55b   :  { %v10504_v54 = vld [vmem:[#allocation3 + $0xbe8] sm:$0xf0]  ;;  %6774 = vmatpush.bf16.msrb.mxu2 %v9803_v8  ;;  %6736 = vmatpush.bf16.msra.mxu3 %v9003_v18  ;;  %v7251_v8 = vsel %vm291_vm2, %v12638_v52, 0.0 }
 0x55c   :  { %v11881_v43 = vld [vmem:[#allocation3 + $0xfcc] sm:$0xf]  ;;  %v10507_v27 = vor.u32 %v11753_v13, %v10504_v54 }
 0x55d   :  { %v11016_v20 = vld [vmem:[#allocation3 + $0xfe8] sm:$0xf0]  ;;  %6761 = vmatpush.bf16.msrb.mxu1 %v9547_v15  ;;  %6749 = vmatpush.bf16.msrb.mxu0 %v9259_v22 }
 0x55e   :  { %v11505_v25 = vld [vmem:[#allocation3 + $0x40c] sm:$0xf]  ;;  %v11019_v3 = vor.u32 %v11881_v43, %v11016_v20  ;;  %6737 = vmatmul.bf16.vlgmr.msra.gmra.mxu3 %v12581_v50  ;;  %v7252_v43 = vrot.slane %v7251_v8, 4 }
 0x55f   :  { %v9512_v23 = vld [vmem:[#allocation3 + $0x428] sm:$0xf0]  ;;  %6775 = vmatpush.bf16.msrb.mxu2 %v9771_v53  ;;  %6781 = vmatpush.bf16.msrb.mxu3 %v10251_v26  ;;  %v6543_v53 = vpop.f32.mrf.mxu0 }
 0x560   :  { %v11817_v30 = vld [vmem:[#allocation3 + $0xdcc] sm:$0xf]  ;;  %v9515_v33 = vor.u32 %v11505_v25, %v9512_v23  ;;  %6750 = vmatmul.bf16.vlgmr.msrb.gmra.mxu0 %v12589_v2  ;;  %v7323_v25 = vsel %vm291_vm2, %v7315_v40, 0.0 }
 0x561   :  { %v10760_v24 = vld [vmem:[#allocation3 + $0xde8] sm:$0xf0]  ;;  %6794 = vmatpush.bf16.msra.mxu0 %v10507_v27 }
 0x562   :  { %v11681_v28 = vld [vmem:[#allocation3 + $0x98c] sm:$0xf]  ;;  %v10763_v37 = vor.u32 %v11817_v30, %v10760_v24  ;;  %6762 = vmatpush.bf16.msrb.mxu1 %v9515_v33  ;;  %6776 = vmatmul.bf16.vlgmr.msrb.gmra.mxu2 %v12585_v11  ;;  %v6556_v33 = vpop.f32.mrf.mxu1 }
 0x563   :  { %v10216_v47 = vld [vmem:[#allocation3 + $0x9a8] sm:$0xf0]  ;;  %6820 = vmatpush.bf16.msra.mxu2 %v11019_v3 }
 0x564   :  { %v11745_v14 = vld [vmem:[#allocation3 + $0xb8c] sm:$0xf]  ;;  %v10219_v29 = vor.u32 %v11681_v28, %v10216_v47  ;;  %v7253_v47 = vadd.f32 %v7252_v43, %v7251_v8 }
 0x565   :  { %v10472_v36 = vld [vmem:[#allocation3 + $0xba8] sm:$0xf0]  ;;  %6763 = vmatmul.bf16.vlgmr.msrb.gmra.mxu1 %v12593_v4 }
 0x566   :  { %v11873_v42 = vld [vmem:[#allocation3 + $0xf8c] sm:$0xf]  ;;  %v10475_v51 = vor.u32 %v11745_v14, %v10472_v36  ;;  %6807 = vmatpush.bf16.msra.mxu1 %v10763_v37  ;;  %6782 = vmatpush.bf16.msrb.mxu3 %v10219_v29  ;;  %v7324_v14 = vrot.slane %v7323_v25, 4 }
 0x567   :  { %v10984_v44 = vld [vmem:[#allocation3 + $0xfa8] sm:$0xf0] }
 0x568   :  { %v11809_v60 = vld [vmem:[#allocation3 + $0xd8c] sm:$0xf]  ;;  %v10987_v56 = vor.u32 %v11873_v42, %v10984_v44  ;;  %6795 = vmatpush.bf16.msra.mxu0 %v10475_v51 }
 0x569   :  { %v10728_v46 = vld [vmem:[#allocation3 + $0xda8] sm:$0xf0] }
 0x56a   :  { %v11673_v55 = vld [vmem:[#allocation3 + $0x94c] sm:$0xf]  ;;  %v10731_v31 = vor.u32 %v11809_v60, %v10728_v46  ;;  %6821 = vmatpush.bf16.msra.mxu2 %v10987_v56 }
 0x56b   :  { %v10184_v57 = vld [vmem:[#allocation3 + $0x968] sm:$0xf0] }
 0x56c   :  { %v11737_v58 = vld [vmem:[#allocation3 + $0xb4c] sm:$0xf]  ;;  %v10187_v1 = vor.u32 %v11673_v55, %v10184_v57  ;;  %6808 = vmatpush.bf16.msra.mxu1 %v10731_v31  ;;  %v6530_v55 = vpop.f32.mrf.mxu3 }
 0x56d   :  { %v10440_v34 = vld [vmem:[#allocation3 + $0xb68] sm:$0xf0]  ;;  %v6544_v31 = vadd.f32 %v6543_v53, %v6530_v55  ;;  %v11502_v53 = vld [vmem:[#allocation3 + $0x3ec] sm:$0xf0] }
 0x56e   :  { %v11865_v59 = vld [vmem:[#allocation3 + $0xf4c] sm:$0xf]  ;;  %v10443_v9 = vor.u32 %v11737_v58, %v10440_v34  ;;  %6783 = vmatpush.bf16.msrb.mxu3 %v10187_v1  ;;  %v11430_v55 = vld [vmem:[#allocation3 + $0x1ac] sm:$0xf0] }
 0x56f   :  { %v10952_v49 = vld [vmem:[#allocation3 + $0xf68] sm:$0xf0] }
 0x570   :  { %v11801_v32 = vld [vmem:[#allocation3 + $0xd4c] sm:$0xf]  ;;  %v10955_v21 = vor.u32 %v11865_v59, %v10952_v49  ;;  %6796 = vmatpush.bf16.msra.mxu0 %v10443_v9  ;;  %v6569_v59 = vpop.f32.mrf.mxu2  ;;  %v7254_v49 = vrot.slane %v7253_v47, 2 }
 0x571   :  { %v10696_v63 = vld [vmem:[#allocation3 + $0xd68] sm:$0xf0] }
 0x572   :  { %v11665_v35 = vld [vmem:[#allocation3 + $0x90c] sm:$0xf]  ;;  %v10699_v12 = vor.u32 %v11801_v32, %v10696_v63  ;;  %6822 = vmatpush.bf16.msra.mxu2 %v10955_v21  ;;  %v7325_v32 = vadd.f32 %v7324_v14, %v7323_v25 }
 0x573   :  { %v10152_v45 = vld [vmem:[#allocation3 + $0x928] sm:$0xf0] }
 0x574   :  { %v11729_v7 = vld [vmem:[#allocation3 + $0xb0c] sm:$0xf]  ;;  %v10155_v17 = vor.u32 %v11665_v35, %v10152_v45  ;;  %6809 = vmatpush.bf16.msra.mxu1 %v10699_v12  ;;  %v7326_v43 = vrot.slane %v7325_v32, 2 }
 0x575   :  { %v10408_v61 = vld [vmem:[#allocation3 + $0xb28] sm:$0xf0] }
 0x576   :  { %v11857_v6 = vld [vmem:[#allocation3 + $0xf0c] sm:$0xf]  ;;  %v10411_v15 = vor.u32 %v11729_v7, %v10408_v61  ;;  %6784 = vmatpush.bf16.msrb.mxu3 %v10155_v17  ;;  %v6557_v7 = vadd.f32 %v6556_v33, %v6544_v31  ;;  %v6545_v61 = vpop.f32.mrf.mxu0  ;;  %v11622_v31 = vld [vmem:[#allocation3 + $0x7ac] sm:$0xf0] }
 0x577   :  { %v10920_v38 = vld [vmem:[#allocation3 + $0xf28] sm:$0xf0]  ;;  %v9422_v61 = vld [vmem:[#allocation3 + $0x350] sm:$0xf] }
 0x578   :  { %v11793_v5 = vld [vmem:[#allocation3 + $0xd0c] sm:$0xf]  ;;  %v10923_v16 = vor.u32 %v11857_v6, %v10920_v38  ;;  %6797 = vmatpush.bf16.msra.mxu0 %v10411_v15  ;;  %v12649_v15 = vadd.f32 %v6569_v59, %v6557_v7  ;;  %v11422_v7 = vld [vmem:[#allocation3 + $0x16c] sm:$0xf0] }
 0x579   :  { %v10664_v10 = vld [vmem:[#allocation3 + $0xd28] sm:$0xf0] }
 0x57a   :  { %v11657_v13 = vld [vmem:[#allocation3 + $0x8cc] sm:$0xf]  ;;  %v10667_v23 = vor.u32 %v11793_v5, %v10664_v10  ;;  %6823 = vmatpush.bf16.msra.mxu2 %v10923_v16 }
 0x57b   :  { %v10120_v54 = vld [vmem:[#allocation3 + $0x8e8] sm:$0xf0] }
 0x57c   :  { %v11721_v18 = vld [vmem:[#allocation3 + $0xacc] sm:$0xf]  ;;  %v10123_v26 = vor.u32 %v11657_v13, %v10120_v54  ;;  %6810 = vmatpush.bf16.msra.mxu1 %v10667_v23  ;;  %v6558_v13 = vpop.f32.mrf.mxu1  ;;  %v7255_v54 = vadd.f32 %v7254_v49, %v7253_v47  ;;  %v9230_v23 = vld [vmem:[#allocation3 + $0x1d0] sm:$0xf]  ;;  %v6571_v47 = vpop.f32.mrf.mxu2 }
 0x57d   :  { %v10376_v20 = vld [vmem:[#allocation3 + $0xae8] sm:$0xf0]  ;;  %v11550_v13 = vld [vmem:[#allocation3 + $0x56c] sm:$0xf0] }
 0x57e   :  { %v11849_v41 = vld [vmem:[#allocation3 + $0xecc] sm:$0xf]  ;;  %v10379_v27 = vor.u32 %v11721_v18, %v10376_v20  ;;  %6785 = vmatpush.bf16.msrb.mxu3 %v10123_v26  ;;  %v6532_v26 = vpop.f32.mrf.mxu3  ;;  %v7256_v14 = vrot.slane %v7255_v54, 1  ;;  %v11406_v47 = vld [vmem:[#allocation3 + $0xec] sm:$0xf0] }
 0x57f   :  { %v10888_v22 = vld [vmem:[#allocation3 + $0xee8] sm:$0xf0]  ;;  %v9646_v26 = vld [vmem:[#allocation3 + $0x510] sm:$0xf] }
 0x580   :  { %v11785_v30 = vld [vmem:[#allocation3 + $0xccc] sm:$0xf]  ;;  %v10891_v36 = vor.u32 %v11849_v41, %v10888_v22  ;;  %6798 = vmatpush.bf16.msra.mxu0 %v10379_v27  ;;  %v11438_v41 = vld [vmem:[#allocation3 + $0x1ec] sm:$0xf0]  ;;  %v7257_v49 = vadd.f32 %v7256_v14, %v7255_v54 }
 0x581   :  { %v10632_v24 = vld [vmem:[#allocation3 + $0xce8] sm:$0xf0]  ;;  %v9486_v22 = vld [vmem:[#allocation3 + $0x3d0] sm:$0xf] }
 0x582   :  { %v11649_v28 = vld [vmem:[#allocation3 + $0x88c] sm:$0xf]  ;;  %v10635_v44 = vor.u32 %v11785_v30, %v10632_v24  ;;  %6824 = vmatpush.bf16.msra.mxu2 %v10891_v36  ;;  %v9998_v30 = vld [vmem:[#allocation3 + $0x7d0] sm:$0xf]  ;;  %v7327_v36 = vadd.f32 %v7326_v43, %v7325_v32 }
 0x583   :  { %v10088_v3 = vld [vmem:[#allocation3 + $0x8a8] sm:$0xf0]  ;;  %v11630_v24 = vld [vmem:[#allocation3 + $0x7ec] sm:$0xf0] }
 0x584   :  { %v11713_v37 = vld [vmem:[#allocation3 + $0xa8c] sm:$0xf]  ;;  %v10091_v56 = vor.u32 %v11649_v28, %v10088_v3  ;;  %6811 = vmatpush.bf16.msra.mxu1 %v10635_v44  ;;  %v9742_v44 = vld [vmem:[#allocation3 + $0x5d0] sm:$0xf]  ;;  %v7328_v32 = vrot.slane %v7327_v36, 1 }
 0x585   :  { %v10344_v42 = vld [vmem:[#allocation3 + $0xaa8] sm:$0xf0]  ;;  %v9358_v14 = vld [vmem:[#allocation3 + $0x2d0] sm:$0xf] }
 0x586   :  { %v11841_v60 = vld [vmem:[#allocation3 + $0xe8c] sm:$0xf]  ;;  %v10347_v57 = vor.u32 %v11713_v37, %v10344_v42  ;;  %6786 = vmatpush.bf16.msrb.mxu3 %v10091_v56  ;;  %v9231_v42 = vor.u32 %v11438_v41, %v9230_v23  ;;  %v9454_v56 = vld [vmem:[#allocation3 + $0x390] sm:$0xf] }
 0x587   :  { %v10856_v46 = vld [vmem:[#allocation3 + $0xea8] sm:$0xf0]  ;;  %v9902_v23 = vld [vmem:[#allocation3 + $0x710] sm:$0xf] }
 0x588   :  { %v11777_v29 = vld [vmem:[#allocation3 + $0xc8c] sm:$0xf]  ;;  %v10859_v63 = vor.u32 %v11841_v60, %v10856_v46  ;;  %6799 = vmatpush.bf16.msra.mxu0 %v10347_v57  ;;  %v11566_v60 = vld [vmem:[#allocation3 + $0x5ec] sm:$0xf0]  ;;  %v9487_v46 = vor.u32 %v11502_v53, %v9486_v22 }
 0x589   :  { %v10600_v51 = vld [vmem:[#allocation3 + $0xca8] sm:$0xf0]  ;;  %v9743_v59 = vor.u32 %v11566_v60, %v9742_v44  ;;  %v11606_v41 = vld [vmem:[#allocation3 + $0x72c] sm:$0xf0]  ;;  %v6595_v60 = vpop.f32.mrf.mxu0 }
 0x58a   :  { %v11641_v58 = vld [vmem:[#allocation3 + $0x84c] sm:$0xf]  ;;  %v10603_v35 = vor.u32 %v11777_v29, %v10600_v51  ;;  %6825 = vmatpush.bf16.msra.mxu2 %v10859_v63  ;;  %v9999_v29 = vor.u32 %v11630_v24, %v9998_v30  ;;  %v9198_v51 = vld [vmem:[#allocation3 + $0x190] sm:$0xf] }
 0x58b   :  { %v10056_v34 = vld [vmem:[#allocation3 + $0x868] sm:$0xf0]  ;;  %v9199_v63 = vor.u32 %v11430_v55, %v9198_v51  ;;  %v9614_v51 = vld [vmem:[#allocation3 + $0x4d0] sm:$0xf] }
 0x58c   :  { %v11705_v1 = vld [vmem:[#allocation3 + $0xa4c] sm:$0xf]  ;;  %v10059_v6 = vor.u32 %v11641_v58, %v10056_v34  ;;  %6812 = vmatpush.bf16.msra.mxu1 %v10603_v35  ;;  %v11494_v58 = vld [vmem:[#allocation3 + $0x3ac] sm:$0xf0] }
 0x58d   :  { %v10312_v9 = vld [vmem:[#allocation3 + $0xa68] sm:$0xf0]  ;;  %v9966_v34 = vld [vmem:[#allocation3 + $0x790] sm:$0xf]  ;;  %v9455_v35 = vor.u32 %v11494_v58, %v9454_v56 }
 0x58e   :  { %v11833_v21 = vld [vmem:[#allocation3 + $0xe4c] sm:$0xf]  ;;  %v10315_v38 = vor.u32 %v11705_v1, %v10312_v9  ;;  %6787 = vmatpush.bf16.msrb.mxu3 %v10059_v6  ;;  %v9710_v1 = vld [vmem:[#allocation3 + $0x590] sm:$0xf] }
 0x58f   :  { %v10824_v45 = vld [vmem:[#allocation3 + $0xe68] sm:$0xf0]  ;;  %v11558_v9 = vld [vmem:[#allocation3 + $0x5ac] sm:$0xf0] }
 0x590   :  { %v11769_v8 = vld [vmem:[#allocation3 + $0xc4c] sm:$0xf]  ;;  %v10827_v16 = vor.u32 %v11833_v21, %v10824_v45  ;;  %6800 = vmatpush.bf16.msra.mxu0 %v10315_v38  ;;  %v9967_v21 = vor.u32 %v11622_v31, %v9966_v34  ;;  %v9166_v45 = vld [vmem:[#allocation3 + $0x150] sm:$0xf]  ;;  %v9711_v6 = vor.u32 %v11558_v9, %v9710_v1  ;;  %v12654_v38 = vmul.f32 %v7257_v49, %v12239_v0  ;;  %v6582_v1 = vpop.f32.mrf.mxu3 }
 0x591   :  { %v10568_v40 = vld [vmem:[#allocation3 + $0xc68] sm:$0xf0]  ;;  %v11534_v55 = vld [vmem:[#allocation3 + $0x4ec] sm:$0xf0] }
 0x592   :  { %v11633_v12 = vld [vmem:[#allocation3 + $0x80c] sm:$0xf]  ;;  %v10571_v25 = vor.u32 %v11769_v8, %v10568_v40  ;;  %6826 = vmatpush.bf16.msra.mxu2 %v10827_v16  ;;  %v11486_v8 = vld [vmem:[#allocation3 + $0x36c] sm:$0xf0]  ;;  %v7387_v30 = vmul.f32 %v12654_v38, %v12654_v38  ;;  %v9615_v9 = vor.u32 %v11534_v55, %v9614_v51 }
 0x593   :  { %v10024_v5 = vld [vmem:[#allocation3 + $0x828] sm:$0xf0]  ;;  %v9934_v40 = vld [vmem:[#allocation3 + $0x750] sm:$0xf]  ;;  %v9423_v54 = vor.u32 %v11486_v8, %v9422_v61  ;;  %v6621_v8 = vpop.f32.mrf.mxu2 }
 0x594   :  { %v11697_v10 = vld [vmem:[#allocation3 + $0xa0c] sm:$0xf]  ;;  %v10027_v27 = vor.u32 %v11633_v12, %v10024_v5  ;;  %6813 = vmatpush.bf16.msra.mxu1 %v10571_v25  ;;  %v11614_v12 = vld [vmem:[#allocation3 + $0x76c] sm:$0xf0]  ;;  %v7329_v5 = vadd.f32 %v7328_v32, %v7327_v36 }
 0x595   :  { %v10280_v17 = vld [vmem:[#allocation3 + $0xa28] sm:$0xf0]  ;;  %v9935_v43 = vor.u32 %v11614_v12, %v9934_v40  ;;  %v9134_v16 = vld [vmem:[#allocation3 + $0x110] sm:$0xf] }
 0x596   :  { %v11825_v18 = vld [vmem:[#allocation3 + $0xe0c] sm:$0xf]  ;;  %v10283_v28 = vor.u32 %v11697_v10, %v10280_v17  ;;  %6788 = vmatpush.bf16.msrb.mxu3 %v10027_v27  ;;  %v9167_v10 = vor.u32 %v11422_v7, %v9166_v45  ;;  %v9678_v17 = vld [vmem:[#allocation3 + $0x550] sm:$0xf]  ;;  %v7379_v53 = vmul.f32 %v7329_v5, %v12239_v0 }
 0x597   :  { %v10792_v20 = vld [vmem:[#allocation3 + $0xe28] sm:$0xf0]  ;;  %v11478_v25 = vld [vmem:[#allocation3 + $0x32c] sm:$0xf0]  ;;  %v9679_v22 = vor.u32 %v11550_v13, %v9678_v17 }
 0x598   :  { %v11761_v3 = vld [vmem:[#allocation3 + $0xc0c] sm:$0xf]  ;;  %v10795_v37 = vor.u32 %v11825_v18, %v10792_v20  ;;  %6801 = vmatpush.bf16.msra.mxu0 %v10283_v28  ;;  %v11414_v18 = vld [vmem:[#allocation3 + $0x12c] sm:$0xf0] }
 0x599   :  { %v10536_v33 = vld [vmem:[#allocation3 + $0xc28] sm:$0xf0]  ;;  %6789 = vmatmul.bf16.vlgmr.msrb.gmra.mxu3 %v12601_v19  ;;  %v9390_v20 = vld [vmem:[#allocation3 + $0x310] sm:$0xf]  ;;  %v9135_v24 = vor.u32 %v11414_v18, %v9134_v16 }
 0x59a   :  { %v10539_v57 = vor.u32 %v11761_v3, %v10536_v33  ;;  %6827 = vmatpush.bf16.msra.mxu2 %v10795_v37  ;;  %6833 = vmatpush.bf16.msra.mxu3 %v9231_v42  ;;  %v11542_v27 = vld [vmem:[#allocation3 + $0x52c] sm:$0xf0]  ;;  %v9391_v28 = vor.u32 %v11478_v25, %v9390_v20  ;;  %v9903_v3 = vor.u32 %v11606_v41, %v9902_v23 }
 0x59b   :  { %6802 = vmatmul.bf16.vlgmr.msra.gmra.mxu0 %v12609_v39  ;;  %v9102_v33 = vld [vmem:[#allocation3 + $0xd0] sm:$0xf]  ;;  %v9647_v44 = vor.u32 %v11542_v27, %v9646_v26 }
 0x59c   :  { %6846 = vmatpush.bf16.msrb.mxu0 %v9487_v46  ;;  %6814 = vmatpush.bf16.msra.mxu1 %v10539_v57  ;;  %v11470_v36 = vld [vmem:[#allocation3 + $0x2ec] sm:$0xf0]  ;;  %v7395_v46 = vsub.f32 %v7379_v53, %v7387_v30 }
 0x59d   :  { %6828 = vmatmul.bf16.vlgmr.msra.gmra.mxu2 %v12605_v62  ;;  %v9870_v37 = vld [vmem:[#allocation3 + $0x6d0] sm:$0xf]  ;;  %v9359_v56 = vor.u32 %v11470_v36, %v9358_v14 }
 0x59e   :  { %6872 = vmatpush.bf16.msrb.mxu2 %v9999_v29  ;;  %6834 = vmatpush.bf16.msra.mxu3 %v9199_v63  ;;  %v11598_v42 = vld [vmem:[#allocation3 + $0x6ec] sm:$0xf0]  ;;  %v9103_v29 = vor.u32 %v11406_v47, %v9102_v33 }
 0x59f   :  { %6815 = vmatmul.bf16.vlgmr.msra.gmra.mxu1 %v12614_v48  ;;  %v9871_v57 = vor.u32 %v11598_v42, %v9870_v37  ;;  %v9070_v58 = vld [vmem:[#allocation3 + $0x90] sm:$0xf] }
 0x5a0   :  { %6859 = vmatpush.bf16.msrb.mxu1 %v9743_v59  ;;  %6847 = vmatpush.bf16.msrb.mxu0 %v9455_v35  ;;  %v11398_v34 = vld [vmem:[#allocation3 + $0xac] sm:$0xf0]  ;;  %v6608_v59 = vpop.f32.mrf.mxu1  ;;  %v12661_v35 = vadd.f32 0.8, %v7395_v46  ;;  %v6584_v46 = vpop.f32.mrf.mxu3 }
 0x5a1   :  { %v9326_v31 = vld [vmem:[#allocation3 + $0x290] sm:$0xf]  ;;  %v9071_v45 = vor.u32 %v11398_v34, %v9070_v58  ;;  %v6623_v58 = vpop.f32.mrf.mxu2 }
 0x5a2   :  { %6873 = vmatpush.bf16.msrb.mxu2 %v9967_v21  ;;  %6835 = vmatpush.bf16.msra.mxu3 %v9167_v10  ;;  %v11462_v49 = vld [vmem:[#allocation3 + $0x2ac] sm:$0xf0]  ;;  %v6583_v21 = vadd.f32 %v6582_v1, %v12649_v15  ;;  %v6597_v15 = vpop.f32.mrf.mxu0  ;;  %11933 = vrsqrt.f32 %v12661_v35  ;;  %vm7425_vm0 = vweird.f32 %v12661_v35 }
 0x5a3   :  { %v9838_v32 = vld [vmem:[#allocation3 + $0x690] sm:$0xf]  ;;  %v9327_v40 = vor.u32 %v11462_v49, %v9326_v31 }
 0x5a4   :  { %6860 = vmatpush.bf16.msrb.mxu1 %v9711_v6  ;;  %6848 = vmatpush.bf16.msrb.mxu0 %v9423_v54  ;;  %v11590_v63 = vld [vmem:[#allocation3 + $0x6ac] sm:$0xf0]  ;;  %v6596_v17 = vadd.f32 %v6595_v60, %v6583_v21 }
 0x5a5   :  { %v9582_v7 = vld [vmem:[#allocation3 + $0x490] sm:$0xf]  ;;  %v9839_v12 = vor.u32 %v11590_v63, %v9838_v32 }
 0x5a6   :  { %6874 = vmatpush.bf16.msrb.mxu2 %v9935_v43  ;;  %6836 = vmatpush.bf16.msra.mxu3 %v9135_v24  ;;  %v11526_v61 = vld [vmem:[#allocation3 + $0x4ac] sm:$0xf0]  ;;  %v6609_v25 = vadd.f32 %v6608_v59, %v6596_v17 }
 0x5a7   :  { %v9038_v6 = vld [vmem:[#allocation3 + $0x50] sm:$0xf]  ;;  %v9583_v16 = vor.u32 %v11526_v61, %v9582_v7 }
 0x5a8   :  { %6861 = vmatpush.bf16.msrb.mxu1 %v9679_v22  ;;  %6849 = vmatpush.bf16.msrb.mxu0 %v9391_v28  ;;  %v11390_v5 = vld [vmem:[#allocation3 + $0x6c] sm:$0xf0]  ;;  %v12665_v33 = vadd.f32 %v6621_v8, %v6609_v25  ;;  %v12671_v63 = vpop.eup %11933 }
 0x5a9   :  { %v9294_v10 = vld [vmem:[#allocation3 + $0x250] sm:$0xf]  ;;  %v9039_v23 = vor.u32 %v11390_v5, %v9038_v6  ;;  %vm7426_vm15 = vweird.f32 %v12671_v63 }
 0x5aa   :  { %6875 = vmatpush.bf16.msrb.mxu2 %v9903_v3  ;;  %6837 = vmatpush.bf16.msra.mxu3 %v9103_v29  ;;  %v11454_v13 = vld [vmem:[#allocation3 + $0x26c] sm:$0xf0]  ;;  %v6610_v3 = vpop.f32.mrf.mxu1  ;;  %v7258_v29 = vsel %vm291_vm2, %v12665_v33, 0.0  ;;  %v7316_v51 = vmul.f32 %v12665_v33, %v12665_v33  ;;  %vm12695_vm1 = vmor %vm7425_vm0, %vm7426_vm15  ;;  %vm7604_vm0 = vcmask 1045508  }
 0x5ab   :  { %v9806_v54 = vld [vmem:[#allocation3 + $0x650] sm:$0xf]  ;;  %v9295_v30 = vor.u32 %v11454_v13, %v9294_v10  ;;  %v7259_v34 = vrot.slane %v7258_v29, 4 }
 0x5ac   :  { %6862 = vmatpush.bf16.msrb.mxu1 %v9647_v44  ;;  %6850 = vmatpush.bf16.msrb.mxu0 %v9359_v56  ;;  %v11582_v43 = vld [vmem:[#allocation3 + $0x66c] sm:$0xf0]  ;;  %v7330_v1 = vsel %vm291_vm2, %v7316_v51, 0.0 }
 0x5ad   :  { %v9550_v18 = vld [vmem:[#allocation3 + $0x450] sm:$0xf]  ;;  %v9807_v24 = vor.u32 %v11582_v43, %v9806_v54  ;;  %v7260_v61 = vadd.f32 %v7259_v34, %v7258_v29  ;;  %v7331_v8 = vrot.slane %v7330_v1, 4  ;;  %v7420_v54 = vmul.f32 %v12671_v63, %v12661_v35 }
 0x5ae   :  { %6876 = vmatpush.bf16.msrb.mxu2 %v9871_v57  ;;  %v11518_v20 = vld [vmem:[#allocation3 + $0x46c] sm:$0xf0]  ;;  %6838 = vmatpush.bf16.msra.mxu3 %v9071_v45 }
 0x5af   :  { %v9006_v41 = vld [vmem:[#allocation3 + $0x10] sm:$0xf]  ;;  %v9551_v37 = vor.u32 %v11518_v20, %v9550_v18  ;;  %v7261_v43 = vrot.slane %v7260_v61, 2 }
 0x5b0   :  { %6863 = vmatpush.bf16.msrb.mxu1 %v9615_v9  ;;  %v11382_v22 = vld [vmem:[#allocation3 + $0x2c] sm:$0xf0]  ;;  %6851 = vmatpush.bf16.msrb.mxu0 %v9327_v40 }
 0x5b1   :  { %v9262_v53 = vld [vmem:[#allocation3 + $0x210] sm:$0xf]  ;;  %v9007_v55 = vor.u32 %v11382_v22, %v9006_v41  ;;  %v7262_v22 = vadd.f32 %v7261_v43, %v7260_v61  ;;  %v6647_v43 = vpop.f32.mrf.mxu0 }
 0x5b2   :  { %6877 = vmatpush.bf16.msrb.mxu2 %v9839_v12  ;;  %v11446_v26 = vld [vmem:[#allocation3 + $0x22c] sm:$0xf0]  ;;  %6839 = vmatpush.bf16.msra.mxu3 %v9039_v23 }
 0x5b3   :  { %v9774_v27 = vld [vmem:[#allocation3 + $0x610] sm:$0xf]  ;;  %v9263_v31 = vor.u32 %v11446_v26, %v9262_v53 }
 0x5b4   :  { %v11574_v28 = vld [vmem:[#allocation3 + $0x62c] sm:$0xf0]  ;;  %6864 = vmatpush.bf16.msrb.mxu1 %v9583_v16  ;;  %6852 = vmatpush.bf16.msrb.mxu0 %v9295_v30  ;;  %v7332_v16 = vadd.f32 %v7331_v8, %v7330_v1 }
 0x5b5   :  { %v10254_v47 = vld [vmem:[#allocation3 + $0x9d0] sm:$0xf]  ;;  %v9775_v59 = vor.u32 %v11574_v28, %v9774_v27 }
 0x5b6   :  { %v11694_v14 = vld [vmem:[#allocation3 + $0x9ec] sm:$0xf0]  ;;  %6878 = vmatpush.bf16.msrb.mxu2 %v9807_v24  ;;  %6840 = vmatpush.bf16.msra.mxu3 %v9007_v55  ;;  %v7333_v53 = vrot.slane %v7332_v16, 2 }
 0x5b7   :  { %v10510_v36 = vld [vmem:[#allocation3 + $0xbd0] sm:$0xf]  ;;  %v10255_v9 = vor.u32 %v11694_v14, %v10254_v47  ;;  %v7421_v47 = vmul.f32 %v12671_v63, %v7420_v54  ;;  %v7263_v14 = vrot.slane %v7262_v22, 1 }
 0x5b8   :  { %v11758_v42 = vld [vmem:[#allocation3 + $0xbec] sm:$0xf0]  ;;  %6865 = vmatpush.bf16.msrb.mxu1 %v9551_v37  ;;  %6853 = vmatpush.bf16.msrb.mxu0 %v9263_v31 }
 0x5b9   :  { %v11022_v44 = vld [vmem:[#allocation3 + $0xfd0] sm:$0xf]  ;;  %v10511_v21 = vor.u32 %v11758_v42, %v10510_v36  ;;  %6841 = vmatmul.bf16.vlgmr.msra.gmra.mxu3 %v12581_v50  ;;  %v7334_v36 = vadd.f32 %v7333_v53, %v7332_v16  ;;  %v7264_v51 = vadd.f32 %v7263_v14, %v7262_v22  ;;  %v6660_v53 = vpop.f32.mrf.mxu1 }
 0x5ba   :  { %v11886_v60 = vld [vmem:[#allocation3 + $0xfec] sm:$0xf0]  ;;  %6879 = vmatpush.bf16.msrb.mxu2 %v9775_v59  ;;  %6885 = vmatpush.bf16.msrb.mxu3 %v10255_v9 }
 0x5bb   :  { %v9518_v56 = vld [vmem:[#allocation3 + $0x410] sm:$0xf]  ;;  %v11023_v40 = vor.u32 %v11886_v60, %v11022_v44  ;;  %6854 = vmatmul.bf16.vlgmr.msrb.gmra.mxu0 %v12589_v2  ;;  %v7335_v55 = vrot.slane %v7334_v36, 1 }
 0x5bc   :  { %v11510_v57 = vld [vmem:[#allocation3 + $0x42c] sm:$0xf0]  ;;  %6898 = vmatpush.bf16.msra.mxu0 %v10511_v21 }
 0x5bd   :  { %v10766_v49 = vld [vmem:[#allocation3 + $0xdd0] sm:$0xf]  ;;  %v9519_v12 = vor.u32 %v11510_v57, %v9518_v56  ;;  %6880 = vmatmul.bf16.vlgmr.msrb.gmra.mxu2 %v12585_v11  ;;  %v7336_v1 = vadd.f32 %v7335_v55, %v7334_v36 }
 0x5be   :  { %v11822_v32 = vld [vmem:[#allocation3 + $0xdec] sm:$0xf0]  ;;  %6924 = vmatpush.bf16.msra.mxu2 %v11023_v40 }
 0x5bf   :  { %v10222_v45 = vld [vmem:[#allocation3 + $0x990] sm:$0xf]  ;;  %v10767_v10 = vor.u32 %v11822_v32, %v10766_v49  ;;  %6866 = vmatpush.bf16.msrb.mxu1 %v9519_v12  ;;  %v7422_v49 = vmul.f32 0.5, %v7421_v47  ;;  %v12682_v32 = vmul.f32 %v7264_v51, %v12239_v0  ;;  %v7380_v8 = vmul.f32 %v7336_v1, %v12239_v0  ;;  %v6673_v51 = vpop.f32.mrf.mxu2 }
 0x5c0   :  { %v11686_v7 = vld [vmem:[#allocation3 + $0x9ac] sm:$0xf0] }
 0x5c1   :  { %v10478_v6 = vld [vmem:[#allocation3 + $0xb90] sm:$0xf]  ;;  %v10223_v15 = vor.u32 %v11686_v7, %v10222_v45  ;;  %v7388_v40 = vmul.f32 %v12682_v32, %v12682_v32  ;;  %v7423_v16 = vsub.f32 1.5, %v7422_v49 }
 0x5c2   :  { %v11750_v5 = vld [vmem:[#allocation3 + $0xbac] sm:$0xf0]  ;;  %6867 = vmatmul.bf16.vlgmr.msrb.gmra.mxu1 %v12593_v4 }
 0x5c3   :  { %v10990_v17 = vld [vmem:[#allocation3 + $0xf90] sm:$0xf]  ;;  %v10479_v25 = vor.u32 %v11750_v5, %v10478_v6  ;;  %6911 = vmatpush.bf16.msra.mxu1 %v10767_v10  ;;  %6886 = vmatpush.bf16.msrb.mxu3 %v10223_v15  ;;  %v7424_v14 = vmul.f32 %v12671_v63, %v7423_v16 }
 0x5c4   :  { %v11878_v13 = vld [vmem:[#allocation3 + $0xfac] sm:$0xf0] }
 0x5c5   :  { %v10734_v18 = vld [vmem:[#allocation3 + $0xd90] sm:$0xf]  ;;  %v10991_v30 = vor.u32 %v11878_v13, %v10990_v17  ;;  %6899 = vmatpush.bf16.msra.mxu0 %v10479_v25  ;;  %v7428_v35 = vsel %vm12695_vm1, %v12671_v63, %v7424_v14  ;;  %vm7606_vm1 = vcmask 1043456  }
 0x5c6   :  { %v11814_v20 = vld [vmem:[#allocation3 + $0xdac] sm:$0xf0] }
 0x5c7   :  { %v10190_v23 = vld [vmem:[#allocation3 + $0x950] sm:$0xf]  ;;  %v10735_v27 = vor.u32 %v11814_v20, %v10734_v18  ;;  %6925 = vmatpush.bf16.msra.mxu2 %v10991_v30  ;;  %v7396_v18 = vsub.f32 %v7380_v8, %v7388_v40 }
 0x5c8   :  { %v11678_v41 = vld [vmem:[#allocation3 + $0x96c] sm:$0xf0] }
 0x5c9   :  { %v10446_v24 = vld [vmem:[#allocation3 + $0xb50] sm:$0xf]  ;;  %v10191_v44 = vor.u32 %v11678_v41, %v10190_v23  ;;  %6912 = vmatpush.bf16.msra.mxu1 %v10735_v27  ;;  %v12687_v30 = vadd.f32 0.8, %v7396_v18 }
 0x5ca   :  { %v11742_v26 = vld [vmem:[#allocation3 + $0xb6c] sm:$0xf0] }
 0x5cb   :  { %v10958_v28 = vld [vmem:[#allocation3 + $0xf50] sm:$0xf]  ;;  %v10447_v60 = vor.u32 %v11742_v26, %v10446_v24  ;;  %6887 = vmatpush.bf16.msrb.mxu3 %v10191_v44  ;;  %11935 = vrsqrt.f32 %v12687_v30  ;;  %vm7435_vm4 = vweird.f32 %v12687_v30 }
 0x5cc   :  { %v11870_v3 = vld [vmem:[#allocation3 + $0xf6c] sm:$0xf0] }
 0x5cd   :  { %v10702_v37 = vld [vmem:[#allocation3 + $0xd50] sm:$0xf]  ;;  %v10959_v56 = vor.u32 %v11870_v3, %v10958_v28  ;;  %6900 = vmatpush.bf16.msra.mxu0 %v10447_v60 }
 0x5ce   :  { %v11806_v42 = vld [vmem:[#allocation3 + $0xd6c] sm:$0xf0] }
 0x5cf   :  { %v10158_v46 = vld [vmem:[#allocation3 + $0x910] sm:$0xf]  ;;  %v10703_v34 = vor.u32 %v11806_v42, %v10702_v37  ;;  %6926 = vmatpush.bf16.msra.mxu2 %v10959_v56  ;;  %v6634_v42 = vpop.f32.mrf.mxu3 }
 0x5d0   :  { %v11670_v29 = vld [vmem:[#allocation3 + $0x92c] sm:$0xf0] }
 0x5d1   :  { %v10414_v57 = vld [vmem:[#allocation3 + $0xb10] sm:$0xf]  ;;  %v10159_v45 = vor.u32 %v11670_v29, %v10158_v46  ;;  %6913 = vmatpush.bf16.msra.mxu1 %v10703_v34  ;;  %v6648_v29 = vadd.f32 %v6647_v43, %v6634_v42 }
 0x5d2   :  { %v11734_v58 = vld [vmem:[#allocation3 + $0xb2c] sm:$0xf0] }
 0x5d3   :  { %v10926_v31 = vld [vmem:[#allocation3 + $0xf10] sm:$0xf]  ;;  %v10415_v7 = vor.u32 %v11734_v58, %v10414_v57  ;;  %6888 = vmatpush.bf16.msrb.mxu3 %v10159_v45  ;;  %v6661_v1 = vadd.f32 %v6660_v53, %v6648_v29  ;;  %v9488_v53 = vld [vmem:[#allocation3 + $0x3f0] sm:$0xf0] }
 0x5d4   :  { %v11862_v59 = vld [vmem:[#allocation3 + $0xf2c] sm:$0xf0] }
 0x5d5   :  { %v10670_v9 = vld [vmem:[#allocation3 + $0xd10] sm:$0xf]  ;;  %v10927_v12 = vor.u32 %v11862_v59, %v10926_v31  ;;  %6901 = vmatpush.bf16.msra.mxu0 %v10415_v7 }
 0x5d6   :  { %v11798_v21 = vld [vmem:[#allocation3 + $0xd2c] sm:$0xf0] }
 0x5d7   :  { %v10126_v61 = vld [vmem:[#allocation3 + $0x8d0] sm:$0xf]  ;;  %v10671_v17 = vor.u32 %v11798_v21, %v10670_v9  ;;  %6927 = vmatpush.bf16.msra.mxu2 %v10927_v12  ;;  %v6649_v9 = vpop.f32.mrf.mxu0 }
 0x5d8   :  { %v11662_v6 = vld [vmem:[#allocation3 + $0x8ec] sm:$0xf0] }
 0x5d9   :  { %v10382_v5 = vld [vmem:[#allocation3 + $0xad0] sm:$0xf]  ;;  %v10127_v25 = vor.u32 %v11662_v6, %v10126_v61  ;;  %6914 = vmatpush.bf16.msra.mxu1 %v10671_v17  ;;  %v12706_v17 = vpop.eup %11935 }
 0x5da   :  { %v11726_v10 = vld [vmem:[#allocation3 + $0xaec] sm:$0xf0]  ;;  %vm7436_vm3 = vweird.f32 %v12706_v17 }
 0x5db   :  { %v10894_v13 = vld [vmem:[#allocation3 + $0xed0] sm:$0xf]  ;;  %v10383_v23 = vor.u32 %v11726_v10, %v10382_v5  ;;  %6889 = vmatpush.bf16.msrb.mxu3 %v10127_v25  ;;  %v12704_v5 = vadd.f32 %v6673_v51, %v6661_v1  ;;  %v6662_v10 = vpop.f32.mrf.mxu1  ;;  %v11434_v25 = vld [vmem:[#allocation3 + $0x1d4] sm:$0xf]  ;;  %vm7437_vm5 = vmor %vm7435_vm4, %vm7436_vm3 }
 0x5dc   :  { %v11854_v54 = vld [vmem:[#allocation3 + $0xeec] sm:$0xf0]  ;;  %v9168_v10 = vld [vmem:[#allocation3 + $0x170] sm:$0xf0] }
 0x5dd   :  { %v10638_v20 = vld [vmem:[#allocation3 + $0xcd0] sm:$0xf]  ;;  %v10895_v24 = vor.u32 %v11854_v54, %v10894_v13  ;;  %6902 = vmatpush.bf16.msra.mxu0 %v10383_v23  ;;  %v12708_v13 = vld [vmem:[#allocation12 + $0x25] sm:$0xff]  ;;  %v7403_v54 = vsub.f32 %v12638_v52, %v12654_v38 }
 0x5de   :  { %v11790_v15 = vld [vmem:[#allocation3 + $0xcec] sm:$0xf0]  ;;  %v9232_v23 = vld [vmem:[#allocation3 + $0x1f0] sm:$0xf0]  ;;  %v7533_v29 = vperm.slane %v12708_v13, 0 }
 0x5df   :  { %v10094_v41 = vld [vmem:[#allocation3 + $0x890] sm:$0xf]  ;;  %v10639_v28 = vor.u32 %v11790_v15, %v10638_v20  ;;  %6928 = vmatpush.bf16.msra.mxu2 %v10895_v24  ;;  %v7430_v20 = vmul.f32 %v12706_v17, %v12687_v30  ;;  %v11626_v24 = vld [vmem:[#allocation3 + $0x7d4] sm:$0xf]  ;;  %v9235_v42 = vor.u32 %v11434_v25, %v9232_v23 }
 0x5e0   :  { %v11654_v22 = vld [vmem:[#allocation3 + $0x8ac] sm:$0xf0]  ;;  %v9936_v30 = vld [vmem:[#allocation3 + $0x770] sm:$0xf0] }
 0x5e1   :  { %v10350_v26 = vld [vmem:[#allocation3 + $0xa90] sm:$0xf]  ;;  %v10095_v44 = vor.u32 %v11654_v22, %v10094_v41  ;;  %6915 = vmatpush.bf16.msra.mxu1 %v10639_v28  ;;  %v11498_v41 = vld [vmem:[#allocation3 + $0x3d4] sm:$0xf]  ;;  %v7499_v22 = vmul.f32 %v7428_v35, %v7403_v54  ;;  %v7431_v38 = vmul.f32 %v12706_v17, %v7430_v20 }
 0x5e2   :  { %v11718_v27 = vld [vmem:[#allocation3 + $0xaac] sm:$0xf0]  ;;  %v11482_v54 = vld [vmem:[#allocation3 + $0x354] sm:$0xf] }
 0x5e3   :  { %v10862_v3 = vld [vmem:[#allocation3 + $0xe90] sm:$0xf]  ;;  %v10351_v60 = vor.u32 %v11718_v27, %v10350_v26  ;;  %6890 = vmatpush.bf16.msrb.mxu3 %v10095_v44  ;;  %v10000_v26 = vld [vmem:[#allocation3 + $0x7f0] sm:$0xf0]  ;;  %v6636_v27 = vpop.f32.mrf.mxu3  ;;  %v7432_v51 = vmul.f32 0.5, %v7431_v38 }
 0x5e4   :  { %v11846_v47 = vld [vmem:[#allocation3 + $0xeac] sm:$0xf0]  ;;  %v11562_v44 = vld [vmem:[#allocation3 + $0x5d4] sm:$0xf] }
 0x5e5   :  { %v10606_v36 = vld [vmem:[#allocation3 + $0xc90] sm:$0xf]  ;;  %v10863_v55 = vor.u32 %v11846_v47, %v10862_v3  ;;  %6903 = vmatpush.bf16.msra.mxu0 %v10351_v60  ;;  %v9744_v60 = vld [vmem:[#allocation3 + $0x5f0] sm:$0xf0]  ;;  %v7433_v9 = vsub.f32 1.5, %v7432_v51 }
 0x5e6   :  { %v11782_v37 = vld [vmem:[#allocation3 + $0xcac] sm:$0xf0]  ;;  %v9747_v35 = vor.u32 %v11562_v44, %v9744_v60  ;;  %v11602_v38 = vld [vmem:[#allocation3 + $0x714] sm:$0xf] }
 0x5e7   :  { %v10062_v46 = vld [vmem:[#allocation3 + $0x850] sm:$0xf]  ;;  %v10607_v31 = vor.u32 %v11782_v37, %v10606_v36  ;;  %6929 = vmatpush.bf16.msra.mxu2 %v10863_v55  ;;  %v6675_v36 = vpop.f32.mrf.mxu2  ;;  %v9491_v55 = vor.u32 %v11498_v41, %v9488_v53  ;;  %v9680_v41 = vld [vmem:[#allocation3 + $0x570] sm:$0xf0] }
 0x5e8   :  { %v11646_v56 = vld [vmem:[#allocation3 + $0x86c] sm:$0xf0]  ;;  %v9104_v44 = vld [vmem:[#allocation3 + $0xf0] sm:$0xf0] }
 0x5e9   :  { %v10318_v57 = vld [vmem:[#allocation3 + $0xa50] sm:$0xf]  ;;  %v10063_v61 = vor.u32 %v11646_v56, %v10062_v46  ;;  %6916 = vmatpush.bf16.msra.mxu1 %v10607_v31  ;;  %v11426_v46 = vld [vmem:[#allocation3 + $0x194] sm:$0xf]  ;;  %v10003_v56 = vor.u32 %v11626_v24, %v10000_v26 }
 0x5ea   :  { %v11710_v58 = vld [vmem:[#allocation3 + $0xa6c] sm:$0xf0]  ;;  %v9456_v31 = vld [vmem:[#allocation3 + $0x3b0] sm:$0xf0] }
 0x5eb   :  { %v10830_v59 = vld [vmem:[#allocation3 + $0xe50] sm:$0xf]  ;;  %v10319_v8 = vor.u32 %v11710_v58, %v10318_v57  ;;  %6891 = vmatpush.bf16.msrb.mxu3 %v10063_v61  ;;  %v9200_v57 = vld [vmem:[#allocation3 + $0x1b0] sm:$0xf0] }
 0x5ec   :  { %v11838_v49 = vld [vmem:[#allocation3 + $0xe6c] sm:$0xf0]  ;;  %v11490_v58 = vld [vmem:[#allocation3 + $0x394] sm:$0xf] }
 0x5ed   :  { %v12699_v21 = vld [vmem:[#allocation12 + $0x1d] sm:$0xff]  ;;  %v10831_v63 = vor.u32 %v11838_v49, %v10830_v59  ;;  %6904 = vmatpush.bf16.msra.mxu0 %v10319_v8 }
 0x5ee   :  { %v10574_v45 = vld [vmem:[#allocation3 + $0xc50] sm:$0xf]  ;;  %v7508_v52 = vperm.slane %v12699_v21, 0  ;;  %v11618_v59 = vld [vmem:[#allocation3 + $0x794] sm:$0xf] }
 0x5ef   :  { %v11774_v7 = vld [vmem:[#allocation3 + $0xc6c] sm:$0xf0]  ;;  %6930 = vmatpush.bf16.msra.mxu2 %v10831_v63  ;;  %v9968_v49 = vld [vmem:[#allocation3 + $0x7b0] sm:$0xf0] }
 0x5f0   :  { %v10030_v40 = vld [vmem:[#allocation3 + $0x810] sm:$0xf]  ;;  %v10575_v15 = vor.u32 %v11774_v7, %v10574_v45  ;;  %v7524_v1 = vmul.f32 %v7508_v52, %v7499_v22  ;;  %v9203_v45 = vor.u32 %v11426_v46, %v9200_v57  ;;  %v11554_v7 = vld [vmem:[#allocation3 + $0x594] sm:$0xf] }
 0x5f1   :  { %v11638_v12 = vld [vmem:[#allocation3 + $0x82c] sm:$0xf0]  ;;  %v9712_v61 = vld [vmem:[#allocation3 + $0x5b0] sm:$0xf0] }
 0x5f2   :  { %v10286_v6 = vld [vmem:[#allocation3 + $0xa10] sm:$0xf]  ;;  %v10031_v28 = vor.u32 %v11638_v12, %v10030_v40  ;;  %6917 = vmatpush.bf16.msra.mxu1 %v10575_v15  ;;  %v11418_v8 = vld [vmem:[#allocation3 + $0x154] sm:$0xf]  ;;  %v7434_v40 = vmul.f32 %v12706_v17, %v7433_v9  ;;  %v9459_v12 = vor.u32 %v11490_v58, %v9456_v31  ;;  %v7549_v20 = vadd.f32 %v7533_v29, %v7524_v1 }
 0x5f3   :  { %v11702_v43 = vld [vmem:[#allocation3 + $0xa2c] sm:$0xf0]  ;;  %v9424_v63 = vld [vmem:[#allocation3 + $0x370] sm:$0xf0]  ;;  %v9715_v25 = vor.u32 %v11554_v7, %v9712_v61 }
 0x5f4   :  { %v10798_v16 = vld [vmem:[#allocation3 + $0xe10] sm:$0xf]  ;;  %v10287_v3 = vor.u32 %v11702_v43, %v10286_v6  ;;  %6892 = vmatpush.bf16.msrb.mxu3 %v10031_v28  ;;  %v9971_v6 = vor.u32 %v11618_v59, %v9968_v49  ;;  %v7404_v43 = vsub.f32 %v12665_v33, %v12682_v32  ;;  %v7438_v15 = vsel %vm7437_vm5, %v12706_v17, %v7434_v40  ;;  %v11410_v24 = vld [vmem:[#allocation3 + $0x114] sm:$0xf]  ;;  %v6712_v40 = vpop.f32.mrf.mxu1 }
 0x5f5   :  { %v11830_v18 = vld [vmem:[#allocation3 + $0xe2c] sm:$0xf0]  ;;  %v7534_v33 = vperm.slane %v12708_v13, 1  ;;  %v9171_v32 = vor.u32 %v11418_v8, %v9168_v10  ;;  %v9427_v22 = vor.u32 %v11482_v54, %v9424_v63  ;;  %v9136_v26 = vld [vmem:[#allocation3 + $0x130] sm:$0xf0]  ;;  %vm7557_vm6 = vcmp.gt.f32.partialorder %v7549_v20, 0.0  ;;  %v6686_v54 = vpop.f32.mrf.mxu3 }
 0x5f6   :  { %v10542_v47 = vld [vmem:[#allocation3 + $0xc10] sm:$0xf]  ;;  %v10799_v37 = vor.u32 %v11830_v18, %v10798_v16  ;;  %6905 = vmatpush.bf16.msra.mxu0 %v10287_v3  ;;  %v7509_v16 = vperm.slane %v12699_v21, 1  ;;  %v11610_v18 = vld [vmem:[#allocation3 + $0x754] sm:$0xf]  ;;  %v7500_v23 = vmul.f32 %v7438_v15, %v7404_v43  ;;  %v9139_v36 = vor.u32 %v11410_v24, %v9136_v26 }
 0x5f7   :  { %v11766_v14 = vld [vmem:[#allocation3 + $0xc2c] sm:$0xf0]  ;;  %6893 = vmatmul.bf16.vlgmr.msrb.gmra.mxu3 %v12601_v19  ;;  %v11546_v21 = vld [vmem:[#allocation3 + $0x554] sm:$0xf]  ;;  %v9939_v53 = vor.u32 %v11610_v18, %v9936_v30  ;;  %v7565_v13 = vmul.f32 0.2, %v7549_v20  ;;  %v6687_v43 = vadd.f32 %v6686_v54, %v12704_v5 }
 0x5f8   :  { %v10543_v34 = vor.u32 %v11766_v14, %v10542_v47  ;;  %6931 = vmatpush.bf16.msra.mxu2 %v10799_v37  ;;  %6937 = vmatpush.bf16.msra.mxu3 %v9235_v42  ;;  %v11474_v17 = vld [vmem:[#allocation3 + $0x314] sm:$0xf]  ;;  %v7525_v27 = vmul.f32 %v7509_v16, %v7500_v23  ;;  %v9683_v3 = vor.u32 %v11546_v21, %v9680_v41 }
 0x5f9   :  { %6906 = vmatmul.bf16.vlgmr.msra.gmra.mxu0 %v12609_v39  ;;  %v9392_v52 = vld [vmem:[#allocation3 + $0x330] sm:$0xf0]  ;;  %v7573_v31 = vsel %vm7557_vm6, %v7549_v20, %v7565_v13  ;;  %v6725_v20 = vpop.f32.mrf.mxu2 }
 0x5fa   :  { %6950 = vmatpush.bf16.msrb.mxu0 %v9491_v55  ;;  %6918 = vmatpush.bf16.msra.mxu1 %v10543_v34  ;;  %v9904_v28 = vld [vmem:[#allocation3 + $0x730] sm:$0xf0]  ;;  %v7550_v14 = vadd.f32 %v7534_v33, %v7525_v27  ;;  %v9395_v60 = vor.u32 %v11474_v17, %v9392_v52  ;;  %v6699_v34 = vpop.f32.mrf.mxu0 }
 0x5fb   :  { %6932 = vmatmul.bf16.vlgmr.msra.gmra.mxu2 %v12605_v62  ;;  %v11538_v47 = vld [vmem:[#allocation3 + $0x514] sm:$0xf]  ;;  %v9907_v46 = vor.u32 %v11602_v38, %v9904_v28  ;;  %v6700_v21 = vadd.f32 %v6699_v34, %v6687_v43 }
 0x5fc   :  { %6976 = vmatpush.bf16.msrb.mxu2 %v10003_v56  ;;  %6938 = vmatpush.bf16.msra.mxu3 %v9203_v45  ;;  %v9648_v37 = vld [vmem:[#allocation3 + $0x530] sm:$0xf0]  ;;  %vm7558_vm7 = vcmp.gt.f32.partialorder %v7550_v14, 0.0  ;;  %v7566_v56 = vmul.f32 0.2, %v7550_v14 }
 0x5fd   :  { %6919 = vmatmul.bf16.vlgmr.msra.gmra.mxu1 %v12614_v48  ;;  %v11402_v42 = vld [vmem:[#allocation3 + $0xd4] sm:$0xf]  ;;  %v9651_v58 = vor.u32 %v11538_v47, %v9648_v37  ;;  %v6713_v38 = vadd.f32 %v6712_v40, %v6700_v21 }
 0x5fe   :  { %6963 = vmatpush.bf16.msrb.mxu1 %v9747_v35  ;;  %6951 = vmatpush.bf16.msrb.mxu0 %v9459_v12  ;;  %v11466_v29 = vld [vmem:[#allocation3 + $0x2d4] sm:$0xf]  ;;  %v7574_v59 = vsel %vm7558_vm7, %v7550_v14, %v7566_v56  ;;  %v9107_v49 = vor.u32 %v11402_v42, %v9104_v44 }
 0x5ff   :  { %v9360_v51 = vld [vmem:[#allocation3 + $0x2f0] sm:$0xf0]  ;;  %11937 = vtanh.f32 %v7574_v59  ;;  %v6688_v59 = vpop.f32.mrf.mxu3 }
 0x600   :  { %6977 = vmatpush.bf16.msrb.mxu2 %v9971_v6  ;;  %6939 = vmatpush.bf16.msra.mxu3 %v9171_v32  ;;  %v11594_v55 = vld [vmem:[#allocation3 + $0x6d4] sm:$0xf]  ;;  %v9363_v35 = vor.u32 %v11466_v29, %v9360_v51  ;;  %11939 = vtanh.f32 %v7573_v31  ;;  %v12736_v29 = vadd.f32 %v6725_v20, %v6713_v38 }
 0x601   :  { %v9872_v57 = vld [vmem:[#allocation3 + $0x6f0] sm:$0xf0] }
 0x602   :  { %6964 = vmatpush.bf16.msrb.mxu1 %v9715_v25  ;;  %6952 = vmatpush.bf16.msrb.mxu0 %v9427_v22  ;;  %v11530_v1 = vld [vmem:[#allocation3 + $0x4d4] sm:$0xf]  ;;  %v9875_v45 = vor.u32 %v11594_v55, %v9872_v57  ;;  %v6701_v27 = vpop.f32.mrf.mxu0 }
 0x603   :  { %v9616_v9 = vld [vmem:[#allocation3 + $0x4f0] sm:$0xf0] }
 0x604   :  { %6978 = vmatpush.bf16.msrb.mxu2 %v9939_v53  ;;  %6940 = vmatpush.bf16.msra.mxu3 %v9139_v36  ;;  %v11394_v7 = vld [vmem:[#allocation3 + $0x94] sm:$0xf]  ;;  %v9619_v63 = vor.u32 %v11530_v1, %v9616_v9 }
 0x605   :  { %v9072_v61 = vld [vmem:[#allocation3 + $0xb0] sm:$0xf0]  ;;  %v11938_v24 = vpop.eup %11937 }
 0x606   :  { %6965 = vmatpush.bf16.msrb.mxu1 %v9683_v3  ;;  %6953 = vmatpush.bf16.msrb.mxu0 %v9395_v60  ;;  %v11458_v8 = vld [vmem:[#allocation3 + $0x294] sm:$0xf]  ;;  %v9075_v16 = vor.u32 %v11394_v7, %v9072_v61  ;;  %v7597_v52 = vrot.slane %v11938_v24, 6  ;;  %v11940_v47 = vpop.eup %11939  ;;  %v6714_v60 = vpop.f32.mrf.mxu1 }
 0x607   :  { %v9328_v12 = vld [vmem:[#allocation3 + $0x2b0] sm:$0xf0] }
 0x608   :  { %6979 = vmatpush.bf16.msrb.mxu2 %v9907_v46  ;;  %v11586_v6 = vld [vmem:[#allocation3 + $0x694] sm:$0xf]  ;;  %6941 = vmatpush.bf16.msra.mxu3 %v9107_v49  ;;  %v9331_v15 = vor.u32 %v11458_v8, %v9328_v12  ;;  %v12734_v46 = vsel %vm291_vm2, %v11940_v47, %v7597_v52 }
 0x609   :  { %v9840_v10 = vld [vmem:[#allocation3 + $0x6b0] sm:$0xf0] }
 0x60a   :  { %6966 = vmatpush.bf16.msrb.mxu1 %v9651_v58  ;;  %v11522_v18 = vld [vmem:[#allocation3 + $0x494] sm:$0xf]  ;;  %6954 = vmatpush.bf16.msrb.mxu0 %v9363_v35  ;;  %v9843_v25 = vor.u32 %v11586_v6, %v9840_v10 }
 0x60b   :  { %v9584_v30 = vld [vmem:[#allocation3 + $0x4b0] sm:$0xf0] }
 0x60c   :  { %6980 = vmatpush.bf16.msrb.mxu2 %v9875_v45  ;;  %v11386_v23 = vld [vmem:[#allocation3 + $0x54] sm:$0xf]  ;;  %v9587_v26 = vor.u32 %v11522_v18, %v9584_v30  ;;  %6942 = vmatpush.bf16.msra.mxu3 %v9075_v16  ;;  %v6727_v45 = vpop.f32.mrf.mxu2 }
 0x60d   :  { %v9040_v33 = vld [vmem:[#allocation3 + $0x70] sm:$0xf0] }
 0x60e   :  { %v11450_v32 = vld [vmem:[#allocation3 + $0x254] sm:$0xf]  ;;  %6967 = vmatpush.bf16.msrb.mxu1 %v9619_v63  ;;  %v9043_v28 = vor.u32 %v11386_v23, %v9040_v33  ;;  %6955 = vmatpush.bf16.msrb.mxu0 %v9331_v15 }
 0x60f   :  { %v9296_v41 = vld [vmem:[#allocation3 + $0x270] sm:$0xf0] }
 0x610   :  { %v11578_v22 = vld [vmem:[#allocation3 + $0x654] sm:$0xf]  ;;  %6981 = vmatpush.bf16.msrb.mxu2 %v9843_v25  ;;  %v9299_v14 = vor.u32 %v11450_v32, %v9296_v41  ;;  %6943 = vmatpush.bf16.msra.mxu3 %v9043_v28 }
 0x611   :  { %v9808_v53 = vld [vmem:[#allocation3 + $0x670] sm:$0xf0] }
 0x612   :  { %v11514_v17 = vld [vmem:[#allocation3 + $0x454] sm:$0xf]  ;;  %v9811_v36 = vor.u32 %v11578_v22, %v9808_v53  ;;  %6968 = vmatpush.bf16.msrb.mxu1 %v9587_v26  ;;  %6956 = vmatpush.bf16.msrb.mxu0 %v9299_v14  ;;  %v7265_v26 = vsel %vm291_vm2, %v12736_v29, 0.0 }
 0x613   :  { %v9552_v5 = vld [vmem:[#allocation3 + $0x470] sm:$0xf0] }
 0x614   :  { %v11378_v13 = vld [vmem:[#allocation3 + $0x14] sm:$0xf]  ;;  %v9555_v57 = vor.u32 %v11514_v17, %v9552_v5  ;;  %6982 = vmatpush.bf16.msrb.mxu2 %v9811_v36  ;;  %v7317_v17 = vmul.f32 %v12736_v29, %v12736_v29  ;;  %v7266_v36 = vrot.slane %v7265_v26, 4 }
 0x615   :  { %v9008_v3 = vld [vmem:[#allocation3 + $0x30] sm:$0xf0] }
 0x616   :  { %v11442_v37 = vld [vmem:[#allocation3 + $0x214] sm:$0xf]  ;;  %v9011_v49 = vor.u32 %v11378_v13, %v9008_v3  ;;  %6969 = vmatpush.bf16.msrb.mxu1 %v9555_v57  ;;  %v7337_v60 = vsel %vm291_vm2, %v7317_v17, 0.0 }
 0x617   :  { %v9264_v42 = vld [vmem:[#allocation3 + $0x230] sm:$0xf0] }
 0x618   :  { %v11570_v44 = vld [vmem:[#allocation3 + $0x614] sm:$0xf]  ;;  %v9267_v7 = vor.u32 %v11442_v37, %v9264_v42  ;;  %6944 = vmatpush.bf16.msra.mxu3 %v9011_v49 }
 0x619   :  { %v9776_v51 = vld [vmem:[#allocation3 + $0x630] sm:$0xf0] }
 0x61a   :  { %v11690_v55 = vld [vmem:[#allocation3 + $0x9d4] sm:$0xf]  ;;  %v9779_v61 = vor.u32 %v11570_v44, %v9776_v51  ;;  %6957 = vmatpush.bf16.msrb.mxu0 %v9267_v7 }
 0x61b   :  { %v10256_v56 = vld [vmem:[#allocation3 + $0x9f0] sm:$0xf0]  ;;  %6945 = vmatmul.bf16.vlgmr.msra.gmra.mxu3 %v12581_v50 }
 0x61c   :  { %v11754_v58 = vld [vmem:[#allocation3 + $0xbd4] sm:$0xf]  ;;  %v10259_v12 = vor.u32 %v11690_v55, %v10256_v56  ;;  %6983 = vmatpush.bf16.msrb.mxu2 %v9779_v61 }
 0x61d   :  { %v10512_v34 = vld [vmem:[#allocation3 + $0xbf0] sm:$0xf0]  ;;  %6958 = vmatmul.bf16.vlgmr.msrb.gmra.mxu0 %v12589_v2 }
 0x61e   :  { %v11882_v31 = vld [vmem:[#allocation3 + $0xfd4] sm:$0xf]  ;;  %v10515_v6 = vor.u32 %v11754_v58, %v10512_v34  ;;  %6989 = vmatpush.bf16.msrb.mxu3 %v10259_v12  ;;  %v12747_v12 = vpop.f32.mrf.mxu0 }
 0x61f   :  { %v11024_v1 = vld [vmem:[#allocation3 + $0xff0] sm:$0xf0]  ;;  %6984 = vmatmul.bf16.vlgmr.msrb.gmra.mxu2 %v12585_v11 }
 0x620   :  { %v11506_v9 = vld [vmem:[#allocation3 + $0x414] sm:$0xf]  ;;  %v11027_v54 = vor.u32 %v11882_v31, %v11024_v1  ;;  %7002 = vmatpush.bf16.msra.mxu0 %v10515_v6  ;;  %v7267_v1 = vadd.f32 %v7266_v36, %v7265_v26 }
 0x621   :  { %v9520_v35 = vld [vmem:[#allocation3 + $0x430] sm:$0xf0] }
 0x622   :  { %v11818_v8 = vld [vmem:[#allocation3 + $0xdd4] sm:$0xf]  ;;  %v9523_v63 = vor.u32 %v11506_v9, %v9520_v35  ;;  %7028 = vmatpush.bf16.msra.mxu2 %v11027_v54  ;;  %v7338_v9 = vrot.slane %v7337_v60, 4 }
 0x623   :  { %v10768_v40 = vld [vmem:[#allocation3 + $0xdf0] sm:$0xf0] }
 0x624   :  { %v11682_v10 = vld [vmem:[#allocation3 + $0x994] sm:$0xf]  ;;  %v10771_v30 = vor.u32 %v11818_v8, %v10768_v40  ;;  %6970 = vmatpush.bf16.msrb.mxu1 %v9523_v63 }
 0x625   :  { %v10224_v43 = vld [vmem:[#allocation3 + $0x9b0] sm:$0xf0] }
 0x626   :  { %v11746_v16 = vld [vmem:[#allocation3 + $0xb94] sm:$0xf]  ;;  %v10227_v33 = vor.u32 %v11682_v10, %v10224_v43 }
 0x627   :  { %v10480_v18 = vld [vmem:[#allocation3 + $0xbb0] sm:$0xf0]  ;;  %6971 = vmatmul.bf16.vlgmr.msrb.gmra.mxu1 %v12593_v4 }
 0x628   :  { %v11874_v20 = vld [vmem:[#allocation3 + $0xf94] sm:$0xf]  ;;  %v10483_v32 = vor.u32 %v11746_v16, %v10480_v18  ;;  %7015 = vmatpush.bf16.msra.mxu1 %v10771_v30  ;;  %6990 = vmatpush.bf16.msrb.mxu3 %v10227_v33  ;;  %v12749_v18 = vpop.f32.mrf.mxu1  ;;  %v7268_v30 = vrot.slane %v7267_v1, 2 }
 0x629   :  { %v10992_v15 = vld [vmem:[#allocation3 + $0xfb0] sm:$0xf0] }
 0x62a   :  { %v11810_v25 = vld [vmem:[#allocation3 + $0xd94] sm:$0xf]  ;;  %v10995_v41 = vor.u32 %v11874_v20, %v10992_v15  ;;  %7003 = vmatpush.bf16.msra.mxu0 %v10483_v32  ;;  %v7339_v20 = vadd.f32 %v7338_v9, %v7337_v60 }
 0x62b   :  { %v10736_v23 = vld [vmem:[#allocation3 + $0xdb0] sm:$0xf0] }
 0x62c   :  { %v11674_v21 = vld [vmem:[#allocation3 + $0x954] sm:$0xf]  ;;  %v10739_v5 = vor.u32 %v11810_v25, %v10736_v23  ;;  %7029 = vmatpush.bf16.msra.mxu2 %v10995_v41 }
 0x62d   :  { %v10192_v22 = vld [vmem:[#allocation3 + $0x970] sm:$0xf0] }
 0x62e   :  { %v11738_v53 = vld [vmem:[#allocation3 + $0xb54] sm:$0xf]  ;;  %v10195_v13 = vor.u32 %v11674_v21, %v10192_v22  ;;  %7016 = vmatpush.bf16.msra.mxu1 %v10739_v5 }
 0x62f   :  { %v10448_v24 = vld [vmem:[#allocation3 + $0xb70] sm:$0xf0] }
 0x630   :  { %v11866_v27 = vld [vmem:[#allocation3 + $0xf54] sm:$0xf]  ;;  %v10451_v3 = vor.u32 %v11738_v53, %v10448_v24  ;;  %6991 = vmatpush.bf16.msrb.mxu3 %v10195_v13  ;;  %v12751_v53 = vpop.f32.mrf.mxu3 }
 0x631   :  { %v10960_v52 = vld [vmem:[#allocation3 + $0xf70] sm:$0xf0] }
 0x632   :  { %v11802_v38 = vld [vmem:[#allocation3 + $0xd54] sm:$0xf]  ;;  %v10963_v37 = vor.u32 %v11866_v27, %v10960_v52  ;;  %7004 = vmatpush.bf16.msra.mxu0 %v10451_v3  ;;  %v12753_v27 = vpop.f32.mrf.mxu2  ;;  %v7269_v52 = vadd.f32 %v7268_v30, %v7267_v1 }
 0x633   :  { %v10704_v28 = vld [vmem:[#allocation3 + $0xd70] sm:$0xf0] }
 0x634   :  { %v11666_v47 = vld [vmem:[#allocation3 + $0x914] sm:$0xf]  ;;  %v10707_v51 = vor.u32 %v11802_v38, %v10704_v28  ;;  %7030 = vmatpush.bf16.msra.mxu2 %v10963_v37  ;;  %v7340_v38 = vrot.slane %v7339_v20, 2  ;;  %v6753_v37 = vpop.f32.mrf.mxu0 }
 0x635   :  { %v10160_v14 = vld [vmem:[#allocation3 + $0x930] sm:$0xf0]  ;;  %v9174_v37 = vld [vmem:[#allocation3 + $0x158] sm:$0xf] }
 0x636   :  { %v11730_v42 = vld [vmem:[#allocation3 + $0xb14] sm:$0xf]  ;;  %v10163_v34 = vor.u32 %v11666_v47, %v10160_v14  ;;  %7017 = vmatpush.bf16.msra.mxu1 %v10707_v51 }
 0x637   :  { %v10416_v44 = vld [vmem:[#allocation3 + $0xb30] sm:$0xf0] }
 0x638   :  { %v11858_v55 = vld [vmem:[#allocation3 + $0xf14] sm:$0xf]  ;;  %v10419_v31 = vor.u32 %v11730_v42, %v10416_v44  ;;  %6992 = vmatpush.bf16.msrb.mxu3 %v10163_v34  ;;  %v6766_v34 = vpop.f32.mrf.mxu1 }
 0x639   :  { %v10928_v56 = vld [vmem:[#allocation3 + $0xf30] sm:$0xf0] }
 0x63a   :  { %v11794_v57 = vld [vmem:[#allocation3 + $0xd14] sm:$0xf]  ;;  %v10931_v35 = vor.u32 %v11858_v55, %v10928_v56  ;;  %7005 = vmatpush.bf16.msra.mxu0 %v10419_v31  ;;  %v7270_v31 = vrot.slane %v7269_v52, 1  ;;  %v6779_v30 = vpop.f32.mrf.mxu2 }
 0x63b   :  { %v10672_v58 = vld [vmem:[#allocation3 + $0xd30] sm:$0xf0] }
 0x63c   :  { %v11658_v59 = vld [vmem:[#allocation3 + $0x8d4] sm:$0xf]  ;;  %v10675_v61 = vor.u32 %v11794_v57, %v10672_v58  ;;  %7031 = vmatpush.bf16.msra.mxu2 %v10931_v35 }
 0x63d   :  { %v10128_v49 = vld [vmem:[#allocation3 + $0x8f0] sm:$0xf0] }
 0x63e   :  { %v11722_v45 = vld [vmem:[#allocation3 + $0xad4] sm:$0xf]  ;;  %v10131_v54 = vor.u32 %v11658_v59, %v10128_v49  ;;  %7018 = vmatpush.bf16.msra.mxu1 %v10675_v61  ;;  %v7341_v59 = vadd.f32 %v7340_v38, %v7339_v20  ;;  %v9494_v61 = vld [vmem:[#allocation3 + $0x3d8] sm:$0xf]  ;;  %v7271_v20 = vadd.f32 %v7270_v31, %v7269_v52 }
 0x63f   :  { %v10384_v7 = vld [vmem:[#allocation3 + $0xaf0] sm:$0xf0]  ;;  %v9974_v38 = vld [vmem:[#allocation3 + $0x798] sm:$0xf] }
 0x640   :  { %v11850_v8 = vld [vmem:[#allocation3 + $0xed4] sm:$0xf]  ;;  %v10387_v63 = vor.u32 %v11722_v45, %v10384_v7  ;;  %6993 = vmatpush.bf16.msrb.mxu3 %v10131_v54  ;;  %v9238_v45 = vld [vmem:[#allocation3 + $0x1d8] sm:$0xf] }
 0x641   :  { %v10896_v40 = vld [vmem:[#allocation3 + $0xef0] sm:$0xf0]  ;;  %v11439_v7 = vld [vmem:[#allocation3 + $0x1f4] sm:$0xf0] }
 0x642   :  { %v11786_v6 = vld [vmem:[#allocation3 + $0xcd4] sm:$0xf]  ;;  %v10899_v15 = vor.u32 %v11850_v8, %v10896_v40  ;;  %7006 = vmatpush.bf16.msra.mxu0 %v10387_v63  ;;  %v11503_v8 = vld [vmem:[#allocation3 + $0x3f4] sm:$0xf0] }
 0x643   :  { %v10640_v10 = vld [vmem:[#allocation3 + $0xcf0] sm:$0xf0]  ;;  %v10006_v40 = vld [vmem:[#allocation3 + $0x7d8] sm:$0xf] }
 0x644   :  { %v11650_v43 = vld [vmem:[#allocation3 + $0x894] sm:$0xf]  ;;  %v10643_v33 = vor.u32 %v11786_v6, %v10640_v10  ;;  %7032 = vmatpush.bf16.msra.mxu2 %v10899_v15  ;;  %v11631_v6 = vld [vmem:[#allocation3 + $0x7f4] sm:$0xf0]  ;;  %v6740_v10 = vpop.f32.mrf.mxu3  ;;  %v7342_v15 = vrot.slane %v7341_v59, 1 }
 0x645   :  { %v10096_v16 = vld [vmem:[#allocation3 + $0x8b0] sm:$0xf0]  ;;  %v9718_v52 = vld [vmem:[#allocation3 + $0x598] sm:$0xf] }
 0x646   :  { %v11714_v25 = vld [vmem:[#allocation3 + $0xa94] sm:$0xf]  ;;  %v10099_v24 = vor.u32 %v11650_v43, %v10096_v16  ;;  %7019 = vmatpush.bf16.msra.mxu1 %v10643_v33  ;;  %v9750_v33 = vld [vmem:[#allocation3 + $0x5d8] sm:$0xf] }
 0x647   :  { %v10352_v23 = vld [vmem:[#allocation3 + $0xab0] sm:$0xf0]  ;;  %v11607_v10 = vld [vmem:[#allocation3 + $0x734] sm:$0xf0] }
 0x648   :  { %v11842_v32 = vld [vmem:[#allocation3 + $0xe94] sm:$0xf]  ;;  %v10355_v26 = vor.u32 %v11714_v25, %v10352_v23  ;;  %6994 = vmatpush.bf16.msrb.mxu3 %v10099_v24  ;;  %v9239_v23 = vor.u32 %v11439_v7, %v9238_v45  ;;  %v11431_v24 = vld [vmem:[#allocation3 + $0x1b4] sm:$0xf0] }
 0x649   :  { %v10864_v21 = vld [vmem:[#allocation3 + $0xeb0] sm:$0xf0]  ;;  %v9142_v7 = vld [vmem:[#allocation3 + $0x118] sm:$0xf] }
 0x64a   :  { %v11778_v41 = vld [vmem:[#allocation3 + $0xc94] sm:$0xf]  ;;  %v10867_v28 = vor.u32 %v11842_v32, %v10864_v21  ;;  %7007 = vmatpush.bf16.msra.mxu0 %v10355_v26  ;;  %v11567_v32 = vld [vmem:[#allocation3 + $0x5f4] sm:$0xf0]  ;;  %v9495_v21 = vor.u32 %v11503_v8, %v9494_v61 }
 0x64b   :  { %v10608_v22 = vld [vmem:[#allocation3 + $0xcb0] sm:$0xf0]  ;;  %v9462_v26 = vld [vmem:[#allocation3 + $0x398] sm:$0xf] }
 0x64c   :  { %v11642_v17 = vld [vmem:[#allocation3 + $0x854] sm:$0xf]  ;;  %v10611_v47 = vor.u32 %v11778_v41, %v10608_v22  ;;  %7033 = vmatpush.bf16.msra.mxu2 %v10867_v28  ;;  %v10007_v41 = vor.u32 %v11631_v6, %v10006_v40  ;;  %v9206_v22 = vld [vmem:[#allocation3 + $0x198] sm:$0xf] }
 0x64d   :  { %v10064_v5 = vld [vmem:[#allocation3 + $0x870] sm:$0xf0]  ;;  %v11623_v28 = vld [vmem:[#allocation3 + $0x7b4] sm:$0xf0] }
 0x64e   :  { %v11706_v13 = vld [vmem:[#allocation3 + $0xa54] sm:$0xf]  ;;  %v10067_v51 = vor.u32 %v11642_v17, %v10064_v5  ;;  %7020 = vmatpush.bf16.msra.mxu1 %v10611_v47  ;;  %v11495_v5 = vld [vmem:[#allocation3 + $0x3b4] sm:$0xf0]  ;;  %v7343_v47 = vadd.f32 %v7342_v15, %v7341_v59 }
 0x64f   :  { %v10320_v3 = vld [vmem:[#allocation3 + $0xa70] sm:$0xf0]  ;;  %v11415_v61 = vld [vmem:[#allocation3 + $0x134] sm:$0xf0] }
 0x650   :  { %v11834_v14 = vld [vmem:[#allocation3 + $0xe54] sm:$0xf]  ;;  %v10323_v55 = vor.u32 %v11706_v13, %v10320_v3  ;;  %6995 = vmatpush.bf16.msrb.mxu3 %v10067_v51  ;;  %v9751_v13 = vor.u32 %v11567_v32, %v9750_v33  ;;  %v12756_v3 = vmul.f32 %v7271_v20, %v12239_v0  ;;  %v9430_v51 = vld [vmem:[#allocation3 + $0x358] sm:$0xf]  ;;  %v7381_v31 = vmul.f32 %v7343_v47, %v12239_v0 }
 0x651   :  { %v10832_v36 = vld [vmem:[#allocation3 + $0xe70] sm:$0xf0]  ;;  %v9398_v8 = vld [vmem:[#allocation3 + $0x318] sm:$0xf] }
 0x652   :  { %v11770_v42 = vld [vmem:[#allocation3 + $0xc54] sm:$0xf]  ;;  %v10835_v49 = vor.u32 %v11834_v14, %v10832_v36  ;;  %7008 = vmatpush.bf16.msra.mxu0 %v10323_v55  ;;  %v9207_v14 = vor.u32 %v11431_v24, %v9206_v22  ;;  %v11559_v36 = vld [vmem:[#allocation3 + $0x5b4] sm:$0xf0]  ;;  %v7389_v59 = vmul.f32 %v12756_v3, %v12756_v3  ;;  %v6803_v22 = vpop.f32.mrf.mxu0 }
 0x653   :  { %v10576_v44 = vld [vmem:[#allocation3 + $0xc70] sm:$0xf0]  ;;  %v11487_v55 = vld [vmem:[#allocation3 + $0x374] sm:$0xf0] }
 0x654   :  { %v11634_v60 = vld [vmem:[#allocation3 + $0x814] sm:$0xf]  ;;  %v10579_v35 = vor.u32 %v11770_v42, %v10576_v44  ;;  %7034 = vmatpush.bf16.msra.mxu2 %v10835_v49  ;;  %v11423_v42 = vld [vmem:[#allocation3 + $0x174] sm:$0xf0]  ;;  %v9463_v44 = vor.u32 %v11495_v5, %v9462_v26  ;;  %v6752_v49 = vadd.f32 %v12747_v12, %v12751_v53  ;;  %v7397_v12 = vsub.f32 %v7381_v31, %v7389_v59 }
 0x655   :  { %v10032_v56 = vld [vmem:[#allocation3 + $0x830] sm:$0xf0]  ;;  %v9175_v34 = vor.u32 %v11423_v42, %v9174_v37  ;;  %v11479_v40 = vld [vmem:[#allocation3 + $0x334] sm:$0xf0] }
 0x656   :  { %v11698_v57 = vld [vmem:[#allocation3 + $0xa14] sm:$0xf]  ;;  %v10035_v54 = vor.u32 %v11634_v60, %v10032_v56  ;;  %7021 = vmatpush.bf16.msra.mxu1 %v10579_v35  ;;  %v9975_v60 = vor.u32 %v11623_v28, %v9974_v38  ;;  %v9942_v56 = vld [vmem:[#allocation3 + $0x758] sm:$0xf]  ;;  %v9431_v35 = vor.u32 %v11487_v55, %v9430_v51  ;;  %v6765_v53 = vadd.f32 %v12749_v18, %v6752_v49 }
 0x657   :  { %v10288_v58 = vld [vmem:[#allocation3 + $0xa30] sm:$0xf0]  ;;  %v9910_v6 = vld [vmem:[#allocation3 + $0x718] sm:$0xf]  ;;  %v9399_v30 = vor.u32 %v11479_v40, %v9398_v8  ;;  %v12768_v24 = vadd.f32 0.8, %v7397_v12 }
 0x658   :  { %v11826_v1 = vld [vmem:[#allocation3 + $0xe14] sm:$0xf]  ;;  %v10291_v63 = vor.u32 %v11698_v57, %v10288_v58  ;;  %6996 = vmatpush.bf16.msrb.mxu3 %v10035_v54  ;;  %v11615_v57 = vld [vmem:[#allocation3 + $0x774] sm:$0xf0]  ;;  %v9719_v58 = vor.u32 %v11559_v36, %v9718_v52  ;;  %v9911_v20 = vor.u32 %v11607_v10, %v9910_v6  ;;  %v6778_v18 = vadd.f32 %v12753_v27, %v6765_v53 }
 0x659   :  { %v10800_v9 = vld [vmem:[#allocation3 + $0xe30] sm:$0xf0]  ;;  %v9943_v45 = vor.u32 %v11615_v57, %v9942_v56  ;;  %v9110_v15 = vld [vmem:[#allocation3 + $0xd8] sm:$0xf]  ;;  %11941 = vrsqrt.f32 %v12768_v24  ;;  %v6829_v57 = vpop.f32.mrf.mxu2  ;;  %vm7445_vm9 = vweird.f32 %v12768_v24 }
 0x65a   :  { %v11762_v43 = vld [vmem:[#allocation3 + $0xc14] sm:$0xf]  ;;  %v10803_v25 = vor.u32 %v11826_v1, %v10800_v9  ;;  %7009 = vmatpush.bf16.msra.mxu0 %v10291_v63  ;;  %v9686_v1 = vld [vmem:[#allocation3 + $0x558] sm:$0xf]  ;;  %v9143_v63 = vor.u32 %v11415_v61, %v9142_v7  ;;  %v6805_v40 = vpop.f32.mrf.mxu0 }
 0x65b   :  { %v10544_v16 = vld [vmem:[#allocation3 + $0xc30] sm:$0xf0]  ;;  %6997 = vmatmul.bf16.vlgmr.msrb.gmra.mxu3 %v12601_v19  ;;  %v11551_v9 = vld [vmem:[#allocation3 + $0x574] sm:$0xf0] }
 0x65c   :  { %v10547_v17 = vor.u32 %v11762_v43, %v10544_v16  ;;  %7035 = vmatpush.bf16.msra.mxu2 %v10803_v25  ;;  %7041 = vmatpush.bf16.msra.mxu3 %v9239_v23  ;;  %v9687_v54 = vor.u32 %v11551_v9, %v9686_v1  ;;  %v9654_v43 = vld [vmem:[#allocation3 + $0x518] sm:$0xf] }
 0x65d   :  { %7010 = vmatmul.bf16.vlgmr.msra.gmra.mxu0 %v12609_v39  ;;  %v11543_v16 = vld [vmem:[#allocation3 + $0x534] sm:$0xf0] }
 0x65e   :  { %7054 = vmatpush.bf16.msrb.mxu0 %v9495_v21  ;;  %7022 = vmatpush.bf16.msra.mxu1 %v10547_v17  ;;  %v11407_v25 = vld [vmem:[#allocation3 + $0xf4] sm:$0xf0] }
 0x65f   :  { %7036 = vmatmul.bf16.vlgmr.msra.gmra.mxu2 %v12605_v62  ;;  %v9366_v23 = vld [vmem:[#allocation3 + $0x2d8] sm:$0xf]  ;;  %v9111_v26 = vor.u32 %v11407_v25, %v9110_v15  ;;  %v12772_v25 = vpop.eup %11941 }
 0x660   :  { %7080 = vmatpush.bf16.msrb.mxu2 %v10007_v41  ;;  %7042 = vmatpush.bf16.msra.mxu3 %v9207_v14  ;;  %v11471_v33 = vld [vmem:[#allocation3 + $0x2f4] sm:$0xf0]  ;;  %v9655_v41 = vor.u32 %v11543_v16, %v9654_v43  ;;  %v6816_v14 = vpop.f32.mrf.mxu1  ;;  %vm7446_vm8 = vweird.f32 %v12772_v25 }
 0x661   :  { %7023 = vmatmul.bf16.vlgmr.msra.gmra.mxu1 %v12614_v48  ;;  %v9878_v32 = vld [vmem:[#allocation3 + $0x6d8] sm:$0xf]  ;;  %v9367_v38 = vor.u32 %v11471_v33, %v9366_v23  ;;  %vm12801_vm10 = vmor %vm7445_vm9, %vm7446_vm8 }
 0x662   :  { %7067 = vmatpush.bf16.msrb.mxu1 %v9751_v13  ;;  %7055 = vmatpush.bf16.msrb.mxu0 %v9463_v44  ;;  %v11599_v21 = vld [vmem:[#allocation3 + $0x6f4] sm:$0xf0]  ;;  %v6790_v44 = vpop.f32.mrf.mxu3 }
 0x663   :  { %v9622_v17 = vld [vmem:[#allocation3 + $0x4d8] sm:$0xf]  ;;  %v9879_v28 = vor.u32 %v11599_v21, %v9878_v32  ;;  %v6791_v27 = vadd.f32 %v6790_v44, %v6778_v18 }
 0x664   :  { %7081 = vmatpush.bf16.msrb.mxu2 %v9975_v60  ;;  %7043 = vmatpush.bf16.msra.mxu3 %v9175_v34  ;;  %v11535_v5 = vld [vmem:[#allocation3 + $0x4f4] sm:$0xf0] }
 0x665   :  { %v9078_v13 = vld [vmem:[#allocation3 + $0x98] sm:$0xf]  ;;  %v9623_v60 = vor.u32 %v11535_v5, %v9622_v17  ;;  %v6804_v1 = vadd.f32 %v6803_v22, %v6791_v27 }
 0x666   :  { %7068 = vmatpush.bf16.msrb.mxu1 %v9719_v58  ;;  %7056 = vmatpush.bf16.msrb.mxu0 %v9431_v35  ;;  %v11399_v52 = vld [vmem:[#allocation3 + $0xb4] sm:$0xf0] }
 0x667   :  { %v9334_v47 = vld [vmem:[#allocation3 + $0x298] sm:$0xf]  ;;  %v9079_v51 = vor.u32 %v11399_v52, %v9078_v13  ;;  %v6817_v6 = vadd.f32 %v6816_v14, %v6804_v1  ;;  %v7440_v14 = vmul.f32 %v12772_v25, %v12768_v24 }
 0x668   :  { %7082 = vmatpush.bf16.msrb.mxu2 %v9943_v45  ;;  %7044 = vmatpush.bf16.msra.mxu3 %v9143_v63  ;;  %v11463_v36 = vld [vmem:[#allocation3 + $0x2b4] sm:$0xf0]  ;;  %v6818_v15 = vpop.f32.mrf.mxu1 }
 0x669   :  { %v9846_v37 = vld [vmem:[#allocation3 + $0x698] sm:$0xf]  ;;  %v9335_v58 = vor.u32 %v11463_v36, %v9334_v47  ;;  %v12774_v23 = vadd.f32 %v6829_v57, %v6817_v6  ;;  %v6831_v47 = vpop.f32.mrf.mxu2 }
 0x66a   :  { %7069 = vmatpush.bf16.msrb.mxu1 %v9687_v54  ;;  %7057 = vmatpush.bf16.msrb.mxu0 %v9399_v30  ;;  %v11591_v42 = vld [vmem:[#allocation3 + $0x6b4] sm:$0xf0]  ;;  %v6792_v17 = vpop.f32.mrf.mxu3 }
 0x66b   :  { %v9590_v55 = vld [vmem:[#allocation3 + $0x498] sm:$0xf]  ;;  %v9847_v34 = vor.u32 %v11591_v42, %v9846_v37  ;;  %v7272_v5 = vsel %vm291_vm2, %v12774_v23, 0.0 }
 0x66c   :  { %7083 = vmatpush.bf16.msrb.mxu2 %v9911_v20  ;;  %7045 = vmatpush.bf16.msra.mxu3 %v9111_v26  ;;  %v11527_v56 = vld [vmem:[#allocation3 + $0x4b4] sm:$0xf0]  ;;  %v7273_v36 = vrot.slane %v7272_v5, 4 }
 0x66d   :  { %v9046_v31 = vld [vmem:[#allocation3 + $0x58] sm:$0xf]  ;;  %v9591_v7 = vor.u32 %v11527_v56, %v9590_v55 }
 0x66e   :  { %7070 = vmatpush.bf16.msrb.mxu1 %v9655_v41  ;;  %7058 = vmatpush.bf16.msrb.mxu0 %v9367_v38  ;;  %v11391_v59 = vld [vmem:[#allocation3 + $0x74] sm:$0xf0]  ;;  %v7318_v38 = vmul.f32 %v12774_v23, %v12774_v23 }
 0x66f   :  { %v9302_v49 = vld [vmem:[#allocation3 + $0x258] sm:$0xf]  ;;  %v9047_v10 = vor.u32 %v11391_v59, %v9046_v31 }
 0x670   :  { %7084 = vmatpush.bf16.msrb.mxu2 %v9879_v28  ;;  %v11455_v9 = vld [vmem:[#allocation3 + $0x274] sm:$0xf0]  ;;  %7046 = vmatpush.bf16.msra.mxu3 %v9079_v51  ;;  %v7344_v27 = vsel %vm291_vm2, %v7318_v38, 0.0 }
 0x671   :  { %v9814_v35 = vld [vmem:[#allocation3 + $0x658] sm:$0xf]  ;;  %v9303_v63 = vor.u32 %v11455_v9, %v9302_v49 }
 0x672   :  { %v11583_v45 = vld [vmem:[#allocation3 + $0x674] sm:$0xf0]  ;;  %7071 = vmatpush.bf16.msrb.mxu1 %v9623_v60  ;;  %7059 = vmatpush.bf16.msrb.mxu0 %v9335_v58  ;;  %v7274_v58 = vadd.f32 %v7273_v36, %v7272_v5 }
 0x673   :  { %v9558_v61 = vld [vmem:[#allocation3 + $0x458] sm:$0xf]  ;;  %v9815_v43 = vor.u32 %v11583_v45, %v9814_v35 }
 0x674   :  { %v11519_v8 = vld [vmem:[#allocation3 + $0x474] sm:$0xf0]  ;;  %7085 = vmatpush.bf16.msrb.mxu2 %v9847_v34  ;;  %7047 = vmatpush.bf16.msra.mxu3 %v9047_v10  ;;  %v7345_v34 = vrot.slane %v7344_v27, 4 }
 0x675   :  { %v9014_v54 = vld [vmem:[#allocation3 + $0x18] sm:$0xf]  ;;  %v9559_v41 = vor.u32 %v11519_v8, %v9558_v61  ;;  %v7275_v61 = vrot.slane %v7274_v58, 2 }
 0x676   :  { %v11383_v12 = vld [vmem:[#allocation3 + $0x34] sm:$0xf0]  ;;  %7072 = vmatpush.bf16.msrb.mxu1 %v9591_v7  ;;  %7060 = vmatpush.bf16.msrb.mxu0 %v9303_v63  ;;  %v7441_v7 = vmul.f32 %v12772_v25, %v7440_v14  ;;  %v7346_v8 = vadd.f32 %v7345_v34, %v7344_v27 }
 0x677   :  { %v9270_v53 = vld [vmem:[#allocation3 + $0x218] sm:$0xf]  ;;  %v9015_v28 = vor.u32 %v11383_v12, %v9014_v54  ;;  %v7276_v63 = vadd.f32 %v7275_v61, %v7274_v58 }
 0x678   :  { %v11447_v16 = vld [vmem:[#allocation3 + $0x234] sm:$0xf0]  ;;  %7086 = vmatpush.bf16.msrb.mxu2 %v9815_v43  ;;  %v7347_v43 = vrot.slane %v7346_v8, 2 }
 0x679   :  { %v9782_v30 = vld [vmem:[#allocation3 + $0x618] sm:$0xf]  ;;  %v9271_v37 = vor.u32 %v11447_v16, %v9270_v53  ;;  %7048 = vmatpush.bf16.msra.mxu3 %v9015_v28 }
 0x67a   :  { %v11575_v20 = vld [vmem:[#allocation3 + $0x634] sm:$0xf0]  ;;  %7073 = vmatpush.bf16.msrb.mxu1 %v9559_v41  ;;  %v7277_v41 = vrot.slane %v7276_v63, 1 }
 0x67b   :  { %v10262_v33 = vld [vmem:[#allocation3 + $0x9d8] sm:$0xf]  ;;  %v9783_v42 = vor.u32 %v11575_v20, %v9782_v30  ;;  %7061 = vmatpush.bf16.msrb.mxu0 %v9271_v37 }
 0x67c   :  { %v11695_v32 = vld [vmem:[#allocation3 + $0x9f4] sm:$0xf0]  ;;  %7049 = vmatmul.bf16.vlgmr.msra.gmra.mxu3 %v12581_v50 }
 0x67d   :  { %v10518_v21 = vld [vmem:[#allocation3 + $0xbd8] sm:$0xf]  ;;  %v10263_v51 = vor.u32 %v11695_v32, %v10262_v33  ;;  %7087 = vmatpush.bf16.msrb.mxu2 %v9783_v42 }
 0x67e   :  { %v11759_v22 = vld [vmem:[#allocation3 + $0xbf4] sm:$0xf0]  ;;  %7062 = vmatmul.bf16.vlgmr.msrb.gmra.mxu0 %v12589_v2 }
 0x67f   :  { %v11030_v18 = vld [vmem:[#allocation3 + $0xfd8] sm:$0xf]  ;;  %v10519_v55 = vor.u32 %v11759_v22, %v10518_v21  ;;  %7093 = vmatpush.bf16.msrb.mxu3 %v10263_v51  ;;  %v7442_v21 = vmul.f32 0.5, %v7441_v7  ;;  %v7348_v22 = vadd.f32 %v7347_v43, %v7346_v8  ;;  %v6855_v8 = vpop.f32.mrf.mxu0 }
 0x680   :  { %v11887_v26 = vld [vmem:[#allocation3 + $0xff4] sm:$0xf0]  ;;  %7088 = vmatmul.bf16.vlgmr.msrb.gmra.mxu2 %v12585_v11 }
 0x681   :  { %v9526_v13 = vld [vmem:[#allocation3 + $0x418] sm:$0xf]  ;;  %v11031_v31 = vor.u32 %v11887_v26, %v11030_v18  ;;  %7106 = vmatpush.bf16.msra.mxu0 %v10519_v55 }
 0x682   :  { %v11511_v52 = vld [vmem:[#allocation3 + $0x434] sm:$0xf0] }
 0x683   :  { %v10774_v44 = vld [vmem:[#allocation3 + $0xdd8] sm:$0xf]  ;;  %v9527_v59 = vor.u32 %v11511_v52, %v9526_v13  ;;  %7132 = vmatpush.bf16.msra.mxu2 %v11031_v31  ;;  %v7278_v13 = vadd.f32 %v7277_v41, %v7276_v63  ;;  %v7349_v52 = vrot.slane %v7348_v22, 1 }
 0x684   :  { %v11823_v60 = vld [vmem:[#allocation3 + $0xdf4] sm:$0xf0] }
 0x685   :  { %v10230_v56 = vld [vmem:[#allocation3 + $0x998] sm:$0xf]  ;;  %v10775_v9 = vor.u32 %v11823_v60, %v10774_v44  ;;  %7074 = vmatpush.bf16.msrb.mxu1 %v9527_v59  ;;  %v7443_v60 = vsub.f32 1.5, %v7442_v21  ;;  %v12789_v27 = vmul.f32 %v7278_v13, %v12239_v0  ;;  %v7350_v51 = vadd.f32 %v7349_v52, %v7348_v22  ;;  %v6881_v52 = vpop.f32.mrf.mxu2 }
 0x686   :  { %v11687_v57 = vld [vmem:[#allocation3 + $0x9b4] sm:$0xf0] }
 0x687   :  { %v10486_v49 = vld [vmem:[#allocation3 + $0xb98] sm:$0xf]  ;;  %v10231_v10 = vor.u32 %v11687_v57, %v10230_v56  ;;  %v7382_v31 = vmul.f32 %v7350_v51, %v12239_v0  ;;  %v7390_v59 = vmul.f32 %v12789_v27, %v12789_v27 }
 0x688   :  { %v11751_v1 = vld [vmem:[#allocation3 + $0xbb4] sm:$0xf0]  ;;  %7075 = vmatmul.bf16.vlgmr.msrb.gmra.mxu1 %v12593_v4 }
 0x689   :  { %v10998_v35 = vld [vmem:[#allocation3 + $0xf98] sm:$0xf]  ;;  %v10487_v54 = vor.u32 %v11751_v1, %v10486_v49  ;;  %7119 = vmatpush.bf16.msra.mxu1 %v10775_v9  ;;  %7094 = vmatpush.bf16.msrb.mxu3 %v10231_v10 }
 0x68a   :  { %v11879_v45 = vld [vmem:[#allocation3 + $0xfb4] sm:$0xf0] }
 0x68b   :  { %v10742_v40 = vld [vmem:[#allocation3 + $0xd98] sm:$0xf]  ;;  %v10999_v16 = vor.u32 %v11879_v45, %v10998_v35  ;;  %7107 = vmatpush.bf16.msra.mxu0 %v10487_v54 }
 0x68c   :  { %v11815_v6 = vld [vmem:[#allocation3 + $0xdb4] sm:$0xf0] }
 0x68d   :  { %v10198_v12 = vld [vmem:[#allocation3 + $0x958] sm:$0xf]  ;;  %v10743_v15 = vor.u32 %v11815_v6, %v10742_v40  ;;  %7133 = vmatpush.bf16.msra.mxu2 %v10999_v16  ;;  %v7444_v40 = vmul.f32 %v12772_v25, %v7443_v60  ;;  %v7398_v6 = vsub.f32 %v7382_v31, %v7390_v59  ;;  %v6868_v16 = vpop.f32.mrf.mxu1 }
 0x68e   :  { %v11679_v53 = vld [vmem:[#allocation3 + $0x974] sm:$0xf0] }
 0x68f   :  { %v10454_v30 = vld [vmem:[#allocation3 + $0xb58] sm:$0xf]  ;;  %v10199_v17 = vor.u32 %v11679_v53, %v10198_v12  ;;  %7120 = vmatpush.bf16.msra.mxu1 %v10743_v15  ;;  %v7448_v24 = vsel %vm12801_vm10, %v12772_v25, %v7444_v40 }
 0x690   :  { %v11743_v20 = vld [vmem:[#allocation3 + $0xb74] sm:$0xf0] }
 0x691   :  { %v10966_v33 = vld [vmem:[#allocation3 + $0xf58] sm:$0xf]  ;;  %v10455_v5 = vor.u32 %v11743_v20, %v10454_v30  ;;  %7095 = vmatpush.bf16.msrb.mxu3 %v10199_v17  ;;  %v12797_v30 = vadd.f32 0.8, %v7398_v6  ;;  %v6842_v17 = vpop.f32.mrf.mxu3 }
 0x692   :  { %v11871_v32 = vld [vmem:[#allocation3 + $0xf74] sm:$0xf0]  ;;  %v6856_v13 = vadd.f32 %v6855_v8, %v6842_v17 }
 0x693   :  { %v10710_v18 = vld [vmem:[#allocation3 + $0xd58] sm:$0xf]  ;;  %v10967_v47 = vor.u32 %v11871_v32, %v10966_v33  ;;  %7108 = vmatpush.bf16.msra.mxu0 %v10455_v5  ;;  %11943 = vrsqrt.f32 %v12797_v30  ;;  %vm7455_vm12 = vweird.f32 %v12797_v30 }
 0x694   :  { %v11807_v26 = vld [vmem:[#allocation3 + $0xd74] sm:$0xf0]  ;;  %v6869_v51 = vadd.f32 %v6868_v16, %v6856_v13  ;;  %v11627_v16 = vld [vmem:[#allocation3 + $0x7dc] sm:$0xf] }
 0x695   :  { %v10166_v38 = vld [vmem:[#allocation3 + $0x918] sm:$0xf]  ;;  %v10711_v37 = vor.u32 %v11807_v26, %v10710_v18  ;;  %7134 = vmatpush.bf16.msra.mxu2 %v10967_v47  ;;  %v7405_v47 = vsub.f32 %v12736_v29, %v12756_v3  ;;  %v11427_v13 = vld [vmem:[#allocation3 + $0x19c] sm:$0xf] }
 0x696   :  { %v11671_v28 = vld [vmem:[#allocation3 + $0x934] sm:$0xf0] }
 0x697   :  { %v10422_v14 = vld [vmem:[#allocation3 + $0xb18] sm:$0xf]  ;;  %v10167_v57 = vor.u32 %v11671_v28, %v10166_v38  ;;  %7121 = vmatpush.bf16.msra.mxu1 %v10711_v37 }
 0x698   :  { %v11735_v36 = vld [vmem:[#allocation3 + $0xb34] sm:$0xf0] }
 0x699   :  { %v10934_v42 = vld [vmem:[#allocation3 + $0xf18] sm:$0xf]  ;;  %v10423_v58 = vor.u32 %v11735_v36, %v10422_v14  ;;  %7096 = vmatpush.bf16.msrb.mxu3 %v10167_v57  ;;  %v12811_v57 = vld [vmem:[#allocation12 + $0x1d] sm:$0xff] }
 0x69a   :  { %v11863_v44 = vld [vmem:[#allocation3 + $0xf34] sm:$0xf0] }
 0x69b   :  { %v10678_v55 = vld [vmem:[#allocation3 + $0xd18] sm:$0xf]  ;;  %v10935_v49 = vor.u32 %v11863_v44, %v10934_v42  ;;  %7109 = vmatpush.bf16.msra.mxu0 %v10423_v58  ;;  %v7510_v58 = vperm.slane %v12811_v57, 2 }
 0x69c   :  { %v11799_v56 = vld [vmem:[#allocation3 + $0xd34] sm:$0xf0] }
 0x69d   :  { %v10134_v34 = vld [vmem:[#allocation3 + $0x8d8] sm:$0xf]  ;;  %v10679_v45 = vor.u32 %v11799_v56, %v10678_v55  ;;  %7135 = vmatpush.bf16.msra.mxu2 %v10935_v49  ;;  %v6857_v55 = vpop.f32.mrf.mxu0  ;;  %v7501_v56 = vmul.f32 %v7448_v24, %v7405_v47 }
 0x69e   :  { %v11663_v1 = vld [vmem:[#allocation3 + $0x8f4] sm:$0xf0] }
 0x69f   :  { %v10390_v9 = vld [vmem:[#allocation3 + $0xad8] sm:$0xf]  ;;  %v10135_v12 = vor.u32 %v11663_v1, %v10134_v34  ;;  %7122 = vmatpush.bf16.msra.mxu1 %v10679_v45  ;;  %v12816_v45 = vpop.eup %11943 }
 0x6a0   :  { %v11727_v35 = vld [vmem:[#allocation3 + $0xaf4] sm:$0xf0]  ;;  %v7450_v6 = vmul.f32 %v12816_v45, %v12797_v30  ;;  %vm7456_vm11 = vweird.f32 %v12816_v45  ;;  %v9944_v30 = vld [vmem:[#allocation3 + $0x778] sm:$0xf0] }
 0x6a1   :  { %v10902_v7 = vld [vmem:[#allocation3 + $0xed8] sm:$0xf]  ;;  %v10391_v53 = vor.u32 %v11727_v35, %v10390_v9  ;;  %7097 = vmatpush.bf16.msrb.mxu3 %v10135_v12  ;;  %v12814_v9 = vadd.f32 %v6881_v52, %v6869_v51  ;;  %v6870_v35 = vpop.f32.mrf.mxu1  ;;  %v9240_v12 = vld [vmem:[#allocation3 + $0x1f8] sm:$0xf0]  ;;  %vm7457_vm13 = vmor %vm7455_vm12, %vm7456_vm11 }
 0x6a2   :  { %v11855_v61 = vld [vmem:[#allocation3 + $0xef4] sm:$0xf0]  ;;  %v11483_v35 = vld [vmem:[#allocation3 + $0x35c] sm:$0xf] }
 0x6a3   :  { %v10646_v10 = vld [vmem:[#allocation3 + $0xcd8] sm:$0xf]  ;;  %v10903_v20 = vor.u32 %v11855_v61, %v10902_v7  ;;  %7110 = vmatpush.bf16.msra.mxu0 %v10391_v53  ;;  %v11499_v53 = vld [vmem:[#allocation3 + $0x3dc] sm:$0xf] }
 0x6a4   :  { %v11791_v54 = vld [vmem:[#allocation3 + $0xcf4] sm:$0xf0] }
 0x6a5   :  { %v10102_v63 = vld [vmem:[#allocation3 + $0x898] sm:$0xf]  ;;  %v10647_v21 = vor.u32 %v11791_v54, %v10646_v10  ;;  %7136 = vmatpush.bf16.msra.mxu2 %v10903_v20  ;;  %v11435_v54 = vld [vmem:[#allocation3 + $0x1dc] sm:$0xf] }
 0x6a6   :  { %v11655_v43 = vld [vmem:[#allocation3 + $0x8b4] sm:$0xf0]  ;;  %v10008_v20 = vld [vmem:[#allocation3 + $0x7f8] sm:$0xf0] }
 0x6a7   :  { %v10358_v15 = vld [vmem:[#allocation3 + $0xa98] sm:$0xf]  ;;  %v10103_v5 = vor.u32 %v11655_v43, %v10102_v63  ;;  %7123 = vmatpush.bf16.msra.mxu1 %v10647_v21  ;;  %v7526_v63 = vmul.f32 %v7510_v58, %v7501_v56  ;;  %v9496_v43 = vld [vmem:[#allocation3 + $0x3f8] sm:$0xf0]  ;;  %v7451_v21 = vmul.f32 %v12816_v45, %v7450_v6 }
 0x6a8   :  { %v11719_v33 = vld [vmem:[#allocation3 + $0xab4] sm:$0xf0]  ;;  %v9499_v47 = vor.u32 %v11499_v53, %v9496_v43  ;;  %v11547_v53 = vld [vmem:[#allocation3 + $0x55c] sm:$0xf] }
 0x6a9   :  { %v10870_v41 = vld [vmem:[#allocation3 + $0xe98] sm:$0xf]  ;;  %v10359_v38 = vor.u32 %v11719_v33, %v10358_v15  ;;  %7098 = vmatpush.bf16.msrb.mxu3 %v10103_v5  ;;  %v6844_v15 = vpop.f32.mrf.mxu3  ;;  %v9243_v5 = vor.u32 %v11435_v54, %v9240_v12  ;;  %v7452_v52 = vmul.f32 0.5, %v7451_v21  ;;  %v9400_v21 = vld [vmem:[#allocation3 + $0x338] sm:$0xf0] }
 0x6aa   :  { %v11847_v22 = vld [vmem:[#allocation3 + $0xeb4] sm:$0xf0]  ;;  %v11475_v15 = vld [vmem:[#allocation3 + $0x31c] sm:$0xf] }
 0x6ab   :  { %v10614_v18 = vld [vmem:[#allocation3 + $0xc98] sm:$0xf]  ;;  %v10871_v14 = vor.u32 %v11847_v22, %v10870_v41  ;;  %7111 = vmatpush.bf16.msra.mxu0 %v10359_v38  ;;  %v11563_v38 = vld [vmem:[#allocation3 + $0x5dc] sm:$0xf]  ;;  %v7453_v55 = vsub.f32 1.5, %v7452_v52  ;;  %v9403_v52 = vor.u32 %v11475_v15, %v9400_v21 }
 0x6ac   :  { %v11783_v26 = vld [vmem:[#allocation3 + $0xcb4] sm:$0xf0]  ;;  %v9816_v15 = vld [vmem:[#allocation3 + $0x678] sm:$0xf0] }
 0x6ad   :  { %v10070_v28 = vld [vmem:[#allocation3 + $0x858] sm:$0xf]  ;;  %v10615_v42 = vor.u32 %v11783_v26, %v10614_v18  ;;  %7137 = vmatpush.bf16.msra.mxu2 %v10871_v14  ;;  %v6883_v26 = vpop.f32.mrf.mxu2  ;;  %v10011_v14 = vor.u32 %v11627_v16, %v10008_v20  ;;  %v11411_v20 = vld [vmem:[#allocation3 + $0x11c] sm:$0xf] }
 0x6ae   :  { %v11647_v36 = vld [vmem:[#allocation3 + $0x874] sm:$0xf0]  ;;  %v11539_v26 = vld [vmem:[#allocation3 + $0x51c] sm:$0xf] }
 0x6af   :  { %v10326_v37 = vld [vmem:[#allocation3 + $0xa58] sm:$0xf]  ;;  %v10071_v29 = vor.u32 %v11647_v36, %v10070_v28  ;;  %7124 = vmatpush.bf16.msra.mxu1 %v10615_v42  ;;  %v9752_v28 = vld [vmem:[#allocation3 + $0x5f8] sm:$0xf0] }
 0x6b0   :  { %v11711_v25 = vld [vmem:[#allocation3 + $0xa74] sm:$0xf0]  ;;  %v9208_v36 = vld [vmem:[#allocation3 + $0x1b8] sm:$0xf0]  ;;  %v9755_v56 = vor.u32 %v11563_v38, %v9752_v28 }
 0x6b1   :  { %v10838_v44 = vld [vmem:[#allocation3 + $0xe58] sm:$0xf]  ;;  %v10327_v3 = vor.u32 %v11711_v25, %v10326_v37  ;;  %7099 = vmatpush.bf16.msrb.mxu3 %v10071_v29  ;;  %v11491_v37 = vld [vmem:[#allocation3 + $0x39c] sm:$0xf]  ;;  %v9211_v58 = vor.u32 %v11427_v13, %v9208_v36 }
 0x6b2   :  { %v11839_v60 = vld [vmem:[#allocation3 + $0xe74] sm:$0xf0]  ;;  %v9464_v42 = vld [vmem:[#allocation3 + $0x3b8] sm:$0xf0] }
 0x6b3   :  { %v10582_v34 = vld [vmem:[#allocation3 + $0xc58] sm:$0xf]  ;;  %v10839_v7 = vor.u32 %v11839_v60, %v10838_v44  ;;  %7112 = vmatpush.bf16.msra.mxu0 %v10327_v3  ;;  %v11619_v44 = vld [vmem:[#allocation3 + $0x79c] sm:$0xf]  ;;  %v7454_v3 = vmul.f32 %v12816_v45, %v7453_v55 }
 0x6b4   :  { %v11775_v31 = vld [vmem:[#allocation3 + $0xc74] sm:$0xf0]  ;;  %v9976_v60 = vld [vmem:[#allocation3 + $0x7b8] sm:$0xf0] }
 0x6b5   :  { %v10038_v59 = vld [vmem:[#allocation3 + $0x818] sm:$0xf]  ;;  %v10583_v10 = vor.u32 %v11775_v31, %v10582_v34  ;;  %7138 = vmatpush.bf16.msra.mxu2 %v10839_v7  ;;  %v11555_v34 = vld [vmem:[#allocation3 + $0x59c] sm:$0xf] }
 0x6b6   :  { %v11639_v49 = vld [vmem:[#allocation3 + $0x834] sm:$0xf0]  ;;  %v9720_v31 = vld [vmem:[#allocation3 + $0x5b8] sm:$0xf0] }
 0x6b7   :  { %v10294_v1 = vld [vmem:[#allocation3 + $0xa18] sm:$0xf]  ;;  %v10039_v41 = vor.u32 %v11639_v49, %v10038_v59  ;;  %7125 = vmatpush.bf16.msra.mxu1 %v10583_v10  ;;  %v11419_v29 = vld [vmem:[#allocation3 + $0x15c] sm:$0xf]  ;;  %v9467_v59 = vor.u32 %v11491_v37, %v9464_v42  ;;  %v9979_v49 = vor.u32 %v11619_v44, %v9976_v60  ;;  %v7458_v10 = vsel %vm7457_vm13, %v12816_v45, %v7454_v3  ;;  %v6907_v60 = vpop.f32.mrf.mxu0 }
 0x6b8   :  { %v11703_v61 = vld [vmem:[#allocation3 + $0xa34] sm:$0xf0]  ;;  %v9432_v7 = vld [vmem:[#allocation3 + $0x378] sm:$0xf0]  ;;  %v9723_v54 = vor.u32 %v11555_v34, %v9720_v31 }
 0x6b9   :  { %v10806_v8 = vld [vmem:[#allocation3 + $0xe18] sm:$0xf]  ;;  %v10295_v22 = vor.u32 %v11703_v61, %v10294_v1  ;;  %7100 = vmatpush.bf16.msrb.mxu3 %v10039_v41  ;;  %v9176_v1 = vld [vmem:[#allocation3 + $0x178] sm:$0xf0]  ;;  %v7406_v61 = vsub.f32 %v12774_v23, %v12789_v27  ;;  %v9435_v43 = vor.u32 %v11483_v35, %v9432_v7 }
 0x6ba   :  { %v11831_v40 = vld [vmem:[#allocation3 + $0xe34] sm:$0xf0]  ;;  %v9179_v27 = vor.u32 %v11419_v29, %v9176_v1  ;;  %v9144_v45 = vld [vmem:[#allocation3 + $0x138] sm:$0xf0] }
 0x6bb   :  { %v12820_v33 = vld [vmem:[#allocation12 + $0x25] sm:$0xff]  ;;  %v10807_v17 = vor.u32 %v11831_v40, %v10806_v8  ;;  %7113 = vmatpush.bf16.msra.mxu0 %v10295_v22  ;;  %v7511_v8 = vperm.slane %v12811_v57, 3  ;;  %v7502_v12 = vmul.f32 %v7458_v10, %v7406_v61  ;;  %v6894_v61 = vpop.f32.mrf.mxu3 }
 0x6bc   :  { %v7535_v32 = vperm.slane %v12820_v33, 2  ;;  %v10550_v24 = vld [vmem:[#allocation3 + $0xc18] sm:$0xf]  ;;  %7101 = vmatmul.bf16.vlgmr.msrb.gmra.mxu3 %v12601_v19  ;;  %v11611_v40 = vld [vmem:[#allocation3 + $0x75c] sm:$0xf]  ;;  %v7536_v23 = vperm.slane %v12820_v33, 3 }
 0x6bd   :  { %v11767_v18 = vld [vmem:[#allocation3 + $0xc34] sm:$0xf0]  ;;  %7139 = vmatpush.bf16.msra.mxu2 %v10807_v17  ;;  %7145 = vmatpush.bf16.msra.mxu3 %v9243_v5  ;;  %v9947_v16 = vor.u32 %v11611_v40, %v9944_v30  ;;  %v11603_v41 = vld [vmem:[#allocation3 + $0x71c] sm:$0xf]  ;;  %v9147_v5 = vor.u32 %v11411_v20, %v9144_v45  ;;  %v6895_v30 = vadd.f32 %v6894_v61, %v12814_v9 }
 0x6be   :  { %v10551_v25 = vor.u32 %v11767_v18, %v10550_v24  ;;  %v7551_v51 = vadd.f32 %v7535_v32, %v7526_v63  ;;  %7114 = vmatmul.bf16.vlgmr.msra.gmra.mxu0 %v12609_v39  ;;  %v9688_v63 = vld [vmem:[#allocation3 + $0x578] sm:$0xf0]  ;;  %v7527_v32 = vmul.f32 %v7511_v8, %v7502_v12  ;;  %v6933_v12 = vpop.f32.mrf.mxu2 }
 0x6bf   :  { %7158 = vmatpush.bf16.msrb.mxu0 %v9499_v47  ;;  %v9912_v22 = vld [vmem:[#allocation3 + $0x738] sm:$0xf0]  ;;  %v9691_v18 = vor.u32 %v11547_v53, %v9688_v63 }
 0x6c0   :  { %7126 = vmatpush.bf16.msra.mxu1 %v10551_v25  ;;  %v7567_v6 = vmul.f32 0.2, %v7551_v51  ;;  %7140 = vmatmul.bf16.vlgmr.msra.gmra.mxu2 %v12605_v62  ;;  %vm7559_vm14 = vcmp.gt.f32.partialorder %v7551_v51, 0.0  ;;  %v7552_v17 = vadd.f32 %v7536_v23, %v7527_v32  ;;  %v9656_v38 = vld [vmem:[#allocation3 + $0x538] sm:$0xf0]  ;;  %v9915_v47 = vor.u32 %v11603_v41, %v9912_v22 }
 0x6c1   :  { %7184 = vmatpush.bf16.msrb.mxu2 %v10011_v14  ;;  %7146 = vmatpush.bf16.msra.mxu3 %v9211_v58  ;;  %v11403_v28 = vld [vmem:[#allocation3 + $0xdc] sm:$0xf]  ;;  %v9659_v44 = vor.u32 %v11539_v26, %v9656_v38 }
 0x6c2   :  { %v7575_v24 = vsel %vm7559_vm14, %v7551_v51, %v7567_v6  ;;  %v9112_v13 = vld [vmem:[#allocation3 + $0xf8] sm:$0xf0]  ;;  %vm7560_vm15 = vcmp.gt.f32.partialorder %v7552_v17, 0.0  ;;  %v7568_v25 = vmul.f32 0.2, %v7552_v17 }
 0x6c3   :  { %7159 = vmatpush.bf16.msrb.mxu0 %v9467_v59  ;;  %7127 = vmatmul.bf16.vlgmr.msra.gmra.mxu1 %v12614_v48  ;;  %v11467_v14 = vld [vmem:[#allocation3 + $0x2dc] sm:$0xf]  ;;  %11945 = vtanh.f32 %v7575_v24  ;;  %v9115_v55 = vor.u32 %v11403_v28, %v9112_v13  ;;  %v6909_v24 = vpop.f32.mrf.mxu0 }
 0x6c4   :  { %7171 = vmatpush.bf16.msrb.mxu1 %v9755_v56  ;;  %v9368_v36 = vld [vmem:[#allocation3 + $0x2f8] sm:$0xf0]  ;;  %v7576_v51 = vsel %vm7560_vm15, %v7552_v17, %v7568_v25 }
 0x6c5   :  { %7185 = vmatpush.bf16.msrb.mxu2 %v9979_v49  ;;  %7147 = vmatpush.bf16.msra.mxu3 %v9179_v27  ;;  %v11595_v37 = vld [vmem:[#allocation3 + $0x6dc] sm:$0xf]  ;;  %11947 = vtanh.f32 %v7576_v51  ;;  %v9371_v34 = vor.u32 %v11467_v14, %v9368_v36  ;;  %v6920_v49 = vpop.f32.mrf.mxu1 }
 0x6c6   :  { %v9880_v42 = vld [vmem:[#allocation3 + $0x6f8] sm:$0xf0] }
 0x6c7   :  { %7160 = vmatpush.bf16.msrb.mxu0 %v9435_v43  ;;  %v11531_v56 = vld [vmem:[#allocation3 + $0x4dc] sm:$0xf]  ;;  %v9883_v31 = vor.u32 %v11595_v37, %v9880_v42 }
 0x6c8   :  { %7172 = vmatpush.bf16.msrb.mxu1 %v9723_v54  ;;  %v9624_v58 = vld [vmem:[#allocation3 + $0x4f8] sm:$0xf0] }
 0x6c9   :  { %7186 = vmatpush.bf16.msrb.mxu2 %v9947_v16  ;;  %7148 = vmatpush.bf16.msra.mxu3 %v9147_v5  ;;  %v11395_v29 = vld [vmem:[#allocation3 + $0x9c] sm:$0xf]  ;;  %v9627_v8 = vor.u32 %v11531_v56, %v9624_v58  ;;  %v11946_v40 = vpop.eup %11945  ;;  %v6908_v16 = vadd.f32 %v6907_v60, %v6895_v30 }
 0x6ca   :  { %v9080_v3 = vld [vmem:[#allocation3 + $0xb8] sm:$0xf0]  ;;  %v7598_v21 = vrot.slane %v11946_v40, 4 }
 0x6cb   :  { %7161 = vmatpush.bf16.msrb.mxu0 %v9403_v52  ;;  %v11459_v59 = vld [vmem:[#allocation3 + $0x29c] sm:$0xf]  ;;  %v9083_v6 = vor.u32 %v11395_v29, %v9080_v3  ;;  %v11948_v32 = vpop.eup %11947  ;;  %v6921_v26 = vadd.f32 %v6920_v49, %v6908_v16 }
 0x6cc   :  { %7173 = vmatpush.bf16.msrb.mxu1 %v9691_v18  ;;  %v9336_v1 = vld [vmem:[#allocation3 + $0x2b8] sm:$0xf0]  ;;  %v7599_v18 = vrot.slane %v11948_v32, 2 }
 0x6cd   :  { %7187 = vmatpush.bf16.msrb.mxu2 %v9915_v47  ;;  %v11587_v35 = vld [vmem:[#allocation3 + $0x69c] sm:$0xf]  ;;  %7149 = vmatpush.bf16.msra.mxu3 %v9115_v55  ;;  %v9339_v23 = vor.u32 %v11459_v59, %v9336_v1  ;;  %v6922_v36 = vpop.f32.mrf.mxu1  ;;  %v12841_v25 = vadd.f32 %v6933_v12, %v6921_v26  ;;  %v6935_v1 = vpop.f32.mrf.mxu2 }
 0x6ce   :  { %v9848_v7 = vld [vmem:[#allocation3 + $0x6b8] sm:$0xf0]  ;;  %v7605_v37 = vsel %vm7604_vm0, %v7598_v21, %v7599_v18 }
 0x6cf   :  { %v11523_v10 = vld [vmem:[#allocation3 + $0x49c] sm:$0xf]  ;;  %7162 = vmatpush.bf16.msrb.mxu0 %v9371_v34  ;;  %v9851_v27 = vor.u32 %v11587_v35, %v9848_v7  ;;  %v7607_v51 = vsel %vm7606_vm1, %v12734_v46, %v7605_v37 }
 0x6d0   :  { %7174 = vmatpush.bf16.msrb.mxu1 %v9659_v44  ;;  %v9592_v54 = vld [vmem:[#allocation3 + $0x4b8] sm:$0xf0]  ;;  %7613 = vst [vmem:[%s12913_s7] sm:$0xff] %v7607_v51 }
 0x6d1   :  { %7188 = vmatpush.bf16.msrb.mxu2 %v9883_v31  ;;  %v11387_v53 = vld [vmem:[#allocation3 + $0x5c] sm:$0xf]  ;;  %v9595_v9 = vor.u32 %v11523_v10, %v9592_v54  ;;  %7150 = vmatpush.bf16.msra.mxu3 %v9083_v6  ;;  %v6896_v31 = vpop.f32.mrf.mxu3 }
 0x6d2   :  { %v9048_v63 = vld [vmem:[#allocation3 + $0x78] sm:$0xf0] }
 0x6d3   :  { %v11451_v43 = vld [vmem:[#allocation3 + $0x25c] sm:$0xf]  ;;  %v9051_v17 = vor.u32 %v11387_v53, %v9048_v63  ;;  %7163 = vmatpush.bf16.msrb.mxu0 %v9339_v23 }
 0x6d4   :  { %v9304_v20 = vld [vmem:[#allocation3 + $0x278] sm:$0xf0]  ;;  %7175 = vmatpush.bf16.msrb.mxu1 %v9627_v8 }
 0x6d5   :  { %v11579_v45 = vld [vmem:[#allocation3 + $0x65c] sm:$0xf]  ;;  %7189 = vmatpush.bf16.msrb.mxu2 %v9851_v27  ;;  %v9307_v28 = vor.u32 %v11451_v43, %v9304_v20  ;;  %7151 = vmatpush.bf16.msra.mxu3 %v9051_v17 }
 0x6d6   :  { %v11515_v41 = vld [vmem:[#allocation3 + $0x45c] sm:$0xf]  ;;  %v9819_v13 = vor.u32 %v11579_v45, %v9816_v15 }
 0x6d7   :  { %v9560_v22 = vld [vmem:[#allocation3 + $0x478] sm:$0xf0]  ;;  %7164 = vmatpush.bf16.msrb.mxu0 %v9307_v28 }
 0x6d8   :  { %v11379_v5 = vld [vmem:[#allocation3 + $0x1c] sm:$0xf]  ;;  %7176 = vmatpush.bf16.msrb.mxu1 %v9595_v9  ;;  %v9563_v55 = vor.u32 %v11515_v41, %v9560_v22 }
 0x6d9   :  { %v9016_v38 = vld [vmem:[#allocation3 + $0x38] sm:$0xf0]  ;;  %7190 = vmatpush.bf16.msrb.mxu2 %v9819_v13 }
 0x6da   :  { %v11443_v52 = vld [vmem:[#allocation3 + $0x21c] sm:$0xf]  ;;  %v9019_v29 = vor.u32 %v11379_v5, %v9016_v38 }
 0x6db   :  { %v9272_v47 = vld [vmem:[#allocation3 + $0x238] sm:$0xf0] }
 0x6dc   :  { %v11571_v14 = vld [vmem:[#allocation3 + $0x61c] sm:$0xf]  ;;  %v9275_v35 = vor.u32 %v11443_v52, %v9272_v47  ;;  %7177 = vmatpush.bf16.msrb.mxu1 %v9563_v55  ;;  %7152 = vmatpush.bf16.msra.mxu3 %v9019_v29  ;;  %v7279_v55 = vsel %vm291_vm2, %v12841_v25, 0.0 }
 0x6dd   :  { %v9784_v42 = vld [vmem:[#allocation3 + $0x638] sm:$0xf0] }
 0x6de   :  { %v11691_v44 = vld [vmem:[#allocation3 + $0x9dc] sm:$0xf]  ;;  %v9787_v46 = vor.u32 %v11571_v14, %v9784_v42  ;;  %7165 = vmatpush.bf16.msrb.mxu0 %v9275_v35  ;;  %v7280_v35 = vrot.slane %v7279_v55, 4 }
 0x6df   :  { %v10264_v60 = vld [vmem:[#allocation3 + $0x9f8] sm:$0xf0]  ;;  %7153 = vmatmul.bf16.vlgmr.msra.gmra.mxu3 %v12581_v50 }
 0x6e0   :  { %v11755_v56 = vld [vmem:[#allocation3 + $0xbdc] sm:$0xf]  ;;  %v10267_v8 = vor.u32 %v11691_v44, %v10264_v60  ;;  %7191 = vmatpush.bf16.msrb.mxu2 %v9787_v46 }
 0x6e1   :  { %v10520_v58 = vld [vmem:[#allocation3 + $0xbf8] sm:$0xf0]  ;;  %7166 = vmatmul.bf16.vlgmr.msrb.gmra.mxu0 %v12589_v2 }
 0x6e2   :  { %v11883_v34 = vld [vmem:[#allocation3 + $0xfdc] sm:$0xf]  ;;  %v10523_v40 = vor.u32 %v11755_v56, %v10520_v58  ;;  %7197 = vmatpush.bf16.msrb.mxu3 %v10267_v8  ;;  %v7319_v56 = vmul.f32 %v12841_v25, %v12841_v25 }
 0x6e3   :  { %v11032_v3 = vld [vmem:[#allocation3 + $0xff8] sm:$0xf0]  ;;  %7192 = vmatmul.bf16.vlgmr.msrb.gmra.mxu2 %v12585_v11 }
 0x6e4   :  { %v11507_v59 = vld [vmem:[#allocation3 + $0x41c] sm:$0xf]  ;;  %v11035_v6 = vor.u32 %v11883_v34, %v11032_v3  ;;  %7210 = vmatpush.bf16.msra.mxu0 %v10523_v40  ;;  %v6972_v40 = vpop.f32.mrf.mxu1 }
 0x6e5   :  { %v9528_v49 = vld [vmem:[#allocation3 + $0x438] sm:$0xf0] }
 0x6e6   :  { %v11819_v7 = vld [vmem:[#allocation3 + $0xddc] sm:$0xf]  ;;  %v9531_v10 = vor.u32 %v11507_v59, %v9528_v49  ;;  %7236 = vmatpush.bf16.msra.mxu2 %v11035_v6  ;;  %v6959_v59 = vpop.f32.mrf.mxu0 }
 0x6e7   :  { %v10776_v61 = vld [vmem:[#allocation3 + $0xdf8] sm:$0xf0] }
 0x6e8   :  { %v11683_v30 = vld [vmem:[#allocation3 + $0x99c] sm:$0xf]  ;;  %v10779_v27 = vor.u32 %v11819_v7, %v10776_v61  ;;  %7178 = vmatpush.bf16.msrb.mxu1 %v9531_v10 }
 0x6e9   :  { %v10232_v54 = vld [vmem:[#allocation3 + $0x9b8] sm:$0xf0] }
 0x6ea   :  { %v11747_v12 = vld [vmem:[#allocation3 + $0xb9c] sm:$0xf]  ;;  %v10235_v20 = vor.u32 %v11683_v30, %v10232_v54  ;;  %v7351_v30 = vsel %vm291_vm2, %v7319_v56, 0.0 }
 0x6eb   :  { %v10488_v23 = vld [vmem:[#allocation3 + $0xbb8] sm:$0xf0]  ;;  %7179 = vmatmul.bf16.vlgmr.msrb.gmra.mxu1 %v12593_v4 }
 0x6ec   :  { %v11875_v53 = vld [vmem:[#allocation3 + $0xf9c] sm:$0xf]  ;;  %v10491_v45 = vor.u32 %v11747_v12, %v10488_v23  ;;  %7223 = vmatpush.bf16.msra.mxu1 %v10779_v27  ;;  %7198 = vmatpush.bf16.msrb.mxu3 %v10235_v20  ;;  %v7281_v20 = vadd.f32 %v7280_v35, %v7279_v55 }
 0x6ed   :  { %v11000_v63 = vld [vmem:[#allocation3 + $0xfb8] sm:$0xf0] }
 0x6ee   :  { %v11811_v43 = vld [vmem:[#allocation3 + $0xd9c] sm:$0xf]  ;;  %v11003_v32 = vor.u32 %v11875_v53, %v11000_v63  ;;  %7211 = vmatpush.bf16.msra.mxu0 %v10491_v45  ;;  %v7352_v45 = vrot.slane %v7351_v30, 4 }
 0x6ef   :  { %v10744_v16 = vld [vmem:[#allocation3 + $0xdb8] sm:$0xf0] }
 0x6f0   :  { %v11675_v15 = vld [vmem:[#allocation3 + $0x95c] sm:$0xf]  ;;  %v10747_v22 = vor.u32 %v11811_v43, %v10744_v16  ;;  %7237 = vmatpush.bf16.msra.mxu2 %v11003_v32  ;;  %v6946_v16 = vpop.f32.mrf.mxu3 }
 0x6f1   :  { %v10200_v21 = vld [vmem:[#allocation3 + $0x978] sm:$0xf0] }
 0x6f2   :  { %v11739_v9 = vld [vmem:[#allocation3 + $0xb5c] sm:$0xf]  ;;  %v10203_v5 = vor.u32 %v11675_v15, %v10200_v21  ;;  %7224 = vmatpush.bf16.msra.mxu1 %v10747_v22 }
 0x6f3   :  { %v10456_v41 = vld [vmem:[#allocation3 + $0xb78] sm:$0xf0] }
 0x6f4   :  { %v11867_v24 = vld [vmem:[#allocation3 + $0xf5c] sm:$0xf]  ;;  %v10459_v38 = vor.u32 %v11739_v9, %v10456_v41  ;;  %7199 = vmatpush.bf16.msrb.mxu3 %v10203_v5  ;;  %v6960_v9 = vadd.f32 %v6959_v59, %v6946_v16  ;;  %v6985_v41 = vpop.f32.mrf.mxu2 }
 0x6f5   :  { %v10968_v18 = vld [vmem:[#allocation3 + $0xf78] sm:$0xf0] }
 0x6f6   :  { %v11803_v26 = vld [vmem:[#allocation3 + $0xd5c] sm:$0xf]  ;;  %v10971_v13 = vor.u32 %v11867_v24, %v10968_v18  ;;  %7212 = vmatpush.bf16.msra.mxu0 %v10459_v38  ;;  %v6973_v38 = vadd.f32 %v6972_v40, %v6960_v9 }
 0x6f7   :  { %v10712_v17 = vld [vmem:[#allocation3 + $0xd78] sm:$0xf0] }
 0x6f8   :  { %v11667_v28 = vld [vmem:[#allocation3 + $0x91c] sm:$0xf]  ;;  %v10715_v50 = vor.u32 %v11803_v26, %v10712_v17  ;;  %7238 = vmatpush.bf16.msra.mxu2 %v10971_v13 }
 0x6f9   :  { %v10168_v52 = vld [vmem:[#allocation3 + $0x938] sm:$0xf0] }
 0x6fa   :  { %v11731_v47 = vld [vmem:[#allocation3 + $0xb1c] sm:$0xf]  ;;  %v10171_v2 = vor.u32 %v11667_v28, %v10168_v52  ;;  %7225 = vmatpush.bf16.msra.mxu1 %v10715_v50  ;;  %v6961_v28 = vpop.f32.mrf.mxu0  ;;  %v7353_v50 = vadd.f32 %v7352_v45, %v7351_v30 }
 0x6fb   :  { %v10424_v14 = vld [vmem:[#allocation3 + $0xb38] sm:$0xf0] }
 0x6fc   :  { %v11859_v36 = vld [vmem:[#allocation3 + $0xf1c] sm:$0xf]  ;;  %v10427_v44 = vor.u32 %v11731_v47, %v10424_v14  ;;  %7200 = vmatpush.bf16.msrb.mxu3 %v10171_v2  ;;  %v7282_v14 = vrot.slane %v7281_v20, 2 }
 0x6fd   :  { %v10936_v37 = vld [vmem:[#allocation3 + $0xf38] sm:$0xf0] }
 0x6fe   :  { %v11795_v42 = vld [vmem:[#allocation3 + $0xd1c] sm:$0xf]  ;;  %v10939_v4 = vor.u32 %v11859_v36, %v10936_v37  ;;  %7213 = vmatpush.bf16.msra.mxu0 %v10427_v44 }
 0x6ff   :  { %v10680_v11 = vld [vmem:[#allocation3 + $0xd38] sm:$0xf0] }
 0x700   :  { %v11659_v60 = vld [vmem:[#allocation3 + $0x8dc] sm:$0xf]  ;;  %v10683_v31 = vor.u32 %v11795_v42, %v10680_v11  ;;  %7239 = vmatpush.bf16.msra.mxu2 %v10939_v4  ;;  %v6986_v42 = vadd.f32 %v6985_v41, %v6973_v38  ;;  %v6974_v11 = vpop.f32.mrf.mxu1 }
 0x701   :  { %v10136_v51 = vld [vmem:[#allocation3 + $0x8f8] sm:$0xf0] }
 0x702   :  { %v11723_v58 = vld [vmem:[#allocation3 + $0xadc] sm:$0xf]  ;;  %v10139_v46 = vor.u32 %v11659_v60, %v10136_v51  ;;  %7226 = vmatpush.bf16.msra.mxu1 %v10683_v31  ;;  %v6948_v31 = vpop.f32.mrf.mxu3 }
 0x703   :  { %v10392_v34 = vld [vmem:[#allocation3 + $0xaf8] sm:$0xf0] }
 0x704   :  { %v11851_v29 = vld [vmem:[#allocation3 + $0xedc] sm:$0xf]  ;;  %v10395_v7 = vor.u32 %v11723_v58, %v10392_v34  ;;  %7201 = vmatpush.bf16.msrb.mxu3 %v10139_v46 }
 0x705   :  { %v10904_v3 = vld [vmem:[#allocation3 + $0xef8] sm:$0xf0] }
 0x706   :  { %v11787_v49 = vld [vmem:[#allocation3 + $0xcdc] sm:$0xf]  ;;  %v10907_v6 = vor.u32 %v11851_v29, %v10904_v3  ;;  %7214 = vmatpush.bf16.msra.mxu0 %v10395_v7  ;;  %v7283_v29 = vadd.f32 %v7282_v14, %v7281_v20  ;;  %v7354_v3 = vrot.slane %v7353_v50, 2 }
 0x707   :  { %v10648_v1 = vld [vmem:[#allocation3 + $0xcf8] sm:$0xf0] }
 0x708   :  { %v11651_v61 = vld [vmem:[#allocation3 + $0x89c] sm:$0xf]  ;;  %v10651_v12 = vor.u32 %v11787_v49, %v10648_v1  ;;  %7240 = vmatpush.bf16.msra.mxu2 %v10907_v6  ;;  %v6987_v1 = vpop.f32.mrf.mxu2  ;;  %v7284_v7 = vrot.slane %v7283_v29, 1 }
 0x709   :  { %v10104_v8 = vld [vmem:[#allocation3 + $0x8b8] sm:$0xf0] }
 0x70a   :  { %v11715_v10 = vld [vmem:[#allocation3 + $0xa9c] sm:$0xf]  ;;  %v10107_v53 = vor.u32 %v11651_v61, %v10104_v8  ;;  %7227 = vmatpush.bf16.msra.mxu1 %v10651_v12  ;;  %v7355_v61 = vadd.f32 %v7354_v3, %v7353_v50  ;;  %v7285_v8 = vadd.f32 %v7284_v7, %v7283_v29  ;;  %v7011_v12 = vpop.f32.mrf.mxu0 }
 0x70b   :  { %v10360_v54 = vld [vmem:[#allocation3 + $0xab8] sm:$0xf0] }
 0x70c   :  { %v11843_v23 = vld [vmem:[#allocation3 + $0xe9c] sm:$0xf]  ;;  %v10363_v15 = vor.u32 %v11715_v10, %v10360_v54  ;;  %7202 = vmatpush.bf16.msrb.mxu3 %v10107_v53  ;;  %v7356_v40 = vrot.slane %v7355_v61, 1  ;;  %v12862_v30 = vmul.f32 %v7285_v8, %v12239_v0 }
 0x70d   :  { %v10872_v27 = vld [vmem:[#allocation3 + $0xeb8] sm:$0xf0] }
 0x70e   :  { %v11779_v63 = vld [vmem:[#allocation3 + $0xc9c] sm:$0xf]  ;;  %v10875_v22 = vor.u32 %v11843_v23, %v10872_v27  ;;  %7215 = vmatpush.bf16.msra.mxu0 %v10363_v15  ;;  %v7357_v6 = vadd.f32 %v7356_v40, %v7355_v61  ;;  %v7391_v54 = vmul.f32 %v12862_v30, %v12862_v30  ;;  %v7024_v23 = vpop.f32.mrf.mxu1  ;;  %v6998_v27 = vpop.f32.mrf.mxu3  ;;  %v7407_v7 = vsub.f32 %v12841_v25, %v12862_v30 }
 0x70f   :  { %v10616_v43 = vld [vmem:[#allocation3 + $0xcb8] sm:$0xf0] }
 0x710   :  { %v11643_v32 = vld [vmem:[#allocation3 + $0x85c] sm:$0xf]  ;;  %v10619_v26 = vor.u32 %v11779_v63, %v10616_v43  ;;  %7241 = vmatpush.bf16.msra.mxu2 %v10875_v22  ;;  %v7383_v10 = vmul.f32 %v7357_v6, %v12239_v0  ;;  %v7037_v53 = vpop.f32.mrf.mxu2 }
 0x711   :  { %v10072_v21 = vld [vmem:[#allocation3 + $0x878] sm:$0xf0] }
 0x712   :  { %v11707_v24 = vld [vmem:[#allocation3 + $0xa5c] sm:$0xf]  ;;  %v10075_v13 = vor.u32 %v11643_v32, %v10072_v21  ;;  %7228 = vmatpush.bf16.msra.mxu1 %v10619_v26 }
 0x713   :  { %v10328_v18 = vld [vmem:[#allocation3 + $0xa78] sm:$0xf0] }
 0x714   :  { %v11835_v17 = vld [vmem:[#allocation3 + $0xe5c] sm:$0xf]  ;;  %v10331_v36 = vor.u32 %v11707_v24, %v10328_v18  ;;  %7203 = vmatpush.bf16.msrb.mxu3 %v10075_v13 }
 0x715   :  { %v10840_v5 = vld [vmem:[#allocation3 + $0xe78] sm:$0xf0] }
 0x716   :  { %v11771_v52 = vld [vmem:[#allocation3 + $0xc5c] sm:$0xf]  ;;  %v10843_v2 = vor.u32 %v11835_v17, %v10840_v5  ;;  %7216 = vmatpush.bf16.msra.mxu0 %v10331_v36  ;;  %v7000_v45 = vpop.f32.mrf.mxu3 }
 0x717   :  { %v10584_v47 = vld [vmem:[#allocation3 + $0xc78] sm:$0xf0] }
 0x718   :  { %v11635_v37 = vld [vmem:[#allocation3 + $0x81c] sm:$0xf]  ;;  %v10587_v55 = vor.u32 %v11771_v52, %v10584_v47  ;;  %7242 = vmatpush.bf16.msra.mxu2 %v10843_v2  ;;  %v7039_v21 = vpop.f32.mrf.mxu2 }
 0x719   :  { %v10040_v44 = vld [vmem:[#allocation3 + $0x838] sm:$0xf0] }
 0x71a   :  { %v11699_v60 = vld [vmem:[#allocation3 + $0xa1c] sm:$0xf]  ;;  %v10043_v59 = vor.u32 %v11635_v37, %v10040_v44  ;;  %7229 = vmatpush.bf16.msra.mxu1 %v10587_v55 }
 0x71b   :  { %v10296_v51 = vld [vmem:[#allocation3 + $0xa38] sm:$0xf0] }
 0x71c   :  { %v11827_v56 = vld [vmem:[#allocation3 + $0xe1c] sm:$0xf]  ;;  %v10299_v49 = vor.u32 %v11699_v60, %v10296_v51  ;;  %7204 = vmatpush.bf16.msrb.mxu3 %v10043_v59 }
 0x71d   :  { %v10808_v4 = vld [vmem:[#allocation3 + $0xe38] sm:$0xf0] }
 0x71e   :  { %v11763_v58 = vld [vmem:[#allocation3 + $0xc1c] sm:$0xf]  ;;  %v10811_v35 = vor.u32 %v11827_v56, %v10808_v4  ;;  %7217 = vmatpush.bf16.msra.mxu0 %v10299_v49  ;;  %v7050_v4 = vpop.f32.mrf.mxu3 }
 0x71f   :  { %v10552_v34 = vld [vmem:[#allocation3 + $0xc38] sm:$0xf0]  ;;  %7205 = vmatmul.bf16.vlgmr.msrb.gmra.mxu3 %v12601_v19  ;;  %v7399_v19 = vsub.f32 %v7383_v10, %v7391_v54  ;;  %v7512_v10 = vperm.slane %v12811_v57, 4 }
 0x720   :  { %v10555_v46 = vor.u32 %v11763_v58, %v10552_v34  ;;  %7243 = vmatpush.bf16.msra.mxu2 %v10811_v35  ;;  %v7089_v34 = vpop.f32.mrf.mxu2 }
 0x721   :  { %7218 = vmatmul.bf16.vlgmr.msra.gmra.mxu0 %v12609_v39  ;;  %v6999_v39 = vadd.f32 %v6998_v27, %v6986_v42  ;;  %v7415_v43 = vadd.f32 0.8, %v7399_v19  ;;  %v7537_v19 = vperm.slane %v12820_v33, 4 }
 0x722   :  { %7230 = vmatpush.bf16.msra.mxu1 %v10555_v46 }
 0x723   :  { %7244 = vmatmul.bf16.vlgmr.msra.gmra.mxu2 %v12605_v62  ;;  %v7012_v63 = vadd.f32 %v7011_v12, %v6999_v39  ;;  %v7013_v62 = vpop.f32.mrf.mxu0  ;;  %11949 = vrsqrt.f32 %v7415_v43  ;;  %vm7465_vm4 = vweird.f32 %v7415_v43 }
 0x725   :  { %7231 = vmatmul.bf16.vlgmr.msra.gmra.mxu1 %v12614_v48  ;;  %v7025_v16 = vadd.f32 %v7024_v23, %v7012_v63  ;;  %v7026_v48 = vpop.f32.mrf.mxu1 }
 0x726   :  { %v7052_v61 = vpop.f32.mrf.mxu3 }
 0x727   :  { %v12867_v20 = vadd.f32 %v7037_v53, %v7025_v16  ;;  %v7513_v53 = vperm.slane %v12811_v57, 5 }
 0x728   :  { %v7091_v40 = vpop.f32.mrf.mxu2 }
 0x729   :  { %v7286_v15 = vsel %vm291_vm2, %v12867_v20, 0.0  ;;  %v7320_v32 = vmul.f32 %v12867_v20, %v12867_v20  ;;  %v11950_v18 = vpop.eup %11949 }
 0x72a   :  { %v7287_v9 = vrot.slane %v7286_v15, 4  ;;  %v7460_v28 = vmul.f32 %v11950_v18, %v7415_v43  ;;  %vm7466_vm3 = vweird.f32 %v11950_v18  ;;  %v7538_v43 = vperm.slane %v12820_v33, 5 }
 0x72b   :  { %v7358_v41 = vsel %vm291_vm2, %v7320_v32, 0.0  ;;  %v7063_v44 = vpop.f32.mrf.mxu0  ;;  %vm7467_vm5 = vmor %vm7465_vm4, %vm7466_vm3 }
 0x72c   :  { %v7288_v22 = vadd.f32 %v7287_v9, %v7286_v15  ;;  %v7359_v24 = vrot.slane %v7358_v41, 4  ;;  %v7461_v50 = vmul.f32 %v11950_v18, %v7460_v28  ;;  %v7064_v58 = vadd.f32 %v7063_v44, %v7050_v4 }
 0x72d   :  { %v7076_v51 = vpop.f32.mrf.mxu1 }
 0x72e   :  { %v7289_v26 = vrot.slane %v7288_v22, 2  ;;  %v7360_v17 = vadd.f32 %v7359_v24, %v7358_v41  ;;  %v7462_v2 = vmul.f32 0.5, %v7461_v50  ;;  %v7077_v29 = vadd.f32 %v7076_v51, %v7064_v58 }
 0x730   :  { %v7290_v5 = vadd.f32 %v7289_v26, %v7288_v22  ;;  %v7361_v38 = vrot.slane %v7360_v17, 2  ;;  %v7463_v56 = vsub.f32 1.5, %v7462_v2  ;;  %v7090_v59 = vadd.f32 %v7089_v34, %v7077_v29 }
 0x732   :  { %v7291_v13 = vrot.slane %v7290_v5, 1  ;;  %v7362_v52 = vadd.f32 %v7361_v38, %v7360_v17  ;;  %v7464_v31 = vmul.f32 %v11950_v18, %v7463_v56 }
 0x733   :  { %v7065_v3 = vpop.f32.mrf.mxu0 }
 0x734   :  { %v7292_v47 = vadd.f32 %v7291_v13, %v7290_v5  ;;  %v7363_v14 = vrot.slane %v7362_v52, 1  ;;  %v7468_v35 = vsel %vm7467_vm5, %v11950_v18, %v7464_v31 }
 0x735   :  { %v7078_v49 = vpop.f32.mrf.mxu1  ;;  %v7503_v6 = vmul.f32 %v7468_v35, %v7407_v7 }
 0x736   :  { %v7312_v36 = vmul.f32 %v7292_v47, %v12239_v0  ;;  %v7364_v37 = vadd.f32 %v7363_v14, %v7362_v52 }
 0x737   :  { %v7528_v23 = vmul.f32 %v7512_v10, %v7503_v6 }
 0x738   :  { %v7384_v42 = vmul.f32 %v7364_v37, %v12239_v0  ;;  %v7392_v11 = vmul.f32 %v7312_v36, %v7312_v36  ;;  %v7408_v39 = vsub.f32 %v12867_v20, %v7312_v36 }
 0x739   :  { %v7553_v30 = vadd.f32 %v7537_v19, %v7528_v23 }
 0x73a   :  { %v7400_v60 = vsub.f32 %v7384_v42, %v7392_v11 }
 0x73b   :  { %v7569_v16 = vmul.f32 0.2, %v7553_v30  ;;  %vm7561_vm9 = vcmp.gt.f32.partialorder %v7553_v30, 0.0  ;;  %v7115_v15 = vpop.f32.mrf.mxu0 }
 0x73c   :  { %v7416_v55 = vadd.f32 0.8, %v7400_v60 }
 0x73d   :  { %v7577_v32 = vsel %vm7561_vm9, %v7553_v30, %v7569_v16 }
 0x73e   :  { %11951 = vrsqrt.f32 %v7416_v55  ;;  %vm7475_vm7 = vweird.f32 %v7416_v55 }
 0x73f   :  { %v7102_v20 = vpop.f32.mrf.mxu3 }
 0x740   :  { %v7128_v9 = vpop.f32.mrf.mxu1  ;;  %v7103_v41 = vadd.f32 %v7102_v20, %v7090_v59 }
 0x742   :  { %v7116_v22 = vadd.f32 %v7115_v15, %v7103_v41 }
 0x743   :  { %v7141_v57 = vpop.f32.mrf.mxu2  ;;  %v7117_v18 = vpop.f32.mrf.mxu0 }
 0x744   :  { %v11952_v1 = vpop.eup %11951  ;;  %v7129_v33 = vadd.f32 %v7128_v9, %v7116_v22 }
 0x745   :  { %v7470_v46 = vmul.f32 %v11952_v1, %v7416_v55  ;;  %vm7476_vm6 = vweird.f32 %v11952_v1 }
 0x746   :  { %vm7477_vm8 = vmor %vm7475_vm7, %vm7476_vm6  ;;  %v12886_v28 = vadd.f32 %v7141_v57, %v7129_v33 }
 0x747   :  { %v7471_v8 = vmul.f32 %v11952_v1, %v7470_v46  ;;  %v7104_v13 = vpop.f32.mrf.mxu3 }
 0x748   :  { %v7130_v5 = vpop.f32.mrf.mxu1  ;;  %v7293_v47 = vsel %vm291_vm2, %v12886_v28, 0.0  ;;  %v7321_v14 = vmul.f32 %v12886_v28, %v12886_v28 }
 0x749   :  { %v7472_v54 = vmul.f32 0.5, %v7471_v8  ;;  %v7294_v50 = vrot.slane %v7293_v47, 4 }
 0x74a   :  { %v7365_v36 = vsel %vm291_vm2, %v7321_v14, 0.0 }
 0x74b   :  { %v7473_v12 = vsub.f32 1.5, %v7472_v54  ;;  %v7143_v52 = vpop.f32.mrf.mxu2  ;;  %v7295_v42 = vadd.f32 %v7294_v50, %v7293_v47  ;;  %v7366_v11 = vrot.slane %v7365_v36, 4 }
 0x74d   :  { %v7474_v27 = vmul.f32 %v11952_v1, %v7473_v12  ;;  %v7296_v60 = vrot.slane %v7295_v42, 2  ;;  %v7367_v51 = vadd.f32 %v7366_v11, %v7365_v36 }
 0x74f   :  { %v7478_v25 = vsel %vm7477_vm8, %v11952_v1, %v7474_v27  ;;  %v7297_v4 = vadd.f32 %v7296_v60, %v7295_v42  ;;  %v7368_v58 = vrot.slane %v7367_v51, 2 }
 0x750   :  { %v7504_v63 = vmul.f32 %v7478_v25, %v7408_v39 }
 0x751   :  { %v7298_v29 = vrot.slane %v7297_v4, 1  ;;  %v7369_v3 = vadd.f32 %v7368_v58, %v7367_v51 }
 0x752   :  { %v7529_v62 = vmul.f32 %v7513_v53, %v7504_v63 }
 0x753   :  { %v7299_v49 = vadd.f32 %v7298_v29, %v7297_v4  ;;  %v7370_v1 = vrot.slane %v7369_v3, 1 }
 0x754   :  { %v7554_v48 = vadd.f32 %v7538_v43, %v7529_v62 }
 0x755   :  { %v7313_v35 = vmul.f32 %v7299_v49, %v12239_v0  ;;  %v7371_v46 = vadd.f32 %v7370_v1, %v7369_v3 }
 0x756   :  { %vm7562_vm10 = vcmp.gt.f32.partialorder %v7554_v48, 0.0  ;;  %v7570_v45 = vmul.f32 0.2, %v7554_v48 }
 0x757   :  { %v7385_v61 = vmul.f32 %v7371_v46, %v12239_v0  ;;  %v7393_v8 = vmul.f32 %v7313_v35, %v7313_v35  ;;  %v7409_v60 = vsub.f32 %v12886_v28, %v7313_v35 }
 0x758   :  { %v7578_v21 = vsel %vm7562_vm10, %v7554_v48, %v7570_v45 }
 0x759   :  { %11953 = vtanh.f32 %v7578_v21  ;;  %v7401_v10 = vsub.f32 %v7385_v61, %v7393_v8 }
 0x75a   :  { %11955 = vtanh.f32 %v7577_v32 }
 0x75b   :  { %v7417_v23 = vadd.f32 0.8, %v7401_v10 }
 0x75d   :  { %11957 = vrsqrt.f32 %v7417_v23  ;;  %vm7485_vm11 = vweird.f32 %v7417_v23 }
 0x75e   :  { %v7167_v37 = vpop.f32.mrf.mxu0 }
 0x75f   :  { %v11954_v24 = vpop.eup %11953 }
 0x760   :  { %v7600_v26 = vrot.slane %v11954_v24, 6  ;;  %v11956_v17 = vpop.eup %11955 }
 0x762   :  { %v12884_v38 = vsel %vm291_vm2, %v11956_v17, %v7600_v26  ;;  %v7154_v44 = vpop.f32.mrf.mxu3 }
 0x763   :  { %v7168_v7 = vadd.f32 %v7167_v37, %v7154_v44  ;;  %v11958_v15 = vpop.eup %11957 }
 0x764   :  { %v7480_v41 = vmul.f32 %v11958_v15, %v7417_v23 }
 0x766   :  { %v7193_v55 = vpop.f32.mrf.mxu2  ;;  %v7169_v56 = vpop.f32.mrf.mxu0  ;;  %v7481_v26 = vmul.f32 %v11958_v15, %v7480_v41 }
 0x767   :  { %v11967_v56 = vld [vmem:[#allocation12 + $0x1d] sm:$0xff] }
 0x768   :  { %v7180_v2 = vpop.f32.mrf.mxu1  ;;  %v7482_v52 = vmul.f32 0.5, %v7481_v26  ;;  %v7514_v4 = vperm.slane %v11967_v56, 6 }
 0x769   :  { %v7181_v6 = vadd.f32 %v7180_v2, %v7168_v7  ;;  %v7515_v7 = vperm.slane %v11967_v56, 7 }
 0x76a   :  { %v7156_v31 = vpop.f32.mrf.mxu3  ;;  %v7483_v37 = vsub.f32 1.5, %v7482_v52 }
 0x76b   :  { %v7194_v12 = vadd.f32 %v7193_v55, %v7181_v6 }
 0x76c   :  { %v7484_v2 = vmul.f32 %v11958_v15, %v7483_v37 }
 0x76e   :  { %v7195_v59 = vpop.f32.mrf.mxu2 }
 0x770   :  { %v7182_v34 = vpop.f32.mrf.mxu1 }
 0x79e   :  { %v7219_v40 = vpop.f32.mrf.mxu0 }
 0x7a2   :  { %v7232_v54 = vpop.f32.mrf.mxu1  ;;  %v7206_v19 = vpop.f32.mrf.mxu3 }
 0x7a3   :  { %v7207_v27 = vadd.f32 %v7206_v19, %v7194_v12 }
 0x7a5   :  { %v7220_v25 = vadd.f32 %v7219_v40, %v7207_v27 }
 0x7a6   :  { %v7245_v39 = vpop.f32.mrf.mxu2  ;;  %v7221_v53 = vpop.f32.mrf.mxu0 }
 0x7a7   :  { %v7233_v63 = vadd.f32 %v7232_v54, %v7220_v25 }
 0x7a9   :  { %v7246_v43 = vadd.f32 %v7245_v39, %v7233_v63 }
 0x7aa   :  { %v7234_v30 = vpop.f32.mrf.mxu1  ;;  %v7208_v62 = vpop.f32.mrf.mxu3 }
 0x7ab   :  { %v7300_v16 = vsel %vm291_vm2, %v7246_v43, 0.0  ;;  %v7322_v48 = vmul.f32 %v7246_v43, %v7246_v43 }
 0x7ac   :  { %v7301_v32 = vrot.slane %v7300_v16, 4 }
 0x7ad   :  { %v7372_v21 = vsel %vm291_vm2, %v7322_v48, 0.0  ;;  %vm7486_vm2 = vweird.f32 %v11958_v15 }
 0x7ae   :  { %v7247_v45 = vpop.f32.mrf.mxu2  ;;  %v7302_v9 = vadd.f32 %v7301_v32, %v7300_v16  ;;  %v7373_v20 = vrot.slane %v7372_v21, 4  ;;  %vm7487_vm12 = vmor %vm7485_vm11, %vm7486_vm2 }
 0x7af   :  { %v7488_v44 = vsel %vm7487_vm12, %v11958_v15, %v7484_v2 }
 0x7b0   :  { %v7303_v57 = vrot.slane %v7302_v9, 2  ;;  %v7374_v22 = vadd.f32 %v7373_v20, %v7372_v21  ;;  %v7505_v55 = vmul.f32 %v7488_v44, %v7409_v60 }
 0x7b2   :  { %v7304_v24 = vadd.f32 %v7303_v57, %v7302_v9  ;;  %v7375_v18 = vrot.slane %v7374_v22, 2  ;;  %v7530_v31 = vmul.f32 %v7514_v4, %v7505_v55 }
 0x7b4   :  { %v7305_v33 = vrot.slane %v7304_v24, 1  ;;  %v7376_v17 = vadd.f32 %v7375_v18, %v7374_v22 }
 0x7b6   :  { %v7306_v5 = vadd.f32 %v7305_v33, %v7304_v24  ;;  %v7377_v13 = vrot.slane %v7376_v17, 1 }
 0x7b8   :  { %v7314_v47 = vmul.f32 %v7306_v5, %v12239_v0  ;;  %v7378_v14 = vadd.f32 %v7377_v13, %v7376_v17 }
 0x7ba   :  { %v7386_v50 = vmul.f32 %v7378_v14, %v12239_v0  ;;  %v7394_v36 = vmul.f32 %v7314_v47, %v7314_v47  ;;  %v11968_v0 = vld [vmem:[#allocation12 + $0x25] sm:$0xff]  ;;  %v7410_v46 = vsub.f32 %v7246_v43, %v7314_v47 }
 0x7bb   :  { %v7539_v29 = vperm.slane %v11968_v0, 6  ;;  %v7540_v8 = vperm.slane %v11968_v0, 7 }
 0x7bc   :  { %v7402_v42 = vsub.f32 %v7386_v50, %v7394_v36 }
 0x7bd   :  { %v7555_v49 = vadd.f32 %v7539_v29, %v7530_v31 }
 0x7be   :  { %v7418_v11 = vadd.f32 0.8, %v7402_v42 }
 0x7bf   :  { %v7571_v28 = vmul.f32 0.2, %v7555_v49  ;;  %vm7563_vm3 = vcmp.gt.f32.partialorder %v7555_v49, 0.0 }
 0x7c0   :  { %11959 = vrsqrt.f32 %v7418_v11  ;;  %vm7495_vm14 = vweird.f32 %v7418_v11 }
 0x7c1   :  { %v7579_v6 = vsel %vm7563_vm3, %v7555_v49, %v7571_v28 }
 0x7c2   :  { %11961 = vtanh.f32 %v7579_v6 }
 0x7c6   :  { %v11960_v51 = vpop.eup %11959 }
 0x7c7   :  { %v7490_v58 = vmul.f32 %v11960_v51, %v7418_v11  ;;  %vm7496_vm13 = vweird.f32 %v11960_v51 }
 0x7c8   :  { %vm7497_vm15 = vmor %vm7495_vm14, %vm7496_vm13  ;;  %v11962_v23 = vpop.eup %11961 }
 0x7c9   :  { %v7491_v34 = vmul.f32 %v11960_v51, %v7490_v58  ;;  %v7601_v27 = vrot.slane %v11962_v23, 4 }
 0x7cb   :  { %v7492_v3 = vmul.f32 0.5, %v7491_v34 }
 0x7cd   :  { %v7493_v59 = vsub.f32 1.5, %v7492_v3 }
 0x7cf   :  { %v7494_v1 = vmul.f32 %v11960_v51, %v7493_v59 }
 0x7d1   :  { %v7498_v61 = vsel %vm7497_vm15, %v11960_v51, %v7494_v1 }
 0x7d2   :  { %v7506_v35 = vmul.f32 %v7498_v61, %v7410_v46 }
 0x7d4   :  { %v7531_v40 = vmul.f32 %v7515_v7, %v7506_v35 }
 0x7d6   :  { %v7556_v10 = vadd.f32 %v7540_v8, %v7531_v40 }
 0x7d8   :  { %vm7564_vm4 = vcmp.gt.f32.partialorder %v7556_v10, 0.0  ;;  %v7572_v54 = vmul.f32 0.2, %v7556_v10 }
 0x7da   :  { %v7580_v12 = vsel %vm7564_vm4, %v7556_v10, %v7572_v54 }
 0x7db   :  { %11963 = vtanh.f32 %v7580_v12 }
 0x7e1   :  { %v11964_v19 = vpop.eup %11963 }
 0x7e2   :  { %v7602_v39 = vrot.slane %v11964_v19, 2 }
 0x7e4   :  { %v7609_v53 = vsel %vm7604_vm0, %v7601_v27, %v7602_v39 }
 0x7e5   :  { %v7610_v25 = vsel %vm7606_vm1, %v12884_v38, %v7609_v53 }
 0x7e6   :  { %7614 = vst [vmem:[%s12913_s7 + $0x8] sm:$0xff] %v7610_v25 }
 0x7e7   :  { %7619 = vsyncpa [#allocation6], 1 }
 0x7e8   :  { %7620 = vsyncpa [#allocation8], 1 }
 0x7e9   :  { %7621 = vsyncpa [#allocation11], 1 }
 0x7ea   :  { %7622 = vsyncmov [#allocation4] }
 0x7ed   :  { %s7623_s15 = vpop.sfrf %7622 }
 0x7ee   :  { %p11036_p0 = scmp.ne.s32.totalorder %s7623_s15, 0 }
 0x7f0   :  { %7627 = shalt.err (%p11036_p0)  }
 0x7f1   :  { %7629 = vsyncmov [#allocation4 + $0x1] }
 0x7f4   :  { %s7630_s16 = vpop.sfrf %7629 }
 0x7f5   :  { %p11037_p1 = scmp.ne.s32.totalorder %s7630_s16, 0 }
 0x7f7   :  { %7634 = shalt.err (%p11037_p1)  }

</bundles_post_ra>
